<compile_context>
chip_gen: v7x
topology: tpu7x:2x2x1
jax: 0.10.0
libtpu: 0.0.40
codegen_flags: <defaults>
</compile_context>

<pallas_src>
import functools

import jax
import jax.numpy as jnp
import numpy as np
from jax.experimental import pallas as pl
from jax.experimental.pallas import tpu as pltpu


def bottleneck_kernel(W, TH, x_ref, w1_ref, b1_ref, w2_ref, b2_ref,
                      w3_ref, b3_ref, o_ref, h1pad_ref):
    planes = w1_ref.shape[1]
    rt = pl.program_id(1)
    r0 = rt * TH                                   # first output image row

    # ---- conv1 (1x1, folded bn1) + relu over TH+2 padded-image rows:
    #      ONE matmul + ONE scratch store (x is row-padded wrapper-side). ----
    start = pl.multiple_of(r0 * W, W)
    xi = x_ref[0, pl.ds(start, (TH + 2) * W), :]               # bf16
    h1 = jnp.dot(xi, w1_ref[...], preferred_element_type=jnp.float32)
    h1 = jnp.maximum(h1 + b1_ref[...], 0.0).astype(jnp.bfloat16)
    h1pad_ref[:, 1:W + 1, :] = h1.reshape(TH + 2, W, planes)

    # Border init: only the two pad columns every step; the top/bottom pad row
    # only on the first/last tile (the interior is fully overwritten anyway).
    h1pad_ref[:, 0:1, :] = jnp.zeros((TH + 2, 1, planes), jnp.bfloat16)
    h1pad_ref[:, W + 1:W + 2, :] = jnp.zeros((TH + 2, 1, planes), jnp.bfloat16)

    @pl.when(rt == 0)
    def _():
        h1pad_ref[0:1, :, :] = jnp.zeros((1, W + 2, planes), jnp.bfloat16)

    @pl.when(rt == pl.num_programs(1) - 1)
    def _():
        h1pad_ref[TH + 1:TH + 2, :, :] = jnp.zeros((1, W + 2, planes),
                                                   jnp.bfloat16)

    # ---- conv2 (3x3, folded bn2): nine accumulating MXU matmuls; no 9-way
    #      lane concat, no (TH*W, 9*planes) patches buffer. ----
    acc = jnp.zeros((TH * W, planes), jnp.float32)
    for dy in range(3):
        for dx in range(3):
            tap = dy * 3 + dx
            patch = h1pad_ref[dy:dy + TH, dx:dx + W, :].reshape(TH * W, planes)
            w_tap = w2_ref[tap * planes:(tap + 1) * planes, :]
            acc = acc + jnp.dot(patch, w_tap,
                                preferred_element_type=jnp.float32)
    h2 = jnp.maximum(acc + b2_ref[...], 0.0).astype(jnp.bfloat16)

    # ---- conv3 (1x1, folded bn3) + identity residual + relu (bf16 out) ----
    h3 = jnp.dot(h2, w3_ref[...], preferred_element_type=jnp.float32)
    h3 = h3 + b3_ref[...]
    res_start = pl.multiple_of((r0 + 1) * W, W)    # +W skips the top pad row
    res = x_ref[0, pl.ds(res_start, TH * W), :].astype(jnp.float32)
    o_ref[0] = jnp.maximum(h3 + res, 0.0).astype(o_ref.dtype)


def fold_params(p):
    """Fold eval-mode BN scales into conv weights (bf16), keep f32 biases."""
    planes = p["w1"].shape[1]
    w1 = (p["w1"] * p["s1"]).astype(jnp.bfloat16)                      # (Cin, P)
    w2_hwio = (p["w2"] * p["s2"].reshape(1, 1, 1, planes)).astype(jnp.bfloat16)
    w3 = (p["w3"] * p["s3"]).astype(jnp.bfloat16)                      # (P, 4P)
    return {"w1": w1, "w2_hwio": w2_hwio,
            "w2": w2_hwio.reshape(9 * planes, planes),
            "w3": w3, "b1": p["b1"], "b2": p["b2"], "b3": p["b3"]}


def _vmem_capacity_bytes():
    try:
        return int(getattr(pltpu.get_tpu_info(), "vmem_capacity_bytes",
                           64 * 1024 * 1024))
    except Exception:
        return 64 * 1024 * 1024


def pick_tile_rows(H, W, planes, vmem_cap):
    """Row tile derived from VMEM: TH*W >= 256 fills the MXU M dim on
    v6e/v7x, but the per-tile working set must fit a slice of VMEM (v7x has
    only 64 MiB, half of v5e/v6e)."""
    cout = 4 * planes
    budget = vmem_cap // 4

    def tile_bytes(th):
        rows = th * W
        return ((th + 2) * (W + 2) * planes * 2       # h1pad scratch (bf16)
                + rows * (planes + cout) * 4          # f32 conv2/conv3 accum
                + 2 * rows * cout * 2)                # double-buffered bf16 out

    fits = [th for th in range(1, H + 1)
            if H % th == 0 and ((th * W) % 8 == 0 or th == H)
            and tile_bytes(th) <= budget]
    if not fits:
        raise ValueError("feature map too large for resident row tiling; "
                         "needs explicit halo DMA path")  # guard, no silent OOM
    big_enough = [th for th in fits if th * W >= 256]
    return min(big_enough) if big_enough else max(fits)


def bottleneck_pallas(x_nhwc, fp, tile_rows=None):
    N, H, W, Cin = x_nhwc.shape
    planes = fp["w1"].shape[1]
    Cout = planes * 4
    assert Cin == Cout, "identity residual requires inplanes == 4 * planes"

    vmem_cap = _vmem_capacity_bytes()
    TH = tile_rows if tile_rows is not None else pick_tile_rows(
        H, W, planes, vmem_cap)
    assert H % TH == 0 and ((TH * W) % 8 == 0 or TH == H)
    n_rt = H // TH
    vmem_limit = int(min(96 * 1024 * 1024, vmem_cap * 3 // 4))

    # bf16 input (halves the dominant HBM read); one zero image row padded at
    # the top and bottom so conv1 of every tile is a single merged matmul.
    # TODO(synk): for very large feature maps, switch the x spec to a
    # row-tiled block with explicit halo DMA instead of a full-image block.
    x_flat = x_nhwc.astype(jnp.bfloat16).reshape(N, H * W, Cin)
    x_pad = jnp.pad(x_flat, ((0, 0), (W, W), (0, 0)))

    cost = pl.CostEstimate(
        flops=2 * N * H * W * (Cin * planes + 9 * planes * planes
                               + planes * Cout),
        transcendentals=0,
        bytes_accessed=int(x_pad.size * 2 + N * H * W * Cout * 2
                           + (fp["w1"].size + fp["w2"].size + fp["w3"].size) * 2
                           + (fp["b1"].size + fp["b2"].size + fp["b3"].size) * 4))

    def make_call(use_buffered):
        def const_spec(a):
            if use_buffered:
                # Block index never changes -> one VMEM buffer is enough
                # (saves double-buffer VMEM, which matters on v7x's 64 MiB).
                return pl.BlockSpec(a.shape, lambda n, rt: (0, 0),
                                    pipeline_mode=pl.Buffered(1))
            return pl.BlockSpec(a.shape, lambda n, rt: (0, 0))

        return pl.pallas_call(
            functools.partial(bottleneck_kernel, W, TH),
            out_shape=jax.ShapeDtypeStruct((N, H * W, Cout), jnp.bfloat16),
            grid_spec=pltpu.PrefetchScalarGridSpec(
                num_scalar_prefetch=0,
                grid=(N, n_rt),
                in_specs=[
                    pl.BlockSpec((1, (H + 2) * W, Cin), lambda n, rt: (n, 0, 0)),
                    const_spec(fp["w1"]), const_spec(fp["b1"]),
                    const_spec(fp["w2"]), const_spec(fp["b2"]),
                    const_spec(fp["w3"]), const_spec(fp["b3"]),
                ],
                out_specs=pl.BlockSpec((1, TH * W, Cout),
                                       lambda n, rt: (n, rt, 0)),
                scratch_shapes=[
                    pltpu.VMEM((TH + 2, W + 2, planes), jnp.bfloat16)],
            ),
            # "parallel" on both axes lets the runtime shard grid steps across
            # TensorCores (2 on v7x); CORE_PARALLEL is a possible further
            # tweak but kept off for portability across v5e/v6e/v7x.
            compiler_params=pltpu.CompilerParams(
                dimension_semantics=("parallel", "parallel"),
                vmem_limit_bytes=vmem_limit),
            cost_estimate=cost,
        )

    args = (x_pad, fp["w1"], fp["b1"], fp["w2"], fp["b2"], fp["w3"], fp["b3"])
    use_buffered = hasattr(pl, "Buffered")
    try:
        out = jax.block_until_ready(make_call(use_buffered)(*args))
    except Exception:
        if not use_buffered:
            raise
        out = jax.block_until_ready(make_call(False)(*args))
    return out.reshape(N, H, W, Cout)


def ref_bottleneck(x_nhwc, fp):
    """Pure-JAX reference (NHWC, eval-mode BN), same bf16 quantization points
    as the kernel (bf16 x / weights, f32 accumulation)."""
    xb = x_nhwc.astype(jnp.bfloat16)

    def conv(x, w, pad):
        return jax.lax.conv_general_dilated(
            x.astype(jnp.bfloat16), w, window_strides=(1, 1), padding=pad,
            dimension_numbers=("NHWC", "HWIO", "NHWC"),
            preferred_element_type=jnp.float32)

    Cin = x_nhwc.shape[-1]
    planes = fp["w1"].shape[1]
    h = conv(xb, fp["w1"].reshape(1, 1, Cin, planes), "VALID")
    h = jnp.maximum(h + fp["b1"][0], 0.0)
    h = conv(h, fp["w2_hwio"], ((1, 1), (1, 1)))
    h = jnp.maximum(h + fp["b2"][0], 0.0)
    h = conv(h, fp["w3"].reshape(1, 1, planes, planes * 4), "VALID")
    h = h + fp["b3"][0]
    return jnp.maximum(h + xb.astype(jnp.float32), 0.0)


def make_params(key, inplanes, planes):
    ks = jax.random.split(key, 6)

    def bn_fold(k, c):
        k1, k2, k3, k4 = jax.random.split(k, 4)
        gamma = jax.random.uniform(k1, (c,), minval=0.5, maxval=1.5)
        beta = jax.random.normal(k2, (c,)) * 0.1
        mean = jax.random.normal(k3, (c,)) * 0.1
        var = jax.random.uniform(k4, (c,), minval=0.5, maxval=1.5)
        scale = gamma / jnp.sqrt(var + 1e-5)
        bias = beta - mean * scale
        return (scale.reshape(1, c).astype(jnp.float32),
                bias.reshape(1, c).astype(jnp.float32))

    s1, b1 = bn_fold(ks[3], planes)
    s2, b2 = bn_fold(ks[4], planes)
    s3, b3 = bn_fold(ks[5], planes * 4)
    return {
        # conv weights stored in matmul / HWIO layouts (transpose of OIHW)
        "w1": (jax.random.normal(ks[0], (inplanes, planes)) * 0.1).astype(jnp.float32),
        "w2": (jax.random.normal(ks[1], (3, 3, planes, planes)) * 0.1).astype(jnp.float32),
        "w3": (jax.random.normal(ks[2], (planes, planes * 4)) * 0.1).astype(jnp.float32),
        "s1": s1, "b1": b1, "s2": s2, "b2": b2, "s3": s3, "b3": b3,
    }


if __name__ == "__main__":
    planes = 32                      # Cout = 128 -> lane-dense output stores
    inplanes = planes * 4            # identity residual path (downsample=None)
    N, H, W = 2, 16, 16

    key = jax.random.PRNGKey(0)
    kx, kp = jax.random.split(key)
    x_nchw = jax.random.normal(kx, (N, inplanes, H, W), dtype=jnp.float32)
    x_nhwc = jnp.transpose(x_nchw, (0, 2, 3, 1))

    params = make_params(kp, inplanes, planes)
    fp = fold_params(params)

    out = jax.block_until_ready(bottleneck_pallas(x_nhwc, fp))
    ref = jax.block_until_ready(ref_bottleneck(x_nhwc, fp))
    np.testing.assert_allclose(np.asarray(out.astype(jnp.float32)),
                               np.asarray(ref), rtol=2e-2, atol=2e-2)
    print("KERNEL_OK")
</pallas_src>

<mosaic_0001>
module attributes {stable_mosaic.version = 11 : i64} {
  func.func @bottleneck_kernel(%arg0: i32, %arg1: i32, %arg2: memref<1x288x128xbf16, #tpu.memory_space<vmem>>, %arg3: memref<128x32xbf16, #tpu.memory_space<vmem>>, %arg4: memref<1x32xf32, #tpu.memory_space<vmem>>, %arg5: memref<288x32xbf16, #tpu.memory_space<vmem>>, %arg6: memref<1x32xf32, #tpu.memory_space<vmem>>, %arg7: memref<32x128xbf16, #tpu.memory_space<vmem>>, %arg8: memref<1x128xf32, #tpu.memory_space<vmem>>, %arg9: memref<1x256x128xbf16, #tpu.memory_space<vmem>>, %arg10: memref<18x18x32xbf16, #tpu.memory_space<vmem>>) attributes {dimension_semantics = [#tpu.dimension_semantics<parallel>, #tpu.dimension_semantics<parallel>], iteration_bounds = array<i64: 2, 1>, scalar_prefetch = 0 : i64, scratch_operands = 1 : i64, tpu.core_type = #tpu.core_type<tc>, window_params = [{transform_indices = @transform_0, window_bounds = array<i64: 1, 288, 128>}, {pipeline_mode = #tpu.pipeline_mode<synchronous>, transform_indices = @transform_1, window_bounds = array<i64: 128, 32>}, {pipeline_mode = #tpu.pipeline_mode<synchronous>, transform_indices = @transform_2, window_bounds = array<i64: 1, 32>}, {pipeline_mode = #tpu.pipeline_mode<synchronous>, transform_indices = @transform_3, window_bounds = array<i64: 288, 32>}, {pipeline_mode = #tpu.pipeline_mode<synchronous>, transform_indices = @transform_4, window_bounds = array<i64: 1, 32>}, {pipeline_mode = #tpu.pipeline_mode<synchronous>, transform_indices = @transform_5, window_bounds = array<i64: 32, 128>}, {pipeline_mode = #tpu.pipeline_mode<synchronous>, transform_indices = @transform_6, window_bounds = array<i64: 1, 128>}, {transform_indices = @transform_7, window_bounds = array<i64: 1, 256, 128>}]} {
    %c16_i32 = arith.constant 16 : i32
    %0 = arith.muli %arg1, %c16_i32 : i32
    %c16_i32_0 = arith.constant 16 : i32
    %1 = arith.muli %0, %c16_i32_0 : i32
    %2 = tpu.assume_multiple %1, 16 : i32
    %c0 = arith.constant 0 : index
    %3 = arith.index_cast %2 : i32 to index
    %c0_1 = arith.constant 0 : index
    %4 = vector.load %arg2[%c0, %3, %c0_1] : memref<1x288x128xbf16, #tpu.memory_space<vmem>>, vector<1x288x128xbf16>
    %5 = vector.shape_cast %4 : vector<1x288x128xbf16> to vector<288x128xbf16>
    %c0_2 = arith.constant 0 : index
    %c0_3 = arith.constant 0 : index
    %6 = vector.load %arg3[%c0_2, %c0_3] : memref<128x32xbf16, #tpu.memory_space<vmem>>, vector<128x32xbf16>
    %cst = arith.constant dense<0.000000e+00> : vector<288x32xf32>
    %7 = tpu.matmul %5, %6, %cst {dimension_numbers = #tpu.dot_dimension_numbers<[1], [0], [0], [1], [0, 0, 1, 1], [], []>} : vector<288x128xbf16>, vector<128x32xbf16>, vector<288x32xf32> -> vector<288x32xf32>
    %c0_4 = arith.constant 0 : index
    %c0_5 = arith.constant 0 : index
    %8 = vector.load %arg4[%c0_4, %c0_5] : memref<1x32xf32, #tpu.memory_space<vmem>>, vector<1x32xf32>
    %9 = vector.broadcast %8 : vector<1x32xf32> to vector<288x32xf32>
    %10 = arith.addf %7, %9 : vector<288x32xf32>
    %cst_6 = arith.constant 0.000000e+00 : f32
    %11 = vector.broadcast %cst_6 : f32 to vector<288x32xf32>
    %12 = arith.maximumf %10, %11 : vector<288x32xf32>
    %13 = arith.truncf %12 : vector<288x32xf32> to vector<288x32xbf16>
    %14 = vector.shape_cast %13 : vector<288x32xbf16> to vector<18x16x32xbf16>
    %c0_7 = arith.constant 0 : index
    %c1 = arith.constant 1 : index
    %c0_8 = arith.constant 0 : index
    %15 = vector.load %arg10[%c0_7, %c1, %c0_8] : memref<18x18x32xbf16, #tpu.memory_space<vmem>>, vector<18x16x32xbf16>
    tpu.vector_store %arg10[%c0_7, %c1, %c0_8], %14 {strides = array<i32>} : memref<18x18x32xbf16, #tpu.memory_space<vmem>>, vector<18x16x32xbf16>,
    %cst_9 = arith.constant 0.000000e+00 : bf16
    %16 = vector.broadcast %cst_9 : bf16 to vector<18x1x32xbf16>
    %c0_10 = arith.constant 0 : index
    %c0_11 = arith.constant 0 : index
    %c0_12 = arith.constant 0 : index
    %17 = vector.load %arg10[%c0_10, %c0_11, %c0_12] : memref<18x18x32xbf16, #tpu.memory_space<vmem>>, vector<18x1x32xbf16>
    tpu.vector_store %arg10[%c0_10, %c0_11, %c0_12], %16 {strides = array<i32>} : memref<18x18x32xbf16, #tpu.memory_space<vmem>>, vector<18x1x32xbf16>,
    %cst_13 = arith.constant 0.000000e+00 : bf16
    %18 = vector.broadcast %cst_13 : bf16 to vector<18x1x32xbf16>
    %c0_14 = arith.constant 0 : index
    %c17 = arith.constant 17 : index
    %c0_15 = arith.constant 0 : index
    %19 = vector.load %arg10[%c0_14, %c17, %c0_15] : memref<18x18x32xbf16, #tpu.memory_space<vmem>>, vector<18x1x32xbf16>
    tpu.vector_store %arg10[%c0_14, %c17, %c0_15], %18 {strides = array<i32>} : memref<18x18x32xbf16, #tpu.memory_space<vmem>>, vector<18x1x32xbf16>,
    %c0_i32 = arith.constant 0 : i32
    %20 = arith.cmpi eq, %arg1, %c0_i32 : i32
    %21 = arith.extui %20 : i1 to i32
    %c0_i32_16 = arith.constant 0 : i32
    %22 = arith.cmpi ne, %21, %c0_i32_16 : i32
    scf.if %22 {
      %cst_80 = arith.constant 0.000000e+00 : bf16
      %97 = vector.broadcast %cst_80 : bf16 to vector<1x18x32xbf16>
      %c0_81 = arith.constant 0 : index
      %c0_82 = arith.constant 0 : index
      %c0_83 = arith.constant 0 : index
      %98 = vector.load %arg10[%c0_81, %c0_82, %c0_83] : memref<18x18x32xbf16, #tpu.memory_space<vmem>>, vector<1x18x32xbf16>
      tpu.vector_store %arg10[%c0_81, %c0_82, %c0_83], %97 {strides = array<i32>} : memref<18x18x32xbf16, #tpu.memory_space<vmem>>, vector<1x18x32xbf16>,
    } else {
    }
    %c0_i32_17 = arith.constant 0 : i32
    %23 = arith.cmpi eq, %arg1, %c0_i32_17 : i32
    %24 = arith.extui %23 : i1 to i32
    %c0_i32_18 = arith.constant 0 : i32
    %25 = arith.cmpi ne, %24, %c0_i32_18 : i32
    scf.if %25 {
      %cst_80 = arith.constant 0.000000e+00 : bf16
      %97 = vector.broadcast %cst_80 : bf16 to vector<1x18x32xbf16>
      %c17_81 = arith.constant 17 : index
      %c0_82 = arith.constant 0 : index
      %c0_83 = arith.constant 0 : index
      %98 = vector.load %arg10[%c17_81, %c0_82, %c0_83] : memref<18x18x32xbf16, #tpu.memory_space<vmem>>, vector<1x18x32xbf16>
      tpu.vector_store %arg10[%c17_81, %c0_82, %c0_83], %97 {strides = array<i32>} : memref<18x18x32xbf16, #tpu.memory_space<vmem>>, vector<1x18x32xbf16>,
    } else {
    }
    %cst_19 = arith.constant 0.000000e+00 : f32
    %26 = vector.broadcast %cst_19 : f32 to vector<256x32xf32>
    %c0_20 = arith.constant 0 : index
    %c0_21 = arith.constant 0 : index
    %c0_22 = arith.constant 0 : index
    %27 = vector.load %arg10[%c0_20, %c0_21, %c0_22] : memref<18x18x32xbf16, #tpu.memory_space<vmem>>, vector<16x16x32xbf16>
    %28 = vector.shape_cast %27 : vector<16x16x32xbf16> to vector<256x32xbf16>
    %c0_23 = arith.constant 0 : index
    %c0_24 = arith.constant 0 : index
    %29 = vector.load %arg5[%c0_23, %c0_24] : memref<288x32xbf16, #tpu.memory_space<vmem>>, vector<32x32xbf16>
    %cst_25 = arith.constant dense<0.000000e+00> : vector<256x32xf32>
    %30 = tpu.matmul %28, %29, %cst_25 {dimension_numbers = #tpu.dot_dimension_numbers<[1], [0], [0], [1], [0, 0, 1, 1], [], []>} : vector<256x32xbf16>, vector<32x32xbf16>, vector<256x32xf32> -> vector<256x32xf32>
    %31 = arith.addf %26, %30 : vector<256x32xf32>
    %c0_26 = arith.constant 0 : index
    %c1_27 = arith.constant 1 : index
    %c0_28 = arith.constant 0 : index
    %32 = vector.load %arg10[%c0_26, %c1_27, %c0_28] : memref<18x18x32xbf16, #tpu.memory_space<vmem>>, vector<16x16x32xbf16>
    %33 = vector.shape_cast %32 : vector<16x16x32xbf16> to vector<256x32xbf16>
    %c32 = arith.constant 32 : index
    %c0_29 = arith.constant 0 : index
    %34 = vector.load %arg5[%c32, %c0_29] : memref<288x32xbf16, #tpu.memory_space<vmem>>, vector<32x32xbf16>
    %cst_30 = arith.constant dense<0.000000e+00> : vector<256x32xf32>
    %35 = tpu.matmul %33, %34, %cst_30 {dimension_numbers = #tpu.dot_dimension_numbers<[1], [0], [0], [1], [0, 0, 1, 1], [], []>} : vector<256x32xbf16>, vector<32x32xbf16>, vector<256x32xf32> -> vector<256x32xf32>
    %36 = arith.addf %31, %35 : vector<256x32xf32>
    %c0_31 = arith.constant 0 : index
    %c2 = arith.constant 2 : index
    %c0_32 = arith.constant 0 : index
    %37 = vector.load %arg10[%c0_31, %c2, %c0_32] : memref<18x18x32xbf16, #tpu.memory_space<vmem>>, vector<16x16x32xbf16>
    %38 = vector.shape_cast %37 : vector<16x16x32xbf16> to vector<256x32xbf16>
    %c64 = arith.constant 64 : index
    %c0_33 = arith.constant 0 : index
    %39 = vector.load %arg5[%c64, %c0_33] : memref<288x32xbf16, #tpu.memory_space<vmem>>, vector<32x32xbf16>
    %cst_34 = arith.constant dense<0.000000e+00> : vector<256x32xf32>
    %40 = tpu.matmul %38, %39, %cst_34 {dimension_numbers = #tpu.dot_dimension_numbers<[1], [0], [0], [1], [0, 0, 1, 1], [], []>} : vector<256x32xbf16>, vector<32x32xbf16>, vector<256x32xf32> -> vector<256x32xf32>
    %41 = arith.addf %36, %40 : vector<256x32xf32>
    %c1_35 = arith.constant 1 : index
    %c0_36 = arith.constant 0 : index
    %c0_37 = arith.constant 0 : index
    %42 = vector.load %arg10[%c1_35, %c0_36, %c0_37] : memref<18x18x32xbf16, #tpu.memory_space<vmem>>, vector<16x16x32xbf16>
    %43 = vector.shape_cast %42 : vector<16x16x32xbf16> to vector<256x32xbf16>
    %c96 = arith.constant 96 : index
    %c0_38 = arith.constant 0 : index
    %44 = vector.load %arg5[%c96, %c0_38] : memref<288x32xbf16, #tpu.memory_space<vmem>>, vector<32x32xbf16>
    %cst_39 = arith.constant dense<0.000000e+00> : vector<256x32xf32>
    %45 = tpu.matmul %43, %44, %cst_39 {dimension_numbers = #tpu.dot_dimension_numbers<[1], [0], [0], [1], [0, 0, 1, 1], [], []>} : vector<256x32xbf16>, vector<32x32xbf16>, vector<256x32xf32> -> vector<256x32xf32>
    %46 = arith.addf %41, %45 : vector<256x32xf32>
    %c1_40 = arith.constant 1 : index
    %c1_41 = arith.constant 1 : index
    %c0_42 = arith.constant 0 : index
    %47 = vector.load %arg10[%c1_40, %c1_41, %c0_42] : memref<18x18x32xbf16, #tpu.memory_space<vmem>>, vector<16x16x32xbf16>
    %48 = vector.shape_cast %47 : vector<16x16x32xbf16> to vector<256x32xbf16>
    %c128 = arith.constant 128 : index
    %c0_43 = arith.constant 0 : index
    %49 = vector.load %arg5[%c128, %c0_43] : memref<288x32xbf16, #tpu.memory_space<vmem>>, vector<32x32xbf16>
    %cst_44 = arith.constant dense<0.000000e+00> : vector<256x32xf32>
    %50 = tpu.matmul %48, %49, %cst_44 {dimension_numbers = #tpu.dot_dimension_numbers<[1], [0], [0], [1], [0, 0, 1, 1], [], []>} : vector<256x32xbf16>, vector<32x32xbf16>, vector<256x32xf32> -> vector<256x32xf32>
    %51 = arith.addf %46, %50 : vector<256x32xf32>
    %c1_45 = arith.constant 1 : index
    %c2_46 = arith.constant 2 : index
    %c0_47 = arith.constant 0 : index
    %52 = vector.load %arg10[%c1_45, %c2_46, %c0_47] : memref<18x18x32xbf16, #tpu.memory_space<vmem>>, vector<16x16x32xbf16>
    %53 = vector.shape_cast %52 : vector<16x16x32xbf16> to vector<256x32xbf16>
    %c160 = arith.constant 160 : index
    %c0_48 = arith.constant 0 : index
    %54 = vector.load %arg5[%c160, %c0_48] : memref<288x32xbf16, #tpu.memory_space<vmem>>, vector<32x32xbf16>
    %cst_49 = arith.constant dense<0.000000e+00> : vector<256x32xf32>
    %55 = tpu.matmul %53, %54, %cst_49 {dimension_numbers = #tpu.dot_dimension_numbers<[1], [0], [0], [1], [0, 0, 1, 1], [], []>} : vector<256x32xbf16>, vector<32x32xbf16>, vector<256x32xf32> -> vector<256x32xf32>
    %56 = arith.addf %51, %55 : vector<256x32xf32>
    %c2_50 = arith.constant 2 : index
    %c0_51 = arith.constant 0 : index
    %c0_52 = arith.constant 0 : index
    %57 = vector.load %arg10[%c2_50, %c0_51, %c0_52] : memref<18x18x32xbf16, #tpu.memory_space<vmem>>, vector<16x16x32xbf16>
    %58 = vector.shape_cast %57 : vector<16x16x32xbf16> to vector<256x32xbf16>
    %c192 = arith.constant 192 : index
    %c0_53 = arith.constant 0 : index
    %59 = vector.load %arg5[%c192, %c0_53] : memref<288x32xbf16, #tpu.memory_space<vmem>>, vector<32x32xbf16>
    %cst_54 = arith.constant dense<0.000000e+00> : vector<256x32xf32>
    %60 = tpu.matmul %58, %59, %cst_54 {dimension_numbers = #tpu.dot_dimension_numbers<[1], [0], [0], [1], [0, 0, 1, 1], [], []>} : vector<256x32xbf16>, vector<32x32xbf16>, vector<256x32xf32> -> vector<256x32xf32>
    %61 = arith.addf %56, %60 : vector<256x32xf32>
    %c2_55 = arith.constant 2 : index
    %c1_56 = arith.constant 1 : index
    %c0_57 = arith.constant 0 : index
    %62 = vector.load %arg10[%c2_55, %c1_56, %c0_57] : memref<18x18x32xbf16, #tpu.memory_space<vmem>>, vector<16x16x32xbf16>
    %63 = vector.shape_cast %62 : vector<16x16x32xbf16> to vector<256x32xbf16>
    %c224 = arith.constant 224 : index
    %c0_58 = arith.constant 0 : index
    %64 = vector.load %arg5[%c224, %c0_58] : memref<288x32xbf16, #tpu.memory_space<vmem>>, vector<32x32xbf16>
    %cst_59 = arith.constant dense<0.000000e+00> : vector<256x32xf32>
    %65 = tpu.matmul %63, %64, %cst_59 {dimension_numbers = #tpu.dot_dimension_numbers<[1], [0], [0], [1], [0, 0, 1, 1], [], []>} : vector<256x32xbf16>, vector<32x32xbf16>, vector<256x32xf32> -> vector<256x32xf32>
    %66 = arith.addf %61, %65 : vector<256x32xf32>
    %c2_60 = arith.constant 2 : index
    %c2_61 = arith.constant 2 : index
    %c0_62 = arith.constant 0 : index
    %67 = vector.load %arg10[%c2_60, %c2_61, %c0_62] : memref<18x18x32xbf16, #tpu.memory_space<vmem>>, vector<16x16x32xbf16>
    %68 = vector.shape_cast %67 : vector<16x16x32xbf16> to vector<256x32xbf16>
    %c256 = arith.constant 256 : index
    %c0_63 = arith.constant 0 : index
    %69 = vector.load %arg5[%c256, %c0_63] : memref<288x32xbf16, #tpu.memory_space<vmem>>, vector<32x32xbf16>
    %cst_64 = arith.constant dense<0.000000e+00> : vector<256x32xf32>
    %70 = tpu.matmul %68, %69, %cst_64 {dimension_numbers = #tpu.dot_dimension_numbers<[1], [0], [0], [1], [0, 0, 1, 1], [], []>} : vector<256x32xbf16>, vector<32x32xbf16>, vector<256x32xf32> -> vector<256x32xf32>
    %71 = arith.addf %66, %70 : vector<256x32xf32>
    %c0_65 = arith.constant 0 : index
    %c0_66 = arith.constant 0 : index
    %72 = vector.load %arg6[%c0_65, %c0_66] : memref<1x32xf32, #tpu.memory_space<vmem>>, vector<1x32xf32>
    %73 = vector.broadcast %72 : vector<1x32xf32> to vector<256x32xf32>
    %74 = arith.addf %71, %73 : vector<256x32xf32>
    %cst_67 = arith.constant 0.000000e+00 : f32
    %75 = vector.broadcast %cst_67 : f32 to vector<256x32xf32>
    %76 = arith.maximumf %74, %75 : vector<256x32xf32>
    %77 = arith.truncf %76 : vector<256x32xf32> to vector<256x32xbf16>
    %c0_68 = arith.constant 0 : index
    %c0_69 = arith.constant 0 : index
    %78 = vector.load %arg7[%c0_68, %c0_69] : memref<32x128xbf16, #tpu.memory_space<vmem>>, vector<32x128xbf16>
    %cst_70 = arith.constant dense<0.000000e+00> : vector<256x128xf32>
    %79 = tpu.matmul %77, %78, %cst_70 {dimension_numbers = #tpu.dot_dimension_numbers<[1], [0], [0], [1], [0, 0, 1, 1], [], []>} : vector<256x32xbf16>, vector<32x128xbf16>, vector<256x128xf32> -> vector<256x128xf32>
    %c0_71 = arith.constant 0 : index
    %c0_72 = arith.constant 0 : index
    %80 = vector.load %arg8[%c0_71, %c0_72] : memref<1x128xf32, #tpu.memory_space<vmem>>, vector<1x128xf32>
    %81 = vector.broadcast %80 : vector<1x128xf32> to vector<256x128xf32>
    %82 = arith.addf %79, %81 : vector<256x128xf32>
    %c1_i32 = arith.constant 1 : i32
    %83 = arith.addi %0, %c1_i32 : i32
    %c16_i32_73 = arith.constant 16 : i32
    %84 = arith.muli %83, %c16_i32_73 : i32
    %85 = tpu.assume_multiple %84, 16 : i32
    %c0_74 = arith.constant 0 : index
    %86 = arith.index_cast %85 : i32 to index
    %c0_75 = arith.constant 0 : index
    %87 = vector.load %arg2[%c0_74, %86, %c0_75] : memref<1x288x128xbf16, #tpu.memory_space<vmem>>, vector<1x256x128xbf16>
    %88 = vector.shape_cast %87 : vector<1x256x128xbf16> to vector<256x128xbf16>
    %89 = arith.extf %88 : vector<256x128xbf16> to vector<256x128xf32>
    %90 = arith.addf %82, %89 : vector<256x128xf32>
    %cst_76 = arith.constant 0.000000e+00 : f32
    %91 = vector.broadcast %cst_76 : f32 to vector<256x128xf32>
    %92 = arith.maximumf %90, %91 : vector<256x128xf32>
    %93 = arith.truncf %92 : vector<256x128xf32> to vector<256x128xbf16>
    %c0_77 = arith.constant 0 : index
    %c0_78 = arith.constant 0 : index
    %c0_79 = arith.constant 0 : index
    %94 = vector.load %arg9[%c0_77, %c0_78, %c0_79] : memref<1x256x128xbf16, #tpu.memory_space<vmem>>, vector<1x256x128xbf16>
    %95 = vector.shape_cast %94 : vector<1x256x128xbf16> to vector<256x128xbf16>
    %96 = vector.shape_cast %93 : vector<256x128xbf16> to vector<1x256x128xbf16>
    tpu.vector_store %arg9[%c0_77, %c0_78, %c0_79], %96 {strides = array<i32>} : memref<1x256x128xbf16, #tpu.memory_space<vmem>>, vector<1x256x128xbf16>,
    return
  }
  func.func @transform_0(%arg0: i32, %arg1: i32) -> (i32, i32, i32) {
    %c0_i32 = arith.constant 0 : i32
    %c0_i32_0 = arith.constant 0 : i32
    %c0_i32_1 = arith.constant 0 : i32
    return %arg0, %c0_i32, %c0_i32_0 : i32, i32, i32
  }
  func.func @transform_1(%arg0: i32, %arg1: i32) -> (i32, i32) {
    %c0_i32 = arith.constant 0 : i32
    %c0_i32_0 = arith.constant 0 : i32
    %c0_i32_1 = arith.constant 0 : i32
    return %c0_i32, %c0_i32_0 : i32, i32
  }
  func.func @transform_2(%arg0: i32, %arg1: i32) -> (i32, i32) {
    %c0_i32 = arith.constant 0 : i32
    %c0_i32_0 = arith.constant 0 : i32
    %c0_i32_1 = arith.constant 0 : i32
    return %c0_i32, %c0_i32_0 : i32, i32
  }
  func.func @transform_3(%arg0: i32, %arg1: i32) -> (i32, i32) {
    %c0_i32 = arith.constant 0 : i32
    %c0_i32_0 = arith.constant 0 : i32
    %c0_i32_1 = arith.constant 0 : i32
    return %c0_i32, %c0_i32_0 : i32, i32
  }
  func.func @transform_4(%arg0: i32, %arg1: i32) -> (i32, i32) {
    %c0_i32 = arith.constant 0 : i32
    %c0_i32_0 = arith.constant 0 : i32
    %c0_i32_1 = arith.constant 0 : i32
    return %c0_i32, %c0_i32_0 : i32, i32
  }
  func.func @transform_5(%arg0: i32, %arg1: i32) -> (i32, i32) {
    %c0_i32 = arith.constant 0 : i32
    %c0_i32_0 = arith.constant 0 : i32
    %c0_i32_1 = arith.constant 0 : i32
    return %c0_i32, %c0_i32_0 : i32, i32
  }
  func.func @transform_6(%arg0: i32, %arg1: i32) -> (i32, i32) {
    %c0_i32 = arith.constant 0 : i32
    %c0_i32_0 = arith.constant 0 : i32
    %c0_i32_1 = arith.constant 0 : i32
    return %c0_i32, %c0_i32_0 : i32, i32
  }
  func.func @transform_7(%arg0: i32, %arg1: i32) -> (i32, i32, i32) {
    %c0_i32 = arith.constant 0 : i32
    %c0_i32_0 = arith.constant 0 : i32
    return %arg0, %arg1, %c0_i32 : i32, i32, i32
  }
}

module attributes {stable_mosaic.version = 11 : i64} {
  func.func @bottleneck_kernel(%arg0: i32, %arg1: i32, %arg2: memref<1x288x128xbf16, #tpu.memory_space<vmem>>, %arg3: memref<128x32xbf16, #tpu.memory_space<vmem>>, %arg4: memref<1x32xf32, #tpu.memory_space<vmem>>, %arg5: memref<288x32xbf16, #tpu.memory_space<vmem>>, %arg6: memref<1x32xf32, #tpu.memory_space<vmem>>, %arg7: memref<32x128xbf16, #tpu.memory_space<vmem>>, %arg8: memref<1x128xf32, #tpu.memory_space<vmem>>, %arg9: memref<1x256x128xbf16, #tpu.memory_space<vmem>>, %arg10: memref<18x18x32xbf16, #tpu.memory_space<vmem>>) attributes {dimension_semantics = [#tpu.dimension_semantics<parallel>, #tpu.dimension_semantics<parallel>], iteration_bounds = array<i64: 2, 1>, scalar_prefetch = 0 : i64, scratch_operands = 1 : i64, tpu.core_type = #tpu.core_type<tc>, window_params = [{transform_indices = @transform_0, window_bounds = array<i64: 1, 288, 128>}, {pipeline_mode = #tpu.pipeline_mode<synchronous>, transform_indices = @transform_1, window_bounds = array<i64: 128, 32>}, {pipeline_mode = #tpu.pipeline_mode<synchronous>, transform_indices = @transform_2, window_bounds = array<i64: 1, 32>}, {pipeline_mode = #tpu.pipeline_mode<synchronous>, transform_indices = @transform_3, window_bounds = array<i64: 288, 32>}, {pipeline_mode = #tpu.pipeline_mode<synchronous>, transform_indices = @transform_4, window_bounds = array<i64: 1, 32>}, {pipeline_mode = #tpu.pipeline_mode<synchronous>, transform_indices = @transform_5, window_bounds = array<i64: 32, 128>}, {pipeline_mode = #tpu.pipeline_mode<synchronous>, transform_indices = @transform_6, window_bounds = array<i64: 1, 128>}, {transform_indices = @transform_7, window_bounds = array<i64: 1, 256, 128>}]} {
    %c16_i32 = arith.constant 16 : i32
    %0 = arith.muli %arg1, %c16_i32 : i32
    %c16_i32_0 = arith.constant 16 : i32
    %1 = arith.muli %0, %c16_i32_0 : i32
    %2 = tpu.assume_multiple %1, 16 : i32
    %c0 = arith.constant 0 : index
    %3 = arith.index_cast %2 : i32 to index
    %c0_1 = arith.constant 0 : index
    %4 = vector.load %arg2[%c0, %3, %c0_1] : memref<1x288x128xbf16, #tpu.memory_space<vmem>>, vector<1x288x128xbf16>
    %5 = vector.shape_cast %4 : vector<1x288x128xbf16> to vector<288x128xbf16>
    %c0_2 = arith.constant 0 : index
    %c0_3 = arith.constant 0 : index
    %6 = vector.load %arg3[%c0_2, %c0_3] : memref<128x32xbf16, #tpu.memory_space<vmem>>, vector<128x32xbf16>
    %cst = arith.constant dense<0.000000e+00> : vector<288x32xf32>
    %7 = tpu.matmul %5, %6, %cst {dimension_numbers = #tpu.dot_dimension_numbers<[1], [0], [0], [1], [0, 0, 1, 1], [], []>} : vector<288x128xbf16>, vector<128x32xbf16>, vector<288x32xf32> -> vector<288x32xf32>
    %c0_4 = arith.constant 0 : index
    %c0_5 = arith.constant 0 : index
    %8 = vector.load %arg4[%c0_4, %c0_5] : memref<1x32xf32, #tpu.memory_space<vmem>>, vector<1x32xf32>
    %9 = vector.broadcast %8 : vector<1x32xf32> to vector<288x32xf32>
    %10 = arith.addf %7, %9 : vector<288x32xf32>
    %cst_6 = arith.constant 0.000000e+00 : f32
    %11 = vector.broadcast %cst_6 : f32 to vector<288x32xf32>
    %12 = arith.maximumf %10, %11 : vector<288x32xf32>
    %13 = arith.truncf %12 : vector<288x32xf32> to vector<288x32xbf16>
    %14 = vector.shape_cast %13 : vector<288x32xbf16> to vector<18x16x32xbf16>
    %c0_7 = arith.constant 0 : index
    %c1 = arith.constant 1 : index
    %c0_8 = arith.constant 0 : index
    %15 = vector.load %arg10[%c0_7, %c1, %c0_8] : memref<18x18x32xbf16, #tpu.memory_space<vmem>>, vector<18x16x32xbf16>
    tpu.vector_store %arg10[%c0_7, %c1, %c0_8], %14 {strides = array<i32>} : memref<18x18x32xbf16, #tpu.memory_space<vmem>>, vector<18x16x32xbf16>,
    %cst_9 = arith.constant 0.000000e+00 : bf16
    %16 = vector.broadcast %cst_9 : bf16 to vector<18x1x32xbf16>
    %c0_10 = arith.constant 0 : index
    %c0_11 = arith.constant 0 : index
    %c0_12 = arith.constant 0 : index
    %17 = vector.load %arg10[%c0_10, %c0_11, %c0_12] : memref<18x18x32xbf16, #tpu.memory_space<vmem>>, vector<18x1x32xbf16>
    tpu.vector_store %arg10[%c0_10, %c0_11, %c0_12], %16 {strides = array<i32>} : memref<18x18x32xbf16, #tpu.memory_space<vmem>>, vector<18x1x32xbf16>,
    %cst_13 = arith.constant 0.000000e+00 : bf16
    %18 = vector.broadcast %cst_13 : bf16 to vector<18x1x32xbf16>
    %c0_14 = arith.constant 0 : index
    %c17 = arith.constant 17 : index
    %c0_15 = arith.constant 0 : index
    %19 = vector.load %arg10[%c0_14, %c17, %c0_15] : memref<18x18x32xbf16, #tpu.memory_space<vmem>>, vector<18x1x32xbf16>
    tpu.vector_store %arg10[%c0_14, %c17, %c0_15], %18 {strides = array<i32>} : memref<18x18x32xbf16, #tpu.memory_space<vmem>>, vector<18x1x32xbf16>,
    %c0_i32 = arith.constant 0 : i32
    %20 = arith.cmpi eq, %arg1, %c0_i32 : i32
    %21 = arith.extui %20 : i1 to i32
    %c0_i32_16 = arith.constant 0 : i32
    %22 = arith.cmpi ne, %21, %c0_i32_16 : i32
    scf.if %22 {
      %cst_80 = arith.constant 0.000000e+00 : bf16
      %97 = vector.broadcast %cst_80 : bf16 to vector<1x18x32xbf16>
      %c0_81 = arith.constant 0 : index
      %c0_82 = arith.constant 0 : index
      %c0_83 = arith.constant 0 : index
      %98 = vector.load %arg10[%c0_81, %c0_82, %c0_83] : memref<18x18x32xbf16, #tpu.memory_space<vmem>>, vector<1x18x32xbf16>
      tpu.vector_store %arg10[%c0_81, %c0_82, %c0_83], %97 {strides = array<i32>} : memref<18x18x32xbf16, #tpu.memory_space<vmem>>, vector<1x18x32xbf16>,
    } else {
    }
    %c0_i32_17 = arith.constant 0 : i32
    %23 = arith.cmpi eq, %arg1, %c0_i32_17 : i32
    %24 = arith.extui %23 : i1 to i32
    %c0_i32_18 = arith.constant 0 : i32
    %25 = arith.cmpi ne, %24, %c0_i32_18 : i32
    scf.if %25 {
      %cst_80 = arith.constant 0.000000e+00 : bf16
      %97 = vector.broadcast %cst_80 : bf16 to vector<1x18x32xbf16>
      %c17_81 = arith.constant 17 : index
      %c0_82 = arith.constant 0 : index
      %c0_83 = arith.constant 0 : index
      %98 = vector.load %arg10[%c17_81, %c0_82, %c0_83] : memref<18x18x32xbf16, #tpu.memory_space<vmem>>, vector<1x18x32xbf16>
      tpu.vector_store %arg10[%c17_81, %c0_82, %c0_83], %97 {strides = array<i32>} : memref<18x18x32xbf16, #tpu.memory_space<vmem>>, vector<1x18x32xbf16>,
    } else {
    }
    %cst_19 = arith.constant 0.000000e+00 : f32
    %26 = vector.broadcast %cst_19 : f32 to vector<256x32xf32>
    %c0_20 = arith.constant 0 : index
    %c0_21 = arith.constant 0 : index
    %c0_22 = arith.constant 0 : index
    %27 = vector.load %arg10[%c0_20, %c0_21, %c0_22] : memref<18x18x32xbf16, #tpu.memory_space<vmem>>, vector<16x16x32xbf16>
    %28 = vector.shape_cast %27 : vector<16x16x32xbf16> to vector<256x32xbf16>
    %c0_23 = arith.constant 0 : index
    %c0_24 = arith.constant 0 : index
    %29 = vector.load %arg5[%c0_23, %c0_24] : memref<288x32xbf16, #tpu.memory_space<vmem>>, vector<32x32xbf16>
    %cst_25 = arith.constant dense<0.000000e+00> : vector<256x32xf32>
    %30 = tpu.matmul %28, %29, %cst_25 {dimension_numbers = #tpu.dot_dimension_numbers<[1], [0], [0], [1], [0, 0, 1, 1], [], []>} : vector<256x32xbf16>, vector<32x32xbf16>, vector<256x32xf32> -> vector<256x32xf32>
    %31 = arith.addf %26, %30 : vector<256x32xf32>
    %c0_26 = arith.constant 0 : index
    %c1_27 = arith.constant 1 : index
    %c0_28 = arith.constant 0 : index
    %32 = vector.load %arg10[%c0_26, %c1_27, %c0_28] : memref<18x18x32xbf16, #tpu.memory_space<vmem>>, vector<16x16x32xbf16>
    %33 = vector.shape_cast %32 : vector<16x16x32xbf16> to vector<256x32xbf16>
    %c32 = arith.constant 32 : index
    %c0_29 = arith.constant 0 : index
    %34 = vector.load %arg5[%c32, %c0_29] : memref<288x32xbf16, #tpu.memory_space<vmem>>, vector<32x32xbf16>
    %cst_30 = arith.constant dense<0.000000e+00> : vector<256x32xf32>
    %35 = tpu.matmul %33, %34, %cst_30 {dimension_numbers = #tpu.dot_dimension_numbers<[1], [0], [0], [1], [0, 0, 1, 1], [], []>} : vector<256x32xbf16>, vector<32x32xbf16>, vector<256x32xf32> -> vector<256x32xf32>
    %36 = arith.addf %31, %35 : vector<256x32xf32>
    %c0_31 = arith.constant 0 : index
    %c2 = arith.constant 2 : index
    %c0_32 = arith.constant 0 : index
    %37 = vector.load %arg10[%c0_31, %c2, %c0_32] : memref<18x18x32xbf16, #tpu.memory_space<vmem>>, vector<16x16x32xbf16>
    %38 = vector.shape_cast %37 : vector<16x16x32xbf16> to vector<256x32xbf16>
    %c64 = arith.constant 64 : index
    %c0_33 = arith.constant 0 : index
    %39 = vector.load %arg5[%c64, %c0_33] : memref<288x32xbf16, #tpu.memory_space<vmem>>, vector<32x32xbf16>
    %cst_34 = arith.constant dense<0.000000e+00> : vector<256x32xf32>
    %40 = tpu.matmul %38, %39, %cst_34 {dimension_numbers = #tpu.dot_dimension_numbers<[1], [0], [0], [1], [0, 0, 1, 1], [], []>} : vector<256x32xbf16>, vector<32x32xbf16>, vector<256x32xf32> -> vector<256x32xf32>
    %41 = arith.addf %36, %40 : vector<256x32xf32>
    %c1_35 = arith.constant 1 : index
    %c0_36 = arith.constant 0 : index
    %c0_37 = arith.constant 0 : index
    %42 = vector.load %arg10[%c1_35, %c0_36, %c0_37] : memref<18x18x32xbf16, #tpu.memory_space<vmem>>, vector<16x16x32xbf16>
    %43 = vector.shape_cast %42 : vector<16x16x32xbf16> to vector<256x32xbf16>
    %c96 = arith.constant 96 : index
    %c0_38 = arith.constant 0 : index
    %44 = vector.load %arg5[%c96, %c0_38] : memref<288x32xbf16, #tpu.memory_space<vmem>>, vector<32x32xbf16>
    %cst_39 = arith.constant dense<0.000000e+00> : vector<256x32xf32>
    %45 = tpu.matmul %43, %44, %cst_39 {dimension_numbers = #tpu.dot_dimension_numbers<[1], [0], [0], [1], [0, 0, 1, 1], [], []>} : vector<256x32xbf16>, vector<32x32xbf16>, vector<256x32xf32> -> vector<256x32xf32>
    %46 = arith.addf %41, %45 : vector<256x32xf32>
    %c1_40 = arith.constant 1 : index
    %c1_41 = arith.constant 1 : index
    %c0_42 = arith.constant 0 : index
    %47 = vector.load %arg10[%c1_40, %c1_41, %c0_42] : memref<18x18x32xbf16, #tpu.memory_space<vmem>>, vector<16x16x32xbf16>
    %48 = vector.shape_cast %47 : vector<16x16x32xbf16> to vector<256x32xbf16>
    %c128 = arith.constant 128 : index
    %c0_43 = arith.constant 0 : index
    %49 = vector.load %arg5[%c128, %c0_43] : memref<288x32xbf16, #tpu.memory_space<vmem>>, vector<32x32xbf16>
    %cst_44 = arith.constant dense<0.000000e+00> : vector<256x32xf32>
    %50 = tpu.matmul %48, %49, %cst_44 {dimension_numbers = #tpu.dot_dimension_numbers<[1], [0], [0], [1], [0, 0, 1, 1], [], []>} : vector<256x32xbf16>, vector<32x32xbf16>, vector<256x32xf32> -> vector<256x32xf32>
    %51 = arith.addf %46, %50 : vector<256x32xf32>
    %c1_45 = arith.constant 1 : index
    %c2_46 = arith.constant 2 : index
    %c0_47 = arith.constant 0 : index
    %52 = vector.load %arg10[%c1_45, %c2_46, %c0_47] : memref<18x18x32xbf16, #tpu.memory_space<vmem>>, vector<16x16x32xbf16>
    %53 = vector.shape_cast %52 : vector<16x16x32xbf16> to vector<256x32xbf16>
    %c160 = arith.constant 160 : index
    %c0_48 = arith.constant 0 : index
    %54 = vector.load %arg5[%c160, %c0_48] : memref<288x32xbf16, #tpu.memory_space<vmem>>, vector<32x32xbf16>
    %cst_49 = arith.constant dense<0.000000e+00> : vector<256x32xf32>
    %55 = tpu.matmul %53, %54, %cst_49 {dimension_numbers = #tpu.dot_dimension_numbers<[1], [0], [0], [1], [0, 0, 1, 1], [], []>} : vector<256x32xbf16>, vector<32x32xbf16>, vector<256x32xf32> -> vector<256x32xf32>
    %56 = arith.addf %51, %55 : vector<256x32xf32>
    %c2_50 = arith.constant 2 : index
    %c0_51 = arith.constant 0 : index
    %c0_52 = arith.constant 0 : index
    %57 = vector.load %arg10[%c2_50, %c0_51, %c0_52] : memref<18x18x32xbf16, #tpu.memory_space<vmem>>, vector<16x16x32xbf16>
    %58 = vector.shape_cast %57 : vector<16x16x32xbf16> to vector<256x32xbf16>
    %c192 = arith.constant 192 : index
    %c0_53 = arith.constant 0 : index
    %59 = vector.load %arg5[%c192, %c0_53] : memref<288x32xbf16, #tpu.memory_space<vmem>>, vector<32x32xbf16>
    %cst_54 = arith.constant dense<0.000000e+00> : vector<256x32xf32>
    %60 = tpu.matmul %58, %59, %cst_54 {dimension_numbers = #tpu.dot_dimension_numbers<[1], [0], [0], [1], [0, 0, 1, 1], [], []>} : vector<256x32xbf16>, vector<32x32xbf16>, vector<256x32xf32> -> vector<256x32xf32>
    %61 = arith.addf %56, %60 : vector<256x32xf32>
    %c2_55 = arith.constant 2 : index
    %c1_56 = arith.constant 1 : index
    %c0_57 = arith.constant 0 : index
    %62 = vector.load %arg10[%c2_55, %c1_56, %c0_57] : memref<18x18x32xbf16, #tpu.memory_space<vmem>>, vector<16x16x32xbf16>
    %63 = vector.shape_cast %62 : vector<16x16x32xbf16> to vector<256x32xbf16>
    %c224 = arith.constant 224 : index
    %c0_58 = arith.constant 0 : index
    %64 = vector.load %arg5[%c224, %c0_58] : memref<288x32xbf16, #tpu.memory_space<vmem>>, vector<32x32xbf16>
    %cst_59 = arith.constant dense<0.000000e+00> : vector<256x32xf32>
    %65 = tpu.matmul %63, %64, %cst_59 {dimension_numbers = #tpu.dot_dimension_numbers<[1], [0], [0], [1], [0, 0, 1, 1], [], []>} : vector<256x32xbf16>, vector<32x32xbf16>, vector<256x32xf32> -> vector<256x32xf32>
    %66 = arith.addf %61, %65 : vector<256x32xf32>
    %c2_60 = arith.constant 2 : index
    %c2_61 = arith.constant 2 : index
    %c0_62 = arith.constant 0 : index
    %67 = vector.load %arg10[%c2_60, %c2_61, %c0_62] : memref<18x18x32xbf16, #tpu.memory_space<vmem>>, vector<16x16x32xbf16>
    %68 = vector.shape_cast %67 : vector<16x16x32xbf16> to vector<256x32xbf16>
    %c256 = arith.constant 256 : index
    %c0_63 = arith.constant 0 : index
    %69 = vector.load %arg5[%c256, %c0_63] : memref<288x32xbf16, #tpu.memory_space<vmem>>, vector<32x32xbf16>
    %cst_64 = arith.constant dense<0.000000e+00> : vector<256x32xf32>
    %70 = tpu.matmul %68, %69, %cst_64 {dimension_numbers = #tpu.dot_dimension_numbers<[1], [0], [0], [1], [0, 0, 1, 1], [], []>} : vector<256x32xbf16>, vector<32x32xbf16>, vector<256x32xf32> -> vector<256x32xf32>
    %71 = arith.addf %66, %70 : vector<256x32xf32>
    %c0_65 = arith.constant 0 : index
    %c0_66 = arith.constant 0 : index
    %72 = vector.load %arg6[%c0_65, %c0_66] : memref<1x32xf32, #tpu.memory_space<vmem>>, vector<1x32xf32>
    %73 = vector.broadcast %72 : vector<1x32xf32> to vector<256x32xf32>
    %74 = arith.addf %71, %73 : vector<256x32xf32>
    %cst_67 = arith.constant 0.000000e+00 : f32
    %75 = vector.broadcast %cst_67 : f32 to vector<256x32xf32>
    %76 = arith.maximumf %74, %75 : vector<256x32xf32>
    %77 = arith.truncf %76 : vector<256x32xf32> to vector<256x32xbf16>
    %c0_68 = arith.constant 0 : index
    %c0_69 = arith.constant 0 : index
    %78 = vector.load %arg7[%c0_68, %c0_69] : memref<32x128xbf16, #tpu.memory_space<vmem>>, vector<32x128xbf16>
    %cst_70 = arith.constant dense<0.000000e+00> : vector<256x128xf32>
    %79 = tpu.matmul %77, %78, %cst_70 {dimension_numbers = #tpu.dot_dimension_numbers<[1], [0], [0], [1], [0, 0, 1, 1], [], []>} : vector<256x32xbf16>, vector<32x128xbf16>, vector<256x128xf32> -> vector<256x128xf32>
    %c0_71 = arith.constant 0 : index
    %c0_72 = arith.constant 0 : index
    %80 = vector.load %arg8[%c0_71, %c0_72] : memref<1x128xf32, #tpu.memory_space<vmem>>, vector<1x128xf32>
    %81 = vector.broadcast %80 : vector<1x128xf32> to vector<256x128xf32>
    %82 = arith.addf %79, %81 : vector<256x128xf32>
    %c1_i32 = arith.constant 1 : i32
    %83 = arith.addi %0, %c1_i32 : i32
    %c16_i32_73 = arith.constant 16 : i32
    %84 = arith.muli %83, %c16_i32_73 : i32
    %85 = tpu.assume_multiple %84, 16 : i32
    %c0_74 = arith.constant 0 : index
    %86 = arith.index_cast %85 : i32 to index
    %c0_75 = arith.constant 0 : index
    %87 = vector.load %arg2[%c0_74, %86, %c0_75] : memref<1x288x128xbf16, #tpu.memory_space<vmem>>, vector<1x256x128xbf16>
    %88 = vector.shape_cast %87 : vector<1x256x128xbf16> to vector<256x128xbf16>
    %89 = arith.extf %88 : vector<256x128xbf16> to vector<256x128xf32>
    %90 = arith.addf %82, %89 : vector<256x128xf32>
    %cst_76 = arith.constant 0.000000e+00 : f32
    %91 = vector.broadcast %cst_76 : f32 to vector<256x128xf32>
    %92 = arith.maximumf %90, %91 : vector<256x128xf32>
    %93 = arith.truncf %92 : vector<256x128xf32> to vector<256x128xbf16>
    %c0_77 = arith.constant 0 : index
    %c0_78 = arith.constant 0 : index
    %c0_79 = arith.constant 0 : index
    %94 = vector.load %arg9[%c0_77, %c0_78, %c0_79] : memref<1x256x128xbf16, #tpu.memory_space<vmem>>, vector<1x256x128xbf16>
    %95 = vector.shape_cast %94 : vector<1x256x128xbf16> to vector<256x128xbf16>
    %96 = vector.shape_cast %93 : vector<256x128xbf16> to vector<1x256x128xbf16>
    tpu.vector_store %arg9[%c0_77, %c0_78, %c0_79], %96 {strides = array<i32>} : memref<1x256x128xbf16, #tpu.memory_space<vmem>>, vector<1x256x128xbf16>,
    return
  }
  func.func @transform_0(%arg0: i32, %arg1: i32) -> (i32, i32, i32) {
    %c0_i32 = arith.constant 0 : i32
    %c0_i32_0 = arith.constant 0 : i32
    %c0_i32_1 = arith.constant 0 : i32
    return %arg0, %c0_i32, %c0_i32_0 : i32, i32, i32
  }
  func.func @transform_1(%arg0: i32, %arg1: i32) -> (i32, i32) {
    %c0_i32 = arith.constant 0 : i32
    %c0_i32_0 = arith.constant 0 : i32
    %c0_i32_1 = arith.constant 0 : i32
    return %c0_i32, %c0_i32_0 : i32, i32
  }
  func.func @transform_2(%arg0: i32, %arg1: i32) -> (i32, i32) {
    %c0_i32 = arith.constant 0 : i32
    %c0_i32_0 = arith.constant 0 : i32
    %c0_i32_1 = arith.constant 0 : i32
    return %c0_i32, %c0_i32_0 : i32, i32
  }
  func.func @transform_3(%arg0: i32, %arg1: i32) -> (i32, i32) {
    %c0_i32 = arith.constant 0 : i32
    %c0_i32_0 = arith.constant 0 : i32
    %c0_i32_1 = arith.constant 0 : i32
    return %c0_i32, %c0_i32_0 : i32, i32
  }
  func.func @transform_4(%arg0: i32, %arg1: i32) -> (i32, i32) {
    %c0_i32 = arith.constant 0 : i32
    %c0_i32_0 = arith.constant 0 : i32
    %c0_i32_1 = arith.constant 0 : i32
    return %c0_i32, %c0_i32_0 : i32, i32
  }
  func.func @transform_5(%arg0: i32, %arg1: i32) -> (i32, i32) {
    %c0_i32 = arith.constant 0 : i32
    %c0_i32_0 = arith.constant 0 : i32
    %c0_i32_1 = arith.constant 0 : i32
    return %c0_i32, %c0_i32_0 : i32, i32
  }
  func.func @transform_6(%arg0: i32, %arg1: i32) -> (i32, i32) {
    %c0_i32 = arith.constant 0 : i32
    %c0_i32_0 = arith.constant 0 : i32
    %c0_i32_1 = arith.constant 0 : i32
    return %c0_i32, %c0_i32_0 : i32, i32
  }
  func.func @transform_7(%arg0: i32, %arg1: i32) -> (i32, i32, i32) {
    %c0_i32 = arith.constant 0 : i32
    %c0_i32_0 = arith.constant 0 : i32
    return %arg0, %arg1, %c0_i32 : i32, i32, i32
  }
}

</mosaic_0001>

<bundles_post_ra>
// kernel: tpu_custom_call.1
= control target key start
LH: loop header
LB: loop body
LE: loop exit
PB: predicated region body
PF: predicated region fallthrough
CT: control target
= control target key end

     0   :  { %12 = vsyncpa [#allocation4], 0  ;;  %s10947_s0 = inlined_call_operand.hbm [shape: bf16[2,288,128], index: 0, kind: input, shape index: {}]   ;;  %s10948_s1 = inlined_call_operand.vmem [shape: bf16[128,32], index: 1, kind: input, shape index: {}]   ;;  %s10949_s2 = inlined_call_operand.vmem [shape: f32[1,32], index: 2, kind: input, shape index: {}]   ;;  %s10950_s3 = inlined_call_operand.vmem [shape: bf16[288,32], index: 3, kind: input, shape index: {}]   ;;  %s10951_s4 = inlined_call_operand.vmem [shape: f32[1,32], index: 4, kind: input, shape index: {}]   ;;  %s10952_s5 = inlined_call_operand.vmem [shape: bf16[32,128], index: 5, kind: input, shape index: {}]   ;;  %s10953_s6 = inlined_call_operand.vmem [shape: f32[1,128], index: 6, kind: input, shape index: {}]   ;;  %s10954_s7 = inlined_call_operand.hbm [shape: bf16[2,256,128], index: 7, kind: output, shape index: {}]  }
   0x1   :  { %14 = vsyncpa [#allocation4 + $0x1], 0 }
   0x2   :  { %15 = vsyncpa [#allocation5], 0 }
   0x3   :  { %17 = vsyncpa [#allocation5 + $0x1], 0  ;;  %s8841_s24 = smov 0   ;;  %s8843_s25 = smov 0  }
   0x4   :  { %s8845_s26 = smov 0   ;;  %s8847_s27 = smov 0  }
   0x5   :  { %s8849_s28 = smov 0   ;;  %s8851_s29 = smov 0  }
   0x6 LB: > { %s6846_s30 = sadd.s32 4294967295, %s8792_s29   ;;  %s6847_s8 = sadd.s32 4294967294, %s8792_s29   ;;  %s8792_s29 = sphi %s8851_s29, %s23_s29   ;;  %s8788_s28 = sphi %s8849_s28, %s11061_s28   ;;  %s8784_s27 = sphi %s8847_s27, %s11060_s27   ;;  %s8780_s26 = sphi %s8845_s26, %s11059_s26   ;;  %s8776_s25 = sphi %s8843_s25, %s11058_s25   ;;  %s8772_s24 = sphi %s8841_s24, %s11057_s24  }
   0x7   : > { %s35_s9 = sadd.s32 1, %s8788_s28  ;;  %s42_s10 = sadd.s32 1, %s8780_s26 }
   0x8   : > { %p37_p0 = scmp.ge.s32.totalorder %s35_s9, 2  ;;  %p49_p1 = scmp.ne.s32.totalorder %s8780_s26, %s8776_s25 }
   0x9   : > { %p50_p2 = scmp.eq.s32.totalorder %s8792_s29, 0  ;;  %p55_p3 = scmp.ne.s32.totalorder %s8776_s25, %s8772_s24 }
   0xa   : > { %s11063_s9 = smov (%p37_p0, %s35_s9), 0  ;;  %p56_p5 = scmp.eq.s32.totalorder %s6846_s30, 0 }
   0xb   : > { %p8882_p4 = por %p50_p2, %p49_p1  ;;  %s39_s12 = ssub.s32 %s8788_s28, %s11063_s9 }
   0xc   : > { %p207_p6 = scmp.eq.s32.totalorder %s6846_s30, 1  ;;  %p40_p7 = scmp.eq.s32.totalorder %s39_s12, 0 }
   0xd   : > { %p8888_p8 = por %p56_p5, %p55_p3  ;;  %p213_p10 = scmp.eq.s32.totalorder %s6847_s8, 1 }
   0xe   : > { %p8892_p9 = por %p207_p6, %p49_p1  ;;  %p8496_p13 = scmp.lt.s32.totalorder %s8792_s29, 2 }
   0xf   : > { %s8897_s15 = scalar_select %p40_p7, %s8780_s26, %s42_s10  }
  0x10   : > { %s10978_s14 = scalar_select %p8892_p9, 1, 0 }
  0x11   : > { %p8899_p11 = por %p213_p10, %p55_p3  ;;  %s251_s17 = sand.u32 1, %s8780_s26  }
  0x12   : > { %s8481_s18 = smul.u32 144, %s251_s17  ;;  %p8909_p0 = pnand %p8496_p13, %p8882_p4 }
  0x13   : > { %s10979_s16 = scalar_select %p8899_p11, 1, 0 }
  0x14   : > { %s8482_s19 = smul.u32 2304, %s8788_s28  ;;  %s255_s30 = scalar_lea.vmem [#allocation3], %s8481_s18 }
  0x15   : > { %s262_s8 = sshll.u32 %s255_s30, 4  ;;  %s8921_s10 = scalar_lea.sflag [#allocation4], %s251_s17  ;;  %s8918_s8 = int_to_ptr.vmem [resolvable:$true] %s262_s8 }
  0x16   : > { %s8916_s23 = scalar_lea.hbm %s10947_s0, %s8482_s19  ;;  %p8682_p3 = pneg %p8909_p0 }
  0x17   : > { %s8680_s11 = scalar_lea.hbm %s8916_s23, 2304  ;;  %s8685_s21 = scalar_lea.hbm %s10947_s0, 4608 }
  0x18   : > { %p8681_p2 = scmp.ne.s32.totalorder %s8916_s23, %s8680_s11  ;;  %p8686_p6 = scmp.lt.u32.totalorder %s8916_s23, %s10947_s0 }
  0x19   : > { %p8687_p7 = scmp.lt.u32.totalorder %s8685_s21, %s8680_s11  ;;  %p8689_p13 = scmp.lt.u32.totalorder %s8680_s11, %s8916_s23 }
  0x1a   : > { %p8683_p4 = pnand %p8682_p3, %p8681_p2 }
  0x1b   : > { %p8688_p10 = por %p8687_p7, %p8686_p6 }
  0x1c   : > { %p8684_p5 = pneg %p8683_p4 }
  0x1d   : > { %p8690_p12 = por %p8689_p13, %p8688_p10 }
  0x1f   : > { %p8691_p1 = pnand %p8690_p12, %p8684_p5 }
  0x21   : > { %8694 = shalt.err (!%p8691_p1)
}
  0x22   : > { %s8695_s17 = scalar_lea.vmem %s8918_s8, 2304  ;;  %s8794_s30 = smov [#allocation3]  }
  0x23   : > { %p8696_p2 = scmp.ne.s32.totalorder %s8918_s8, %s8695_s17  ;;  %s8700_s12 = sshll.u32 %s8794_s30, 4  ;;  %s8701_s12 = int_to_ptr.vmem [resolvable:$false] %s8700_s12 }
  0x24   : > { %s8702_s19 = scalar_lea.vmem %s8701_s12, 4608  ;;  %p8703_p9 = scmp.lt.s32.totalorder %s8918_s8, %s8701_s12 }
  0x25   : > { %p8698_p4 = pnand %p8696_p2, %p8682_p3  ;;  %p8704_p6 = scmp.lt.s32.totalorder %s8702_s19, %s8695_s17 }
  0x27   : > { %p8699_p11 = pneg %p8698_p4  ;;  %p8705_p7 = por %p8704_p6, %p8703_p9 }
  0x29   : > { %p8706_p10 = pnand %p8705_p7, %p8699_p11 }
  0x2b   : > { %8709 = shalt.err (!%p8706_p10)
}
  0x2c   : > { %s8795_s11 = smov 64   ;;  %s8796_s21 = smov 4  }
  0x2d   : > { %8491 = dma.hbm_to_vmem [thread:$0]  (!%p8909_p0), %s8916_s23, 2304, %s8918_s8, %s8921_s10, %s8795_s11, %s8795_s11, %s8796_s21  }
  0x2e   : > { %p270_p12 = scmp.lt.s32.totalorder %s8792_s29, 3  ;;  %p10981_p1 = scmp.ge.s32.totalorder %s8792_s29, 1 }
  0x30   : > { %p271_p3 = pnand %p10981_p1, %p270_p12 }
  0x32   : > { %274 = sbr.rel (%p271_p3) target bundleno = 1278 (0x4fe), region = 48 }
  0x39   : > { %s8953_s22 = sand.u32 1, %s8776_s25  }
  0x3a   : > { %s8483_s18 = smul.u32 144, %s8953_s22  ;;  %s277_s17 = scalar_lea.sflag [#allocation4], %s8953_s22 }
  0x3c   : > { %s8957_s30 = scalar_lea.vmem [#allocation3], %s8483_s18 }
  0x3d   : > { %8763 = dma.done.wait (%p8888_p8), %s277_s17, 2304  }
  0x3e   : > { %8765 = vsyncadd (%p8888_p8), %s277_s17, 4294964992  ;;  %v8551_v0 = vld [vmem:[%s10948_s1] sm:$0xff]   ;;  %v8552_v1 = vld [vmem:[%s10948_s1 + $0x8] sm:$0xff]   ;;  %vm855_vm0 = vsmask.f32 256  ;;  %vm1218_vm1 = vcmask 257024  }
  0x3f   : > { %7809 = vmatprep.subr.bf16.mxu0 %v8551_v0  ;;  %v8553_v2 = vld [vmem:[%s10948_s1 + $0x10] sm:$0xff]   ;;  %v8554_v3 = vld [vmem:[%s10948_s1 + $0x18] sm:$0xff]   ;;  %v8555_v5 = vld [vmem:[%s10948_s1 + $0x20] sm:$0xff]   ;;  %vm1219_vm2 = vsmask.f32 7938  ;;  %vm1226_vm3 = vcmask 253952  }
  0x40   : > { %7810 = vmatpush3.bf16.msra.mxu0 %v8551_v0  ;;  %v8559_v4 = vld [vmem:[%s8957_s30] sm:$0xff]   ;;  %v8557_v7 = vld [vmem:[%s10948_s1 + $0x30] sm:$0xff]   ;;  %v8561_v10 = vld [vmem:[%s8957_s30 + $0x10] sm:$0xff]   ;;  %vm856_vm4 = vsmask.f32 4368  ;;  %vm1974_vm9 = vcmask 261120  }
  0x41   : > { %7811 = vmatprep.subr.bf16.mxu0 %v8552_v1  ;;  %7825 = vmatprep.mubr.bf16.mxu0 %v8559_v4  ;;  %v8556_v6 = vld [vmem:[%s10948_s1 + $0x28] sm:$0xff]   ;;  %v8558_v8 = vld [vmem:[%s10948_s1 + $0x38] sm:$0xff]   ;;  %v8560_v9 = vld [vmem:[%s8957_s30 + $0x8] sm:$0xff]   ;;  %vm1523_vm10 = vsmask.f32 3328  ;;  %vm2533_vm13 = vcmask 1042432  }
  0x42   : > { %v8562_v11 = vld [vmem:[%s8957_s30 + $0x18] sm:$0xff]   ;;  %v8563_v12 = vld [vmem:[%s8957_s30 + $0x20] sm:$0xff]   ;;  %v8564_v13 = vld [vmem:[%s8957_s30 + $0x28] sm:$0xff]   ;;  %vm1524_vm11 = vsmask.f32 7440  ;;  %vm2534_vm14 = vcmask 1046532  }
  0x43   : > { %v8565_v14 = vld [vmem:[%s8957_s30 + $0x30] sm:$0xff]   ;;  %v8566_v15 = vld [vmem:[%s8957_s30 + $0x38] sm:$0xff]   ;;  %v8567_v16 = vld [vmem:[%s8957_s30 + $0x40] sm:$0xff]   ;;  %s6852_s12 = sshll.u32 %s8953_s22, 7  ;;  %p11054_p9 = scmp.ne.s32.totalorder %s10978_s14, 0 }
  0x44   : > { %7812 = vmatpush3.bf16.msra.mxu0 %v8552_v1  ;;  %v8568_v17 = vld [vmem:[%s8957_s30 + $0x48] sm:$0xff]   ;;  %v8569_v18 = vld [vmem:[%s8957_s30 + $0x50] sm:$0xff]   ;;  %v8570_v19 = vld [vmem:[%s8957_s30 + $0x58] sm:$0xff]   ;;  %s10835_s19 = scalar_lea.vmem [#allocation6], %s6852_s12  ;;  %s8798_s20 = smov [#allocation6]  }
  0x45   : > { %7813 = vmatprep.subr.bf16.mxu0 %v8553_v2  ;;  %v8571_v20 = vld [vmem:[%s8957_s30 + $0x60] sm:$0xff]   ;;  %v8572_v21 = vld [vmem:[%s8957_s30 + $0x68] sm:$0xff]   ;;  %v8573_v22 = vld [vmem:[%s8957_s30 + $0x70] sm:$0xff]   ;;  %s6758_s11 = sshll.u32 %s10835_s19, 4  ;;  %s8714_s23 = sshll.u32 %s8798_s20, 4  ;;  %s10896_s11 = int_to_ptr.vmem [resolvable:$true] %s6758_s11  ;;  %s8715_s23 = int_to_ptr.vmem [resolvable:$false] %s8714_s23 }
  0x46   : > { %v8574_v23 = vld [vmem:[%s8957_s30 + $0x78] sm:$0xff]   ;;  %v8575_v24 = vld [vmem:[%s8957_s30 + $0x80] sm:$0xff]   ;;  %v8576_v25 = vld [vmem:[%s8957_s30 + $0x88] sm:$0xff]   ;;  %s8710_s17 = scalar_lea.vmem %s10896_s11, 2048  ;;  %s8716_s8 = scalar_lea.vmem %s8715_s23, 4096 }
  0x47   : > { %v8577_v26 = vld [vmem:[%s10950_s3 + $0x10] sm:$0xff]   ;;  %v8578_v27 = vld [vmem:[%s10950_s3 + $0x18] sm:$0xff]   ;;  %v9020_v30 = vld [vmem:[%s10950_s3 + $0x40] sm:$0xff]   ;;  %p8711_p8 = scmp.ne.s32.totalorder %s10896_s11, %s8710_s17  ;;  %p8717_p5 = scmp.lt.s32.totalorder %s10896_s11, %s8715_s23 }
  0x48   : > { %7814 = vmatpush3.bf16.msra.mxu0 %v8553_v2  ;;  %v8579_v28 = vld [vmem:[%s10950_s3 + $0x30] sm:$0xff]   ;;  %v8581_v29 = vld [vmem:[%s10950_s3 + $0x38] sm:$0xff]   ;;  %v9026_v31 = vld [vmem:[%s10949_s2] ss:$0 sm:$0xff]  ;;  %p8718_p13 = scmp.lt.s32.totalorder %s8716_s8, %s8710_s17 }
  0x49   : > { %7815 = vmatprep.subr.bf16.mxu0 %v8554_v3  ;;  %8221 = vmatprep.subr.bf16.mxu1 %v8579_v28  ;;  %vm9035_vm5 = vmand %vm1218_vm1, %vm1219_vm2  ;;  %v1231_v59 = vld [vmem:[#allocation2 + $0xc] sm:$0xf]  ;;  %v1221_v4 = vld [vmem:[#allocation2] sm:$0xf]  ;;  %p8712_p11 = pnand %p8711_p8, %p11054_p9 }
  0x4a   : > { %8223 = vmatpush3.bf16.msra.mxu1 %v8579_v28  ;;  %vm9042_vm6 = vmand %vm1226_vm3, %vm855_vm0  ;;  %p8719_p2 = por %p8718_p13, %p8717_p5 }
  0x4b   : > { %8222 = vmatprep.subr.bf16.mxu1 %v8581_v29  ;;  %vm9048_vm7 = vmor %vm855_vm0, %vm856_vm4  ;;  %p8713_p0 = pneg %p8712_p11 }
  0x4c   : > { %7816 = vmatpush3.bf16.msra.mxu0 %v8554_v3  ;;  %vm9082_vm8 = vmand %vm1226_vm3, %vm1219_vm2 }
  0x4d   : > { %7817 = vmatprep.subr.bf16.mxu0 %v8555_v5  ;;  %vm9319_vm12 = vmor %vm1523_vm10, %vm1524_vm11  ;;  %p8720_p4 = pnand %p8719_p2, %p8713_p0 }
  0x4e   : > { %8224 = vmatpush3.bf16.msra.mxu1 %v8581_v29  ;;  %vm9883_vm15 = vmor %vm2533_vm13, %vm2534_vm14 }
  0x4f   : > { %8005 = vmatprep.subr.bf16.mxu1 %v9020_v30 }
  0x50   : > { %7818 = vmatpush3.bf16.msra.mxu0 %v8555_v5 }
  0x51   : > { %7819 = vmatprep.subr.bf16.mxu0 %v8556_v6 }
  0x54   : > { %7820 = vmatpush3.bf16.msra.mxu0 %v8556_v6 }
  0x55   : > { %7821 = vmatprep.subr.bf16.mxu0 %v8557_v7 }
  0x58   : > { %7822 = vmatpush3.bf16.msra.mxu0 %v8557_v7 }
  0x59   : > { %7823 = vmatprep.subr.bf16.mxu0 %v8558_v8 }
  0x5c   : > { %7824 = vmatpush3.bf16.msra.mxu0 %v8558_v8 }
  0x5d   : > { %7861 = vmatprep.subr.bf16.mxu0 %v8577_v26 }
  0x5f   : > { %7826 = vmatmul.mubr.bf16.vlgmr.msra.gmra.mrb[0].mxu0 %v8560_v9 }
  0x60   : > { %7829 = vmatprep.mubr.bf16.mxu0 %v8561_v10  ;;  %7862 = vmatpush3.bf16.msra.mxu0 %v8577_v26 }
  0x61   : > { %7863 = vmatprep.subr.bf16.mxu0 %v8578_v27 }
  0x64   : > { %7864 = vmatpush3.bf16.msra.mxu0 %v8578_v27 }
  0x67   : > { %7830 = vmatmul.mubr.bf16.gmra.mrb[4].mxu0 %v8562_v11  ;;  %v1235_v11 = vld [vmem:[#allocation2 + $0x14] sm:$0x1] }
  0x68   : > { %7833 = vmatprep.mubr.bf16.mxu0 %v8563_v12 }
  0x6f   : > { %7834 = vmatmul.mubr.bf16.gmra.mrb[8].mxu0 %v8564_v13 }
  0x70   : > { %7837 = vmatprep.mubr.bf16.mxu0 %v8565_v14 }
  0x77   : > { %7838 = vmatmul.mubr.bf16.gmra.mrb[12].mxu0 %v8566_v15 }
  0x78   : > { %7841 = vmatprep.mubr.bf16.mxu0 %v8567_v16 }
  0x7f   : > { %7842 = vmatmul.mubr.bf16.gmra.mrb[16].mxu0 %v8568_v17  ;;  %v1228_v17 = vld [vmem:[#allocation2 + $0x8] sm:$0x1] }
  0x80   : > { %7845 = vmatprep.mubr.bf16.mxu0 %v8569_v18 }
  0x87   : > { %7846 = vmatmul.mubr.bf16.gmra.mrb[20].mxu0 %v8570_v19 }
  0x88   : > { %7849 = vmatprep.mubr.bf16.mxu0 %v8571_v20 }
  0x8f   : > { %7850 = vmatmul.mubr.bf16.gmra.mrb[24].mxu0 %v8572_v21 }
  0x90   : > { %7853 = vmatprep.mubr.bf16.mxu0 %v8573_v22 }
  0x97   : > { %7854 = vmatmul.mubr.bf16.gmra.mrb[28].mxu0 %v8574_v23 }
  0x98   : > { %7857 = vmatprep.mubr.bf16.mxu0 %v8575_v24 }
  0x9f   : > { %7858 = vmatmul.mubr.bf16.gmra.mrb[32].mxu0 %v8576_v25 }
 0x132   : > { %v7827_v32 = vpop.f32.mrb[0].mxu0 }
 0x133   : > { %v577_v33 = vadd.f32 %v7827_v32, %v9026_v31  ;;  %v568_v34 = vpop.f32.mrb[1].mxu0 }
 0x134   : > { %v569_v35 = vadd.f32 %v9026_v31, %v568_v34  ;;  %v7828_v36 = vpop.f32.mrb[2].mxu0 }
 0x135   : > { %v713_v37 = vmax.f32 %v577_v33, 0.0  ;;  %v580_v38 = vadd.f32 %v7828_v36, %v9026_v31  ;;  %v571_v39 = vpop.f32.mrb[3].mxu0 }
 0x136   : > { %v711_v40 = vmax.f32 %v569_v35, 0.0  ;;  %v572_v41 = vadd.f32 %v9026_v31, %v571_v39  ;;  %v1245_v39 = vld [vmem:[#allocation2 + $0x24] sm:$0xf] }
 0x137   : > { %v7361_v42 = vpack.c.bf16 %v713_v37, %v713_v37  ;;  %v714_v43 = vmax.f32 %v580_v38, 0.0  ;;  %v8797_v38 = vmov 0  }
 0x138   : > { %v7359_v44 = vpack.c.bf16 %v711_v40, %v711_v40  ;;  %v712_v45 = vmax.f32 %v572_v41, 0.0 }
 0x139   : > { %v876_v46 = vshrl.u32 %v7361_v42, 16  ;;  %v7362_v47 = vpack.c.bf16 %v714_v43, %v714_v43  ;;  %v879_v48 = vshll.u32 %v7361_v42, 16 }
 0x13a   : > { %v859_v49 = vshrl.u32 %v7359_v44, 16  ;;  %v862_v50 = vshll.u32 %v7359_v44, 16  ;;  %v7360_v51 = vpack.c.bf16 %v712_v45, %v712_v45  ;;  %v7831_v52 = vpop.f32.mrb[4].mxu0 }
 0x13b   : > { %v878_v53 = vrot.slane %v876_v46, 7  ;;  %v884_v54 = vshrl.u32 %v7362_v47, 16  ;;  %v887_v55 = vshll.u32 %v7362_v47, 16  ;;  %v593_v56 = vadd.f32 %v7831_v52, %v9026_v31  ;;  %v584_v57 = vpop.f32.mrb[5].mxu0  ;;  %v1238_v46 = vld [vmem:[#allocation2 + $0x18] sm:$0xf] }
 0x13c   : > { %v861_v60 = vrot.slane %v859_v49, 7  ;;  %v867_v61 = vshrl.u32 %v7360_v51, 16  ;;  %v870_v62 = vshll.u32 %v7360_v51, 16  ;;  %v585_v63 = vadd.f32 %v9026_v31, %v584_v57  ;;  %v7832_v0 = vpop.f32.mrb[6].mxu0 }
 0x13d   : > { %v881_v1 = vor.u32 %v879_v48, %v878_v53  ;;  %v882_v2 = vrot.slane %v878_v53, 4  ;;  %v886_v5 = vrot.slane %v884_v54, 7  ;;  %v717_v6 = vmax.f32 %v593_v56, 0.0  ;;  %v587_v7 = vpop.f32.mrb[7].mxu0 }
 0x13e   : > { %v864_v8 = vor.u32 %v862_v50, %v861_v60  ;;  %v865_v9 = vrot.slane %v861_v60, 4  ;;  %v869_v12 = vrot.slane %v867_v61, 7  ;;  %v715_v13 = vmax.f32 %v585_v63, 0.0 }
 0x13f   : > { %v1232_v14 = vsel %vm9035_vm5, %v881_v1, %v1231_v59  ;;  %v889_v15 = vor.u32 %v887_v55, %v886_v5  ;;  %v891_v16 = vrot.slane %v886_v5, 4  ;;  %v7365_v18 = vpack.c.bf16 %v717_v6, %v717_v6 }
 0x140   : > { %1233 = vst [vmem:[#allocation2 + $0xc] sm:$0xf] %v1232_v14  ;;  %v1222_v19 = vsel %vm9035_vm5, %v864_v8, %v1221_v4  ;;  %v872_v20 = vor.u32 %v870_v62, %v869_v12  ;;  %v874_v21 = vrot.slane %v869_v12, 4  ;;  %v7363_v22 = vpack.c.bf16 %v715_v13, %v715_v13 }
 0x141   : > { %1223 = vst [vmem:[#allocation2] sm:$0xf] %v1222_v19  ;;  %v890_v23 = vsel %vm9048_vm7, %v882_v2, %v889_v15  ;;  %v1236_v24 = vsel %vm9042_vm6, %v891_v16, %v1235_v11  ;;  %v910_v25 = vshrl.u32 %v7365_v18, 16  ;;  %v913_v28 = vshll.u32 %v7365_v18, 16  ;;  %v1249_v11 = vld [vmem:[#allocation2 + $0x2c] sm:$0x1] }
 0x142   : > { %1234 = vst.msk [vmem:[#allocation2 + $0x10] sm:$0xf] %vm1218_vm1, %v890_v23  ;;  %1237 = vst [vmem:[#allocation2 + $0x14] sm:$0x1] %v1236_v24  ;;  %v873_v26 = vsel %vm9048_vm7, %v865_v9, %v872_v20  ;;  %v1229_v27 = vsel %vm9042_vm6, %v874_v21, %v1228_v17  ;;  %v893_v29 = vshrl.u32 %v7363_v22, 16  ;;  %v7835_v32 = vpop.f32.mrb[8].mxu0  ;;  %v596_v34 = vadd.f32 %v7832_v0, %v9026_v31 }
 0x143   : > { %1225 = vst.msk [vmem:[#allocation2 + $0x4] sm:$0xf] %vm1218_vm1, %v873_v26  ;;  %1230 = vst [vmem:[#allocation2 + $0x8] sm:$0x1] %v1229_v27  ;;  %v9066_v33 = vrot.slane %v910_v25, 7  ;;  %v588_v35 = vadd.f32 %v9026_v31, %v587_v7  ;;  %v609_v36 = vadd.f32 %v7835_v32, %v9026_v31  ;;  %v600_v37 = vpop.f32.mrb[9].mxu0 }
 0x144   : > { %1464 = vst.msk [vmem:[#allocation2 + $0x4] sm:$0xf] %vm1218_vm1, %v8797_v38  ;;  %v9073_v40 = vrot.slane %v893_v29, 7  ;;  %v896_v41 = vshll.u32 %v7363_v22, 16  ;;  %v601_v42 = vadd.f32 %v9026_v31, %v600_v37  ;;  %v7836_v43 = vpop.f32.mrb[10].mxu0  ;;  %v718_v47 = vmax.f32 %v596_v34, 0.0 }
 0x145   : > { %v915_v44 = vor.u32 %v913_v28, %v9066_v33  ;;  %v916_v45 = vrot.slane %v9066_v33, 4  ;;  %v716_v48 = vmax.f32 %v588_v35, 0.0  ;;  %v603_v49 = vpop.f32.mrb[11].mxu0  ;;  %v721_v52 = vmax.f32 %v609_v36, 0.0  ;;  %v1242_v20 = vld [vmem:[#allocation2 + $0x20] sm:$0x1] }
 0x146   : > { %v898_v50 = vor.u32 %v896_v41, %v9073_v40  ;;  %v899_v51 = vrot.slane %v9073_v40, 4  ;;  %v719_v53 = vmax.f32 %v601_v42, 0.0  ;;  %v7366_v57 = vpack.c.bf16 %v718_v47, %v718_v47  ;;  %v1259_v32 = vld [vmem:[#allocation2 + $0x3c] sm:$0xf]  ;;  %v1252_v47 = vld [vmem:[#allocation2 + $0x30] sm:$0xf] }
 0x147   : > { %v1353_v54 = vld [vmem:[#allocation2 + $0xc] sm:$0x1]  ;;  %v1246_v56 = vsel %vm9035_vm5, %v915_v44, %v1245_v39  ;;  %v7364_v59 = vpack.c.bf16 %v716_v48, %v716_v48  ;;  %v612_v60 = vadd.f32 %v7836_v43, %v9026_v31  ;;  %v7369_v0 = vpack.c.bf16 %v721_v52, %v721_v52 }
 0x148   : > { %v1354_v61 = vsel %vm9042_vm6, 0, %v1353_v54  ;;  %v1350_v62 = vld [vmem:[#allocation2] sm:$0x1]  ;;  %1247 = vst [vmem:[#allocation2 + $0x24] sm:$0xf] %v1246_v56  ;;  %v1239_v63 = vsel %vm9035_vm5, %v898_v50, %v1238_v46  ;;  %v7367_v1 = vpack.c.bf16 %v719_v53, %v719_v53  ;;  %v918_v5 = vshrl.u32 %v7366_v57, 16 }
 0x149   : > { %1355 = vst [vmem:[#allocation2 + $0xc] sm:$0x1] %v1354_v61  ;;  %v1351_v2 = vsel %vm9042_vm6, 0, %v1350_v62  ;;  %v1408_v4 = vld [vmem:[#allocation2 + $0x14] sm:$0x1]  ;;  %v921_v6 = vshll.u32 %v7366_v57, 16  ;;  %v604_v24 = vadd.f32 %v9026_v31, %v603_v49 }
 0x14a   : > { %1240 = vst [vmem:[#allocation2 + $0x18] sm:$0xf] %v1239_v63  ;;  %v901_v7 = vshrl.u32 %v7364_v59, 16  ;;  %1352 = vst [vmem:[#allocation2] sm:$0x1] %v1351_v2  ;;  %v1409_v8 = vsel %vm9082_vm8, 0, %v1408_v4 }
 0x14b   : > { %v1405_v9 = vld [vmem:[#allocation2 + $0x8] sm:$0x1]  ;;  %v904_v12 = vshll.u32 %v7364_v59, 16  ;;  %v944_v13 = vshrl.u32 %v7369_v0, 16  ;;  %v947_v14 = vshll.u32 %v7369_v0, 16  ;;  %v920_v16 = vrot.slane %v918_v5, 7 }
 0x14c   : > { %1463 = vst.msk [vmem:[#allocation2] sm:$0xf] %vm1218_vm1, %v8797_v38  ;;  %1410 = vst [vmem:[#allocation2 + $0x14] sm:$0x1] %v1409_v8  ;;  %v1406_v15 = vsel %vm9082_vm8, 0, %v1405_v9  ;;  %v903_v17 = vrot.slane %v901_v7, 7 }
 0x14d   : > { %v927_v18 = vshrl.u32 %v7367_v1, 16  ;;  %v7839_v19 = vpop.f32.mrb[12].mxu0  ;;  %1407 = vst [vmem:[#allocation2 + $0x8] sm:$0x1] %v1406_v15  ;;  %v9101_v21 = vrot.slane %v944_v13, 7  ;;  %v930_v22 = vshll.u32 %v7367_v1, 16  ;;  %v923_v26 = vor.u32 %v921_v6, %v920_v16 }
 0x14e   : > { %v722_v23 = vmax.f32 %v612_v60, 0.0  ;;  %v616_v25 = vpop.f32.mrb[13].mxu0  ;;  %1466 = vst.msk [vmem:[#allocation2 + $0x8] sm:$0x1] %vm1226_vm3, %v8797_v38  ;;  %v925_v27 = vrot.slane %v920_v16, 4  ;;  %v906_v28 = vor.u32 %v904_v12, %v903_v17  ;;  %v908_v29 = vrot.slane %v903_v17, 4 }
 0x14f   : > { %v7840_v34 = vpop.f32.mrb[14].mxu0  ;;  %v949_v35 = vor.u32 %v947_v14, %v9101_v21  ;;  %v950_v36 = vrot.slane %v9101_v21, 4  ;;  %v9108_v37 = vrot.slane %v927_v18, 7  ;;  %v1359_v41 = vld [vmem:[#allocation2 + $0x24] sm:$0x1]  ;;  %v924_v42 = vsel %vm9048_vm7, %v916_v45, %v923_v26 }
 0x150   : > { %v7370_v39 = vpack.c.bf16 %v722_v23, %v722_v23  ;;  %v619_v40 = vpop.f32.mrb[15].mxu0  ;;  %v1250_v43 = vsel %vm9042_vm6, %v925_v27, %v1249_v11  ;;  %v907_v44 = vsel %vm9048_vm7, %v899_v51, %v906_v28  ;;  %v1243_v46 = vsel %vm9042_vm6, %v908_v29, %v1242_v20  ;;  %1248 = vst.msk [vmem:[#allocation2 + $0x28] sm:$0xf] %vm1218_vm1, %v924_v42  ;;  %v1263_v4 = vld [vmem:[#allocation2 + $0x44] sm:$0x1] }
 0x151   : > { %v1360_v48 = vsel %vm9042_vm6, 0, %v1359_v41  ;;  %v1356_v49 = vld [vmem:[#allocation2 + $0x18] sm:$0x1]  ;;  %1251 = vst [vmem:[#allocation2 + $0x2c] sm:$0x1] %v1250_v43  ;;  %v1260_v33 = vsel %vm9035_vm5, %v949_v35, %v1259_v32  ;;  %v932_v45 = vor.u32 %v930_v22, %v9108_v37  ;;  %v933_v50 = vrot.slane %v9108_v37, 4 }
 0x152   : > { %1241 = vst.msk [vmem:[#allocation2 + $0x1c] sm:$0xf] %vm1218_vm1, %v907_v44  ;;  %1244 = vst [vmem:[#allocation2 + $0x20] sm:$0x1] %v1243_v46  ;;  %v1357_v51 = vsel %vm9042_vm6, 0, %v1356_v49  ;;  %v952_v52 = vshrl.u32 %v7370_v39, 16  ;;  %v625_v57 = vadd.f32 %v7839_v19, %v9026_v31  ;;  %v617_v59 = vadd.f32 %v9026_v31, %v616_v25 }
 0x153   : > { %1361 = vst [vmem:[#allocation2 + $0x24] sm:$0x1] %v1360_v48  ;;  %1261 = vst [vmem:[#allocation2 + $0x3c] sm:$0xf] %v1260_v33  ;;  %v955_v53 = vshll.u32 %v7370_v39, 16  ;;  %v720_v54 = vmax.f32 %v604_v24, 0.0  ;;  %v1253_v56 = vsel %vm9035_vm5, %v932_v45, %v1252_v47  ;;  %v628_v60 = vadd.f32 %v7840_v34, %v9026_v31 }
 0x154   : > { %1358 = vst [vmem:[#allocation2 + $0x18] sm:$0x1] %v1357_v51  ;;  %v7843_v61 = vpop.f32.mrb[16].mxu0  ;;  %1254 = vst [vmem:[#allocation2 + $0x30] sm:$0xf] %v1253_v56  ;;  %v954_v62 = vrot.slane %v952_v52, 7  ;;  %v620_v0 = vadd.f32 %v9026_v31, %v619_v40 }
 0x155   : > { %v7368_v63 = vpack.c.bf16 %v720_v54, %v720_v54  ;;  %v9137_v1 = vadd.f32 %v7843_v61, %v9026_v31  ;;  %v632_v2 = vpop.f32.mrb[17].mxu0  ;;  %v725_v5 = vmax.f32 %v625_v57, 0.0  ;;  %v723_v6 = vmax.f32 %v617_v59, 0.0  ;;  %v1256_v16 = vld [vmem:[#allocation2 + $0x38] sm:$0x1] }
 0x156   : > { %v726_v7 = vmax.f32 %v628_v60, 0.0  ;;  %v9140_v8 = vadd.f32 %v9026_v31, %v632_v2  ;;  %v9142_v9 = vpop.f32.mrb[18].mxu0  ;;  %v957_v11 = vor.u32 %v955_v53, %v954_v62  ;;  %v959_v12 = vrot.slane %v954_v62, 4  ;;  %v1273_v33 = vld [vmem:[#allocation2 + $0x54] sm:$0xf] }
 0x157   : > { %v935_v13 = vshrl.u32 %v7368_v63, 16  ;;  %v938_v14 = vshll.u32 %v7368_v63, 16  ;;  %v9144_v15 = vpop.f32.mrb[19].mxu0  ;;  %v7373_v17 = vpack.c.bf16 %v725_v5, %v725_v5  ;;  %v7371_v18 = vpack.c.bf16 %v723_v6, %v723_v6  ;;  %v1266_v54 = vld [vmem:[#allocation2 + $0x48] sm:$0xf] }
 0x158   : > { %v7374_v19 = vpack.c.bf16 %v726_v7, %v726_v7  ;;  %v724_v20 = vmax.f32 %v620_v0, 0.0  ;;  %v1414_v21 = vld [vmem:[#allocation2 + $0x2c] sm:$0x1]  ;;  %v958_v23 = vsel %vm9048_vm7, %v950_v36, %v957_v11  ;;  %v1264_v24 = vsel %vm9042_vm6, %v959_v12, %v1263_v4  ;;  %v1277_v61 = vld [vmem:[#allocation2 + $0x5c] sm:$0x1] }
 0x159   : > { %v1411_v22 = vld [vmem:[#allocation2 + $0x20] sm:$0x1]  ;;  %v937_v25 = vrot.slane %v935_v13, 7  ;;  %v729_v26 = vmax.f32 %v9137_v1, 0.0  ;;  %v1415_v27 = vsel %vm9082_vm8, 0, %v1414_v21  ;;  %v978_v32 = vshrl.u32 %v7373_v17, 16 }
 0x15a   : > { %v1412_v28 = vsel %vm9082_vm8, 0, %v1411_v22  ;;  %v1365_v29 = vld [vmem:[#allocation2 + $0x3c] sm:$0x1]  ;;  %1262 = vst.msk [vmem:[#allocation2 + $0x40] sm:$0xf] %vm1218_vm1, %v958_v23  ;;  %v981_v34 = vshll.u32 %v7373_v17, 16  ;;  %v7372_v57 = vpack.c.bf16 %v724_v20, %v724_v20  ;;  %v644_v21 = vadd.f32 %v9142_v9, %v9026_v31 }
 0x15b   : > { %1265 = vst [vmem:[#allocation2 + $0x44] sm:$0x1] %v1264_v24  ;;  %1416 = vst [vmem:[#allocation2 + $0x2c] sm:$0x1] %v1415_v27  ;;  %v1366_v35 = vsel %vm9042_vm6, 0, %v1365_v29  ;;  %v940_v36 = vor.u32 %v938_v14, %v937_v25  ;;  %v942_v39 = vrot.slane %v937_v25, 4  ;;  %v636_v22 = vadd.f32 %v9026_v31, %v9144_v15 }
 0x15c   : > { %1413 = vst [vmem:[#allocation2 + $0x20] sm:$0x1] %v1412_v28  ;;  %v961_v40 = vshrl.u32 %v7371_v18, 16  ;;  %1367 = vst [vmem:[#allocation2 + $0x3c] sm:$0x1] %v1366_v35  ;;  %v980_v42 = vrot.slane %v978_v32, 7 }
 0x15d   : > { %v1362_v41 = vld [vmem:[#allocation2 + $0x30] sm:$0x1]  ;;  %v964_v43 = vshll.u32 %v7371_v18, 16  ;;  %v986_v44 = vshrl.u32 %v7374_v19, 16  ;;  %v989_v46 = vshll.u32 %v7374_v19, 16  ;;  %v941_v48 = vsel %vm9048_vm7, %v933_v50, %v940_v36  ;;  %v7847_v51 = vpop.f32.mrb[20].mxu0 }
 0x15e   : > { %v1363_v47 = vsel %vm9042_vm6, 0, %v1362_v41  ;;  %v1257_v49 = vsel %vm9042_vm6, %v942_v39, %v1256_v16  ;;  %v963_v45 = vrot.slane %v961_v40, 7  ;;  %1255 = vst.msk [vmem:[#allocation2 + $0x34] sm:$0xf] %vm1218_vm1, %v941_v48  ;;  %v983_v52 = vor.u32 %v981_v34, %v980_v42  ;;  %v648_v59 = vpop.f32.mrb[21].mxu0 }
 0x15f   : > { %1364 = vst [vmem:[#allocation2 + $0x30] sm:$0x1] %v1363_v47  ;;  %1258 = vst [vmem:[#allocation2 + $0x38] sm:$0x1] %v1257_v49  ;;  %v984_v53 = vrot.slane %v980_v42, 4  ;;  %v988_v56 = vrot.slane %v986_v44, 7  ;;  %v7377_v50 = vpack.c.bf16 %v729_v26, %v729_v26  ;;  %v657_v27 = vadd.f32 %v7847_v51, %v9026_v31 }
 0x160   : > { %v966_v37 = vor.u32 %v964_v43, %v963_v45  ;;  %v967_v60 = vrot.slane %v963_v45, 4  ;;  %v727_v62 = vmax.f32 %v9140_v8, 0.0  ;;  %v7848_v63 = vpop.f32.mrb[22].mxu0  ;;  %v1274_v0 = vsel %vm9035_vm5, %v983_v52, %v1273_v33  ;;  %v1270_v18 = vld [vmem:[#allocation2 + $0x50] sm:$0x1]  ;;  %v9205_v44 = vld [vmem:[%s10950_s3] sm:$0xff]  }
 0x161   : > { %v991_v1 = vor.u32 %v989_v46, %v988_v56  ;;  %v993_v2 = vrot.slane %v988_v56, 4  ;;  %v969_v4 = vshrl.u32 %v7372_v57, 16  ;;  %v651_v5 = vpop.f32.mrb[23].mxu0  ;;  %1275 = vst [vmem:[#allocation2 + $0x54] sm:$0xf] %v1274_v0  ;;  %v972_v11 = vshll.u32 %v7372_v57, 16  ;;  %7897 = vmatprep.subr.bf16.mxu0 %v9205_v44 }
 0x162   : > { %v1420_v6 = vld [vmem:[#allocation2 + $0x44] sm:$0x1]  ;;  %v1267_v7 = vsel %vm9035_vm5, %v966_v37, %v1266_v54  ;;  %v1012_v12 = vshrl.u32 %v7377_v50, 16  ;;  %v1015_v13 = vshll.u32 %v7377_v50, 16  ;;  %v7375_v20 = vpack.c.bf16 %v727_v62, %v727_v62  ;;  %v1287_v26 = vld [vmem:[#allocation2 + $0x6c] sm:$0xf] }
 0x163   : > { %v1421_v14 = vsel %vm9082_vm8, 0, %v1420_v6  ;;  %1268 = vst [vmem:[#allocation2 + $0x48] sm:$0xf] %v1267_v7  ;;  %v992_v8 = vsel %vm9048_vm7, %v984_v53, %v991_v1  ;;  %v1278_v16 = vsel %vm9042_vm6, %v993_v2, %v1277_v61  ;;  %v971_v17 = vrot.slane %v969_v4, 7  ;;  %v8580_v23 = vld [vmem:[#allocation2 + $0x3c] sm:$0xff]   ;;  %v9187_v29 = vpop.f32.mrb[24].mxu0 }
 0x164   : > { %1422 = vst [vmem:[#allocation2 + $0x44] sm:$0x1] %v1421_v14  ;;  %1276 = vst.msk [vmem:[#allocation2 + $0x58] sm:$0xf] %vm1218_vm1, %v992_v8  ;;  %v9179_v19 = vrot.slane %v1012_v12, 7  ;;  %v649_v28 = vadd.f32 %v9026_v31, %v648_v59  ;;  %v995_v36 = vshrl.u32 %v7375_v20, 16  ;;  %7981 = vmatprep.mubr.msk.bf16.mxu1 %vm1974_vm9, %v8580_v23  ;;  %v9215_v54 = vadd.f32 %v7848_v63, %v9026_v31 }
 0x165   : > { %1279 = vst [vmem:[#allocation2 + $0x5c] sm:$0x1] %v1278_v16  ;;  %v974_v24 = vor.u32 %v972_v11, %v971_v17  ;;  %v976_v25 = vrot.slane %v971_v17, 4  ;;  %v998_v9 = vshll.u32 %v7375_v20, 16  ;;  %v9191_v39 = vpop.f32.mrb[25].mxu0  ;;  %v730_v42 = vmax.f32 %v644_v21, 0.0 }
 0x166   : > { %v1417_v32 = vld [vmem:[#allocation2 + $0x38] sm:$0x1]  ;;  %v1017_v34 = vor.u32 %v1015_v13, %v9179_v19  ;;  %v1018_v35 = vrot.slane %v9179_v19, 4  ;;  %v9200_v43 = vpop.f32.mrb[26].mxu0  ;;  %v9210_v47 = vrot.slane %v995_v36, 7  ;;  %v728_v48 = vmax.f32 %v636_v22, 0.0 }
 0x167   : > { %v1418_v15 = vsel %vm9082_vm8, 0, %v1417_v32  ;;  %v975_v40 = vsel %vm9048_vm7, %v967_v60, %v974_v24  ;;  %v1271_v41 = vsel %vm9042_vm6, %v976_v25, %v1270_v18  ;;  %v733_v49 = vmax.f32 %v657_v27, 0.0  ;;  %v9212_v33 = vpop.f32.mrb[27].mxu0  ;;  %v1280_v51 = vld [vmem:[#allocation2 + $0x60] sm:$0xf] }
 0x168   : > { %1419 = vst [vmem:[#allocation2 + $0x38] sm:$0x1] %v1418_v15  ;;  %1269 = vst.msk [vmem:[#allocation2 + $0x4c] sm:$0xf] %vm1218_vm1, %v975_v40  ;;  %v1288_v46 = vsel %vm9035_vm5, %v1017_v34, %v1287_v26  ;;  %v1371_v45 = vld [vmem:[#allocation2 + $0x54] sm:$0x1]  ;;  %v7378_v52 = vpack.c.bf16 %v730_v42, %v730_v42  ;;  %v9218_v56 = vadd.f32 %v9026_v31, %v651_v5 }
 0x169   : > { %1272 = vst [vmem:[#allocation2 + $0x50] sm:$0x1] %v1271_v41  ;;  %1289 = vst [vmem:[#allocation2 + $0x6c] sm:$0xf] %v1288_v46  ;;  %v731_v53 = vmax.f32 %v649_v28, 0.0  ;;  %v1372_v57 = vsel %vm9042_vm6, 0, %v1371_v45  ;;  %v1000_v37 = vor.u32 %v998_v9, %v9210_v47  ;;  %v7376_v61 = vpack.c.bf16 %v728_v48, %v728_v48 }
 0x16a   : > { %v1368_v59 = vld [vmem:[#allocation2 + $0x48] sm:$0x1]  ;;  %v1001_v60 = vrot.slane %v9210_v47, 4  ;;  %v9225_v50 = vld [vmem:[#allocation2] sm:$0xf]  ;;  %v1020_v0 = vshrl.u32 %v7378_v52, 16  ;;  %v7381_v2 = vpack.c.bf16 %v733_v49, %v733_v49 }
 0x16b   : > { %1373 = vst [vmem:[#allocation2 + $0x54] sm:$0x1] %v1372_v57  ;;  %v1369_v62 = vsel %vm9042_vm6, 0, %v1368_v59  ;;  %v1023_v1 = vshll.u32 %v7378_v52, 16  ;;  %v1281_v5 = vsel %vm9035_vm5, %v1000_v37, %v1280_v51  ;;  %v1291_v6 = vld [vmem:[#allocation2 + $0x74] sm:$0x1]  ;;  %v7379_v16 = vpack.c.bf16 %v731_v53, %v731_v53 }
 0x16c   : > { %v1426_v63 = vld [vmem:[#allocation2 + $0x5c] sm:$0x1]  ;;  %1370 = vst [vmem:[#allocation2 + $0x48] sm:$0x1] %v1369_v62  ;;  %v1003_v7 = vshrl.u32 %v7376_v61, 16  ;;  %v1006_v11 = vshll.u32 %v7376_v61, 16 }
 0x16d   : > { %v1427_v4 = vsel %vm9082_vm8, 0, %v1426_v63  ;;  %1282 = vst [vmem:[#allocation2 + $0x60] sm:$0xf] %v1281_v5  ;;  %v1022_v12 = vrot.slane %v1020_v0, 7  ;;  %v1284_v13 = vld [vmem:[#allocation2 + $0x68] sm:$0x1] }
 0x16e   : > { %1428 = vst [vmem:[#allocation2 + $0x5c] sm:$0x1] %v1427_v4  ;;  %v1046_v14 = vshrl.u32 %v7381_v2, 16  ;;  %v1049_v8 = vshll.u32 %v7381_v2, 16  ;;  %v9233_v17 = vpop.f32.mrb[28].mxu0  ;;  %v1005_v18 = vrot.slane %v1003_v7, 7 }
 0x16f   : > { %v1301_v20 = vld [vmem:[#allocation2 + $0x84] sm:$0xf]  ;;  %v734_v21 = vmax.f32 %v9215_v54, 0.0  ;;  %v732_v22 = vmax.f32 %v9218_v56, 0.0  ;;  %v1527_v23 = vshrl.u32 %v9225_v50, 16  ;;  %v9238_v24 = vpop.f32.mrb[29].mxu0  ;;  %v1025_v26 = vor.u32 %v1023_v1, %v1022_v12 }
 0x170   : > { %v1423_v25 = vld [vmem:[#allocation2 + $0x50] sm:$0x1]  ;;  %v1027_v27 = vrot.slane %v1022_v12, 4  ;;  %v9240_v28 = vrot.slane %v1046_v14, 7  ;;  %v1029_v32 = vshrl.u32 %v7379_v16, 16  ;;  %v9242_v34 = vpop.f32.mrb[30].mxu0  ;;  %v1008_v15 = vor.u32 %v1006_v11, %v1005_v18 }
 0x171   : > { %v1424_v36 = vsel %vm9082_vm8, 0, %v1423_v25  ;;  %v1377_v9 = vld [vmem:[#allocation2 + $0x6c] sm:$0x1]  ;;  %v1010_v40 = vrot.slane %v1005_v18, 4  ;;  %v1032_v41 = vshll.u32 %v7379_v16, 16  ;;  %v9246_v42 = vpop.f32.mrb[31].mxu0  ;;  %v1026_v47 = vsel %vm9048_vm7, %v1018_v35, %v1025_v26 }
 0x172   : > { %1425 = vst [vmem:[#allocation2 + $0x50] sm:$0x1] %v1424_v36  ;;  %v1378_v46 = vsel %vm9042_vm6, 0, %v1377_v9  ;;  %v1292_v48 = vsel %vm9042_vm6, %v1027_v27, %v1291_v6  ;;  %v1051_v49 = vor.u32 %v1049_v8, %v9240_v28  ;;  %v1294_v45 = vld [vmem:[#allocation2 + $0x78] sm:$0xf]  ;;  %v1009_v52 = vsel %vm9048_vm7, %v1001_v60, %v1008_v15  ;;  %v8589_v54 = vld [vmem:[%s10950_s3 + $0x48] sm:$0xff]  }
 0x173   : > { %v9257_v51 = vld [vmem:[#allocation2 + $0x4] sm:$0xf]  ;;  %1379 = vst [vmem:[#allocation2 + $0x6c] sm:$0x1] %v1378_v46  ;;  %1290 = vst.msk [vmem:[#allocation2 + $0x70] sm:$0xf] %vm1218_vm1, %v1026_v47  ;;  %v1285_v19 = vsel %vm9042_vm6, %v1010_v40, %v1284_v13  ;;  %v7382_v57 = vpack.c.bf16 %v734_v21, %v734_v21  ;;  %v7380_v59 = vpack.c.bf16 %v732_v22, %v732_v22 }
 0x174   : > { %1293 = vst [vmem:[#allocation2 + $0x74] sm:$0x1] %v1292_v48  ;;  %v1052_v35 = vrot.slane %v9240_v28, 4  ;;  %v9265_v53 = vrot.slane %v1029_v32, 7  ;;  %1283 = vst.msk [vmem:[#allocation2 + $0x64] sm:$0xf] %vm1218_vm1, %v1009_v52  ;;  %v1302_v56 = vsel %vm9035_vm5, %v1051_v49, %v1301_v20 }
 0x175   : > { %1286 = vst [vmem:[#allocation2 + $0x68] sm:$0x1] %v1285_v19  ;;  %v1507_v37 = vld [vmem:[#allocation2 + $0x8] sm:$0x1]  ;;  %v1529_v60 = vrot.slane %v1527_v23, 4  ;;  %v1530_v4 = vshll.u32 %v9225_v50, 16 }
 0x176   : > { %v9273_v61 = vld [vmem:[#allocation2 + $0xc] sm:$0xf]  ;;  %v9275_v62 = vld [vmem:[#allocation2 + $0x10] sm:$0xf]  ;;  %v1374_v0 = vld [vmem:[#allocation2 + $0x60] sm:$0x1]  ;;  %v1034_v1 = vor.u32 %v1032_v41, %v9265_v53 }
 0x177   : > { %v8583_v63 = vld [vmem:[#allocation2 + $0x48] sm:$0xff]   ;;  %1303 = vst [vmem:[#allocation2 + $0x84] sm:$0xf] %v1302_v56  ;;  %v1035_v2 = vrot.slane %v9265_v53, 4  ;;  %v1536_v5 = vshll.u32 %v9257_v51, 16  ;;  %v8584_v6 = vld [vmem:[#allocation2 + $0x54] sm:$0xff]  }
 0x178   : > { %v1375_v7 = vsel %vm9042_vm6, 0, %v1374_v0  ;;  %v1054_v11 = vshrl.u32 %v7382_v57, 16  ;;  %v1057_v12 = vshll.u32 %v7382_v57, 16  ;;  %v1037_v13 = vshrl.u32 %v7380_v59, 16  ;;  %7982 = vmatmul.mubr.msk.bf16.vlgmr.msra.gmra.mrb[0].mxu1 %vm1974_vm9, %v8583_v63  ;;  %v9284_v14 = vpop.f32.mrb[32].mxu0  ;;  %v8597_v36 = vld [vmem:[%s10950_s3 + $0x50] sm:$0xff]  }
 0x179   : > { %1376 = vst [vmem:[#allocation2 + $0x60] sm:$0x1] %v1375_v7  ;;  %v1295_v8 = vsel %vm9035_vm5, %v1034_v1, %v1294_v45  ;;  %v1305_v16 = vld [vmem:[#allocation2 + $0x8c] sm:$0x1]  ;;  %v1040_v18 = vshll.u32 %v7380_v59, 16  ;;  %v1532_v20 = vrot.slane %v1530_v4, 5  ;;  %8006 = vmatpush3.bf16.msra.mxu1 %v9020_v30  ;;  %7985 = vmatprep.mubr.msk.bf16.mxu1 %vm1974_vm9, %v8584_v6 }
 0x17a   : > { %v9288_v21 = vrot.slane %v1536_v5, 5  ;;  %v9292_v22 = vpop.f32.mrb[33].mxu0  ;;  %1296 = vst [vmem:[#allocation2 + $0x78] sm:$0xf] %v1295_v8  ;;  %v1056_v23 = vrot.slane %v1054_v11, 7  ;;  %v1039_v25 = vrot.slane %v1037_v13, 7  ;;  %8007 = vmatprep.subr.bf16.mxu1 %v8589_v54 }
 0x17b   : > { %v1540_v26 = vshrl.u32 %v9257_v51, 16  ;;  %v1546_v27 = vshll.u32 %v1507_v37, 16  ;;  %v9295_v32 = vpop.f32.mrb[34].mxu0  ;;  %v1298_v9 = vld [vmem:[#allocation2 + $0x80] sm:$0x1]  ;;  %v1533_v15 = vor.u32 %v1532_v20, %v1529_v60  ;;  %v1551_v30 = vshrl.u32 %v9273_v61, 16 }
 0x17c   : > { %v1554_v40 = vshll.u32 %v9273_v61, 16  ;;  %v1560_v41 = vshll.u32 %v9275_v62, 16  ;;  %v9303_v46 = vpop.f32.mrb[35].mxu0  ;;  %v1432_v47 = vld [vmem:[#allocation2 + $0x74] sm:$0x1]  ;;  %v1059_v48 = vor.u32 %v1057_v12, %v1056_v23  ;;  %v1061_v49 = vrot.slane %v1056_v23, 4 }
 0x17d   : > { %v1042_v45 = vor.u32 %v1040_v18, %v1039_v25  ;;  %v1044_v52 = vrot.slane %v1039_v25, 4  ;;  %v1508_v19 = vld [vmem:[#allocation2 + $0x14] sm:$0x1]  ;;  %v1433_v53 = vsel %vm9082_vm8, 0, %v1432_v47  ;;  %v1429_v56 = vld [vmem:[#allocation2 + $0x68] sm:$0x1]  ;;  %8008 = vmatpush3.bf16.msra.mxu1 %v8589_v54  ;;  %v665_v18 = vadd.f32 %v9026_v31, %v9191_v39 }
 0x17e   : > { %v1534_v57 = vrot.slane %v1533_v15, 4  ;;  %v1542_v59 = vrot.slane %v1540_v26, 4  ;;  %v1548_v37 = vrot.slane %v1546_v27, 5  ;;  %1434 = vst [vmem:[#allocation2 + $0x74] sm:$0x1] %v1433_v53  ;;  %v1430_v60 = vsel %vm9082_vm8, 0, %v1429_v56  ;;  %8041 = vmatprep.subr.bf16.mxu1 %v8597_v36 }
 0x17f   : > { %v1383_v61 = vld [vmem:[#allocation2 + $0x84] sm:$0x1]  ;;  %v1060_v63 = vsel %vm9048_vm7, %v1052_v35, %v1059_v48  ;;  %v1306_v0 = vsel %vm9042_vm6, %v1061_v49, %v1305_v16  ;;  %v1043_v1 = vsel %vm9048_vm7, %v1035_v2, %v1042_v45  ;;  %1431 = vst [vmem:[#allocation2 + $0x68] sm:$0x1] %v1430_v60  ;;  %v1299_v35 = vsel %vm9042_vm6, %v1044_v52, %v1298_v9  ;;  %v1475_v27 = vld [vmem:[#allocation2 + $0x18] sm:$0xf] }
 0x180   : > { %v1384_v28 = vsel %vm9042_vm6, 0, %v1383_v61  ;;  %1304 = vst.msk [vmem:[#allocation2 + $0x88] sm:$0xf] %vm1218_vm1, %v1060_v63  ;;  %1307 = vst [vmem:[#allocation2 + $0x8c] sm:$0x1] %v1306_v0  ;;  %v1539_v2 = vsel %vm9319_vm12, %v1534_v57, %v9288_v21  ;;  %v1543_v4 = vor.u32 %v1542_v59, %v9288_v21  ;;  %v1553_v5 = vrot.slane %v1551_v30, 4 }
 0x181   : > { %1297 = vst.msk [vmem:[#allocation2 + $0x7c] sm:$0xf] %vm1218_vm1, %v1043_v1  ;;  %1385 = vst [vmem:[#allocation2 + $0x84] sm:$0x1] %v1384_v28  ;;  %v1556_v6 = vrot.slane %v1554_v40, 5  ;;  %v1562_v7 = vrot.slane %v1560_v41, 5  ;;  %v673_v16 = vadd.f32 %v9187_v29, %v9026_v31  ;;  %v676_v26 = vadd.f32 %v9200_v43, %v9026_v31 }
 0x182   : > { %1300 = vst [vmem:[#allocation2 + $0x80] sm:$0x1] %v1299_v35  ;;  %v1564_v11 = vshrl.u32 %v9275_v62, 16  ;;  %v1380_v12 = vld [vmem:[#allocation2 + $0x78] sm:$0x1]  ;;  %v1544_v13 = vrot.slane %v1543_v4, 4  ;;  %v668_v43 = vadd.f32 %v9026_v31, %v9212_v33 }
 0x183   : > { %v1570_v8 = vshll.u32 %v1508_v19, 16  ;;  %v8585_v20 = vld [vmem:[#allocation2 + $0x60] sm:$0xff]   ;;  %v1381_v21 = vsel %vm9042_vm6, 0, %v1380_v12  ;;  %v1557_v23 = vor.u32 %v1556_v6, %v1553_v5  ;;  %v8586_v62 = vld [vmem:[#allocation2 + $0x6c] sm:$0xff]   ;;  %v737_v29 = vmax.f32 %v673_v16, 0.0 }
 0x184   : > { %v1566_v25 = vrot.slane %v1564_v11, 4  ;;  %1382 = vst [vmem:[#allocation2 + $0x78] sm:$0x1] %v1381_v21  ;;  %v1549_v36 = vsel %vm9319_vm12, %v1544_v13, %v1548_v37  ;;  %v735_v15 = vmax.f32 %v665_v18, 0.0  ;;  %7986 = vmatmul.mubr.msk.bf16.gmra.mrb[4].mxu1 %vm1974_vm9, %v8585_v20  ;;  %v738_v41 = vmax.f32 %v676_v26, 0.0  ;;  %v8596_v11 = vld [vmem:[%s10950_s3 + $0x8] sm:$0xff]  }
 0x185   : > { %v1572_v9 = vrot.slane %v1570_v8, 5  ;;  %v6916_v39 = vcombine.low %v1539_v2, %v1549_v36  ;;  %v1558_v30 = vrot.slane %v1557_v23, 4  ;;  %7989 = vmatprep.mubr.msk.bf16.mxu1 %vm1974_vm9, %v8586_v62  ;;  %v7385_v47 = vpack.c.bf16 %v737_v29, %v737_v29  ;;  %v1315_v63 = vld [vmem:[#allocation2 + $0x9c] sm:$0xf]  ;;  %v1308_v1 = vld [vmem:[#allocation2 + $0x90] sm:$0xf] }
 0x186   : > { %v1567_v40 = vor.u32 %v1566_v25, %v1562_v7  ;;  %v7383_v48 = vpack.c.bf16 %v735_v15, %v735_v15  ;;  %v1575_v49 = vshrl.u32 %v1475_v27, 16  ;;  %v7386_v53 = vpack.c.bf16 %v738_v41, %v738_v41  ;;  %v1476_v35 = vld [vmem:[#allocation2 + $0x1c] sm:$0xf]  ;;  %v1509_v36 = vld [vmem:[#allocation2 + $0x20] sm:$0x1] }
 0x187   : > { %v1438_v45 = vld [vmem:[#allocation2 + $0x8c] sm:$0x1]  ;;  %7865 = vmatprep.mubr.msk.bf16.mxu0 %vm1974_vm9, %v6916_v39  ;;  %v1563_v52 = vsel %vm9319_vm12, %v1558_v30, %v1562_v7  ;;  %v1578_v56 = vshll.u32 %v1475_v27, 16  ;;  %v1080_v37 = vshrl.u32 %v7385_v47, 16  ;;  %v1083_v60 = vshll.u32 %v7385_v47, 16 }
 0x188   : > { %v1568_v19 = vrot.slane %v1567_v40, 4  ;;  %v1439_v57 = vsel %vm9082_vm8, 0, %v1438_v45  ;;  %v1063_v61 = vshrl.u32 %v7383_v48, 16  ;;  %v1066_v0 = vshll.u32 %v7383_v48, 16  ;;  %v1319_v7 = vld [vmem:[#allocation2 + $0xa4] sm:$0x1] }
 0x189   : > { %v1435_v59 = vld [vmem:[#allocation2 + $0x80] sm:$0x1]  ;;  %1440 = vst [vmem:[#allocation2 + $0x8c] sm:$0x1] %v1439_v57  ;;  %v1088_v28 = vshrl.u32 %v7386_v53, 16  ;;  %v1082_v4 = vrot.slane %v1080_v37, 7 }
 0x18a   : > { %v1436_v31 = vsel %vm9082_vm8, 0, %v1435_v59  ;;  %v1573_v33 = vsel %vm9319_vm12, %v1568_v19, %v1572_v9  ;;  %v9357_v5 = vrot.slane %v1063_v61, 7  ;;  %v1091_v6 = vshll.u32 %v7386_v53, 16  ;;  %v8588_v29 = vld [vmem:[#allocation2 + $0x84] sm:$0xff]   ;;  %v1510_v57 = vld [vmem:[#allocation2 + $0x2c] sm:$0x1] }
 0x18b   : > { %1437 = vst [vmem:[#allocation2 + $0x80] sm:$0x1] %v1436_v31  ;;  %v6917_v2 = vcombine.low %v1563_v52, %v1573_v33  ;;  %v1090_v12 = vrot.slane %v1088_v28, 7  ;;  %v736_v13 = vmax.f32 %v668_v43, 0.0  ;;  %v1577_v8 = vrot.slane %v1575_v49, 4  ;;  %v8587_v25 = vld [vmem:[#allocation2 + $0x78] sm:$0xff]  }
 0x18c   : > { %v1580_v16 = vrot.slane %v1578_v56, 5  ;;  %v1085_v18 = vor.u32 %v1083_v60, %v1082_v4  ;;  %v1086_v20 = vrot.slane %v1082_v4, 4  ;;  %v1068_v21 = vor.u32 %v1066_v0, %v9357_v5  ;;  %v1477_v41 = vld [vmem:[#allocation2 + $0x24] sm:$0xf]  ;;  %v1478_v47 = vld [vmem:[#allocation2 + $0x28] sm:$0xf]  ;;  %7990 = vmatmul.mubr.msk.bf16.gmra.mrb[8].mxu1 %vm1974_vm9, %v8587_v25 }
 0x18d   : > { %7866 = vmatmul.mubr.msk.bf16.vlgmr.msra.gmra.mrb[36].mxu0 %vm1974_vm9, %v6917_v2  ;;  %v1069_v23 = vrot.slane %v9357_v5, 4  ;;  %v1093_v26 = vor.u32 %v1091_v6, %v1090_v12  ;;  %v1095_v27 = vrot.slane %v1090_v12, 4  ;;  %v7384_v62 = vpack.c.bf16 %v736_v13, %v736_v13  ;;  %7993 = vmatprep.mubr.msk.bf16.mxu1 %vm1974_vm9, %v8588_v29  ;;  %v1312_v61 = vld [vmem:[#allocation2 + $0x98] sm:$0x1] }
 0x18e   : > { %v1581_v9 = vor.u32 %v1580_v16, %v1577_v8  ;;  %7898 = vmatpush3.bf16.msra.mxu0 %v9205_v44  ;;  %v1316_v15 = vsel %vm9035_vm5, %v1085_v18, %v1315_v63  ;;  %v1309_v39 = vsel %vm9035_vm5, %v1068_v21, %v1308_v1  ;;  %v1584_v30 = vshll.u32 %v1476_v35, 16  ;;  %v9386_v8 = vld [vmem:[%s10949_s2] ss:$0 sm:$0xff]  ;;  %v1479_v18 = vld [vmem:[#allocation2 + $0x30] sm:$0xf] }
 0x18f   : > { %v1588_v40 = vshrl.u32 %v1476_v35, 16  ;;  %7899 = vmatprep.subr.bf16.mxu0 %v8596_v11  ;;  %1317 = vst [vmem:[#allocation2 + $0x9c] sm:$0xf] %v1316_v15  ;;  %1310 = vst [vmem:[#allocation2 + $0x90] sm:$0xf] %v1309_v39  ;;  %v1094_v48 = vsel %vm9048_vm7, %v1086_v20, %v1093_v26  ;;  %v1320_v44 = vsel %vm9042_vm6, %v1095_v27, %v1319_v7  ;;  %v1071_v43 = vshrl.u32 %v7384_v62, 16 }
 0x190   : > { %v1074_v49 = vshll.u32 %v7384_v62, 16  ;;  %1318 = vst.msk [vmem:[#allocation2 + $0xa0] sm:$0xf] %vm1218_vm1, %v1094_v48  ;;  %1321 = vst [vmem:[#allocation2 + $0xa4] sm:$0x1] %v1320_v44  ;;  %v1582_v45 = vrot.slane %v1581_v9, 4  ;;  %v689_v16 = vadd.f32 %v9386_v8, %v9233_v17  ;;  %v681_v27 = vadd.f32 %v9386_v8, %v9238_v24 }
 0x191   : > { %v1586_v52 = vrot.slane %v1584_v30, 5  ;;  %v1590_v19 = vrot.slane %v1588_v40, 4  ;;  %v1594_v53 = vshll.u32 %v1509_v36, 16  ;;  %v1073_v56 = vrot.slane %v1071_v43, 7 }
 0x192   : > { %v1599_v59 = vshrl.u32 %v1477_v41, 16  ;;  %v1602_v37 = vshll.u32 %v1477_v41, 16  ;;  %v1608_v60 = vshll.u32 %v1478_v47, 16  ;;  %7900 = vmatpush3.bf16.msra.mxu0 %v8596_v11  ;;  %v1612_v0 = vshrl.u32 %v1478_v47, 16 }
 0x193   : > { %v1587_v31 = vsel %vm9319_vm12, %v1582_v45, %v1586_v52  ;;  %v1591_v33 = vor.u32 %v1590_v19, %v1586_v52  ;;  %v1596_v63 = vrot.slane %v1594_v53, 5  ;;  %v1076_v1 = vor.u32 %v1074_v49, %v1073_v56  ;;  %v1480_v45 = vld [vmem:[#allocation2 + $0x34] sm:$0xf] }
 0x194   : > { %v1078_v28 = vrot.slane %v1073_v56, 4  ;;  %v1601_v35 = vrot.slane %v1599_v59, 4  ;;  %v1604_v2 = vrot.slane %v1602_v37, 5  ;;  %v1610_v5 = vrot.slane %v1608_v60, 5 }
 0x195   : > { %v1592_v4 = vrot.slane %v1591_v33, 4  ;;  %v1614_v6 = vrot.slane %v1612_v0, 4  ;;  %v1618_v7 = vshll.u32 %v1510_v57, 16  ;;  %v1077_v12 = vsel %vm9048_vm7, %v1069_v23, %v1076_v1 }
 0x196   : > { %v1313_v11 = vsel %vm9042_vm6, %v1078_v28, %v1312_v61  ;;  %v1605_v13 = vor.u32 %v1604_v2, %v1601_v35  ;;  %v1389_v20 = vld [vmem:[#allocation2 + $0x9c] sm:$0x1]  ;;  %v1386_v21 = vld [vmem:[#allocation2 + $0x90] sm:$0x1]  ;;  %1311 = vst.msk [vmem:[#allocation2 + $0x94] sm:$0xf] %vm1218_vm1, %v1077_v12  ;;  %v692_v41 = vadd.f32 %v9386_v8, %v9242_v34  ;;  %v684_v47 = vadd.f32 %v9386_v8, %v9246_v42 }
 0x197   : > { %1314 = vst [vmem:[#allocation2 + $0x98] sm:$0x1] %v1313_v11  ;;  %v1597_v23 = vsel %vm9319_vm12, %v1592_v4, %v1596_v63  ;;  %v1615_v25 = vor.u32 %v1614_v6, %v1610_v5  ;;  %v1620_v26 = vrot.slane %v1618_v7, 5  ;;  %v1390_v62 = vsel %vm9042_vm6, 0, %v1389_v20  ;;  %v1444_v36 = vld [vmem:[#allocation2 + $0xa4] sm:$0x1] }
 0x198   : > { %v1387_v17 = vsel %vm9042_vm6, 0, %v1386_v21  ;;  %v6918_v9 = vcombine.low %v1587_v31, %v1597_v23  ;;  %v1606_v29 = vrot.slane %v1605_v13, 4  ;;  %1391 = vst [vmem:[#allocation2 + $0x9c] sm:$0x1] %v1390_v62  ;;  %v1445_v15 = vsel %vm9082_vm8, 0, %v1444_v36 }
 0x199   : > { %1388 = vst [vmem:[#allocation2 + $0x90] sm:$0x1] %v1387_v17  ;;  %v1616_v39 = vrot.slane %v1615_v25, 4  ;;  %v741_v30 = vmax.f32 %v689_v16, 0.0  ;;  %v739_v40 = vmax.f32 %v681_v27, 0.0  ;;  %v1623_v48 = vshrl.u32 %v1479_v18, 16 }
 0x19a   : > { %1446 = vst [vmem:[#allocation2 + $0xa4] sm:$0x1] %v1445_v15  ;;  %7869 = vmatprep.mubr.msk.bf16.mxu0 %vm1974_vm9, %v6918_v9  ;;  %v1611_v24 = vsel %vm9319_vm12, %v1606_v29, %v1610_v5  ;;  %v1626_v52 = vshll.u32 %v1479_v18, 16  ;;  %v742_v53 = vmax.f32 %v692_v41, 0.0  ;;  %v740_v56 = vmax.f32 %v684_v47, 0.0 }
 0x19b   : > { %v1621_v44 = vsel %vm9319_vm12, %v1616_v39, %v1620_v26  ;;  %v7389_v43 = vpack.c.bf16 %v741_v30, %v741_v30  ;;  %v7387_v49 = vpack.c.bf16 %v739_v40, %v739_v40  ;;  %v1625_v57 = vrot.slane %v1623_v48, 4  ;;  %v1329_v42 = vld [vmem:[#allocation2 + $0xb4] sm:$0xf]  ;;  %v1322_v31 = vld [vmem:[#allocation2 + $0xa8] sm:$0xf] }
 0x19c   : > { %v6919_v19 = vcombine.low %v1611_v24, %v1621_v44  ;;  %v7390_v33 = vpack.c.bf16 %v742_v53, %v742_v53  ;;  %v7388_v63 = vpack.c.bf16 %v740_v56, %v740_v56  ;;  %v1628_v0 = vrot.slane %v1626_v52, 5  ;;  %v1511_v4 = vld [vmem:[#allocation2 + $0x38] sm:$0x1]  ;;  %v1481_v62 = vld [vmem:[#allocation2 + $0x3c] sm:$0xf] }
 0x19d   : > { %v1114_v59 = vshrl.u32 %v7389_v43, 16  ;;  %v1117_v37 = vshll.u32 %v7389_v43, 16  ;;  %v1097_v60 = vshrl.u32 %v7387_v49, 16  ;;  %v1100_v61 = vshll.u32 %v7387_v49, 16  ;;  %v1333_v29 = vld [vmem:[#allocation2 + $0xbc] sm:$0x1] }
 0x19e   : > { %v1441_v34 = vld [vmem:[#allocation2 + $0x98] sm:$0x1]  ;;  %7870 = vmatmul.mubr.msk.bf16.gmra.mrb[40].mxu0 %vm1974_vm9, %v6919_v19  ;;  %v1632_v1 = vshll.u32 %v1480_v45, 16  ;;  %v1636_v5 = vshrl.u32 %v1480_v45, 16  ;;  %v1122_v6 = vshrl.u32 %v7390_v33, 16  ;;  %v1125_v7 = vshll.u32 %v7390_v33, 16 }
 0x19f   : > { %v1442_v28 = vsel %vm9082_vm8, 0, %v1441_v34  ;;  %v1116_v35 = vrot.slane %v1114_v59, 7  ;;  %v1099_v2 = vrot.slane %v1097_v60, 7  ;;  %v1105_v12 = vshrl.u32 %v7388_v63, 16  ;;  %v8591_v17 = vld [vmem:[#allocation2 + $0x9c] sm:$0xff]  }
 0x1a0   : > { %1443 = vst [vmem:[#allocation2 + $0x98] sm:$0x1] %v1442_v28  ;;  %v1108_v11 = vshll.u32 %v7388_v63, 16  ;;  %v8590_v21 = vld [vmem:[#allocation2 + $0x90] sm:$0xff]   ;;  %v1124_v23 = vrot.slane %v1122_v6, 7  ;;  %v1629_v26 = vor.u32 %v1628_v0, %v1625_v57  ;;  %v1634_v27 = vrot.slane %v1632_v1, 5 }
 0x1a1   : > { %v1119_v13 = vor.u32 %v1117_v37, %v1116_v35  ;;  %v1120_v16 = vrot.slane %v1116_v35, 4  ;;  %v1102_v18 = vor.u32 %v1100_v61, %v1099_v2  ;;  %v1103_v20 = vrot.slane %v1099_v2, 4  ;;  %v1326_v15 = vld [vmem:[#allocation2 + $0xb0] sm:$0x1]  ;;  %7994 = vmatmul.mubr.msk.bf16.gmra.mrb[12].mxu1 %vm1974_vm9, %v8590_v21  ;;  %v1482_v48 = vld [vmem:[#allocation2 + $0x40] sm:$0xf] }
 0x1a2   : > { %v1107_v25 = vrot.slane %v1105_v12, 7  ;;  %v1638_v39 = vrot.slane %v1636_v5, 4  ;;  %v1642_v30 = vshll.u32 %v1511_v4, 16  ;;  %v1127_v40 = vor.u32 %v1125_v7, %v1124_v23  ;;  %7997 = vmatprep.mubr.msk.bf16.mxu1 %vm1974_vm9, %v8591_v17  ;;  %v1512_v45 = vld [vmem:[#allocation2 + $0x44] sm:$0x1] }
 0x1a3   : > { %v1330_v36 = vsel %vm9035_vm5, %v1119_v13, %v1329_v42  ;;  %v1323_v9 = vsel %vm9035_vm5, %v1102_v18, %v1322_v31  ;;  %v1129_v24 = vrot.slane %v1124_v23, 4  ;;  %v1630_v44 = vrot.slane %v1629_v26, 4  ;;  %v9439_v6 = vld [vmem:[#allocation2 + $0x48] sm:$0xf] }
 0x1a4   : > { %1331 = vst [vmem:[#allocation2 + $0xb4] sm:$0xf] %v1330_v36  ;;  %1324 = vst [vmem:[#allocation2 + $0xa8] sm:$0xf] %v1323_v9  ;;  %v1110_v41 = vor.u32 %v1108_v11, %v1107_v25  ;;  %v1112_v47 = vrot.slane %v1107_v25, 4  ;;  %v1639_v43 = vor.u32 %v1638_v39, %v1634_v27  ;;  %v1644_v49 = vrot.slane %v1642_v30, 5 }
 0x1a5   : > { %v1647_v52 = vshrl.u32 %v1481_v62, 16  ;;  %v1128_v19 = vsel %vm9048_vm7, %v1120_v16, %v1127_v40  ;;  %v1334_v53 = vsel %vm9042_vm6, %v1129_v24, %v1333_v29  ;;  %v1635_v59 = vsel %vm9319_vm12, %v1630_v44, %v1634_v27  ;;  %v9464_v44 = vld [vmem:[%s10950_s3 + $0x20] sm:$0xff]  }
 0x1a6   : > { %v1111_v56 = vsel %vm9048_vm7, %v1103_v20, %v1110_v41  ;;  %v1327_v57 = vsel %vm9042_vm6, %v1112_v47, %v1326_v15  ;;  %1332 = vst.msk [vmem:[#allocation2 + $0xb8] sm:$0xf] %vm1218_vm1, %v1128_v19  ;;  %1335 = vst [vmem:[#allocation2 + $0xbc] sm:$0x1] %v1334_v53  ;;  %v1640_v37 = vrot.slane %v1639_v43, 4  ;;  %v1650_v61 = vshll.u32 %v1481_v62, 16  ;;  %7933 = vmatprep.subr.bf16.mxu0 %v9464_v44 }
 0x1a7   : > { %1325 = vst.msk [vmem:[#allocation2 + $0xac] sm:$0xf] %vm1218_vm1, %v1111_v56  ;;  %1328 = vst [vmem:[#allocation2 + $0xb0] sm:$0x1] %v1327_v57  ;;  %v1649_v60 = vrot.slane %v1647_v52, 4  ;;  %v1656_v34 = vshll.u32 %v1482_v48, 16  ;;  %v705_v33 = vadd.f32 %v9386_v8, %v9284_v14  ;;  %v697_v1 = vadd.f32 %v9386_v8, %v9292_v22 }
 0x1a8   : > { %v1660_v42 = vshrl.u32 %v1482_v48, 16  ;;  %v1666_v31 = vshll.u32 %v1512_v45, 16  ;;  %v1645_v63 = vsel %vm9319_vm12, %v1640_v37, %v1644_v49  ;;  %v1652_v0 = vrot.slane %v1650_v61, 5  ;;  %v1343_v41 = vld [vmem:[#allocation2 + $0xcc] sm:$0xf] }
 0x1a9   : > { %v708_v28 = vadd.f32 %v9386_v8, %v9295_v32  ;;  %v6920_v35 = vcombine.low %v1635_v59, %v1645_v63  ;;  %v1658_v2 = vrot.slane %v1656_v34, 5  ;;  %v745_v14 = vmax.f32 %v705_v33, 0.0  ;;  %v1336_v45 = vld [vmem:[#allocation2 + $0xc0] sm:$0xf]  ;;  %v1347_v56 = vld [vmem:[#allocation2 + $0xd4] sm:$0x1] }
 0x1aa   : > { %v1662_v4 = vrot.slane %v1660_v42, 4  ;;  %v1668_v5 = vrot.slane %v1666_v31, 5  ;;  %v1653_v11 = vor.u32 %v1652_v0, %v1649_v60  ;;  %v743_v13 = vmax.f32 %v697_v1, 0.0  ;;  %v1513_v59 = vld [vmem:[#allocation2 + $0x50] sm:$0x1] }
 0x1ab   : > { %v1395_v7 = vld [vmem:[#allocation2 + $0xb4] sm:$0x1]  ;;  %v1392_v12 = vld [vmem:[#allocation2 + $0xa8] sm:$0x1]  ;;  %v700_v16 = vadd.f32 %v9386_v8, %v9303_v46  ;;  %7873 = vmatprep.mubr.msk.bf16.mxu0 %vm1974_vm9, %v6920_v35  ;;  %v746_v20 = vmax.f32 %v708_v28, 0.0  ;;  %v7393_v23 = vpack.c.bf16 %v745_v14, %v745_v14  ;;  %v1671_v36 = vshrl.u32 %v9439_v6, 16 }
 0x1ac   : > { %v1396_v22 = vsel %vm9042_vm6, 0, %v1395_v7  ;;  %v1393_v32 = vsel %vm9042_vm6, 0, %v1392_v12  ;;  %v1663_v18 = vor.u32 %v1662_v4, %v1658_v2  ;;  %v1654_v21 = vrot.slane %v1653_v11, 4  ;;  %v9448_v8 = vld [vmem:[#allocation2 + $0x4c] sm:$0xf] }
 0x1ad   : > { %1397 = vst [vmem:[#allocation2 + $0xb4] sm:$0x1] %v1396_v22  ;;  %1394 = vst [vmem:[#allocation2 + $0xa8] sm:$0x1] %v1393_v32  ;;  %v7391_v25 = vpack.c.bf16 %v743_v13, %v743_v13  ;;  %v744_v26 = vmax.f32 %v700_v16, 0.0  ;;  %v7394_v46 = vpack.c.bf16 %v746_v20, %v746_v20  ;;  %v6950_v9 = vcombine.low %v9225_v50, %v9257_v51  ;;  %v8601_v50 = vld [vmem:[%s10950_s3 + $0x58] sm:$0xff]  }
 0x1ae   : > { %v1450_v27 = vld [vmem:[#allocation2 + $0xbc] sm:$0x1]  ;;  %v1447_v62 = vld [vmem:[#allocation2 + $0xb0] sm:$0x1]  ;;  %v1664_v17 = vrot.slane %v1663_v18, 4  ;;  %v1659_v39 = vsel %vm9319_vm12, %v1654_v21, %v1658_v2  ;;  %v1148_v30 = vshrl.u32 %v7393_v23, 16 }
 0x1af   : > { %v1451_v29 = vsel %vm9082_vm8, 0, %v1450_v27  ;;  %v1448_v15 = vsel %vm9082_vm8, 0, %v1447_v62  ;;  %v1151_v24 = vshll.u32 %v7393_v23, 16  ;;  %v1131_v47 = vshrl.u32 %v7391_v25, 16  ;;  %v9470_v33 = vld [vmem:[#allocation2 + $0x54] sm:$0xf] }
 0x1b0   : > { %1452 = vst [vmem:[#allocation2 + $0xbc] sm:$0x1] %v1451_v29  ;;  %1449 = vst [vmem:[#allocation2 + $0xb0] sm:$0x1] %v1448_v15  ;;  %v1669_v40 = vsel %vm9319_vm12, %v1664_v17, %v1668_v5  ;;  %v1134_v48 = vshll.u32 %v7391_v25, 16  ;;  %v1150_v49 = vrot.slane %v1148_v30, 7  ;;  %v7392_v57 = vpack.c.bf16 %v744_v26, %v744_v26 }
 0x1b1   : > { %v6921_v43 = vcombine.low %v1659_v39, %v1669_v40  ;;  %v1156_v52 = vshrl.u32 %v7394_v46, 16  ;;  %v1159_v19 = vshll.u32 %v7394_v46, 16  ;;  %v1133_v53 = vrot.slane %v1131_v47, 7  ;;  %v9477_v22 = vld [vmem:[#allocation2 + $0x58] sm:$0xf] }
 0x1b2   : > { %v1673_v37 = vrot.slane %v1671_v36, 4  ;;  %v1674_v60 = vshll.u32 %v9439_v6, 16  ;;  %v1153_v61 = vor.u32 %v1151_v24, %v1150_v49  ;;  %v1154_v34 = vrot.slane %v1150_v49, 4  ;;  %v1340_v20 = vld [vmem:[#allocation2 + $0xc8] sm:$0x1] }
 0x1b3   : > { %7874 = vmatmul.mubr.msk.bf16.gmra.mrb[44].mxu0 %vm1974_vm9, %v6921_v43  ;;  %v1158_v42 = vrot.slane %v1156_v52, 7  ;;  %v1680_v31 = vshll.u32 %v9448_v8, 16  ;;  %v1136_v63 = vor.u32 %v1134_v48, %v1133_v53  ;;  %v1137_v0 = vrot.slane %v1133_v53, 4  ;;  %v1514_v27 = vld [vmem:[#allocation2 + $0x5c] sm:$0x1] }
 0x1b4   : > { %v1139_v1 = vshrl.u32 %v7392_v57, 16  ;;  %v1142_v28 = vshll.u32 %v7392_v57, 16  ;;  %v8592_v35 = vld [vmem:[#allocation2 + $0xa8] sm:$0xff]   ;;  %v1344_v2 = vsel %vm9035_vm5, %v1153_v61, %v1343_v41  ;;  %v1676_v7 = vrot.slane %v1674_v60, 5  ;;  %v8593_v12 = vld [vmem:[#allocation2 + $0xb4] sm:$0xff]  }
 0x1b5   : > { %v1161_v4 = vor.u32 %v1159_v19, %v1158_v42  ;;  %v1163_v5 = vrot.slane %v1158_v42, 4  ;;  %1345 = vst [vmem:[#allocation2 + $0xcc] sm:$0xf] %v1344_v2  ;;  %v1337_v11 = vsel %vm9035_vm5, %v1136_v63, %v1336_v45  ;;  %v1682_v13 = vrot.slane %v1680_v31, 5  ;;  %7998 = vmatmul.mubr.msk.bf16.gmra.mrb[16].mxu1 %vm1974_vm9, %v8592_v35  ;;  %v9491_v15 = vld [vmem:[#allocation2 + $0x60] sm:$0xf] }
 0x1b6   : > { %v1141_v14 = vrot.slane %v1139_v1, 7  ;;  %v1684_v16 = vshrl.u32 %v9448_v8, 16  ;;  %1338 = vst [vmem:[#allocation2 + $0xc0] sm:$0xf] %v1337_v11  ;;  %v1677_v21 = vor.u32 %v1676_v7, %v1673_v37  ;;  %v1690_v23 = vshll.u32 %v1513_v59, 16  ;;  %8001 = vmatprep.mubr.msk.bf16.mxu1 %vm1974_vm9, %v8593_v12 }
 0x1b7   : > { %v1162_v32 = vsel %vm9048_vm7, %v1154_v34, %v1161_v4  ;;  %v1348_v18 = vsel %vm9042_vm6, %v1163_v5, %v1347_v56  ;;  %v1695_v62 = vshrl.u32 %v9470_v33, 16  ;;  %v1698_v36 = vshll.u32 %v9470_v33, 16  ;;  %v9497_v41 = vld [vmem:[#allocation2 + $0x64] sm:$0xf]  ;;  %v1515_v52 = vld [vmem:[#allocation2 + $0x68] sm:$0x1] }
 0x1b8   : > { %1346 = vst.msk [vmem:[#allocation2 + $0xd0] sm:$0xf] %vm1218_vm1, %v1162_v32  ;;  %1349 = vst [vmem:[#allocation2 + $0xd4] sm:$0x1] %v1348_v18  ;;  %v1144_v58 = vor.u32 %v1142_v28, %v1141_v14  ;;  %v1146_v25 = vrot.slane %v1141_v14, 4  ;;  %v1686_v26 = vrot.slane %v1684_v16, 4 }
 0x1b9   : > { %1469 = vst.msk [vmem:[#allocation2 + $0xd0] sm:$0xf] %vm1218_vm1, %v8797_v38  ;;  %v1678_v17 = vrot.slane %v1677_v21, 4  ;;  %v1692_v46 = vrot.slane %v1690_v23, 5  ;;  %v1704_v29 = vshll.u32 %v9477_v22, 16  ;;  %v1697_v24 = vrot.slane %v1695_v62, 4 }
 0x1ba   : > { %v1145_v39 = vsel %vm9048_vm7, %v1137_v0, %v1144_v58  ;;  %v1341_v30 = vsel %vm9042_vm6, %v1146_v25, %v1340_v20  ;;  %v1687_v40 = vor.u32 %v1686_v26, %v1682_v13  ;;  %v1700_v48 = vrot.slane %v1698_v36, 5  ;;  %v9505_v56 = vld [vmem:[#allocation2 + $0x6c] sm:$0xf]  ;;  %v9515_v5 = vld [vmem:[#allocation2 + $0x70] sm:$0xf] }
 0x1bb   : > { %1339 = vst.msk [vmem:[#allocation2 + $0xc4] sm:$0xf] %vm1218_vm1, %v1145_v39  ;;  %1342 = vst [vmem:[#allocation2 + $0xc8] sm:$0x1] %v1341_v30  ;;  %v1683_v47 = vsel %vm9319_vm12, %v1678_v17, %v1682_v13  ;;  %v1706_v43 = vrot.slane %v1704_v29, 5  ;;  %v1708_v49 = vshrl.u32 %v9477_v22, 16 }
 0x1bc   : > { %v1688_v45 = vrot.slane %v1687_v40, 4  ;;  %v1714_v10 = vshll.u32 %v1514_v27, 16  ;;  %v1719_v19 = vshrl.u32 %v9491_v15, 16  ;;  %v1722_v53 = vshll.u32 %v9491_v15, 16  ;;  %v1401_v57 = vld [vmem:[#allocation2 + $0xcc] sm:$0x1] }
 0x1bd   : > { %v1701_v59 = vor.u32 %v1700_v48, %v1697_v24  ;;  %v1710_v37 = vrot.slane %v1708_v49, 4  ;;  %v1728_v60 = vshll.u32 %v9497_v41, 16  ;;  %v1732_v61 = vshrl.u32 %v9497_v41, 16  ;;  %v1398_v42 = vld [vmem:[#allocation2 + $0xc0] sm:$0x1] }
 0x1be   : > { %v1402_v34 = vsel %vm9042_vm6, 0, %v1401_v57  ;;  %v1693_v31 = vsel %vm9319_vm12, %v1688_v45, %v1692_v46  ;;  %v1716_v63 = vrot.slane %v1714_v10, 5  ;;  %v1721_v0 = vrot.slane %v1719_v19, 4  ;;  %v1516_v13 = vld [vmem:[#allocation2 + $0x74] sm:$0x1] }
 0x1bf   : > { %1403 = vst [vmem:[#allocation2 + $0xcc] sm:$0x1] %v1402_v34  ;;  %v1399_v1 = vsel %vm9042_vm6, 0, %v1398_v42  ;;  %v1456_v28 = vld [vmem:[#allocation2 + $0xd4] sm:$0x1]  ;;  %v6922_v35 = vcombine.low %v1683_v47, %v1693_v31  ;;  %v1702_v2 = vrot.slane %v1701_v59, 4  ;;  %v1711_v4 = vor.u32 %v1710_v37, %v1706_v43 }
 0x1c0   : > { %1468 = vst.msk [vmem:[#allocation2 + $0xcc] sm:$0xf] %vm1218_vm1, %v8797_v38  ;;  %1400 = vst [vmem:[#allocation2 + $0xc0] sm:$0x1] %v1399_v1  ;;  %v1457_v7 = vsel %vm9082_vm8, 0, %v1456_v28  ;;  %v1724_v12 = vrot.slane %v1722_v53, 5 }
 0x1c1   : > { %v1730_v11 = vrot.slane %v1728_v60, 5  ;;  %v1734_v14 = vrot.slane %v1732_v61, 4  ;;  %1458 = vst [vmem:[#allocation2 + $0xd4] sm:$0x1] %v1457_v7  ;;  %7877 = vmatprep.mubr.msk.bf16.mxu0 %vm1974_vm9, %v6922_v35  ;;  %v1707_v3 = vsel %vm9319_vm12, %v1702_v2, %v1706_v43  ;;  %v1712_v16 = vrot.slane %v1711_v4, 4 }
 0x1c2   : > { %v1738_v32 = vshll.u32 %v1515_v52, 16  ;;  %v1743_v18 = vshrl.u32 %v9505_v56, 16  ;;  %v9525_v20 = vld [vmem:[#allocation2 + $0x78] sm:$0xf]  ;;  %1470 = vst.msk [vmem:[#allocation2 + $0xd4] sm:$0x1] %vm1226_vm3, %v8797_v38  ;;  %v1725_v23 = vor.u32 %v1724_v12, %v1721_v0 }
 0x1c3   : > { %v1453_v21 = vld [vmem:[#allocation2 + $0xc8] sm:$0x1]  ;;  %v1735_v58 = vor.u32 %v1734_v14, %v1730_v11  ;;  %v1746_v25 = vshll.u32 %v9505_v56, 16  ;;  %v1752_v26 = vshll.u32 %v9515_v5, 16  ;;  %v1717_v62 = vsel %vm9319_vm12, %v1712_v16, %v1716_v63  ;;  %v9536_v47 = vld [vmem:[#allocation2 + $0x7c] sm:$0xf] }
 0x1c4   : > { %v1454_v27 = vsel %vm9082_vm8, 0, %v1453_v21  ;;  %v1740_v17 = vrot.slane %v1738_v32, 5  ;;  %v1745_v46 = vrot.slane %v1743_v18, 4  ;;  %v6923_v36 = vcombine.low %v1707_v3, %v1717_v62  ;;  %v1517_v45 = vld [vmem:[#allocation2 + $0x80] sm:$0x1] }
 0x1c5   : > { %1455 = vst [vmem:[#allocation2 + $0xc8] sm:$0x1] %v1454_v27  ;;  %v1726_v29 = vrot.slane %v1725_v23, 4  ;;  %v1736_v39 = vrot.slane %v1735_v58, 4  ;;  %v1748_v38 = vrot.slane %v1746_v25, 5  ;;  %v1754_v30 = vrot.slane %v1752_v26, 5 }
 0x1c6   : > { %v1756_v40 = vshrl.u32 %v9515_v5, 16  ;;  %v1762_v24 = vshll.u32 %v1516_v13, 16  ;;  %v1767_v48 = vshrl.u32 %v9525_v20, 16  ;;  %7878 = vmatmul.mubr.msk.bf16.gmra.mrb[48].mxu0 %vm1974_vm9, %v6923_v36  ;;  %v1770_v10 = vshll.u32 %v9525_v20, 16  ;;  %v9545_v52 = vld [vmem:[#allocation2 + $0x84] sm:$0xf] }
 0x1c7   : > { %v1731_v55 = vsel %vm9319_vm12, %v1726_v29, %v1730_v11  ;;  %v1741_v43 = vsel %vm9319_vm12, %v1736_v39, %v1740_v17  ;;  %v1749_v49 = vor.u32 %v1748_v38, %v1745_v46  ;;  %v8594_v37 = vld [vmem:[#allocation2 + $0xc0] sm:$0xff]   ;;  %v1776_v34 = vshll.u32 %v9536_v47, 16  ;;  %v9550_v0 = vld [vmem:[#allocation2 + $0x88] sm:$0xf]  ;;  %v1518_v12 = vld [vmem:[#allocation2 + $0x8c] sm:$0x1] }
 0x1c8   : > { %v6924_v19 = vcombine.low %v1731_v55, %v1741_v43  ;;  %v1758_v53 = vrot.slane %v1756_v40, 4  ;;  %v1764_v57 = vrot.slane %v1762_v24, 5  ;;  %v1769_v59 = vrot.slane %v1767_v48, 4  ;;  %8002 = vmatmul.mubr.msk.bf16.gmra.mrb[20].mxu1 %vm1974_vm9, %v8594_v37  ;;  %v9557_v11 = vld [vmem:[#allocation2 + $0x90] sm:$0xf] }
 0x1c9   : > { %v1750_v60 = vrot.slane %v1749_v49, 4  ;;  %v1772_v61 = vrot.slane %v1770_v10, 5  ;;  %v1780_v42 = vshrl.u32 %v9536_v47, 16  ;;  %v1786_v63 = vshll.u32 %v1517_v45, 16  ;;  %v9563_v27 = vld [vmem:[#allocation2 + $0x94] sm:$0xf] }
 0x1ca   : > { %7881 = vmatprep.mubr.msk.bf16.mxu0 %vm1974_vm9, %v6924_v19  ;;  %v1759_v31 = vor.u32 %v1758_v53, %v1754_v30  ;;  %v1791_v1 = vshrl.u32 %v9545_v52, 16  ;;  %v1794_v28 = vshll.u32 %v9545_v52, 16  ;;  %v1778_v4 = vrot.slane %v1776_v34, 5  ;;  %v1519_v39 = vld [vmem:[#allocation2 + $0x98] sm:$0x1] }
 0x1cb   : > { %v1755_v35 = vsel %vm9319_vm12, %v1750_v60, %v1754_v30  ;;  %v1773_v2 = vor.u32 %v1772_v61, %v1769_v59  ;;  %v1782_v7 = vrot.slane %v1780_v42, 4  ;;  %v1788_v13 = vrot.slane %v1786_v63, 5  ;;  %v9568_v48 = vld [vmem:[#allocation2 + $0x9c] sm:$0xf]  ;;  %v9576_v10 = vld [vmem:[#allocation2 + $0xa0] sm:$0xf] }
 0x1cc   : > { %v1760_v14 = vrot.slane %v1759_v31, 4  ;;  %v1793_v3 = vrot.slane %v1791_v1, 4  ;;  %v1796_v16 = vrot.slane %v1794_v28, 5  ;;  %v1800_v21 = vshll.u32 %v9550_v0, 16  ;;  %v1520_v34 = vld [vmem:[#allocation2 + $0xa4] sm:$0x1] }
 0x1cd   : > { %v1774_v32 = vrot.slane %v1773_v2, 4  ;;  %v1783_v18 = vor.u32 %v1782_v7, %v1778_v4  ;;  %v1804_v23 = vshrl.u32 %v9550_v0, 16  ;;  %v1810_v26 = vshll.u32 %v1518_v12, 16  ;;  %v9585_v12 = vld [vmem:[#allocation2 + $0xa8] sm:$0xf] }
 0x1ce   : > { %v1765_v58 = vsel %vm9319_vm12, %v1760_v14, %v1764_v57  ;;  %v1797_v25 = vor.u32 %v1796_v16, %v1793_v3  ;;  %v1815_v62 = vshrl.u32 %v9557_v11, 16  ;;  %v1802_v29 = vrot.slane %v1800_v21, 5 }
 0x1cf   : > { %v6925_v17 = vcombine.low %v1755_v35, %v1765_v58  ;;  %v1779_v46 = vsel %vm9319_vm12, %v1774_v32, %v1778_v4  ;;  %v1784_v36 = vrot.slane %v1783_v18, 4  ;;  %v1806_v30 = vrot.slane %v1804_v23, 4  ;;  %v9589_v32 = vld [vmem:[#allocation2 + $0xac] sm:$0xf] }
 0x1d0   : > { %v1798_v38 = vrot.slane %v1797_v25, 4  ;;  %v1812_v40 = vrot.slane %v1810_v26, 5  ;;  %v1817_v24 = vrot.slane %v1815_v62, 4  ;;  %v1818_v43 = vshll.u32 %v9557_v11, 16  ;;  %v1521_v62 = vld [vmem:[#allocation2 + $0xb0] sm:$0x1] }
 0x1d1   : > { %7882 = vmatmul.mubr.msk.bf16.gmra.mrb[52].mxu0 %vm1974_vm9, %v6925_v17  ;;  %v1789_v55 = vsel %vm9319_vm12, %v1784_v36, %v1788_v13  ;;  %v1824_v49 = vshll.u32 %v9563_v27, 16  ;;  %v1828_v45 = vshrl.u32 %v9563_v27, 16  ;;  %v1807_v57 = vor.u32 %v1806_v30, %v1802_v29  ;;  %v3323_v30 = vld [vmem:[#allocation2 + $0xc] sm:$0xf] }
 0x1d2   : > { %v6926_v19 = vcombine.low %v1779_v46, %v1789_v55  ;;  %v1803_v53 = vsel %vm9319_vm12, %v1798_v38, %v1802_v29  ;;  %v1834_v59 = vshll.u32 %v1519_v39, 16  ;;  %v1820_v37 = vrot.slane %v1818_v43, 5 }
 0x1d3   : > { %v1826_v60 = vrot.slane %v1824_v49, 5  ;;  %v1830_v61 = vrot.slane %v1828_v45, 4  ;;  %v1839_v42 = vshrl.u32 %v9568_v48, 16  ;;  %v1808_v31 = vrot.slane %v1807_v57, 4  ;;  %v9599_v49 = vld [vmem:[#allocation2 + $0x10] sm:$0xf] }
 0x1d4   : > { %7885 = vmatprep.mubr.msk.bf16.mxu0 %vm1974_vm9, %v6926_v19  ;;  %v1836_v63 = vrot.slane %v1834_v59, 5  ;;  %v1842_v1 = vshll.u32 %v9568_v48, 16  ;;  %v1848_v28 = vshll.u32 %v9576_v10, 16  ;;  %v1821_v35 = vor.u32 %v1820_v37, %v1817_v24  ;;  %v9602_v59 = vld [vmem:[#allocation2 + $0x14] sm:$0x1] }
 0x1d5   : > { %v1831_v2 = vor.u32 %v1830_v61, %v1826_v60  ;;  %v1841_v4 = vrot.slane %v1839_v42, 4  ;;  %v1852_v7 = vshrl.u32 %v9576_v10, 16  ;;  %v1813_v14 = vsel %vm9319_vm12, %v1808_v31, %v1812_v40  ;;  %v9607_v42 = vld [vmem:[#allocation2 + $0xb4] sm:$0xf]  ;;  %v9609_v31 = vld [vmem:[#allocation2 + $0xb8] sm:$0xf] }
 0x1d6   : > { %v1844_v13 = vrot.slane %v1842_v1, 5  ;;  %v1850_v3 = vrot.slane %v1848_v28, 5  ;;  %v1858_v16 = vshll.u32 %v1520_v34, 16  ;;  %v6927_v18 = vcombine.low %v1803_v53, %v1813_v14 }
 0x1d7   : > { %v1822_v21 = vrot.slane %v1821_v35, 4  ;;  %v1832_v23 = vrot.slane %v1831_v2, 4  ;;  %v1854_v58 = vrot.slane %v1852_v7, 4  ;;  %v1863_v17 = vshrl.u32 %v9585_v12, 16 }
 0x1d8   : > { %v1845_v25 = vor.u32 %v1844_v13, %v1841_v4  ;;  %v1860_v26 = vrot.slane %v1858_v16, 5  ;;  %v1866_v46 = vshll.u32 %v9585_v12, 16  ;;  %v1872_v38 = vshll.u32 %v9589_v32, 16 }
 0x1d9   : > { %7886 = vmatmul.mubr.msk.bf16.gmra.mrb[56].mxu0 %vm1974_vm9, %v6927_v18  ;;  %v1827_v36 = vsel %vm9319_vm12, %v1822_v21, %v1826_v60  ;;  %v1837_v29 = vsel %vm9319_vm12, %v1832_v23, %v1836_v63  ;;  %v1855_v39 = vor.u32 %v1854_v58, %v1850_v3  ;;  %v1865_v55 = vrot.slane %v1863_v17, 4  ;;  %v1522_v58 = vld [vmem:[#allocation2 + $0xbc] sm:$0x1] }
 0x1da   : > { %v6928_v40 = vcombine.low %v1827_v36, %v1837_v29  ;;  %v1846_v24 = vrot.slane %v1845_v25, 4  ;;  %v1868_v43 = vrot.slane %v1866_v46, 5  ;;  %v1874_v19 = vrot.slane %v1872_v38, 5  ;;  %v3326_v29 = vld [vmem:[#allocation2 + $0x18] sm:$0xf] }
 0x1db   : > { %v1856_v45 = vrot.slane %v1855_v39, 4  ;;  %v1876_v53 = vshrl.u32 %v9589_v32, 16  ;;  %v1882_v57 = vshll.u32 %v1521_v62, 16  ;;  %v3372_v61 = vshrl.u32 %v3323_v30, 16  ;;  %v9622_v39 = vld [vmem:[#allocation2 + $0x1c] sm:$0xf] }
 0x1dc   : > { %7889 = vmatprep.mubr.msk.bf16.mxu0 %vm1974_vm9, %v6928_v40  ;;  %v1851_v37 = vsel %vm9319_vm12, %v1846_v24, %v1850_v3  ;;  %v1869_v60 = vor.u32 %v1868_v43, %v1865_v55  ;;  %v3375_v34 = vshll.u32 %v3323_v30, 16  ;;  %v3381_v35 = vshll.u32 %v9599_v49, 16  ;;  %v9625_v55 = vld [vmem:[#allocation2 + $0x20] sm:$0x1] }
 0x1dd   : > { %v1861_v63 = vsel %vm9319_vm12, %v1856_v45, %v1860_v26  ;;  %v1878_v1 = vrot.slane %v1876_v53, 4  ;;  %v1884_v28 = vrot.slane %v1882_v57, 5  ;;  %v3374_v7 = vrot.slane %v3372_v61, 4 }
 0x1de   : > { %v6929_v2 = vcombine.low %v1851_v37, %v1861_v63  ;;  %v1870_v4 = vrot.slane %v1869_v60, 4  ;;  %v3377_v14 = vrot.slane %v3375_v34, 5  ;;  %v3383_v3 = vrot.slane %v3381_v35, 5  ;;  %v3329_v34 = vld [vmem:[#allocation2 + $0x24] sm:$0xf] }
 0x1df   : > { %v1879_v13 = vor.u32 %v1878_v1, %v1874_v19  ;;  %v3385_v16 = vshrl.u32 %v9599_v49, 16  ;;  %v3391_v18 = vshll.u32 %v9602_v59, 16  ;;  %v1887_v25 = vshrl.u32 %v9607_v42, 16 }
 0x1e0   : > { %v1875_v21 = vsel %vm9319_vm12, %v1870_v4, %v1874_v19  ;;  %v3378_v23 = vor.u32 %v3377_v14, %v3374_v7  ;;  %v1890_v26 = vshll.u32 %v9607_v42, 16  ;;  %v1896_v36 = vshll.u32 %v9609_v31, 16  ;;  %v9631_v4 = vld [vmem:[#allocation2 + $0x28] sm:$0xf] }
 0x1e1   : > { %7890 = vmatmul.mubr.msk.bf16.gmra.mrb[60].mxu0 %vm1974_vm9, %v6929_v2  ;;  %v1880_v62 = vrot.slane %v1879_v13, 4  ;;  %v3387_v17 = vrot.slane %v3385_v16, 4  ;;  %v3393_v46 = vrot.slane %v3391_v18, 5  ;;  %v1889_v30 = vrot.slane %v1887_v25, 4 }
 0x1e2   : > { %v3379_v38 = vrot.slane %v3378_v23, 4  ;;  %v1892_v40 = vrot.slane %v1890_v26, 5  ;;  %v1900_v24 = vshrl.u32 %v9609_v31, 16  ;;  %v1898_v19 = vrot.slane %v1896_v36, 5 }
 0x1e3   : > { %v1885_v43 = vsel %vm9319_vm12, %v1880_v62, %v1884_v28  ;;  %v3388_v45 = vor.u32 %v3387_v17, %v3383_v3  ;;  %v1906_v53 = vshll.u32 %v1522_v58, 16  ;;  %v3396_v35 = vshrl.u32 %v3326_v29, 16  ;;  %v9641_v62 = vld [vmem:[#allocation2 + $0x2c] sm:$0x1] }
 0x1e4   : > { %v6930_v57 = vcombine.low %v1875_v21, %v1885_v43  ;;  %v3384_v37 = vsel %vm9319_vm12, %v3379_v38, %v3383_v3  ;;  %v1893_v60 = vor.u32 %v1892_v40, %v1889_v30  ;;  %v1902_v61 = vrot.slane %v1900_v24, 4  ;;  %v3332_v30 = vld [vmem:[#allocation2 + $0x30] sm:$0xf] }
 0x1e5   : > { %v3389_v63 = vrot.slane %v3388_v45, 4  ;;  %v1908_v1 = vrot.slane %v1906_v53, 5  ;;  %v3399_v2 = vshll.u32 %v3326_v29, 16  ;;  %v3405_v14 = vshll.u32 %v9622_v39, 16  ;;  %v9648_v45 = vld [vmem:[#allocation2 + $0x34] sm:$0xf] }
 0x1e6   : > { %7893 = vmatprep.mubr.msk.bf16.mxu0 %vm1974_vm9, %v6930_v57  ;;  %v1894_v7 = vrot.slane %v1893_v60, 4  ;;  %v1903_v28 = vor.u32 %v1902_v61, %v1898_v19  ;;  %v3409_v13 = vshrl.u32 %v9622_v39, 16  ;;  %v3398_v16 = vrot.slane %v3396_v35, 4 }
 0x1e7   : > { %v3394_v3 = vsel %vm9319_vm12, %v3389_v63, %v3393_v46  ;;  %v3401_v18 = vrot.slane %v3399_v2, 5  ;;  %v3415_v21 = vshll.u32 %v9625_v55, 16  ;;  %v3407_v26 = vrot.slane %v3405_v14, 5  ;;  %v9651_v2 = vld [vmem:[#allocation2 + $0x38] sm:$0x1] }
 0x1e8   : > { %v7068_v23 = vcombine.low %v3384_v37, %v3394_v3  ;;  %v1899_v58 = vsel %vm9319_vm12, %v1894_v7, %v1898_v19  ;;  %v1904_v25 = vrot.slane %v1903_v28, 4  ;;  %v3411_v36 = vrot.slane %v3409_v13, 4  ;;  %v8640_v7 = vld [vmem:[#allocation2 + $0xc] sm:$0xf]  ;;  %v9656_v28 = vld [vmem:[#allocation2 + $0x10] sm:$0xf] }
 0x1e9   : > { %v3402_v17 = vor.u32 %v3401_v18, %v3398_v16  ;;  %v3417_v29 = vrot.slane %v3415_v21, 5  ;;  %v3420_v38 = vshrl.u32 %v3329_v34, 16  ;;  %v3423_v40 = vshll.u32 %v3329_v34, 16  ;;  %v8642_v13 = vld [vmem:[#allocation2 + $0x18] sm:$0xf] }
 0x1ea   : > { %8009 = vmatprep.mubr.msk.bf16.mxu1 %vm1974_vm9, %v7068_v23  ;;  %v1909_v46 = vsel %vm9319_vm12, %v1904_v25, %v1908_v1  ;;  %v3429_v24 = vshll.u32 %v9631_v4, 16  ;;  %v3433_v43 = vshrl.u32 %v9631_v4, 16  ;;  %v3412_v57 = vor.u32 %v3411_v36, %v3407_v26  ;;  %v9659_v3 = vld [vmem:[#allocation2 + $0x1c] sm:$0xf] }
 0x1eb   : > { %v6931_v19 = vcombine.low %v1899_v58, %v1909_v46  ;;  %v3403_v53 = vrot.slane %v3402_v17, 4  ;;  %v3422_v37 = vrot.slane %v3420_v38, 4  ;;  %v3425_v60 = vrot.slane %v3423_v40, 5  ;;  %v3335_v18 = vld [vmem:[#allocation2 + $0x3c] sm:$0xf] }
 0x1ec   : > { %v3431_v61 = vrot.slane %v3429_v24, 5  ;;  %v3435_v63 = vrot.slane %v3433_v43, 4  ;;  %v3439_v35 = vshll.u32 %v9641_v62, 16  ;;  %v3413_v1 = vrot.slane %v3412_v57, 4  ;;  %v9670_v46 = vld [vmem:[#allocation2 + $0x40] sm:$0xf] }
 0x1ed   : > { %7894 = vmatmul.mubr.msk.bf16.gmra.mrb[64].mxu0 %vm1974_vm9, %v6931_v19  ;;  %v3408_v34 = vsel %vm9319_vm12, %v3403_v53, %v3407_v26  ;;  %v6951_v14 = vcombine.low %v8640_v7, %v9656_v28  ;;  %v6952_v16 = vcombine.low %v8642_v13, %v9659_v3  ;;  %v3426_v21 = vor.u32 %v3425_v60, %v3422_v37  ;;  %v9672_v53 = vld [vmem:[#allocation2 + $0x44] sm:$0x1]  ;;  %v8610_v57 = vld [vmem:[%s10950_s3 + $0x28] sm:$0xff]  }
 0x1ee   : > { %v3436_v23 = vor.u32 %v3435_v63, %v3431_v61  ;;  %v3441_v58 = vrot.slane %v3439_v35, 5  ;;  %7901 = vmatprep.mubr.msk.bf16.mxu0 %vm1974_vm9, %v6950_v9  ;;  %v3444_v25 = vshrl.u32 %v3332_v30, 16  ;;  %v3418_v26 = vsel %vm9319_vm12, %v3413_v1, %v3417_v29  ;;  %v8644_v1 = vld [vmem:[%s10950_s3 + $0x50] sm:$0xff]  }
 0x1ef   : > { %v3447_v17 = vshll.u32 %v3332_v30, 16  ;;  %v3453_v36 = vshll.u32 %v9648_v45, 16  ;;  %v3457_v38 = vshrl.u32 %v9648_v45, 16  ;;  %v7069_v40 = vcombine.low %v3408_v34, %v3418_v26  ;;  %v3338_v34 = vld [vmem:[#allocation2 + $0x48] sm:$0xf] }
 0x1f0   : > { %v3427_v24 = vrot.slane %v3426_v21, 4  ;;  %v3437_v43 = vrot.slane %v3436_v23, 4  ;;  %v3446_v19 = vrot.slane %v3444_v25, 4  ;;  %v3463_v30 = vshll.u32 %v9651_v2, 16  ;;  %v9692_v25 = vld [vmem:[%s10950_s3 + $0x60] sm:$0xff]  }
 0x1f1   : > { %v3449_v51 = vrot.slane %v3447_v17, 5  ;;  %v3455_v9 = vrot.slane %v3453_v36, 5  ;;  %v3459_v29 = vrot.slane %v3457_v38, 4  ;;  %8010 = vmatmul.mubr.msk.bf16.vlgmr.msra.gmra.mrb[24].mxu1 %vm1974_vm9, %v7069_v40  ;;  %v3468_v63 = vshrl.u32 %v3335_v18, 16  ;;  %v9696_v17 = vld [vmem:[#allocation2 + $0x4c] sm:$0xf] }
 0x1f2   : > { %v3432_v37 = vsel %vm9319_vm12, %v3427_v24, %v3431_v61  ;;  %v3442_v60 = vsel %vm9319_vm12, %v3437_v43, %v3441_v58  ;;  %v3471_v35 = vshll.u32 %v3335_v18, 16  ;;  %8042 = vmatpush3.bf16.msra.mxu1 %v8644_v1  ;;  %v3465_v23 = vrot.slane %v3463_v30, 5  ;;  %10992 = vst [vmem:[#allocation9_spill] sm:$0xff] %v9696_v17  ;;  %v9698_v36 = vld [vmem:[#allocation2 + $0x50] sm:$0x1] }
 0x1f3   : > { %v7070_v7 = vcombine.low %v3432_v37, %v3442_v60  ;;  %v3450_v13 = vor.u32 %v3449_v51, %v3446_v19  ;;  %v3460_v21 = vor.u32 %v3459_v29, %v3455_v9  ;;  %v3470_v61 = vrot.slane %v3468_v63, 4  ;;  %10993 = vst [vmem:[#allocation10_spill] sm:$0xff] %v9698_v36  ;;  %8043 = vmatprep.subr.bf16.mxu1 %v8601_v50  ;;  %v8645_v43 = vld [vmem:[#allocation2 + $0x24] sm:$0xf]  ;;  %v9703_v19 = vld [vmem:[#allocation2 + $0x28] sm:$0xf] }
 0x1f4   : > { %v3473_v26 = vrot.slane %v3471_v35, 5  ;;  %v3477_v58 = vshll.u32 %v9670_v46, 16  ;;  %v3481_v18 = vshrl.u32 %v9670_v46, 16  ;;  %v3487_v24 = vshll.u32 %v9672_v53, 16  ;;  %v3341_v29 = vld [vmem:[#allocation2 + $0x54] sm:$0xf] }
 0x1f5   : > { %8013 = vmatprep.mubr.msk.bf16.mxu1 %vm1974_vm9, %v7070_v7  ;;  %7902 = vmatmul.mubr.msk.bf16.vlgmr.msra.gmra.mrb[36].mxu0 %vm1974_vm9, %v6951_v14  ;;  %v3451_v38 = vrot.slane %v3450_v13, 4  ;;  %v3461_v40 = vrot.slane %v3460_v21, 4  ;;  %v6953_v51 = vcombine.low %v8645_v43, %v9703_v19  ;;  %v8647_v63 = vld [vmem:[#allocation2 + $0x30] sm:$0xf]  ;;  %v9707_v35 = vld [vmem:[#allocation2 + $0x34] sm:$0xf] }
 0x1f6   : > { %7905 = vmatprep.mubr.msk.bf16.mxu0 %vm1974_vm9, %v6952_v16  ;;  %v3474_v30 = vor.u32 %v3473_v26, %v3470_v61  ;;  %v3479_v37 = vrot.slane %v3477_v58, 5  ;;  %v3483_v60 = vrot.slane %v3481_v18, 4  ;;  %v6954_v14 = vcombine.low %v8647_v63, %v9707_v35  ;;  %7934 = vmatpush3.bf16.msra.mxu0 %v9464_v44  ;;  %v9715_v43 = vld [vmem:[#allocation2 + $0x58] sm:$0xf] }
 0x1f7   : > { %v3456_v1 = vsel %vm9319_vm12, %v3451_v38, %v3455_v9  ;;  %v3466_v7 = vsel %vm9319_vm12, %v3461_v40, %v3465_v23  ;;  %v3489_v13 = vrot.slane %v3487_v24, 5  ;;  %v3492_v21 = vshrl.u32 %v3338_v34, 16  ;;  %8044 = vmatpush3.bf16.msra.mxu1 %v8601_v50  ;;  %7935 = vmatprep.subr.bf16.mxu0 %v8610_v57  ;;  %v9721_v23 = vld [vmem:[#allocation2 + $0x5c] sm:$0x1] }
 0x1f8   : > { %v7071_v16 = vcombine.low %v3456_v1, %v3466_v7  ;;  %v3475_v61 = vrot.slane %v3474_v30, 4  ;;  %v3484_v26 = vor.u32 %v3483_v60, %v3479_v37  ;;  %v3495_v58 = vshll.u32 %v3338_v34, 16  ;;  %8077 = vmatprep.subr.bf16.mxu1 %v9692_v25  ;;  %v9729_v7 = vld [vmem:[%s10950_s3 + $0x30] sm:$0xff]  }
 0x1f9   : > { %v3494_v18 = vrot.slane %v3492_v21, 4  ;;  %v3501_v44 = vshll.u32 %v9696_v17, 16  ;;  %v3505_v9 = vshrl.u32 %v9696_v17, 16  ;;  %v3511_v38 = vshll.u32 %v9698_v36, 16  ;;  %v8650_v17 = vld [vmem:[#allocation2 + $0x3c] sm:$0xf] }
 0x1fa   : > { %8014 = vmatmul.mubr.msk.bf16.gmra.mrb[28].mxu1 %vm1974_vm9, %v7071_v16  ;;  %v3480_v50 = vsel %vm9319_vm12, %v3475_v61, %v3479_v37  ;;  %v3485_v40 = vrot.slane %v3484_v26, 4  ;;  %v3497_v24 = vrot.slane %v3495_v58, 5  ;;  %v3516_v30 = vshrl.u32 %v3341_v29, 16  ;;  %7936 = vmatpush3.bf16.msra.mxu0 %v8610_v57 }
 0x1fb   : > { %v3503_v34 = vrot.slane %v3501_v44, 5  ;;  %v3507_v60 = vrot.slane %v3505_v9, 4  ;;  %v3513_v63 = vrot.slane %v3511_v38, 5  ;;  %v3519_v1 = vshll.u32 %v3341_v29, 16  ;;  %7969 = vmatprep.subr.bf16.mxu0 %v9729_v7  ;;  %v3344_v44 = vld [vmem:[#allocation2 + $0x60] sm:$0xf] }
 0x1fc   : > { %v3490_v21 = vsel %vm9319_vm12, %v3485_v40, %v3489_v13  ;;  %v3498_v16 = vor.u32 %v3497_v24, %v3494_v18  ;;  %v3518_v37 = vrot.slane %v3516_v30, 4  ;;  %v3525_v61 = vshll.u32 %v9715_v43, 16  ;;  %v9739_v13 = vld [vmem:[#allocation2 + $0x40] sm:$0xf]  ;;  %v9742_v40 = vld [vmem:[#allocation2 + $0x64] sm:$0xf] }
 0x1fd   : > { %v7072_v26 = vcombine.low %v3480_v50, %v3490_v21  ;;  %7906 = vmatmul.mubr.msk.bf16.gmra.mrb[40].mxu0 %vm1974_vm9, %v6953_v51  ;;  %v3508_v57 = vor.u32 %v3507_v60, %v3503_v34  ;;  %v3521_v58 = vrot.slane %v3519_v1, 5  ;;  %v3529_v29 = vshrl.u32 %v9715_v43, 16  ;;  %10994 = vst [vmem:[#allocation11_spill] sm:$0xff] %v9739_v13  ;;  %v9749_v1 = vld [vmem:[#allocation2 + $0x68] sm:$0x1] }
 0x1fe   : > { %7909 = vmatprep.mubr.msk.bf16.mxu0 %vm1974_vm9, %v6954_v14  ;;  %v3499_v9 = vrot.slane %v3498_v16, 4  ;;  %v3527_v38 = vrot.slane %v3525_v61, 5  ;;  %v3535_v36 = vshll.u32 %v9721_v23, 16  ;;  %v6955_v18 = vcombine.low %v8650_v17, %v9739_v13  ;;  %10995 = vst [vmem:[#allocation12_spill] sm:$0xff] %v9749_v1 }
 0x1ff   : > { %8017 = vmatprep.mubr.msk.bf16.mxu1 %vm1974_vm9, %v7072_v26  ;;  %v3509_v51 = vrot.slane %v3508_v57, 4  ;;  %v3522_v50 = vor.u32 %v3521_v58, %v3518_v37  ;;  %v3531_v24 = vrot.slane %v3529_v29, 4  ;;  %v6956_v30 = vcombine.low %v9439_v6, %v9448_v8  ;;  %v3347_v37 = vld [vmem:[#allocation2 + $0x6c] sm:$0xf]  ;;  %v9755_v8 = vld [vmem:[#allocation2 + $0x70] sm:$0xf] }
 0x200   : > { %v3504_v14 = vsel %vm9319_vm12, %v3499_v9, %v3503_v34  ;;  %v3537_v60 = vrot.slane %v3535_v36, 5  ;;  %v3540_v21 = vshrl.u32 %v3344_v44, 16  ;;  %v3543_v16 = vshll.u32 %v3344_v44, 16 }
 0x201   : > { %v3514_v17 = vsel %vm9319_vm12, %v3509_v51, %v3513_v63  ;;  %v3523_v61 = vrot.slane %v3522_v50, 4  ;;  %v3532_v13 = vor.u32 %v3531_v24, %v3527_v38  ;;  %v3549_v26 = vshll.u32 %v9742_v40, 16  ;;  %v9761_v50 = vld [vmem:[#allocation2 + $0x74] sm:$0x1] }
 0x202   : > { %v7073_v57 = vcombine.low %v3504_v14, %v3514_v17  ;;  %v3542_v58 = vrot.slane %v3540_v21, 4  ;;  %v3545_v29 = vrot.slane %v3543_v16, 5  ;;  %v3553_v6 = vshrl.u32 %v9742_v40, 16 }
 0x203   : > { %v3528_v36 = vsel %vm9319_vm12, %v3523_v61, %v3527_v38  ;;  %v3533_v34 = vrot.slane %v3532_v13, 4  ;;  %v3551_v44 = vrot.slane %v3549_v26, 5  ;;  %v3559_v9 = vshll.u32 %v9749_v1, 16 }
 0x204   : > { %8018 = vmatmul.mubr.msk.bf16.gmra.mrb[0].mxu1 %vm1974_vm9, %v7073_v57  ;;  %v3546_v63 = vor.u32 %v3545_v29, %v3542_v58  ;;  %v3555_v51 = vrot.slane %v3553_v6, 4  ;;  %v3564_v24 = vshrl.u32 %v3347_v37, 16  ;;  %v3567_v14 = vshll.u32 %v3347_v37, 16  ;;  %v3350_v58 = vld [vmem:[#allocation2 + $0x78] sm:$0xf] }
 0x205   : > { %v3538_v21 = vsel %vm9319_vm12, %v3533_v34, %v3537_v60  ;;  %7910 = vmatmul.mubr.msk.bf16.gmra.mrb[44].mxu0 %vm1974_vm9, %v6955_v18  ;;  %v3561_v16 = vrot.slane %v3559_v9, 5  ;;  %v3573_v38 = vshll.u32 %v9755_v8, 16  ;;  %v3577_v13 = vshrl.u32 %v9755_v8, 16  ;;  %v9770_v60 = vld [vmem:[#allocation2 + $0x7c] sm:$0xf] }
 0x206   : > { %v7074_v17 = vcombine.low %v3528_v36, %v3538_v21  ;;  %7913 = vmatprep.mubr.msk.bf16.mxu0 %vm1974_vm9, %v6956_v30  ;;  %v3547_v61 = vrot.slane %v3546_v63, 4  ;;  %v3556_v26 = vor.u32 %v3555_v51, %v3551_v44  ;;  %v3566_v57 = vrot.slane %v3564_v24, 4  ;;  %v9779_v24 = vld [vmem:[#allocation2 + $0x80] sm:$0x1] }
 0x207   : > { %v3569_v29 = vrot.slane %v3567_v14, 5  ;;  %v3575_v6 = vrot.slane %v3573_v38, 5  ;;  %v3579_v37 = vrot.slane %v3577_v13, 4  ;;  %v3583_v1 = vshll.u32 %v9761_v50, 16 }
 0x208   : > { %8021 = vmatprep.mubr.msk.bf16.mxu1 %vm1974_vm9, %v7074_v17  ;;  %v3552_v18 = vsel %vm9319_vm12, %v3547_v61, %v3551_v44  ;;  %v3557_v34 = vrot.slane %v3556_v26, 4  ;;  %v6957_v30 = vcombine.low %v9470_v33, %v9477_v22  ;;  %v6958_v36 = vcombine.low %v9491_v15, %v9497_v41  ;;  %v3353_v17 = vld [vmem:[#allocation2 + $0x84] sm:$0xf] }
 0x209   : > { %v3570_v9 = vor.u32 %v3569_v29, %v3566_v57  ;;  %v3580_v63 = vor.u32 %v3579_v37, %v3575_v6  ;;  %v3585_v51 = vrot.slane %v3583_v1, 5  ;;  %v3588_v14 = vshrl.u32 %v3350_v58, 16  ;;  %v9786_v29 = vld [vmem:[#allocation2 + $0x88] sm:$0xf]  ;;  %v9794_v37 = vld [vmem:[#allocation2 + $0x8c] sm:$0x1] }
 0x20a   : > { %v3562_v21 = vsel %vm9319_vm12, %v3557_v34, %v3561_v16  ;;  %v3591_v38 = vshll.u32 %v3350_v58, 16  ;;  %v3597_v13 = vshll.u32 %v9770_v60, 16  ;;  %v3601_v44 = vshrl.u32 %v9770_v60, 16 }
 0x20b   : > { %v7075_v61 = vcombine.low %v3552_v18, %v3562_v21  ;;  %v3571_v33 = vrot.slane %v3570_v9, 4  ;;  %v3581_v22 = vrot.slane %v3580_v63, 4  ;;  %v3590_v26 = vrot.slane %v3588_v14, 4 }
 0x20c   : > { %v3593_v15 = vrot.slane %v3591_v38, 5  ;;  %v3599_v41 = vrot.slane %v3597_v13, 5  ;;  %v3603_v57 = vrot.slane %v3601_v44, 4  ;;  %v3607_v1 = vshll.u32 %v9779_v24, 16 }
 0x20d   : > { %8022 = vmatmul.mubr.msk.bf16.gmra.mrb[4].mxu1 %vm1974_vm9, %v7075_v61  ;;  %v3576_v16 = vsel %vm9319_vm12, %v3571_v33, %v3575_v6  ;;  %v3586_v58 = vsel %vm9319_vm12, %v3581_v22, %v3585_v51  ;;  %7914 = vmatmul.mubr.msk.bf16.gmra.mrb[48].mxu0 %vm1974_vm9, %v6957_v30  ;;  %v3612_v18 = vshrl.u32 %v3353_v17, 16  ;;  %v3615_v34 = vshll.u32 %v3353_v17, 16  ;;  %v3356_v61 = vld [vmem:[#allocation2 + $0x90] sm:$0xf] }
 0x20e   : > { %v7076_v9 = vcombine.low %v3576_v16, %v3586_v58  ;;  %7917 = vmatprep.mubr.msk.bf16.mxu0 %vm1974_vm9, %v6958_v36  ;;  %v3594_v63 = vor.u32 %v3593_v15, %v3590_v26  ;;  %v3604_v14 = vor.u32 %v3603_v57, %v3599_v41  ;;  %v3609_v21 = vrot.slane %v3607_v1, 5  ;;  %v9805_v57 = vld [vmem:[#allocation2 + $0x94] sm:$0xf]  ;;  %v9807_v1 = vld [vmem:[#allocation2 + $0x98] sm:$0x1] }
 0x20f   : > { %v3614_v38 = vrot.slane %v3612_v18, 4  ;;  %v3617_v13 = vrot.slane %v3615_v34, 5  ;;  %v3621_v44 = vshll.u32 %v9786_v29, 16  ;;  %v3625_v6 = vshrl.u32 %v9786_v29, 16 }
 0x210   : > { %8025 = vmatprep.mubr.msk.bf16.mxu1 %vm1974_vm9, %v7076_v9  ;;  %v3595_v30 = vrot.slane %v3594_v63, 4  ;;  %v3605_v51 = vrot.slane %v3604_v14, 4  ;;  %v3631_v33 = vshll.u32 %v9794_v37, 16  ;;  %v6959_v17 = vcombine.low %v9505_v56, %v9515_v5  ;;  %v3359_v9 = vld [vmem:[#allocation2 + $0x9c] sm:$0xf] }
 0x211   : > { %v3618_v36 = vor.u32 %v3617_v13, %v3614_v38  ;;  %v3623_v22 = vrot.slane %v3621_v44, 5  ;;  %v3627_v26 = vrot.slane %v3625_v6, 4  ;;  %v6960_v15 = vcombine.low %v9525_v20, %v9536_v47  ;;  %v9816_v44 = vld [vmem:[#allocation2 + $0xa0] sm:$0xf] }
 0x212   : > { %v3600_v16 = vsel %vm9319_vm12, %v3595_v30, %v3599_v41  ;;  %v3610_v58 = vsel %vm9319_vm12, %v3605_v51, %v3609_v21  ;;  %v3633_v18 = vrot.slane %v3631_v33, 5  ;;  %v3636_v34 = vshrl.u32 %v3356_v61, 16 }
 0x213   : > { %v7077_v56 = vcombine.low %v3600_v16, %v3610_v58  ;;  %v3619_v5 = vrot.slane %v3618_v36, 4  ;;  %v3628_v63 = vor.u32 %v3627_v26, %v3623_v22  ;;  %v3639_v14 = vshll.u32 %v3356_v61, 16  ;;  %v9823_v36 = vld [vmem:[#allocation2 + $0xa4] sm:$0x1] }
 0x214   : > { %v3638_v38 = vrot.slane %v3636_v34, 4  ;;  %v3645_v20 = vshll.u32 %v9805_v57, 16  ;;  %v3649_v47 = vshrl.u32 %v9805_v57, 16  ;;  %v3655_v13 = vshll.u32 %v9807_v1, 16 }
 0x215   : > { %8026 = vmatmul.mubr.msk.bf16.gmra.mrb[8].mxu1 %vm1974_vm9, %v7077_v56  ;;  %v3624_v41 = vsel %vm9319_vm12, %v3619_v5, %v3623_v22  ;;  %v3629_v21 = vrot.slane %v3628_v63, 4  ;;  %7918 = vmatmul.mubr.msk.bf16.gmra.mrb[52].mxu0 %vm1974_vm9, %v6959_v17  ;;  %v3641_v6 = vrot.slane %v3639_v14, 5  ;;  %v3660_v30 = vshrl.u32 %v3359_v9, 16  ;;  %v3362_v14 = vld [vmem:[#allocation2 + $0xa8] sm:$0xf] }
 0x216   : > { %7921 = vmatprep.mubr.msk.bf16.mxu0 %vm1974_vm9, %v6960_v15  ;;  %v3647_v61 = vrot.slane %v3645_v20, 5  ;;  %v3651_v51 = vrot.slane %v3649_v47, 4  ;;  %v3657_v33 = vrot.slane %v3655_v13, 5  ;;  %v3663_v26 = vshll.u32 %v3359_v9, 16  ;;  %v9832_v13 = vld [vmem:[#allocation2 + $0xac] sm:$0xf] }
 0x217   : > { %v3634_v16 = vsel %vm9319_vm12, %v3629_v21, %v3633_v18  ;;  %v3642_v58 = vor.u32 %v3641_v6, %v3638_v38  ;;  %v3662_v34 = vrot.slane %v3660_v30, 4  ;;  %v3669_v22 = vshll.u32 %v9816_v44, 16 }
 0x218   : > { %v7078_v56 = vcombine.low %v3624_v41, %v3634_v16  ;;  %v3652_v5 = vor.u32 %v3651_v51, %v3647_v61  ;;  %v3665_v17 = vrot.slane %v3663_v26, 5  ;;  %v3673_v63 = vshrl.u32 %v9816_v44, 16  ;;  %v9839_v51 = vld [vmem:[#allocation2 + $0xb0] sm:$0x1] }
 0x219   : > { %v3643_v15 = vrot.slane %v3642_v58, 4  ;;  %v3671_v20 = vrot.slane %v3669_v22, 5  ;;  %v3679_v47 = vshll.u32 %v9823_v36, 16  ;;  %v6961_v9 = vcombine.low %v9545_v52, %v9550_v0 }
 0x21a   : > { %8029 = vmatprep.mubr.msk.bf16.mxu1 %vm1974_vm9, %v7078_v56  ;;  %v3653_v18 = vrot.slane %v3652_v5, 4  ;;  %v3666_v38 = vor.u32 %v3665_v17, %v3662_v34  ;;  %v3675_v21 = vrot.slane %v3673_v63, 4  ;;  %v6962_v41 = vcombine.low %v9557_v11, %v9563_v27  ;;  %v3365_v34 = vld [vmem:[#allocation2 + $0xb4] sm:$0xf]  ;;  %v9846_v5 = vld [vmem:[#allocation2 + $0xb8] sm:$0xf] }
 0x21b   : > { %v3648_v6 = vsel %vm9319_vm12, %v3643_v15, %v3647_v61  ;;  %v3681_v30 = vrot.slane %v3679_v47, 5  ;;  %v3684_v26 = vshrl.u32 %v3362_v14, 16  ;;  %v3687_v16 = vshll.u32 %v3362_v14, 16 }
 0x21c   : > { %v3658_v52 = vsel %vm9319_vm12, %v3653_v18, %v3657_v33  ;;  %v3667_v0 = vrot.slane %v3666_v38, 4  ;;  %v3676_v58 = vor.u32 %v3675_v21, %v3671_v20  ;;  %v3693_v22 = vshll.u32 %v9832_v13, 16 }
 0x21d   : > { %v7079_v56 = vcombine.low %v3648_v6, %v3658_v52  ;;  %7922 = vmatmul.mubr.msk.bf16.gmra.mrb[56].mxu0 %vm1974_vm9, %v6961_v9  ;;  %v3686_v11 = vrot.slane %v3684_v26, 4  ;;  %v3689_v27 = vrot.slane %v3687_v16, 5  ;;  %v3697_v61 = vshrl.u32 %v9832_v13, 16  ;;  %v9853_v9 = vld [vmem:[#allocation2 + $0xbc] sm:$0x1] }
 0x21e   : > { %v3672_v17 = vsel %vm9319_vm12, %v3667_v0, %v3671_v20  ;;  %v3677_v63 = vrot.slane %v3676_v58, 4  ;;  %7925 = vmatprep.mubr.msk.bf16.mxu0 %vm1974_vm9, %v6962_v41  ;;  %v3695_v33 = vrot.slane %v3693_v22, 5  ;;  %v3703_v14 = vshll.u32 %v9839_v51, 16  ;;  %v3368_v58 = vld [vmem:[#allocation2 + $0xc0] sm:$0xf] }
 0x21f   : > { %8030 = vmatmul.mubr.msk.bf16.gmra.mrb[12].mxu1 %vm1974_vm9, %v7079_v56  ;;  %v3690_v15 = vor.u32 %v3689_v27, %v3686_v11  ;;  %v3699_v47 = vrot.slane %v3697_v61, 4  ;;  %v3708_v18 = vshrl.u32 %v3365_v34, 16  ;;  %v3711_v38 = vshll.u32 %v3365_v34, 16  ;;  %v9860_v61 = vld [vmem:[#allocation2 + $0xc4] sm:$0xf] }
 0x220   : > { %v3682_v21 = vsel %vm9319_vm12, %v3677_v63, %v3681_v30  ;;  %v3705_v6 = vrot.slane %v3703_v14, 5  ;;  %v3717_v20 = vshll.u32 %v9846_v5, 16  ;;  %v3721_v26 = vshrl.u32 %v9846_v5, 16 }
 0x221   : > { %v7080_v41 = vcombine.low %v3672_v17, %v3682_v21  ;;  %v3691_v16 = vrot.slane %v3690_v15, 4  ;;  %v3700_v52 = vor.u32 %v3699_v47, %v3695_v33  ;;  %v3710_v0 = vrot.slane %v3708_v18, 4  ;;  %v9869_v18 = vld [vmem:[#allocation2 + $0xc8] sm:$0x1] }
 0x222   : > { %v3713_v22 = vrot.slane %v3711_v38, 5  ;;  %v3719_v56 = vrot.slane %v3717_v20, 5  ;;  %v3723_v11 = vrot.slane %v3721_v26, 4  ;;  %v3727_v27 = vshll.u32 %v9853_v9, 16 }
 0x223   : > { %8033 = vmatprep.mubr.msk.bf16.mxu1 %vm1974_vm9, %v7080_v41  ;;  %v3696_v30 = vsel %vm9319_vm12, %v3691_v16, %v3695_v33  ;;  %v3701_v34 = vrot.slane %v3700_v52, 4  ;;  %v6963_v17 = vcombine.low %v9568_v48, %v9576_v10  ;;  %v6964_v63 = vcombine.low %v9585_v12, %v9589_v32 }
 0x224   : > { %v3714_v14 = vor.u32 %v3713_v22, %v3710_v0  ;;  %v3724_v15 = vor.u32 %v3723_v11, %v3719_v56  ;;  %v3729_v47 = vrot.slane %v3727_v27, 5  ;;  %v3732_v38 = vshrl.u32 %v3368_v58, 16  ;;  %v4060_v22 = vld [vmem:[#allocation2 + $0xc] sm:$0xe] }
 0x225   : > { %v3706_v21 = vsel %vm9319_vm12, %v3701_v34, %v3705_v6  ;;  %7926 = vmatmul.mubr.msk.bf16.gmra.mrb[60].mxu0 %vm1974_vm9, %v6963_v17  ;;  %v3735_v20 = vshll.u32 %v3368_v58, 16  ;;  %v3741_v33 = vshll.u32 %v9860_v61, 16  ;;  %v3745_v26 = vshrl.u32 %v9860_v61, 16  ;;  %v4061_v17 = vld [vmem:[#allocation2 + $0x18] sm:$0xe] }
 0x226   : > { %v7081_v48 = vcombine.low %v3696_v30, %v3706_v21  ;;  %v3715_v10 = vrot.slane %v3714_v14, 4  ;;  %v3725_v41 = vrot.slane %v3724_v15, 4  ;;  %7929 = vmatprep.mubr.msk.bf16.mxu0 %vm1974_vm9, %v6964_v63  ;;  %v3734_v12 = vrot.slane %v3732_v38, 4 }
 0x227   : > { %v3737_v32 = vrot.slane %v3735_v20, 5  ;;  %v3743_v16 = vrot.slane %v3741_v33, 5  ;;  %v3747_v52 = vrot.slane %v3745_v26, 4  ;;  %v3751_v0 = vshll.u32 %v9869_v18, 16 }
 0x228   : > { %8034 = vmatmul.mubr.msk.bf16.gmra.mrb[16].mxu1 %vm1974_vm9, %v7081_v48  ;;  %v3720_v6 = vsel %vm9319_vm12, %v3715_v10, %v3719_v56  ;;  %v3730_v58 = vsel %vm9319_vm12, %v3725_v41, %v3729_v47  ;;  %v7102_v14 = vrot.slane %v4060_v22, 9  ;;  %v4126_v15 = vrot.slane %v9599_v49, 5  ;;  %v2485_v10 = vld [vmem:[#allocation2] sm:$0xe]  ;;  %v8652_v22 = vld [vmem:[#allocation2 + $0x4] sm:$0xf] }
 0x229   : > { %v7082_v11 = vcombine.low %v3720_v6, %v3730_v58  ;;  %v3738_v27 = vor.u32 %v3737_v32, %v3734_v12  ;;  %v3748_v30 = vor.u32 %v3747_v52, %v3743_v16  ;;  %v3753_v34 = vrot.slane %v3751_v0, 5 }
 0x22a   : > { %v4129_v38 = vrot.slane %v9602_v59, 5  ;;  %v6965_v21 = vcombine.low %v9607_v42, %v9609_v31  ;;  %v4133_v20 = vrot.slane %v9622_v39, 5  ;;  %v4128_v33 = vrot.slane %v4126_v15, 4  ;;  %v4062_v42 = vld [vmem:[#allocation2 + $0x24] sm:$0xe] }
 0x22b   : > { %8037 = vmatprep.mubr.msk.bf16.mxu1 %vm1974_vm9, %v7082_v11  ;;  %v3739_v56 = vrot.slane %v3738_v27, 4  ;;  %v3749_v47 = vrot.slane %v3748_v30, 4  ;;  %v7103_v26 = vrot.slane %v4061_v17, 9  ;;  %v4136_v48 = vrot.slane %v9625_v55, 5  ;;  %v8653_v27 = vld [vmem:[#allocation2 + $0x8] sm:$0x1] }
 0x22c   : > { %v4127_v59 = vsel %vm9883_vm15, %v7102_v14, %v4126_v15  ;;  %v4135_v12 = vrot.slane %v4133_v20, 4  ;;  %v4130_v39 = vsel %vm9883_vm15, %v4128_v33, %v4129_v38  ;;  %v4140_v55 = vrot.slane %v9631_v4, 5  ;;  %v2487_v15 = vld [vmem:[#allocation2 + $0x18] sm:$0xe] }
 0x22d   : > { %v3744_v41 = vsel %vm9319_vm12, %v3739_v56, %v3743_v16  ;;  %v3754_v49 = vsel %vm9319_vm12, %v3749_v47, %v3753_v34  ;;  %7930 = vmatmul.mubr.msk.bf16.gmra.mrb[64].mxu0 %vm1974_vm9, %v6965_v21  ;;  %v4143_v32 = vrot.slane %v9641_v62, 5  ;;  %v7118_v52 = vcombine.low %v4127_v59, %v4130_v39  ;;  %v2486_v34 = vld [vmem:[#allocation2 + $0xc] sm:$0xe]  ;;  %v8654_v47 = vld [vmem:[#allocation2 + $0x14] sm:$0x1] }
 0x22e   : > { %v7083_v31 = vcombine.low %v3744_v41, %v3754_v49  ;;  %v4137_v16 = vsel %vm9883_vm15, %v4135_v12, %v4136_v48  ;;  %v6984_v0 = vrot.slane %v2485_v10, 9  ;;  %v2538_v6 = vrot.slane %v8652_v22, 5  ;;  %v8655_v59 = vld [vmem:[#allocation2 + $0x20] sm:$0x1] }
 0x22f   : > { %v4134_v58 = vsel %vm9883_vm15, %v7103_v26, %v4133_v20  ;;  %v7104_v11 = vrot.slane %v4062_v42, 9  ;;  %v2541_v30 = vrot.slane %v8653_v27, 5  ;;  %v4142_v4 = vrot.slane %v4140_v55, 4  ;;  %v4063_v42 = vld [vmem:[#allocation2 + $0x30] sm:$0xe] }
 0x230   : > { %8038 = vmatmul.mubr.msk.bf16.gmra.mrb[20].mxu1 %vm1974_vm9, %v7083_v31  ;;  %v2539_v62 = vsel %vm9883_vm15, %v6984_v0, %v2538_v6  ;;  %v2540_v17 = vrot.slane %v2538_v6, 4  ;;  %v2545_v14 = vrot.slane %v9656_v28, 5  ;;  %v7119_v38 = vcombine.low %v4134_v58, %v4137_v16  ;;  %v8612_v6 = vld [vmem:[%s10950_s3 + $0x68] sm:$0xff]   ;;  %v2488_v27 = vld [vmem:[#allocation2 + $0x24] sm:$0xe] }
 0x231   : > { %8045 = vmatprep.mubr.msk.bf16.mxu1 %vm1974_vm9, %v7118_v52  ;;  %v4141_v56 = vsel %vm9883_vm15, %v7104_v11, %v4140_v55  ;;  %v2548_v21 = vrot.slane %v8654_v47, 5  ;;  %v2552_v20 = vrot.slane %v9659_v3, 5  ;;  %v4144_v33 = vsel %vm9883_vm15, %v4142_v4, %v4143_v32  ;;  %v4064_v32 = vld [vmem:[#allocation2 + $0x3c] sm:$0xe]  ;;  %v9955_v47 = vld [vmem:[%s10950_s3 + $0x70] sm:$0xff]  }
 0x232   : > { %v2542_v26 = vsel %vm9883_vm15, %v2540_v17, %v2541_v30  ;;  %v6985_v48 = vrot.slane %v2486_v34, 9  ;;  %v2547_v10 = vrot.slane %v2545_v14, 4  ;;  %v6986_v49 = vrot.slane %v2487_v15, 9 }
 0x233   : > { %v7000_v41 = vcombine.low %v2539_v62, %v2542_v26  ;;  %v2554_v28 = vrot.slane %v2552_v20, 4  ;;  %v2555_v12 = vrot.slane %v8655_v59, 5  ;;  %v4147_v39 = vrot.slane %v9648_v45, 5  ;;  %v2489_v62 = vld [vmem:[#allocation2 + $0x30] sm:$0xe]  ;;  %v10999_v59 = vld [vmem:[#allocation10_spill] sm:$0xff] }
 0x234   : > { %v2546_v31 = vsel %vm9883_vm15, %v6985_v48, %v2545_v14  ;;  %v2549_v3 = vsel %vm9883_vm15, %v2547_v10, %v2548_v21  ;;  %v4150_v55 = vrot.slane %v9651_v2, 5  ;;  %v7120_v52 = vcombine.low %v4141_v56, %v4144_v33  ;;  %v8656_v14 = vld [vmem:[#allocation2 + $0x2c] sm:$0x1]  ;;  %v8657_v33 = vld [vmem:[#allocation2 + $0x38] sm:$0x1] }
 0x235   : > { %7937 = vmatprep.mubr.msk.bf16.mxu0 %vm1974_vm9, %v7000_v41  ;;  %v7001_v16 = vcombine.low %v2546_v31, %v2549_v3  ;;  %v2556_v0 = vsel %vm9883_vm15, %v2554_v28, %v2555_v12  ;;  %v4154_v22 = vrot.slane %v9670_v46, 5  ;;  %v2553_v58 = vsel %vm9883_vm15, %v6986_v49, %v2552_v20  ;;  %v4065_v41 = vld [vmem:[#allocation2 + $0x48] sm:$0xe]  ;;  %v10998_v49 = vld [vmem:[#allocation9_spill] sm:$0xff] }
 0x236   : > { %v7105_v45 = vrot.slane %v4063_v42, 9  ;;  %v4149_v11 = vrot.slane %v4147_v39, 4  ;;  %v4157_v2 = vrot.slane %v9672_v53, 5  ;;  %v7002_v30 = vcombine.low %v2553_v58, %v2556_v0  ;;  %v8658_v42 = vld [vmem:[%s10950_s3 + $0x38] sm:$0xff]  }
 0x237   : > { %7938 = vmatmul.mubr.msk.bf16.vlgmr.msra.gmra.mrb[36].mxu0 %vm1974_vm9, %v7001_v16  ;;  %v7106_v34 = vrot.slane %v4064_v32, 9  ;;  %v4156_v4 = vrot.slane %v4154_v22, 4  ;;  %v2559_v46 = vrot.slane %v9703_v19, 5  ;;  %v2562_v53 = vrot.slane %v8656_v14, 5 }
 0x238   : > { %8046 = vmatmul.mubr.msk.bf16.vlgmr.msra.gmra.mrb[24].mxu1 %vm1974_vm9, %v7119_v38  ;;  %v4151_v17 = vsel %vm9883_vm15, %v4149_v11, %v4150_v55  ;;  %v2566_v15 = vrot.slane %v9707_v35, 5  ;;  %7941 = vmatprep.mubr.msk.bf16.mxu0 %vm1974_vm9, %v7002_v30  ;;  %v4148_v38 = vsel %vm9883_vm15, %v7105_v45, %v4147_v39  ;;  %v6987_v21 = vrot.slane %v2488_v27, 9  ;;  %v4066_v39 = vld [vmem:[#allocation2 + $0x54] sm:$0xe]  ;;  %v2491_v30 = vld [vmem:[#allocation2 + $0x48] sm:$0xe] }
 0x239   : > { %8078 = vmatpush3.bf16.msra.mxu1 %v9692_v25  ;;  %8049 = vmatprep.mubr.msk.bf16.mxu1 %vm1974_vm9, %v7120_v52  ;;  %v4155_v19 = vsel %vm9883_vm15, %v7106_v34, %v4154_v22  ;;  %v4158_v25 = vsel %vm9883_vm15, %v4156_v4, %v4157_v2  ;;  %v2561_v56 = vrot.slane %v2559_v46, 4  ;;  %v6988_v35 = vrot.slane %v2489_v62, 9  ;;  %v2490_v22 = vld [vmem:[#allocation2 + $0x3c] sm:$0xe]  ;;  %v11000_v2 = vld [vmem:[#allocation11_spill] sm:$0xff] }
 0x23a   : > { %8079 = vmatprep.subr.bf16.mxu1 %v8612_v6  ;;  %v2568_v20 = vrot.slane %v2566_v15, 4  ;;  %v2569_v26 = vrot.slane %v8657_v33, 5  ;;  %7970 = vmatpush3.bf16.msra.mxu0 %v9729_v7  ;;  %v7121_v48 = vcombine.low %v4148_v38, %v4151_v17  ;;  %v4161_v28 = vrot.slane %v10998_v49, 5  ;;  %v8659_v34 = vld [vmem:[#allocation2 + $0x44] sm:$0x1]  ;;  %v11001_v49 = vld [vmem:[#allocation12_spill] sm:$0xff] }
 0x23b   : > { %v2563_v10 = vsel %vm9883_vm15, %v2561_v56, %v2562_v53  ;;  %v4164_v12 = vrot.slane %v10999_v59, 5  ;;  %7971 = vmatprep.subr.bf16.mxu0 %v8658_v42  ;;  %v7122_v31 = vcombine.low %v4155_v19, %v4158_v25  ;;  %v2560_v3 = vsel %vm9883_vm15, %v6987_v21, %v2559_v46  ;;  %v8660_v4 = vld [vmem:[#allocation2 + $0x4c] sm:$0xf]  ;;  %v8661_v25 = vld [vmem:[#allocation2 + $0x50] sm:$0x1] }
 0x23c   : > { %v2570_v7 = vsel %vm9883_vm15, %v2568_v20, %v2569_v26  ;;  %v4168_v55 = vrot.slane %v9715_v43, 5  ;;  %v7003_v32 = vcombine.low %v2560_v3, %v2563_v10  ;;  %v2567_v52 = vsel %vm9883_vm15, %v6988_v35, %v2566_v15  ;;  %v4067_v21 = vld [vmem:[#allocation2 + $0x60] sm:$0xe] }
 0x23d   : > { %8080 = vmatpush3.bf16.msra.mxu1 %v8612_v6  ;;  %v4163_v16 = vrot.slane %v4161_v28, 4  ;;  %v4171_v0 = vrot.slane %v9721_v23, 5  ;;  %v7004_v58 = vcombine.low %v2567_v52, %v2570_v7  ;;  %v7107_v45 = vrot.slane %v4065_v41, 9  ;;  %v2492_v7 = vld [vmem:[#allocation2 + $0x54] sm:$0xe] }
 0x23e   : > { %8113 = vmatprep.subr.bf16.mxu1 %v9955_v47  ;;  %v4170_v11 = vrot.slane %v4168_v55, 4  ;;  %v2573_v27 = vrot.slane %v11000_v2, 5  ;;  %7972 = vmatpush3.bf16.msra.mxu0 %v8658_v42  ;;  %v7108_v6 = vrot.slane %v4066_v39, 9  ;;  %v2576_v23 = vrot.slane %v8659_v34, 5 }
 0x23f   : > { %7942 = vmatmul.mubr.msk.bf16.gmra.mrb[40].mxu0 %vm1974_vm9, %v7003_v32  ;;  %v4165_v43 = vsel %vm9883_vm15, %v4163_v16, %v4164_v12  ;;  %v2580_v46 = vrot.slane %v8660_v4, 5  ;;  %v4162_v62 = vsel %vm9883_vm15, %v7107_v45, %v4161_v28  ;;  %v6989_v14 = vrot.slane %v2490_v22, 9  ;;  %v8662_v32 = vld [vmem:[#allocation2 + $0x58] sm:$0xf]  ;;  %v2493_v16 = vld [vmem:[#allocation2 + $0x60] sm:$0xe] }
 0x240   : > { %8050 = vmatmul.mubr.msk.bf16.gmra.mrb[28].mxu1 %vm1974_vm9, %v7121_v48  ;;  %7945 = vmatprep.mubr.msk.bf16.mxu0 %vm1974_vm9, %v7004_v58  ;;  %v4172_v17 = vsel %vm9883_vm15, %v4170_v11, %v4171_v0  ;;  %v2575_v53 = vrot.slane %v2573_v27, 4  ;;  %v4169_v15 = vsel %vm9883_vm15, %v7108_v6, %v4168_v55  ;;  %v6990_v38 = vrot.slane %v2491_v30, 9  ;;  %v4068_v48 = vld [vmem:[#allocation2 + $0x6c] sm:$0xe]  ;;  %v8663_v58 = vld [vmem:[#allocation2 + $0x5c] sm:$0x1] }
 0x241   : > { %8053 = vmatprep.mubr.msk.bf16.mxu1 %vm1974_vm9, %v7122_v31  ;;  %v2582_v19 = vrot.slane %v2580_v46, 4  ;;  %v2583_v56 = vrot.slane %v8661_v25, 5  ;;  %v7123_v35 = vcombine.low %v4162_v62, %v4165_v43  ;;  %v2574_v20 = vsel %vm9883_vm15, %v6989_v14, %v2573_v27  ;;  %v8664_v45 = vld [vmem:[#allocation2 + $0x64] sm:$0xf] }
 0x242   : > { %v2577_v33 = vsel %vm9883_vm15, %v2575_v53, %v2576_v23  ;;  %v4175_v26 = vrot.slane %v9742_v40, 5  ;;  %v7124_v10 = vcombine.low %v4169_v15, %v4172_v17  ;;  %v4178_v28 = vrot.slane %v11001_v49, 5  ;;  %v8665_v23 = vld [vmem:[#allocation2 + $0x68] sm:$0x1]  ;;  %v4070_v15 = vld [vmem:[#allocation2 + $0x84] sm:$0xe] }
 0x243   : > { %v2584_v41 = vsel %vm9883_vm15, %v2582_v19, %v2583_v56  ;;  %v4182_v59 = vrot.slane %v9755_v8, 5  ;;  %v7005_v12 = vcombine.low %v2574_v20, %v2577_v33  ;;  %v2581_v42 = vsel %vm9883_vm15, %v6990_v38, %v2580_v46  ;;  %v4069_v46 = vld [vmem:[#allocation2 + $0x78] sm:$0xe] }
 0x244   : > { %v7109_v31 = vrot.slane %v4067_v21, 9  ;;  %v4185_v3 = vrot.slane %v9761_v50, 5  ;;  %v4177_v39 = vrot.slane %v4175_v26, 4  ;;  %v7110_v55 = vrot.slane %v4068_v48, 9  ;;  %v8666_v48 = vld [vmem:[#allocation2 + $0x70] sm:$0xf] }
 0x245   : > { %v4184_v40 = vrot.slane %v4182_v59, 4  ;;  %v2587_v52 = vrot.slane %v8662_v32, 5  ;;  %v7006_v0 = vcombine.low %v2581_v42, %v2584_v41  ;;  %v2590_v8 = vrot.slane %v8663_v58, 5  ;;  %v8669_v32 = vld [vmem:[#allocation2 + $0x80] sm:$0x1] }
 0x246   : > { %v4176_v22 = vsel %vm9883_vm15, %v7109_v31, %v4175_v26  ;;  %v2594_v11 = vrot.slane %v8664_v45, 5  ;;  %v4179_v50 = vsel %vm9883_vm15, %v4177_v39, %v4178_v28  ;;  %v4183_v2 = vsel %vm9883_vm15, %v7110_v55, %v4182_v59  ;;  %v2494_v28 = vld [vmem:[#allocation2 + $0x6c] sm:$0xe]  ;;  %v2495_v39 = vld [vmem:[#allocation2 + $0x78] sm:$0xe] }
 0x247   : > { %7946 = vmatmul.mubr.msk.bf16.gmra.mrb[44].mxu0 %vm1974_vm9, %v7005_v12  ;;  %v4186_v27 = vsel %vm9883_vm15, %v4184_v40, %v4185_v3  ;;  %v2589_v30 = vrot.slane %v2587_v52, 4  ;;  %v6991_v6 = vrot.slane %v2492_v7, 9  ;;  %v6992_v34 = vrot.slane %v2493_v16, 9  ;;  %v8668_v12 = vld [vmem:[#allocation2 + $0x7c] sm:$0xf] }
 0x248   : > { %8054 = vmatmul.mubr.msk.bf16.gmra.mrb[0].mxu1 %vm1974_vm9, %v7123_v35  ;;  %7949 = vmatprep.mubr.msk.bf16.mxu0 %vm1974_vm9, %v7006_v0  ;;  %v7126_v43 = vcombine.low %v4183_v2, %v4186_v27  ;;  %v2597_v4 = vrot.slane %v8665_v23, 5  ;;  %v2596_v17 = vrot.slane %v2594_v11, 4  ;;  %v4189_v14 = vrot.slane %v9770_v60, 5  ;;  %v4071_v16 = vld [vmem:[#allocation2 + $0x90] sm:$0xe] }
 0x249   : > { %8057 = vmatprep.mubr.msk.bf16.mxu1 %vm1974_vm9, %v7124_v10  ;;  %v2591_v62 = vsel %vm9883_vm15, %v2589_v30, %v2590_v8  ;;  %v4192_v53 = vrot.slane %v9779_v24, 5  ;;  %v7125_v38 = vcombine.low %v4176_v22, %v4179_v50  ;;  %v2588_v19 = vsel %vm9883_vm15, %v6991_v6, %v2587_v52  ;;  %v4072_v8 = vld [vmem:[#allocation2 + $0x9c] sm:$0xe] }
 0x24a   : > { %v2595_v25 = vsel %vm9883_vm15, %v6992_v34, %v2594_v11  ;;  %v4196_v56 = vrot.slane %v9786_v29, 5  ;;  %v2598_v21 = vsel %vm9883_vm15, %v2596_v17, %v2597_v4  ;;  %v7111_v35 = vrot.slane %v4069_v46, 9  ;;  %v8667_v29 = vld [vmem:[#allocation2 + $0x74] sm:$0x1] }
 0x24b   : > { %v4191_v20 = vrot.slane %v4189_v14, 4  ;;  %v4199_v33 = vrot.slane %v9794_v37, 5  ;;  %v7007_v60 = vcombine.low %v2588_v19, %v2591_v62  ;;  %v7112_v26 = vrot.slane %v4070_v15, 9  ;;  %v8670_v62 = vld [vmem:[#allocation2 + $0x88] sm:$0xf] }
 0x24c   : > { %v4198_v24 = vrot.slane %v4196_v56, 4  ;;  %v2601_v10 = vrot.slane %v8666_v48, 5  ;;  %v4190_v41 = vsel %vm9883_vm15, %v7111_v35, %v4189_v14  ;;  %v2604_v59 = vrot.slane %v8667_v29, 5  ;;  %v2496_v15 = vld [vmem:[#allocation2 + $0x84] sm:$0xe] }
 0x24d   : > { %v4193_v49 = vsel %vm9883_vm15, %v4191_v20, %v4192_v53  ;;  %v2608_v42 = vrot.slane %v8668_v12, 5  ;;  %v7008_v31 = vcombine.low %v2595_v25, %v2598_v21  ;;  %v4197_v37 = vsel %vm9883_vm15, %v7112_v26, %v4196_v56  ;;  %v8672_v21 = vld [vmem:[#allocation2 + $0x8c] sm:$0x1]  ;;  %v2497_v20 = vld [vmem:[#allocation2 + $0x90] sm:$0xe] }
 0x24e   : > { %v7127_v3 = vcombine.low %v4190_v41, %v4193_v49  ;;  %v4200_v7 = vsel %vm9883_vm15, %v4198_v24, %v4199_v33  ;;  %v2603_v40 = vrot.slane %v2601_v10, 4  ;;  %v2611_v52 = vrot.slane %v8669_v32, 5  ;;  %v4073_v33 = vld [vmem:[#allocation2 + $0xa8] sm:$0xe]  ;;  %v8674_v32 = vld [vmem:[#allocation2 + $0xa0] sm:$0xf] }
 0x24f   : > { %7950 = vmatmul.mubr.msk.bf16.gmra.mrb[48].mxu0 %vm1974_vm9, %v7007_v60  ;;  %v7128_v55 = vcombine.low %v4197_v37, %v4200_v7  ;;  %v6993_v0 = vrot.slane %v2494_v28, 9  ;;  %v4203_v22 = vrot.slane %v9805_v57, 5  ;;  %v4206_v58 = vrot.slane %v9807_v1, 5  ;;  %v8673_v60 = vld [vmem:[#allocation2 + $0x98] sm:$0x1] }
 0x250   : > { %8058 = vmatmul.mubr.msk.bf16.gmra.mrb[4].mxu1 %vm1974_vm9, %v7125_v38  ;;  %7953 = vmatprep.mubr.msk.bf16.mxu0 %vm1974_vm9, %v7008_v31  ;;  %v2605_v45 = vsel %vm9883_vm15, %v2603_v40, %v2604_v59  ;;  %v6994_v11 = vrot.slane %v2495_v39, 9  ;;  %v2610_v50 = vrot.slane %v2608_v42, 4  ;;  %v4210_v2 = vrot.slane %v9816_v44, 5  ;;  %v8671_v38 = vld [vmem:[#allocation2 + $0x94] sm:$0xf] }
 0x251   : > { %8061 = vmatprep.mubr.msk.bf16.mxu1 %vm1974_vm9, %v7126_v43  ;;  %v2602_v27 = vsel %vm9883_vm15, %v6993_v0, %v2601_v10  ;;  %v7113_v30 = vrot.slane %v4071_v16, 9  ;;  %v4205_v43 = vrot.slane %v4203_v22, 4  ;;  %v4213_v6 = vrot.slane %v9823_v36, 5  ;;  %v4074_v10 = vld [vmem:[#allocation2 + $0xb4] sm:$0xe] }
 0x252   : > { %v2609_v57 = vsel %vm9883_vm15, %v6994_v11, %v2608_v42  ;;  %v2612_v1 = vsel %vm9883_vm15, %v2610_v50, %v2611_v52  ;;  %v7114_v34 = vrot.slane %v4072_v8, 9  ;;  %v4212_v23 = vrot.slane %v4210_v2, 4  ;;  %v8676_v50 = vld [vmem:[#allocation2 + $0xa4] sm:$0x1] }
 0x253   : > { %v7009_v4 = vcombine.low %v2602_v27, %v2605_v45  ;;  %v4204_v46 = vsel %vm9883_vm15, %v7113_v30, %v4203_v22  ;;  %v4207_v44 = vsel %vm9883_vm15, %v4205_v43, %v4206_v58  ;;  %v2615_v17 = vrot.slane %v8670_v62, 5  ;;  %v8675_v58 = vld [vmem:[#allocation2 + $0xac] sm:$0xf]  ;;  %v4075_v45 = vld [vmem:[#allocation2 + $0xc0] sm:$0xe] }
 0x254   : > { %v7129_v14 = vcombine.low %v4204_v46, %v4207_v44  ;;  %v4211_v36 = vsel %vm9883_vm15, %v7114_v34, %v4210_v2  ;;  %v4214_v53 = vsel %vm9883_vm15, %v4212_v23, %v4213_v6  ;;  %v2622_v19 = vrot.slane %v8671_v38, 5  ;;  %v2498_v43 = vld [vmem:[#allocation2 + $0x9c] sm:$0xe]  ;;  %v8677_v6 = vld [vmem:[#allocation2 + $0xb0] sm:$0x1] }
 0x255   : > { %v7010_v25 = vcombine.low %v2609_v57, %v2612_v1  ;;  %v7130_v56 = vcombine.low %v4211_v36, %v4214_v53  ;;  %v2618_v35 = vrot.slane %v8672_v21, 5  ;;  %v2625_v26 = vrot.slane %v8673_v60, 5  ;;  %v2499_v34 = vld [vmem:[#allocation2 + $0xa8] sm:$0xe]  ;;  %v8679_v21 = vld [vmem:[#allocation2 + $0xbc] sm:$0x1] }
 0x256   : > { %v4217_v24 = vrot.slane %v9832_v13, 5  ;;  %v4220_v48 = vrot.slane %v9839_v51, 5  ;;  %v6995_v41 = vrot.slane %v2496_v15, 9  ;;  %v2617_v49 = vrot.slane %v2615_v17, 4  ;;  %v8678_v15 = vld [vmem:[#allocation2 + $0xb8] sm:$0xf] }
 0x257   : > { %7954 = vmatmul.mubr.msk.bf16.gmra.mrb[52].mxu0 %vm1974_vm9, %v7009_v4  ;;  %v4224_v28 = vrot.slane %v9846_v5, 5  ;;  %v2624_v29 = vrot.slane %v2622_v19, 4  ;;  %v7115_v59 = vrot.slane %v4073_v33, 9  ;;  %v4227_v42 = vrot.slane %v9853_v9, 5 }
 0x258   : > { %8062 = vmatmul.mubr.msk.bf16.gmra.mrb[8].mxu1 %vm1974_vm9, %v7127_v3  ;;  %7957 = vmatprep.mubr.msk.bf16.mxu0 %vm1974_vm9, %v7010_v25  ;;  %v4219_v12 = vrot.slane %v4217_v24, 4  ;;  %v2619_v31 = vsel %vm9883_vm15, %v2617_v49, %v2618_v35  ;;  %v6996_v13 = vrot.slane %v2497_v20, 9  ;;  %v7116_v3 = vrot.slane %v4074_v10, 9  ;;  %v2500_v20 = vld [vmem:[#allocation2 + $0xb4] sm:$0xe]  ;;  %v8613_v10 = vld [vmem:[#allocation2 + $0x18] sm:$0xff]  }
 0x259   : > { %8065 = vmatprep.mubr.msk.bf16.mxu1 %vm1974_vm9, %v7128_v55  ;;  %v4226_v51 = vrot.slane %v4224_v28, 4  ;;  %v2616_v37 = vsel %vm9883_vm15, %v6995_v41, %v2615_v17  ;;  %v2626_v7 = vsel %vm9883_vm15, %v2624_v29, %v2625_v26  ;;  %v4218_v5 = vsel %vm9883_vm15, %v7115_v59, %v4217_v24  ;;  %v8614_v41 = vld [vmem:[#allocation2 + $0xc] sm:$0xff]   ;;  %v8616_v49 = vld [vmem:[#allocation2 + $0x24] sm:$0xff]   ;;  %v8627_v29 = vld [vmem:[%s10950_s3 + $0x78] sm:$0xff]  }
 0x25a   : > { %v4221_v39 = vsel %vm9883_vm15, %v4219_v12, %v4220_v48  ;;  %v4225_v9 = vsel %vm9883_vm15, %v7116_v3, %v4224_v28  ;;  %v2629_v52 = vrot.slane %v8674_v32, 5  ;;  %v7011_v16 = vcombine.low %v2616_v37, %v2619_v31  ;;  %v8618_v28 = vld [vmem:[#allocation2 + $0x18] sm:$0xff]   ;;  %v8617_v59 = vld [vmem:[#allocation2 + $0x30] sm:$0xff]   ;;  %v8619_v12 = vld [vmem:[#allocation2 + $0x24] sm:$0xff]  }
 0x25b   : > { %v7131_v55 = vcombine.low %v4218_v5, %v4221_v39  ;;  %v4228_v40 = vsel %vm9883_vm15, %v4226_v51, %v4227_v42  ;;  %v2623_v0 = vsel %vm9883_vm15, %v6996_v13, %v2622_v19  ;;  %v2636_v8 = vrot.slane %v8675_v58, 5  ;;  %v10120_v42 = vld [vmem:[%s10950_s3 + $0x80] sm:$0xff]   ;;  %v4911_v31 = vld [vmem:[#allocation2 + $0x18] sm:$0xf]  ;;  %v8622_v3 = vld [vmem:[#allocation2 + $0x30] sm:$0xff]  }
 0x25c   : > { %v7132_v22 = vcombine.low %v4225_v9, %v4228_v40  ;;  %v7012_v11 = vcombine.low %v2623_v0, %v2626_v7  ;;  %v2632_v2 = vrot.slane %v8676_v50, 5  ;;  %v4231_v27 = vrot.slane %v9860_v61, 5  ;;  %v8620_v13 = vld [vmem:[#allocation2 + $0x3c] sm:$0xff]   ;;  %v4914_v51 = vld [vmem:[#allocation2 + $0x24] sm:$0xf]  ;;  %v8621_v37 = vld [vmem:[#allocation2 + $0x48] sm:$0xff]  }
 0x25d   : > { %v4234_v30 = vrot.slane %v9869_v18, 5  ;;  %v2639_v57 = vrot.slane %v8677_v6, 5  ;;  %v2631_v1 = vrot.slane %v2629_v52, 4  ;;  %v7117_v23 = vrot.slane %v4075_v45, 9  ;;  %v10125_v5 = vld [vmem:[#allocation2 + $0x1c] sm:$0xf] }
 0x25e   : > { %v4233_v4 = vrot.slane %v4231_v27, 4  ;;  %v2638_v46 = vrot.slane %v2636_v8, 4  ;;  %v6997_v44 = vrot.slane %v2498_v43, 9  ;;  %v6998_v17 = vrot.slane %v2499_v34, 9  ;;  %v10128_v9 = vld [vmem:[#allocation2 + $0x28] sm:$0xf] }
 0x25f   : > { %7958 = vmatmul.mubr.msk.bf16.gmra.mrb[56].mxu0 %vm1974_vm9, %v7011_v16  ;;  %v2633_v61 = vsel %vm9883_vm15, %v2631_v1, %v2632_v2  ;;  %v4232_v18 = vsel %vm9883_vm15, %v7117_v23, %v4231_v27  ;;  %v2643_v38 = vrot.slane %v8678_v15, 5  ;;  %v2646_v35 = vrot.slane %v8679_v21, 5  ;;  %v4917_v45 = vld [vmem:[#allocation2 + $0x30] sm:$0xf]  ;;  %v10134_v50 = vld [vmem:[#allocation2 + $0x20] sm:$0x1] }
 0x260   : > { %8066 = vmatmul.mubr.msk.bf16.gmra.mrb[12].mxu1 %vm1974_vm9, %v7129_v14  ;;  %7961 = vmatprep.mubr.msk.bf16.mxu0 %vm1974_vm9, %v7012_v11  ;;  %v4235_v62 = vsel %vm9883_vm15, %v4233_v4, %v4234_v30  ;;  %v2640_v14 = vsel %vm9883_vm15, %v2638_v46, %v2639_v57  ;;  %v2630_v53 = vsel %vm9883_vm15, %v6997_v44, %v2629_v52  ;;  %v6999_v60 = vrot.slane %v2500_v20, 9  ;;  %v8623_v11 = vld [vmem:[#allocation2 + $0x54] sm:$0xff]   ;;  %v8624_v2 = vld [vmem:[#allocation2 + $0x60] sm:$0xff]   ;;  %v10137_v6 = vld [vmem:[#allocation2 + $0x2c] sm:$0x1] }
 0x261   : > { %8069 = vmatprep.mubr.msk.bf16.mxu1 %vm1974_vm9, %v7130_v56  ;;  %v7133_v36 = vcombine.low %v4232_v18, %v4235_v62  ;;  %v7013_v19 = vcombine.low %v2630_v53, %v2633_v61  ;;  %v2637_v25 = vsel %vm9883_vm15, %v6998_v17, %v2636_v8  ;;  %v2645_v33 = vrot.slane %v2643_v38, 4  ;;  %v10139_v57 = vld [vmem:[#allocation2 + $0x34] sm:$0xf]  ;;  %v10146_v21 = vld [vmem:[#allocation2 + $0x38] sm:$0x1] }
 0x262   : > { %v7014_v56 = vcombine.low %v2637_v25, %v2640_v14  ;;  %v2644_v24 = vsel %vm9883_vm15, %v6999_v60, %v2643_v38  ;;  %v4960_v7 = vshrl.u32 %v4911_v31, 16  ;;  %v4984_v39 = vshrl.u32 %v4914_v51, 16  ;;  %v4920_v25 = vld [vmem:[#allocation2 + $0x3c] sm:$0xf] }
 0x263   : > { %v2647_v26 = vsel %vm9883_vm15, %v2645_v33, %v2646_v35  ;;  %v4969_v52 = vshll.u32 %v10125_v5, 16  ;;  %v4973_v16 = vshrl.u32 %v10125_v5, 16  ;;  %v4993_v58 = vshll.u32 %v10128_v9, 16  ;;  %v10148_v35 = vld [vmem:[#allocation2 + $0x40] sm:$0xf]  ;;  %v8626_v20 = vld [vmem:[#allocation2 + $0x78] sm:$0xff]  }
 0x264   : > { %v7015_v48 = vcombine.low %v2644_v24, %v2647_v26  ;;  %v4962_v40 = vrot.slane %v4960_v7, 4  ;;  %v4986_v0 = vrot.slane %v4984_v39, 4  ;;  %v4997_v8 = vshrl.u32 %v10128_v9, 16 }
 0x265   : > { %v4971_v30 = vrot.slane %v4969_v52, 5  ;;  %v4975_v43 = vrot.slane %v4973_v16, 4  ;;  %v5008_v1 = vshrl.u32 %v4917_v45, 16  ;;  %v5011_v34 = vshll.u32 %v4917_v45, 16 }
 0x266   : > { %v4979_v23 = vshll.u32 %v10134_v50, 16  ;;  %v4995_v46 = vrot.slane %v4993_v58, 5  ;;  %v4999_v44 = vrot.slane %v4997_v8, 4  ;;  %v5003_v62 = vshll.u32 %v10137_v6, 16  ;;  %v8629_v58 = vld [vmem:[#allocation2 + $0x90] sm:$0xff]  }
 0x267   : > { %7962 = vmatmul.mubr.msk.bf16.gmra.mrb[60].mxu0 %vm1974_vm9, %v7013_v19  ;;  %v4976_v18 = vor.u32 %v4975_v43, %v4971_v30  ;;  %v5017_v17 = vshll.u32 %v10139_v57, 16  ;;  %v5010_v14 = vrot.slane %v5008_v1, 4  ;;  %v5021_v53 = vshrl.u32 %v10139_v57, 16 }
 0x268   : > { %8070 = vmatmul.mubr.msk.bf16.gmra.mrb[16].mxu1 %vm1974_vm9, %v7131_v55  ;;  %7965 = vmatprep.mubr.msk.bf16.mxu0 %vm1974_vm9, %v7014_v56  ;;  %v4987_v55 = vshll.u32 %v4914_v51, 16  ;;  %v4981_v15 = vrot.slane %v4979_v23, 5  ;;  %v5000_v19 = vor.u32 %v4999_v44, %v4995_v46  ;;  %v8625_v56 = vld [vmem:[#allocation2 + $0x6c] sm:$0xff]   ;;  %v5005_v26 = vrot.slane %v5003_v62, 5  ;;  %v10178_v23 = vld [vmem:[#allocation2 + $0x58] sm:$0xf] }
 0x269   : > { %8073 = vmatprep.mubr.msk.bf16.mxu1 %vm1974_vm9, %v7132_v22  ;;  %v4977_v60 = vrot.slane %v4976_v18, 4  ;;  %v10152_v24 = vrot.slane %v5017_v17, 5  ;;  %v10163_v51 = vld [vmem:[#allocation2 + $0x4c] sm:$0xf] }
 0x26a   : > { %v4989_v22 = vrot.slane %v4987_v55, 5  ;;  %v4926_v55 = vld [vmem:[#allocation2 + $0x54] sm:$0xf] }
 0x26b   : > { %v5083_v44 = vshll.u32 %v4926_v55, 16 }
 0x26c   : > { %v4990_v4 = vor.u32 %v4989_v22, %v4986_v0  ;;  %v4929_v22 = vld [vmem:[#allocation2 + $0x60] sm:$0xf] }
 0x26d   : > { %v5107_v18 = vshll.u32 %v4929_v22, 16 }
 0x26e   : > { %v4991_v38 = vrot.slane %v4990_v4, 4  ;;  %v10180_v4 = vld [vmem:[#allocation2 + $0x50] sm:$0x1] }
 0x26f   : > { %7966 = vmatmul.mubr.msk.bf16.gmra.mrb[64].mxu0 %vm1974_vm9, %v7015_v48  ;;  %v4923_v48 = vld [vmem:[#allocation2 + $0x48] sm:$0xf] }
 0x270   : > { %8074 = vmatmul.mubr.msk.bf16.gmra.mrb[20].mxu1 %vm1974_vm9, %v7133_v36  ;;  %7973 = vmatprep.mubr.msk.bf16.mxu0 %vm1974_vm9, %v8614_v41  ;;  %v5013_v36 = vrot.slane %v5011_v34, 5  ;;  %v5023_v41 = vrot.slane %v5021_v53, 4  ;;  %v5059_v7 = vshll.u32 %v4923_v48, 16  ;;  %v10187_v53 = vld [vmem:[#allocation2 + $0x64] sm:$0xf] }
 0x271   : > { %8081 = vmatprep.mubr.msk.bf16.mxu1 %vm1974_vm9, %v8613_v10 }
 0x272   : > { %v5014_v10 = vor.u32 %v5013_v36, %v5010_v14  ;;  %v5024_v52 = vor.u32 %v5023_v41, %v10152_v24  ;;  %v5061_v34 = vrot.slane %v5059_v7, 5  ;;  %v8630_v7 = vld [vmem:[#allocation2 + $0x9c] sm:$0xff]  }
 0x274   : > { %v5025_v17 = vrot.slane %v5024_v52, 4  ;;  %v10208_v52 = vld [vmem:[#allocation2 + $0x70] sm:$0xf] }
 0x277   : > { %7974 = vmatmul.mubr.msk.bf16.vlgmr.msra.gmra.mrb[36].mxu0 %vm1974_vm9, %v8618_v28  ;;  %v5035_v28 = vshll.u32 %v4920_v25, 16 }
 0x278   : > { %8082 = vmatmul.mubr.msk.bf16.vlgmr.msra.gmra.mrb[24].mxu1 %vm1974_vm9, %v8616_v49  ;;  %7977 = vmatprep.mubr.msk.bf16.mxu0 %vm1974_vm9, %v8619_v12  ;;  %v5032_v49 = vshrl.u32 %v4920_v25, 16  ;;  %v5001_v12 = vrot.slane %v5000_v19, 4  ;;  %v5089_v19 = vshll.u32 %v10178_v23, 16  ;;  %v5093_v25 = vshrl.u32 %v10178_v23, 16 }
 0x279   : > { %8114 = vmatpush3.bf16.msra.mxu1 %v9955_v47  ;;  %8085 = vmatprep.mubr.msk.bf16.mxu1 %vm1974_vm9, %v8617_v59  ;;  %v4963_v47 = vshll.u32 %v4911_v31, 16  ;;  %v4996_v59 = vsel %vm9319_vm12, %v4991_v38, %v4995_v46  ;;  %v5027_v31 = vshll.u32 %v10146_v21, 16  ;;  %v5037_v0 = vrot.slane %v5035_v28, 5 }
 0x27a   : > { %8115 = vmatprep.subr.bf16.mxu1 %v8627_v29  ;;  %v5006_v39 = vsel %vm9319_vm12, %v5001_v12, %v5005_v26  ;;  %v5034_v16 = vrot.slane %v5032_v49, 4  ;;  %v5080_v46 = vshrl.u32 %v4926_v55, 16  ;;  %v5075_v26 = vshll.u32 %v10180_v4, 16 }
 0x27b   : > { %v4965_v32 = vrot.slane %v4963_v47, 5  ;;  %v10170_v8 = vcombine.low %v4996_v59, %v5006_v39  ;;  %v5029_v45 = vrot.slane %v5027_v31, 5  ;;  %v5109_v49 = vrot.slane %v5107_v18, 5 }
 0x27c   : > { %v5038_v14 = vor.u32 %v5037_v0, %v5034_v16  ;;  %v5113_v28 = vshll.u32 %v10187_v53, 16  ;;  %v8631_v16 = vld [vmem:[#allocation2 + $0xa8] sm:$0xff]   ;;  %v5137_v18 = vshll.u32 %v10208_v52, 16 }
 0x27d   : > { %8116 = vmatpush3.bf16.msra.mxu1 %v8627_v29  ;;  %v4966_v27 = vor.u32 %v4965_v32, %v4962_v40  ;;  %v4982_v29 = vsel %vm9319_vm12, %v4977_v60, %v4981_v15  ;;  %v8628_v40 = vld [vmem:[#allocation2 + $0x84] sm:$0xff]   ;;  %v5015_v32 = vrot.slane %v5014_v10, 4  ;;  %v5085_v10 = vrot.slane %v5083_v44, 5 }
 0x27e   : > { %8149 = vmatprep.subr.bf16.mxu1 %v10120_v42  ;;  %v5039_v55 = vrot.slane %v5038_v14, 4 }
 0x27f   : > { %7978 = vmatmul.mubr.msk.bf16.gmra.mrb[40].mxu0 %vm1974_vm9, %v8622_v3  ;;  %v4967_v61 = vrot.slane %v4966_v27, 4  ;;  %v5045_v3 = vshrl.u32 %v10148_v35, 16  ;;  %v5069_v27 = vshrl.u32 %v10163_v51, 16  ;;  %v5020_v62 = vsel %vm9319_vm12, %v5015_v32, %v10152_v24  ;;  %v10198_v24 = vld [vmem:[#allocation2 + $0x5c] sm:$0x1] }
 0x280   : > { %8086 = vmatmul.mubr.msk.bf16.gmra.mrb[28].mxu1 %vm1974_vm9, %v8620_v13  ;;  %v5041_v13 = vshll.u32 %v10148_v35, 16  ;;  %v5099_v32 = vshll.u32 %v10198_v24, 16 }
 0x281   : > { %8089 = vmatprep.mubr.msk.bf16.mxu1 %vm1974_vm9, %v8621_v37  ;;  %v4972_v33 = vsel %vm9319_vm12, %v4967_v61, %v4971_v30  ;;  %v5056_v37 = vshrl.u32 %v4923_v48, 16  ;;  %v5047_v43 = vrot.slane %v5045_v3, 4  ;;  %v5104_v61 = vshrl.u32 %v4929_v22, 16 }
 0x282   : > { %v10165_v47 = vcombine.low %v4972_v33, %v4982_v29  ;;  %v10176_v30 = vrot.slane %v5041_v13, 5  ;;  %v5071_v38 = vrot.slane %v5069_v27, 4  ;;  %v5082_v48 = vrot.slane %v5080_v46, 4 }
 0x283   : > { %v5058_v1 = vrot.slane %v5056_v37, 4  ;;  %v5106_v41 = vrot.slane %v5104_v61, 4  ;;  %v5117_v29 = vshrl.u32 %v10187_v53, 16  ;;  %v10203_v3 = vrot.slane %v5089_v19, 5 }
 0x284   : > { %v5048_v33 = vor.u32 %v5047_v43, %v10176_v30  ;;  %v5095_v37 = vrot.slane %v5093_v25, 4  ;;  %v5077_v22 = vrot.slane %v5075_v26, 5  ;;  %v10213_v27 = vrot.slane %v5113_v28, 5 }
 0x285   : > { %v5062_v60 = vor.u32 %v5061_v34, %v5058_v1  ;;  %v5119_v43 = vrot.slane %v5117_v29, 4  ;;  %v10215_v1 = vld [vmem:[#allocation2 + $0x74] sm:$0x1]  ;;  %v5044_v14 = vsel %vm9319_vm12, %v5039_v55, %v10176_v30  ;;  %v10229_v19 = vrot.slane %v5099_v32, 5  ;;  %v8633_v55 = vld [vmem:[#allocation2 + $0xc0] sm:$0xff]  }
 0x286   : > { %v5049_v0 = vrot.slane %v5048_v33, 4  ;;  %v5096_v61 = vor.u32 %v5095_v37, %v10203_v3 }
 0x287   : > { %v5120_v30 = vor.u32 %v5119_v43, %v10213_v27 }
 0x288   : > { %8090 = vmatmul.mubr.msk.bf16.gmra.mrb[0].mxu1 %vm1974_vm9, %v8623_v11  ;;  %v10172_v11 = vld [vmem:[#allocation2 + $0x44] sm:$0x1] }
 0x289   : > { %8093 = vmatprep.mubr.msk.bf16.mxu1 %vm1974_vm9, %v8624_v2  ;;  %v5065_v2 = vshll.u32 %v10163_v51, 16  ;;  %v5051_v36 = vshll.u32 %v10172_v11, 16 }
 0x28b   : > { %v10190_v15 = vrot.slane %v5065_v2, 5  ;;  %v5053_v31 = vrot.slane %v5051_v36, 5  ;;  %v5110_v2 = vor.u32 %v5109_v49, %v5106_v41  ;;  %v10242_v41 = vrot.slane %v5096_v61, 4 }
 0x28c   : > { %v10244_v49 = vrot.slane %v5137_v18, 5 }
 0x28d   : > { %v5072_v13 = vor.u32 %v5071_v38, %v10190_v15  ;;  %v5054_v36 = vsel %vm9319_vm12, %v5049_v0, %v5053_v31  ;;  %v10252_v31 = vld [vmem:[#allocation2 + $0x80] sm:$0x1] }
 0x28f   : > { %v5073_v44 = vrot.slane %v5072_v13, 4 }
 0x290   : > { %8094 = vmatmul.mubr.msk.bf16.gmra.mrb[4].mxu1 %vm1974_vm9, %v8625_v56  ;;  %v4932_v56 = vld [vmem:[#allocation2 + $0x6c] sm:$0xf] }
 0x291   : > { %8097 = vmatprep.mubr.msk.bf16.mxu1 %vm1974_vm9, %v8626_v20  ;;  %v5030_v20 = vsel %vm9319_vm12, %v5025_v17, %v5029_v45  ;;  %v5128_v59 = vshrl.u32 %v4932_v56, 16  ;;  %v5131_v12 = vshll.u32 %v4932_v56, 16  ;;  %v10210_v45 = vld [vmem:[#allocation2 + $0x68] sm:$0x1]  ;;  %v4935_v17 = vld [vmem:[#allocation2 + $0x78] sm:$0xf]  ;;  %v5078_v25 = vsel %vm9319_vm12, %v5073_v44, %v5077_v22 }
 0x292   : > { %v10205_v39 = vcombine.low %v5020_v62, %v5030_v20  ;;  %v5141_v62 = vshrl.u32 %v10208_v52, 16  ;;  %v10235_v20 = vrot.slane %v5110_v2, 4  ;;  %v5123_v33 = vshll.u32 %v10210_v45, 16  ;;  %v10272_v22 = vld [vmem:[#allocation2 + $0x90] sm:$0xf] }
 0x293   : > { %v5130_v34 = vrot.slane %v5128_v59, 4  ;;  %v5133_v46 = vrot.slane %v5131_v12, 5  ;;  %v5155_v29 = vshll.u32 %v4935_v17, 16  ;;  %v10248_v59 = vcombine.low %v5044_v14, %v5054_v36  ;;  %v5651_v44 = vld [vmem:[#allocation2 + $0x3c] sm:$0xe] }
 0x294   : > { %v10246_v28 = vrot.slane %v5141_v62, 4  ;;  %v10270_v0 = vrot.slane %v5123_v33, 5  ;;  %v10275_v2 = vrot.slane %v5120_v30, 4  ;;  %v5653_v14 = vld [vmem:[#allocation2 + $0x54] sm:$0xe]  ;;  %v5731_v33 = vrot.slane %v10146_v21, 5 }
 0x295   : > { %v5134_v26 = vor.u32 %v5133_v46, %v5130_v34  ;;  %v10286_v18 = vrot.slane %v5155_v29, 5  ;;  %v5652_v30 = vld [vmem:[#allocation2 + $0x48] sm:$0xe]  ;;  %v8634_v29 = vld [vmem:[#allocation2 + $0xcc] sm:$0xff]   ;;  %v5742_v21 = vrot.slane %v10163_v51, 5  ;;  %v5745_v62 = vrot.slane %v10180_v4, 5 }
 0x297   : > { %v10277_v43 = vrot.slane %v5134_v26, 4  ;;  %v5744_v4 = vrot.slane %v5742_v21, 4 }
 0x298   : > { %8098 = vmatmul.mubr.msk.bf16.gmra.mrb[8].mxu1 %vm1974_vm9, %v8628_v40  ;;  %v5063_v40 = vrot.slane %v5062_v60, 4  ;;  %v10238_v60 = vld [vmem:[#allocation2 + $0x7c] sm:$0xf] }
 0x299   : > { %8101 = vmatprep.mubr.msk.bf16.mxu1 %vm1974_vm9, %v8629_v58  ;;  %v5086_v58 = vor.u32 %v5085_v10, %v5082_v48  ;;  %v5147_v48 = vshll.u32 %v10215_v1, 16  ;;  %v5152_v10 = vshrl.u32 %v4935_v17, 16  ;;  %v5161_v13 = vshll.u32 %v10238_v60, 16 }
 0x29a   : > { %v5068_v38 = vsel %vm9319_vm12, %v5063_v40, %v10190_v15  ;;  %v8632_v15 = vld [vmem:[#allocation2 + $0xb4] sm:$0xff]   ;;  %v5165_v37 = vshrl.u32 %v10238_v60, 16  ;;  %v5728_v17 = vrot.slane %v10139_v57, 5  ;;  %v5654_v40 = vld [vmem:[#allocation2 + $0x60] sm:$0xe] }
 0x29b   : > { %v10233_v56 = vrot.slane %v5086_v58, 4  ;;  %v10250_v12 = vcombine.low %v5068_v38, %v5078_v25  ;;  %v5650_v58 = vld [vmem:[#allocation2 + $0x30] sm:$0xe]  ;;  %v10279_v34 = vrot.slane %v5147_v48, 5  ;;  %v10281_v46 = vrot.slane %v5152_v10, 4  ;;  %v8636_v10 = vld [vmem:[%s10950_s3 + $0x88] sm:$0xff]  }
 0x29c   : > { %v10290_v36 = vrot.slane %v5161_v13, 5  ;;  %v10292_v38 = vrot.slane %v5165_v37, 4  ;;  %v7222_v25 = vrot.slane %v5650_v58, 9  ;;  %v5730_v13 = vrot.slane %v5728_v17, 4  ;;  %v10391_v48 = vld [vmem:[#allocation2 + $0xb8] sm:$0xf] }
 0x29d   : > { %v5735_v37 = vrot.slane %v10148_v35, 5  ;;  %v7224_v58 = vrot.slane %v5652_v30, 9  ;;  %v5749_v35 = vrot.slane %v10178_v23, 5  ;;  %v5655_v30 = vld [vmem:[#allocation2 + $0x6c] sm:$0xe] }
 0x29e   : > { %v10300_v57 = vsel %vm9883_vm15, %v7222_v25, %v5728_v17 }
 0x29f   : > { %v5737_v17 = vrot.slane %v5735_v37, 4  ;;  %v10319_v51 = vsel %vm9883_vm15, %v7224_v58, %v5742_v21  ;;  %v5656_v58 = vld [vmem:[#allocation2 + $0x78] sm:$0xe]  ;;  %v10341_v21 = vld [vmem:[#allocation2 + $0x88] sm:$0xf] }
 0x2a0   : > { %8102 = vmatmul.mubr.msk.bf16.gmra.mrb[12].mxu1 %vm1974_vm9, %v8630_v7  ;;  %v10256_v7 = vld [vmem:[#allocation2 + $0x84] sm:$0xf]  ;;  %11002 = vst [vmem:[#allocation9_spill] sm:$0xff] %v10319_v51  ;;  %v5662_v51 = vld [vmem:[#allocation2 + $0xc0] sm:$0xe] }
 0x2a1   : > { %8105 = vmatprep.mubr.msk.bf16.mxu1 %vm1974_vm9, %v8631_v16  ;;  %v7225_v16 = vrot.slane %v5653_v14, 9  ;;  %v5752_v14 = vrot.slane %v10198_v24, 5  ;;  %v10337_v24 = vsel %vm9883_vm15, %v5744_v4, %v5745_v62  ;;  %v10350_v62 = vld [vmem:[#allocation2 + $0x8c] sm:$0x1]  ;;  %v10352_v4 = vld [vmem:[#allocation2 + $0x94] sm:$0xf] }
 0x2a2   : > { %11005 = vst [vmem:[#allocation12_spill] sm:$0xff] %v10337_v24  ;;  %v5663_v24 = vld [vmem:[#allocation2 + $0xcc] sm:$0xe] }
 0x2a3   : > { %v10329_v23 = vsel %vm9883_vm15, %v7225_v16, %v5749_v35  ;;  %v7227_v16 = vrot.slane %v5655_v30, 9 }
 0x2a4   : > { %11004 = vst [vmem:[#allocation11_spill] sm:$0xff] %v10329_v23  ;;  %v5805_v23 = vrot.slane %v10391_v48, 5 }
 0x2a8   : > { %8106 = vmatmul.mubr.msk.bf16.gmra.mrb[16].mxu1 %vm1974_vm9, %v8632_v15  ;;  %v7223_v15 = vrot.slane %v5651_v44, 9  ;;  %v10308_v44 = vsel %vm9883_vm15, %v5730_v13, %v5731_v33  ;;  %v7226_v13 = vrot.slane %v5654_v40, 9 }
 0x2a9   : > { %8109 = vmatprep.mubr.msk.bf16.mxu1 %vm1974_vm9, %v8633_v55  ;;  %v5738_v55 = vrot.slane %v10172_v11, 5  ;;  %v5770_v11 = vrot.slane %v10238_v60, 5 }
 0x2aa   : > { %v10312_v25 = vsel %vm9883_vm15, %v7223_v15, %v5735_v37  ;;  %v5751_v15 = vrot.slane %v5749_v35, 4  ;;  %v5657_v35 = vld [vmem:[#allocation2 + $0x84] sm:$0xe]  ;;  %v5766_v37 = vrot.slane %v10215_v1, 5  ;;  %v5658_v1 = vld [vmem:[#allocation2 + $0x90] sm:$0xe] }
 0x2ab   : > { %v10325_v33 = vsel %vm9883_vm15, %v5737_v17, %v5738_v55  ;;  %v5759_v55 = vrot.slane %v10210_v45, 5  ;;  %v5763_v17 = vrot.slane %v10208_v52, 5  ;;  %v7229_v32 = vrot.slane %v5657_v35, 9  ;;  %v10389_v35 = vld [vmem:[#allocation2 + $0xa4] sm:$0x1]  ;;  %v11032_v63 = vld [vmem:[#allocation11_spill] sm:$0xff] }
 0x2ac   : > { %11003 = vst [vmem:[#allocation10_spill] sm:$0xff] %v10325_v33  ;;  %v10460_v33 = vld [vmem:[#allocation2 + $0xd0] sm:$0xf] }
 0x2ad   : > { %v10365_v52 = vsel %vm9883_vm15, %v7227_v16, %v5763_v17  ;;  %v5765_v30 = vrot.slane %v5763_v17, 4  ;;  %v10377_v16 = vld [vmem:[#allocation2 + $0xa0] sm:$0xf]  ;;  %v5659_v17 = vld [vmem:[#allocation2 + $0x9c] sm:$0xe] }
 0x2ae   : > { %11008 = vst [vmem:[#allocation15_spill] sm:$0xff] %v10365_v52  ;;  %v5794_v52 = vrot.slane %v10389_v35, 5 }
 0x2af   : > { %v10383_v60 = vsel %vm9883_vm15, %v5765_v30, %v5766_v37  ;;  %v5780_v37 = vrot.slane %v10350_v62, 5  ;;  %v10402_v30 = vld [vmem:[#allocation2 + $0xac] sm:$0xf] }
 0x2b0   : > { %8110 = vmatmul.mubr.msk.bf16.gmra.mrb[20].mxu1 %vm1974_vm9, %v8634_v29  ;;  %v5756_v29 = vrot.slane %v10187_v53, 5  ;;  %11010 = vst [vmem:[#allocation17_spill] sm:$0xff] %v10383_v60  ;;  %v5203_v60 = vshll.u32 %v10272_v22, 16 }
 0x2b1   : > { %8117 = vmatprep.mubr.msk.bf16.mxu1 %vm1974_vm9, %v10165_v47  ;;  %v10347_v47 = vsel %vm9883_vm15, %v5751_v15, %v5752_v14  ;;  %v10361_v14 = vld [vmem:[#allocation2 + $0x98] sm:$0x1]  ;;  %v7228_v15 = vrot.slane %v5656_v58, 9 }
 0x2b2   : > { %11006 = vst [vmem:[#allocation13_spill] sm:$0xff] %v10347_v47  ;;  %v10358_v45 = vsel %vm9883_vm15, %v7226_v13, %v5756_v29  ;;  %v5758_v40 = vrot.slane %v5756_v29, 4  ;;  %v5773_v13 = vrot.slane %v10252_v31, 5  ;;  %v5777_v29 = vrot.slane %v10341_v21, 5  ;;  %v10426_v47 = vld [vmem:[#allocation2 + $0xbc] sm:$0x1] }
 0x2b3   : > { %11007 = vst [vmem:[#allocation14_spill] sm:$0xff] %v10358_v45  ;;  %v5787_v26 = vrot.slane %v10361_v14, 5  ;;  %v5661_v45 = vld [vmem:[#allocation2 + $0xb4] sm:$0xe] }
 0x2b4   : > { %v10370_v53 = vsel %vm9883_vm15, %v5758_v40, %v5759_v55  ;;  %v10387_v55 = vsel %vm9883_vm15, %v7228_v15, %v5770_v11  ;;  %v5772_v40 = vrot.slane %v5770_v11, 4  ;;  %v10397_v58 = vsel %vm9883_vm15, %v7229_v32, %v5777_v29  ;;  %v10413_v32 = vld [vmem:[#allocation2 + $0xb0] sm:$0x1] }
 0x2b5   : > { %11009 = vst [vmem:[#allocation16_spill] sm:$0xff] %v10370_v53  ;;  %11011 = vst [vmem:[#allocation18_spill] sm:$0xff] %v10387_v55  ;;  %v5779_v61 = vrot.slane %v5777_v29, 4  ;;  %v7230_v15 = vrot.slane %v5658_v1, 9  ;;  %v5784_v53 = vrot.slane %v10352_v4, 5  ;;  %v5791_v1 = vrot.slane %v10377_v16, 5 }
 0x2b6   : > { %11012 = vst [vmem:[#allocation19_spill] sm:$0xff] %v10397_v58  ;;  %v10406_v11 = vsel %vm9883_vm15, %v5772_v40, %v5773_v13  ;;  %v7231_v13 = vrot.slane %v5659_v17, 9  ;;  %v5660_v40 = vld [vmem:[#allocation2 + $0xa8] sm:$0xe]  ;;  %v5801_v55 = vrot.slane %v10413_v32, 5 }
 0x2b7   : > { %11013 = vst [vmem:[#allocation20_spill] sm:$0xff] %v10406_v11  ;;  %v10419_v29 = vsel %vm9883_vm15, %v5779_v61, %v5780_v37  ;;  %v10432_v61 = vsel %vm9883_vm15, %v7230_v15, %v5784_v53  ;;  %v5793_v37 = vrot.slane %v5791_v1, 4  ;;  %v5798_v11 = vrot.slane %v10402_v30, 5 }
 0x2b8   : > { %8118 = vmatmul.mubr.msk.bf16.vlgmr.msra.gmra.mrb[24].mxu1 %vm1974_vm9, %v10170_v8  ;;  %11014 = vst [vmem:[#allocation21_spill] sm:$0xff] %v10419_v29  ;;  %v10428_v8 = vld [vmem:[#allocation2 + $0xc4] sm:$0xf]  ;;  %v10436_v17 = vsel %vm9883_vm15, %v7231_v13, %v5791_v1  ;;  %v7232_v58 = vrot.slane %v5660_v40, 9  ;;  %v7233_v1 = vrot.slane %v5661_v45, 9 }
 0x2b9   : > { %8150 = vmatpush3.bf16.msra.mxu1 %v10120_v42  ;;  %8121 = vmatprep.mubr.msk.bf16.mxu1 %vm1974_vm9, %v10205_v39  ;;  %v5786_v39 = vrot.slane %v5784_v53, 4  ;;  %v10439_v42 = vld [vmem:[#allocation2 + $0xc8] sm:$0x1]  ;;  %v10451_v15 = vsel %vm9883_vm15, %v5793_v37, %v5794_v52  ;;  %v5800_v13 = vrot.slane %v5798_v11, 4  ;;  %v5812_v37 = vrot.slane %v10428_v8, 5 }
 0x2ba   : > { %8151 = vmatprep.subr.bf16.mxu1 %v8636_v10  ;;  %11015 = vst [vmem:[#allocation22_spill] sm:$0xff] %v10451_v15  ;;  %v10457_v40 = vsel %vm9883_vm15, %v7232_v58, %v5798_v11  ;;  %v10468_v45 = vsel %vm9883_vm15, %v7233_v1, %v5805_v23  ;;  %v10474_v58 = vld [vmem:[#allocation2 + $0xd4] sm:$0x1]  ;;  %v7234_v53 = vrot.slane %v5662_v51, 9  ;;  %v11018_v11 = vor.u32 %v10246_v28, %v10244_v49 }
 0x2bb   : > { %v10443_v29 = vsel %vm9883_vm15, %v5786_v39, %v5787_v26  ;;  %v5807_v39 = vrot.slane %v5805_v23, 4  ;;  %v10464_v52 = vsel %vm9883_vm15, %v5800_v13, %v5801_v55  ;;  %v5815_v26 = vrot.slane %v10439_v42, 5 }
 0x2bc   : > { %11016 = vst [vmem:[#allocation23_spill] sm:$0xff] %v10464_v52  ;;  %v7235_v13 = vrot.slane %v5663_v24, 9  ;;  %v5819_v23 = vrot.slane %v10460_v33, 5  ;;  %v5822_v15 = vrot.slane %v10474_v58, 5  ;;  %v5145_v52 = vrot.slane %v11018_v11, 4 }
 0x2bd   : > { %8152 = vmatpush3.bf16.msra.mxu1 %v8636_v10  ;;  %v5808_v10 = vrot.slane %v10426_v47, 5  ;;  %v11019_v51 = vshrl.u32 %v10256_v7, 16  ;;  %v5185_v11 = vshll.u32 %v10341_v21, 16 }
 0x2be   : > { %v10495_v24 = vsel %vm9883_vm15, %v7235_v13, %v5819_v23 }
 0x2bf   : > { %v10480_v55 = vsel %vm9883_vm15, %v5807_v39, %v5808_v10  ;;  %v5158_v39 = vor.u32 %v10286_v18, %v10281_v46  ;;  %v5821_v10 = vrot.slane %v5819_v23, 4  ;;  %v5178_v1 = vrot.slane %v11019_v51, 4 }
 0x2c0   : > { %8122 = vmatmul.mubr.msk.bf16.gmra.mrb[28].mxu1 %vm1974_vm9, %v10248_v59  ;;  %11017 = vst [vmem:[#allocation24_spill] sm:$0xff] %v10480_v55  ;;  %v5814_v59 = vrot.slane %v5812_v37, 4  ;;  %v10503_v55 = vsel %vm9883_vm15, %v7234_v53, %v5812_v37  ;;  %v11020_v46 = vshll.u32 %v10256_v7, 16  ;;  %v5189_v23 = vshrl.u32 %v10341_v21, 16 }
 0x2c1   : > { %8125 = vmatprep.mubr.msk.bf16.mxu1 %vm1974_vm9, %v10250_v12  ;;  %v5168_v12 = vor.u32 %v10292_v38, %v10290_v36  ;;  %v10516_v38 = vsel %vm9883_vm15, %v5821_v10, %v5822_v15  ;;  %v11021_v53 = vshrl.u32 %v10272_v22, 16  ;;  %v5205_v51 = vrot.slane %v5203_v60, 5  ;;  %v4944_v10 = vld [vmem:[#allocation2 + $0x9c] sm:$0xf] }
 0x2c2   : > { %v10507_v28 = vsel %vm9883_vm15, %v5814_v59, %v5815_v26  ;;  %v5181_v18 = vrot.slane %v11020_v46, 5  ;;  %v7251_v26 = vcombine.low %v10495_v24, %v10516_v38  ;;  %v11022_v7 = vsel %vm9319_vm12, %v10242_v41, %v10229_v19 }
 0x2c3   : > { %v7250_v13 = vcombine.low %v10503_v55, %v10507_v28  ;;  %v5202_v37 = vrot.slane %v11021_v53, 4  ;;  %v11023_v15 = vsel %vm9319_vm12, %v10233_v56, %v10203_v3  ;;  %v5126_v22 = vsel %vm9319_vm12, %v10275_v2, %v10270_v0 }
 0x2c4   : > { %v7191_v59 = vcombine.low %v11023_v15, %v11022_v7  ;;  %v5209_v21 = vshll.u32 %v10352_v4, 16  ;;  %v5213_v60 = vshrl.u32 %v10352_v4, 16  ;;  %v11024_v19 = vsel %vm9319_vm12, %v10235_v20, %v10213_v27  ;;  %v4947_v27 = vld [vmem:[#allocation2 + $0xa8] sm:$0xf] }
 0x2c5   : > { %v7192_v41 = vcombine.low %v11024_v19, %v5126_v22  ;;  %v5140_v3 = vsel %vm9319_vm12, %v10277_v43, %v10244_v49  ;;  %v5150_v56 = vsel %vm9319_vm12, %v5145_v52, %v10279_v34  ;;  %v11025_v0 = vshll.u32 %v10252_v31, 16 }
 0x2c6   : > { %v5159_v4 = vrot.slane %v5158_v39, 4  ;;  %v5169_v46 = vrot.slane %v5168_v12, 4  ;;  %v5182_v53 = vor.u32 %v5181_v18, %v5178_v1  ;;  %v5187_v7 = vrot.slane %v5185_v11, 5 }
 0x2c7   : > { %v5173_v2 = vrot.slane %v11025_v0, 5  ;;  %v5191_v20 = vrot.slane %v5189_v23, 4  ;;  %v5206_v15 = vor.u32 %v5205_v51, %v5202_v37  ;;  %v5224_v22 = vshrl.u32 %v4944_v10, 16 }
 0x2c8   : > { %8126 = vmatmul.mubr.msk.bf16.gmra.mrb[0].mxu1 %vm1974_vm9, %v7191_v59  ;;  %v5227_v49 = vshll.u32 %v4944_v10, 16  ;;  %v5211_v43 = vrot.slane %v5209_v21, 5  ;;  %v5215_v19 = vrot.slane %v5213_v60, 4  ;;  %v5233_v34 = vshll.u32 %v10377_v16, 16 }
 0x2c9   : > { %8129 = vmatprep.mubr.msk.bf16.mxu1 %vm1974_vm9, %v7192_v41  ;;  %v5237_v31 = vshrl.u32 %v10377_v16, 16  ;;  %v7193_v52 = vcombine.low %v5140_v3, %v5150_v56  ;;  %v5195_v59 = vshll.u32 %v10350_v62, 16  ;;  %v5248_v39 = vshrl.u32 %v4947_v27, 16 }
 0x2ca   : > { %v5251_v12 = vshll.u32 %v4947_v27, 16  ;;  %v5164_v1 = vsel %vm9319_vm12, %v5159_v4, %v10290_v36  ;;  %v5174_v18 = vsel %vm9319_vm12, %v5169_v46, %v5173_v2  ;;  %v5183_v11 = vrot.slane %v5182_v53, 4 }
 0x2cb   : > { %v5219_v23 = vshll.u32 %v10361_v14, 16  ;;  %v5192_v37 = vor.u32 %v5191_v20, %v5187_v7  ;;  %v5207_v51 = vrot.slane %v5206_v15, 4  ;;  %v5226_v21 = vrot.slane %v5224_v22, 4  ;;  %v4950_v14 = vld [vmem:[#allocation2 + $0xb4] sm:$0xf] }
 0x2cc   : > { %v5229_v60 = vrot.slane %v5227_v49, 5  ;;  %v5216_v16 = vor.u32 %v5215_v19, %v5211_v43  ;;  %v10564_v10 = vrot.slane %v5233_v34, 5  ;;  %v5239_v62 = vrot.slane %v5237_v31, 4  ;;  %v4953_v15 = vld [vmem:[#allocation2 + $0xc0] sm:$0xf] }
 0x2cd   : > { %v5257_v41 = vshll.u32 %v10402_v30, 16  ;;  %v7194_v3 = vcombine.low %v5164_v1, %v5174_v18  ;;  %v5250_v56 = vrot.slane %v5248_v39, 4  ;;  %v5253_v0 = vrot.slane %v5251_v12, 5 }
 0x2ce   : > { %v5261_v36 = vshrl.u32 %v10402_v30, 16  ;;  %v5197_v2 = vrot.slane %v5195_v59, 5  ;;  %v5221_v4 = vrot.slane %v5219_v23, 5  ;;  %v5188_v46 = vsel %vm9319_vm12, %v5183_v11, %v5187_v7  ;;  %v4956_v23 = vld [vmem:[#allocation2 + $0xcc] sm:$0xf] }
 0x2cf   : > { %v5193_v53 = vrot.slane %v5192_v37, 4  ;;  %v5230_v27 = vor.u32 %v5229_v60, %v5226_v21  ;;  %v5243_v20 = vshll.u32 %v10389_v35, 16  ;;  %v5212_v22 = vsel %vm9319_vm12, %v5207_v51, %v5211_v43 }
 0x2d0   : > { %8130 = vmatmul.mubr.msk.bf16.gmra.mrb[4].mxu1 %vm1974_vm9, %v7193_v52  ;;  %v5217_v49 = vrot.slane %v5216_v16, 4  ;;  %v5240_v30 = vor.u32 %v5239_v62, %v10564_v10  ;;  %v5259_v19 = vrot.slane %v5257_v41, 5  ;;  %v5254_v34 = vor.u32 %v5253_v0, %v5250_v56  ;;  %v8637_v16 = vld [vmem:[%s10952_s5] sm:$0xff]  }
 0x2d1   : > { %8133 = vmatprep.mubr.msk.bf16.mxu1 %vm1974_vm9, %v7194_v3  ;;  %v5263_v31 = vrot.slane %v5261_v36, 4  ;;  %v5272_v52 = vshrl.u32 %v4950_v14, 16  ;;  %v5275_v59 = vshll.u32 %v4950_v14, 16  ;;  %v5198_v39 = vsel %vm9319_vm12, %v5193_v53, %v5197_v2  ;;  %8185 = vmatprep.subr.bf16.mxu0 %v8637_v16 }
 0x2d2   : > { %v5222_v7 = vsel %vm9319_vm12, %v5217_v49, %v5221_v4  ;;  %v5296_v12 = vshrl.u32 %v4953_v15, 16  ;;  %v5299_v35 = vshll.u32 %v4953_v15, 16  ;;  %v7195_v1 = vcombine.low %v5188_v46, %v5198_v39  ;;  %8186 = vmatpush3.bf16.msra.mxu0 %v8637_v16 }
 0x2d3   : > { %v7196_v18 = vcombine.low %v5212_v22, %v5222_v7  ;;  %v5231_v11 = vrot.slane %v5230_v27, 4  ;;  %v5245_v43 = vrot.slane %v5243_v20, 5  ;;  %v5241_v37 = vrot.slane %v5240_v30, 4 }
 0x2d4   : > { %v5267_v51 = vshll.u32 %v10413_v32, 16  ;;  %v5281_v21 = vshll.u32 %v10391_v48, 16  ;;  %v5285_v60 = vshrl.u32 %v10391_v48, 16  ;;  %v5255_v62 = vrot.slane %v5254_v34, 4 }
 0x2d5   : > { %v5264_v41 = vor.u32 %v5263_v31, %v5259_v19  ;;  %v5274_v3 = vrot.slane %v5272_v52, 4  ;;  %v5277_v56 = vrot.slane %v5275_v59, 5  ;;  %v5298_v0 = vrot.slane %v5296_v12, 4 }
 0x2d6   : > { %v5301_v36 = vrot.slane %v5299_v35, 5  ;;  %v5305_v2 = vshll.u32 %v10428_v8, 16  ;;  %v5309_v32 = vshrl.u32 %v10428_v8, 16  ;;  %v5320_v48 = vshrl.u32 %v4956_v23, 16 }
 0x2d7   : > { %v5323_v4 = vshll.u32 %v4956_v23, 16  ;;  %v5329_v14 = vshll.u32 %v10460_v33, 16  ;;  %v5333_v46 = vshrl.u32 %v10460_v33, 16  ;;  %v5236_v53 = vsel %vm9319_vm12, %v5231_v11, %v10564_v10 }
 0x2d8   : > { %8134 = vmatmul.mubr.msk.bf16.gmra.mrb[8].mxu1 %vm1974_vm9, %v7195_v1  ;;  %v5246_v27 = vsel %vm9319_vm12, %v5241_v37, %v5245_v43  ;;  %v5269_v20 = vrot.slane %v5267_v51, 5  ;;  %v5283_v15 = vrot.slane %v5281_v21, 5  ;;  %v5260_v8 = vsel %vm9319_vm12, %v5255_v62, %v5259_v19 }
 0x2d9   : > { %8137 = vmatprep.mubr.msk.bf16.mxu1 %vm1974_vm9, %v7196_v18  ;;  %v5278_v22 = vor.u32 %v5277_v56, %v5274_v3  ;;  %v5287_v49 = vrot.slane %v5285_v60, 4  ;;  %v5291_v30 = vshll.u32 %v10426_v47, 16  ;;  %v5265_v34 = vrot.slane %v5264_v41, 4 }
 0x2da   : > { %v5302_v31 = vor.u32 %v5301_v36, %v5298_v0  ;;  %v5307_v33 = vrot.slane %v5305_v2, 5  ;;  %v5311_v52 = vrot.slane %v5309_v32, 4  ;;  %v5322_v59 = vrot.slane %v5320_v48, 4 }
 0x2db   : > { %v5325_v39 = vrot.slane %v5323_v4, 5  ;;  %v5331_v7 = vrot.slane %v5329_v14, 5  ;;  %v5335_v10 = vrot.slane %v5333_v46, 4  ;;  %v7197_v12 = vcombine.low %v5236_v53, %v5246_v27  ;;  %v5648_v53 = vld [vmem:[#allocation2 + $0x18] sm:$0xe] }
 0x2dc   : > { %v5270_v35 = vsel %vm9319_vm12, %v5265_v34, %v5269_v20  ;;  %v5315_v1 = vshll.u32 %v10439_v42, 16  ;;  %v5279_v19 = vrot.slane %v5278_v22, 4  ;;  %v5288_v11 = vor.u32 %v5287_v49, %v5283_v15 }
 0x2dd   : > { %v7198_v18 = vcombine.low %v5260_v8, %v5270_v35  ;;  %v5303_v47 = vrot.slane %v5302_v31, 4  ;;  %v5312_v43 = vor.u32 %v5311_v52, %v5307_v33  ;;  %v5293_v23 = vrot.slane %v5291_v30, 5  ;;  %v5649_v30 = vld [vmem:[#allocation2 + $0x24] sm:$0xe] }
 0x2de   : > { %v5326_v37 = vor.u32 %v5325_v39, %v5322_v59  ;;  %v5336_v51 = vor.u32 %v5335_v10, %v5331_v7  ;;  %v5339_v21 = vshll.u32 %v10474_v58, 16  ;;  %v5317_v60 = vrot.slane %v5315_v1, 5  ;;  %v11029_v39 = vld [vmem:[#allocation9_spill] sm:$0xff]  ;;  %v11035_v1 = vld [vmem:[#allocation14_spill] sm:$0xff] }
 0x2df   : > { %v5284_v16 = vsel %vm9319_vm12, %v5279_v19, %v5283_v15  ;;  %v5289_v62 = vrot.slane %v5288_v11, 4  ;;  %v5308_v42 = vsel %vm9319_vm12, %v5303_v47, %v5307_v33  ;;  %v5313_v41 = vrot.slane %v5312_v43, 4  ;;  %v11039_v19 = vld [vmem:[#allocation17_spill] sm:$0xff]  ;;  %v11041_v11 = vld [vmem:[#allocation18_spill] sm:$0xff]  ;;  %v11042_v47 = vld [vmem:[#allocation20_spill] sm:$0xff] }
 0x2e0   : > { %8138 = vmatmul.mubr.msk.bf16.gmra.mrb[12].mxu1 %vm1974_vm9, %v7197_v12  ;;  %v5327_v56 = vrot.slane %v5326_v37, 4  ;;  %v5337_v0 = vrot.slane %v5336_v51, 4  ;;  %v5341_v36 = vrot.slane %v5339_v21, 5  ;;  %v5714_v58 = vrot.slane %v10125_v5, 5  ;;  %v11033_v12 = vld [vmem:[#allocation13_spill] sm:$0xff] }
 0x2e1   : > { %8141 = vmatprep.mubr.msk.bf16.mxu1 %vm1974_vm9, %v7198_v18  ;;  %v5294_v3 = vsel %vm9319_vm12, %v5289_v62, %v5293_v23  ;;  %v5318_v32 = vsel %vm9319_vm12, %v5313_v41, %v5317_v60  ;;  %v5717_v4 = vrot.slane %v10134_v50, 5  ;;  %v7220_v15 = vrot.slane %v5648_v53, 9  ;;  %v11036_v18 = vld [vmem:[#allocation16_spill] sm:$0xff]  ;;  %v11044_v23 = vld [vmem:[#allocation19_spill] sm:$0xff]  ;;  %v11045_v37 = vld [vmem:[#allocation21_spill] sm:$0xff] }
 0x2e2   : > { %v7199_v2 = vcombine.low %v5284_v16, %v5294_v3  ;;  %v7200_v48 = vcombine.low %v5308_v42, %v5318_v32  ;;  %v5332_v14 = vsel %vm9319_vm12, %v5327_v56, %v5331_v7  ;;  %v5342_v46 = vsel %vm9319_vm12, %v5337_v0, %v5341_v36  ;;  %v11030_v7 = vld [vmem:[#allocation12_spill] sm:$0xff]  ;;  %v11048_v41 = vld [vmem:[#allocation22_spill] sm:$0xff]  ;;  %v11050_v56 = vld [vmem:[#allocation23_spill] sm:$0xff] }
 0x2e3   : > { %v5716_v27 = vrot.slane %v5714_v58, 4  ;;  %v7201_v20 = vcombine.low %v5332_v14, %v5342_v46  ;;  %v5721_v8 = vrot.slane %v10128_v9, 5  ;;  %v5715_v50 = vsel %vm9883_vm15, %v7220_v15, %v5714_v58  ;;  %v11052_v32 = vld [vmem:[#allocation24_spill] sm:$0xff] }
 0x2e4   : > { %v5724_v49 = vrot.slane %v10137_v6, 5  ;;  %v7221_v34 = vrot.slane %v5649_v30, 9  ;;  %v11026_v52 = vcombine.low %v10300_v57, %v10308_v44  ;;  %v11027_v6 = vld [vmem:[#allocation10_spill] sm:$0xff]  ;;  %v11031_v10 = vcombine.low %v11029_v39, %v11030_v7  ;;  %v11038_v44 = vld [vmem:[#allocation15_spill] sm:$0xff] }
 0x2e5   : > { %v5718_v5 = vsel %vm9883_vm15, %v5716_v27, %v5717_v4  ;;  %v5723_v54 = vrot.slane %v5721_v8, 4  ;;  %v11028_v59 = vcombine.low %v10312_v25, %v11027_v6  ;;  %v11034_v35 = vcombine.low %v11032_v63, %v11033_v12 }
 0x2e6   : > { %v7236_v22 = vcombine.low %v5715_v50, %v5718_v5  ;;  %v5722_v33 = vsel %vm9883_vm15, %v7221_v34, %v5721_v8  ;;  %v11037_v57 = vcombine.low %v11035_v1, %v11036_v18  ;;  %v11040_v25 = vcombine.low %v11038_v44, %v11039_v19 }
 0x2e7   : > { %v5725_v31 = vsel %vm9883_vm15, %v5723_v54, %v5724_v49  ;;  %v11043_v43 = vcombine.low %v11041_v11, %v11042_v47  ;;  %v11046_v51 = vcombine.low %v11044_v23, %v11045_v37  ;;  %v11047_v21 = vcombine.low %v10432_v61, %v10443_v29  ;;  %v8638_v54 = vld [vmem:[%s10952_s5 + $0x8] sm:$0xff]  }
 0x2e8   : > { %8142 = vmatmul.mubr.msk.bf16.gmra.mrb[16].mxu1 %vm1974_vm9, %v7199_v2  ;;  %v7237_v9 = vcombine.low %v5722_v33, %v5725_v31  ;;  %v11049_v3 = vcombine.low %v10436_v17, %v11048_v41  ;;  %v11051_v0 = vcombine.low %v10457_v40, %v11050_v56  ;;  %v11053_v58 = vcombine.low %v10468_v45, %v11052_v32  ;;  %v10745_v33 = vld [vmem:[%s10951_s4] ss:$0 sm:$0xff] }
 0x2e9   : > { %8145 = vmatprep.mubr.msk.bf16.mxu1 %vm1974_vm9, %v7200_v48  ;;  %8187 = vmatprep.subr.bf16.mxu0 %v8638_v54 }
 0x2ea   : > { %8188 = vmatpush3.bf16.msra.mxu0 %v8638_v54 }
 0x2f0   : > { %8146 = vmatmul.mubr.msk.bf16.gmra.mrb[20].mxu1 %vm1974_vm9, %v7201_v20 }
 0x2f1   : > { %8153 = vmatprep.mubr.msk.bf16.mxu1 %vm1974_vm9, %v7236_v22 }
 0x2f8   : > { %8154 = vmatmul.mubr.msk.bf16.vlgmr.msra.gmra.mrb[24].mxu1 %vm1974_vm9, %v7237_v9 }
 0x2f9   : > { %8157 = vmatprep.mubr.msk.bf16.mxu1 %vm1974_vm9, %v11026_v52 }
 0x300   : > { %8158 = vmatmul.mubr.msk.bf16.gmra.mrb[28].mxu1 %vm1974_vm9, %v11028_v59 }
 0x301   : > { %8161 = vmatprep.mubr.msk.bf16.mxu1 %vm1974_vm9, %v11031_v10 }
 0x308   : > { %8162 = vmatmul.mubr.msk.bf16.gmra.mrb[0].mxu1 %vm1974_vm9, %v11034_v35 }
 0x309   : > { %8165 = vmatprep.mubr.msk.bf16.mxu1 %vm1974_vm9, %v11037_v57 }
 0x310   : > { %8166 = vmatmul.mubr.msk.bf16.gmra.mrb[4].mxu1 %vm1974_vm9, %v11040_v25 }
 0x311   : > { %8169 = vmatprep.mubr.msk.bf16.mxu1 %vm1974_vm9, %v11043_v43 }
 0x318   : > { %8170 = vmatmul.mubr.msk.bf16.gmra.mrb[8].mxu1 %vm1974_vm9, %v11046_v51 }
 0x319   : > { %8173 = vmatprep.mubr.msk.bf16.mxu1 %vm1974_vm9, %v11047_v21 }
 0x31a   : > { %v10671_v60 = vpop.f32.mrb[44].mxu0 }
 0x31b   : > { %v10673_v16 = vpop.f32.mrb[45].mxu0 }
 0x31c   : > { %v10675_v62 = vpop.f32.mrb[46].mxu0 }
 0x31d   : > { %v10677_v42 = vpop.f32.mrb[47].mxu0 }
 0x320   : > { %8174 = vmatmul.mubr.msk.bf16.gmra.mrb[12].mxu1 %vm1974_vm9, %v11049_v3 }
 0x321   : > { %8177 = vmatprep.mubr.msk.bf16.mxu1 %vm1974_vm9, %v11051_v0 }
 0x322   : > { %v10687_v29 = vpop.f32.mrb[48].mxu0 }
 0x323   : > { %v10689_v61 = vpop.f32.mrb[49].mxu0 }
 0x324   : > { %v10691_v36 = vpop.f32.mrb[50].mxu0 }
 0x325   : > { %v10693_v2 = vpop.f32.mrb[51].mxu0 }
 0x328   : > { %8178 = vmatmul.mubr.msk.bf16.gmra.mrb[16].mxu1 %vm1974_vm9, %v11053_v58 }
 0x329   : > { %8181 = vmatprep.mubr.msk.bf16.mxu1 %vm1974_vm9, %v7250_v13 }
 0x32a   : > { %v10703_v17 = vpop.f32.mrb[52].mxu0 }
 0x32b   : > { %v10705_v40 = vpop.f32.mrb[53].mxu0 }
 0x32c   : > { %v10707_v48 = vpop.f32.mrb[54].mxu0 }
 0x32d   : > { %v10709_v4 = vpop.f32.mrb[55].mxu0 }
 0x330   : > { %8182 = vmatmul.mubr.msk.bf16.gmra.mrb[20].mxu1 %vm1974_vm9, %v7251_v26 }
 0x332   : > { %v10715_v45 = vpop.f32.mrb[56].mxu0 }
 0x333   : > { %v10717_v14 = vpop.f32.mrb[57].mxu0 }
 0x334   : > { %v10719_v55 = vpop.f32.mrb[58].mxu0 }
 0x335   : > { %v10721_v28 = vpop.f32.mrb[59].mxu0 }
 0x33a   : > { %v10723_v13 = vpop.f32.mrb[60].mxu0 }
 0x33b   : > { %v10725_v46 = vpop.f32.mrb[61].mxu0 }
 0x33c   : > { %v10727_v53 = vpop.f32.mrb[62].mxu0 }
 0x33d   : > { %v10729_v27 = vpop.f32.mrb[63].mxu0 }
 0x342   : > { %v10731_v20 = vpop.f32.mrb[64].mxu0 }
 0x343   : > { %v10733_v24 = vpop.f32.mrb[65].mxu0 }
 0x344   : > { %v10735_v38 = vpop.f32.mrb[66].mxu0 }
 0x345   : > { %v10737_v26 = vpop.f32.mrb[67].mxu0 }
 0x34a   : > { %v7975_v15 = vpop.f32.mrb[36].mxu0 }
 0x34b   : > { %v3164_v5 = vpop.f32.mrb[37].mxu0 }
 0x34c   : > { %v7976_v8 = vpop.f32.mrb[38].mxu0 }
 0x34d   : > { %v3167_v50 = vpop.f32.mrb[39].mxu0 }
 0x352   : > { %v7979_v22 = vpop.f32.mrb[40].mxu0 }
 0x353   : > { %v3180_v49 = vpop.f32.mrb[41].mxu0 }
 0x354   : > { %v7980_v30 = vpop.f32.mrb[42].mxu0 }
 0x355   : > { %v3183_v34 = vpop.f32.mrb[43].mxu0 }
 0x3cb   : > { %v8155_v31 = vpop.f32.mrb[24].mxu1 }
 0x3cc   : > { %v8225_v9 = vadd.f32 %v8155_v31, %v7975_v15  ;;  %v5970_v52 = vpop.f32.mrb[25].mxu1 }
 0x3cd   : > { %v8226_v6 = vadd.f32 %v5970_v52, %v3164_v5  ;;  %v8156_v59 = vpop.f32.mrb[26].mxu1 }
 0x3ce   : > { %v6138_v39 = vadd.f32 %v8225_v9, %v10745_v33  ;;  %v8227_v7 = vadd.f32 %v8156_v59, %v7976_v8  ;;  %v5973_v10 = vpop.f32.mrb[27].mxu1 }
 0x3cf   : > { %v6136_v63 = vadd.f32 %v8226_v6, %v10745_v33  ;;  %v8228_v12 = vadd.f32 %v5973_v10, %v3167_v50 }
 0x3d0   : > { %v6139_v35 = vadd.f32 %v8227_v7, %v10745_v33  ;;  %v6170_v18 = vmax.f32 %v6138_v39, 0.0 }
 0x3d1   : > { %v6137_v1 = vadd.f32 %v8228_v12, %v10745_v33  ;;  %v6168_v44 = vmax.f32 %v6136_v63, 0.0 }
 0x3d2   : > { %v6171_v57 = vmax.f32 %v6139_v35, 0.0 }
 0x3d3   : > { %v6169_v19 = vmax.f32 %v6137_v1, 0.0  ;;  %v8159_v25 = vpop.f32.mrb[28].mxu1 }
 0x3d4   : > { %v6201_v11 = vpack.c.bf16 %v6171_v57, %v6170_v18  ;;  %v8229_v47 = vadd.f32 %v8159_v25, %v7979_v22  ;;  %v5986_v43 = vpop.f32.mrb[29].mxu1 }
 0x3d5   : > { %v6200_v23 = vpack.c.bf16 %v6169_v19, %v6168_v44  ;;  %v8230_v37 = vadd.f32 %v5986_v43, %v3180_v49  ;;  %v8160_v51 = vpop.f32.mrb[30].mxu1 }
 0x3d6   : > { %v6142_v21 = vadd.f32 %v8229_v47, %v10745_v33  ;;  %v8231_v41 = vadd.f32 %v8160_v51, %v7980_v30  ;;  %v5989_v3 = vpop.f32.mrb[31].mxu1 }
 0x3d7   : > { %v6140_v56 = vadd.f32 %v8230_v37, %v10745_v33  ;;  %v8232_v0 = vadd.f32 %v5989_v3, %v3183_v34  ;;  %8189 = vmatprep.mubr.msk.bf16.mxu0 %vm1974_vm9, %v6200_v23 }
 0x3d8   : > { %v6143_v32 = vadd.f32 %v8231_v41, %v10745_v33  ;;  %8190 = vmatmul.mubr.msk.bf16.vlgmr.msra.gmra.mrb[68].mxu0 %vm1974_vm9, %v6201_v11  ;;  %v6174_v15 = vmax.f32 %v6142_v21, 0.0 }
 0x3d9   : > { %v6141_v58 = vadd.f32 %v8232_v0, %v10745_v33  ;;  %v6172_v8 = vmax.f32 %v6140_v56, 0.0 }
 0x3da   : > { %v6175_v5 = vmax.f32 %v6143_v32, 0.0 }
 0x3db   : > { %v6173_v50 = vmax.f32 %v6141_v58, 0.0  ;;  %v8163_v22 = vpop.f32.mrb[0].mxu1 }
 0x3dc   : > { %v6203_v49 = vpack.c.bf16 %v6175_v5, %v6174_v15  ;;  %v8233_v30 = vadd.f32 %v8163_v22, %v10671_v60  ;;  %v6002_v54 = vpop.f32.mrb[1].mxu1 }
 0x3dd   : > { %v6202_v31 = vpack.c.bf16 %v6173_v50, %v6172_v8  ;;  %v8234_v34 = vadd.f32 %v6002_v54, %v10673_v16  ;;  %v8164_v9 = vpop.f32.mrb[2].mxu1 }
 0x3de   : > { %v6146_v52 = vadd.f32 %v8233_v30, %v10745_v33  ;;  %v8235_v6 = vadd.f32 %v8164_v9, %v10675_v62  ;;  %v6005_v59 = vpop.f32.mrb[3].mxu1 }
 0x3df   : > { %v6144_v39 = vadd.f32 %v8234_v34, %v10745_v33  ;;  %v8236_v7 = vadd.f32 %v6005_v59, %v10677_v42  ;;  %8193 = vmatprep.mubr.msk.bf16.mxu0 %vm1974_vm9, %v6202_v31 }
 0x3e0   : > { %v6147_v10 = vadd.f32 %v8235_v6, %v10745_v33  ;;  %8194 = vmatmul.mubr.msk.bf16.gmra.mrb[72].mxu0 %vm1974_vm9, %v6203_v49  ;;  %v6178_v63 = vmax.f32 %v6146_v52, 0.0 }
 0x3e1   : > { %v6145_v60 = vadd.f32 %v8236_v7, %v10745_v33  ;;  %v6176_v12 = vmax.f32 %v6144_v39, 0.0 }
 0x3e2   : > { %v6179_v16 = vmax.f32 %v6147_v10, 0.0 }
 0x3e3   : > { %v6177_v35 = vmax.f32 %v6145_v60, 0.0  ;;  %v8167_v1 = vpop.f32.mrb[4].mxu1 }
 0x3e4   : > { %v6205_v18 = vpack.c.bf16 %v6179_v16, %v6178_v63  ;;  %v8237_v62 = vadd.f32 %v8167_v1, %v10687_v29  ;;  %v6018_v57 = vpop.f32.mrb[5].mxu1 }
 0x3e5   : > { %v6204_v44 = vpack.c.bf16 %v6177_v35, %v6176_v12  ;;  %v8238_v42 = vadd.f32 %v6018_v57, %v10689_v61  ;;  %v8168_v19 = vpop.f32.mrb[6].mxu1 }
 0x3e6   : > { %v6150_v25 = vadd.f32 %v8237_v62, %v10745_v33  ;;  %v8239_v11 = vadd.f32 %v8168_v19, %v10691_v36  ;;  %v6021_v47 = vpop.f32.mrb[7].mxu1 }
 0x3e7   : > { %v6148_v43 = vadd.f32 %v8238_v42, %v10745_v33  ;;  %v8240_v23 = vadd.f32 %v6021_v47, %v10693_v2  ;;  %8197 = vmatprep.mubr.msk.bf16.mxu0 %vm1974_vm9, %v6204_v44 }
 0x3e8   : > { %v6151_v37 = vadd.f32 %v8239_v11, %v10745_v33  ;;  %8198 = vmatmul.mubr.msk.bf16.gmra.mrb[76].mxu0 %vm1974_vm9, %v6205_v18  ;;  %v6182_v51 = vmax.f32 %v6150_v25, 0.0 }
 0x3e9   : > { %v6149_v29 = vadd.f32 %v8240_v23, %v10745_v33  ;;  %v6180_v21 = vmax.f32 %v6148_v43, 0.0 }
 0x3ea   : > { %v6183_v61 = vmax.f32 %v6151_v37, 0.0 }
 0x3eb   : > { %v6181_v41 = vmax.f32 %v6149_v29, 0.0  ;;  %v8171_v3 = vpop.f32.mrb[8].mxu1 }
 0x3ec   : > { %v6207_v56 = vpack.c.bf16 %v6183_v61, %v6182_v51  ;;  %v8241_v36 = vadd.f32 %v8171_v3, %v10703_v17  ;;  %v6034_v0 = vpop.f32.mrb[9].mxu1 }
 0x3ed   : > { %v6206_v32 = vpack.c.bf16 %v6181_v41, %v6180_v21  ;;  %v8242_v2 = vadd.f32 %v6034_v0, %v10705_v40  ;;  %v8172_v58 = vpop.f32.mrb[10].mxu1 }
 0x3ee   : > { %v6154_v15 = vadd.f32 %v8241_v36, %v10745_v33  ;;  %v8243_v5 = vadd.f32 %v8172_v58, %v10707_v48  ;;  %v6037_v8 = vpop.f32.mrb[11].mxu1 }
 0x3ef   : > { %v6152_v50 = vadd.f32 %v8242_v2, %v10745_v33  ;;  %v8244_v22 = vadd.f32 %v6037_v8, %v10709_v4  ;;  %8201 = vmatprep.mubr.msk.bf16.mxu0 %vm1974_vm9, %v6206_v32 }
 0x3f0   : > { %v6155_v49 = vadd.f32 %v8243_v5, %v10745_v33  ;;  %8202 = vmatmul.mubr.msk.bf16.gmra.mrb[80].mxu0 %vm1974_vm9, %v6207_v56  ;;  %v6186_v30 = vmax.f32 %v6154_v15, 0.0 }
 0x3f1   : > { %v6153_v17 = vadd.f32 %v8244_v22, %v10745_v33  ;;  %v6184_v54 = vmax.f32 %v6152_v50, 0.0 }
 0x3f2   : > { %v6187_v40 = vmax.f32 %v6155_v49, 0.0  ;;  %v7573_v49 = vld [vmem:[%s8957_s30 + $0x10] sm:$0xff]  }
 0x3f3   : > { %v6185_v31 = vmax.f32 %v6153_v17, 0.0  ;;  %v8175_v34 = vpop.f32.mrb[12].mxu1  ;;  %v10824_v17 = vld [vmem:[%s10953_s6] ss:$0 sm:$0xff] }
 0x3f4   : > { %v6209_v9 = vpack.c.bf16 %v6187_v40, %v6186_v30  ;;  %v8245_v48 = vadd.f32 %v8175_v34, %v10715_v45  ;;  %v6050_v52 = vpop.f32.mrb[13].mxu1  ;;  %v7435_v34 = vunpack.c.h.bf16 %v7573_v49 }
 0x3f5   : > { %v6208_v6 = vpack.c.bf16 %v6185_v31, %v6184_v54  ;;  %v8246_v4 = vadd.f32 %v6050_v52, %v10717_v14  ;;  %v8176_v59 = vpop.f32.mrb[14].mxu1 }
 0x3f6   : > { %v6158_v39 = vadd.f32 %v8245_v48, %v10745_v33  ;;  %v8247_v7 = vadd.f32 %v8176_v59, %v10719_v55  ;;  %v6053_v10 = vpop.f32.mrb[15].mxu1 }
 0x3f7   : > { %v6156_v60 = vadd.f32 %v8246_v4, %v10745_v33  ;;  %v8248_v63 = vadd.f32 %v6053_v10, %v10721_v28  ;;  %8205 = vmatprep.mubr.msk.bf16.mxu0 %vm1974_vm9, %v6208_v6  ;;  %v7575_v10 = vld [vmem:[%s8957_s30 + $0x20] sm:$0xff]  }
 0x3f8   : > { %v6159_v16 = vadd.f32 %v8247_v7, %v10745_v33  ;;  %8206 = vmatmul.mubr.msk.bf16.gmra.mrb[84].mxu0 %vm1974_vm9, %v6209_v9  ;;  %v6190_v12 = vmax.f32 %v6158_v39, 0.0 }
 0x3f9   : > { %v6157_v45 = vadd.f32 %v8248_v63, %v10745_v33  ;;  %v6188_v35 = vmax.f32 %v6156_v60, 0.0  ;;  %v7574_v63 = vld [vmem:[%s8957_s30 + $0x18] sm:$0xff]  }
 0x3fa   : > { %v6191_v14 = vmax.f32 %v6159_v16, 0.0 }
 0x3fb   : > { %v6189_v1 = vmax.f32 %v6157_v45, 0.0  ;;  %v8179_v18 = vpop.f32.mrb[16].mxu1 }
 0x3fc   : > { %v6211_v62 = vpack.c.bf16 %v6191_v14, %v6190_v12  ;;  %v8249_v55 = vadd.f32 %v8179_v18, %v10723_v13  ;;  %v6066_v57 = vpop.f32.mrb[17].mxu1  ;;  %v7442_v14 = vunpack.c.l.bf16 %v7575_v10 }
 0x3fd   : > { %v6210_v44 = vpack.c.bf16 %v6189_v1, %v6188_v35  ;;  %v8250_v28 = vadd.f32 %v6066_v57, %v10725_v46  ;;  %v8180_v42 = vpop.f32.mrb[18].mxu1 }
 0x3fe   : > { %v6162_v19 = vadd.f32 %v8249_v55, %v10745_v33  ;;  %v8251_v25 = vadd.f32 %v8180_v42, %v10727_v53  ;;  %v6069_v11 = vpop.f32.mrb[19].mxu1 }
 0x3ff   : > { %v6160_v47 = vadd.f32 %v8250_v28, %v10745_v33  ;;  %v8252_v43 = vadd.f32 %v6069_v11, %v10729_v27  ;;  %8209 = vmatprep.mubr.msk.bf16.mxu0 %vm1974_vm9, %v6210_v44  ;;  %v7443_v28 = vunpack.c.h.bf16 %v7575_v10  ;;  %v7439_v11 = vunpack.c.h.bf16 %v7574_v63 }
 0x400   : > { %v6163_v23 = vadd.f32 %v8251_v25, %v10745_v33  ;;  %8210 = vmatmul.mubr.msk.bf16.gmra.mrb[88].mxu0 %vm1974_vm9, %v6211_v62  ;;  %v6194_v37 = vmax.f32 %v6162_v19, 0.0  ;;  %v7438_v62 = vunpack.c.l.bf16 %v7574_v63 }
 0x401   : > { %v6161_v13 = vadd.f32 %v8252_v43, %v10745_v33  ;;  %v6192_v29 = vmax.f32 %v6160_v47, 0.0 }
 0x402   : > { %v6195_v46 = vmax.f32 %v6163_v23, 0.0 }
 0x403   : > { %v6193_v51 = vmax.f32 %v6161_v13, 0.0  ;;  %v8183_v61 = vpop.f32.mrb[20].mxu1 }
 0x404   : > { %v6213_v21 = vpack.c.bf16 %v6195_v46, %v6194_v37  ;;  %v8253_v53 = vadd.f32 %v8183_v61, %v10731_v20  ;;  %v6082_v41 = vpop.f32.mrb[21].mxu1  ;;  %v7577_v46 = vld [vmem:[%s8957_s30 + $0x30] sm:$0xff]  }
 0x405   : > { %v6212_v3 = vpack.c.bf16 %v6193_v51, %v6192_v29  ;;  %v8254_v27 = vadd.f32 %v6082_v41, %v10733_v24  ;;  %v8184_v56 = vpop.f32.mrb[22].mxu1  ;;  %v7576_v51 = vld [vmem:[%s8957_s30 + $0x28] sm:$0xff]   ;;  %v7450_v41 = vunpack.c.l.bf16 %v7577_v46 }
 0x406   : > { %v6166_v36 = vadd.f32 %v8253_v53, %v10745_v33  ;;  %v8255_v0 = vadd.f32 %v8184_v56, %v10735_v38  ;;  %v6085_v32 = vpop.f32.mrb[23].mxu1 }
 0x407   : > { %v6164_v2 = vadd.f32 %v8254_v27, %v10745_v33  ;;  %v8256_v58 = vadd.f32 %v6085_v32, %v10737_v26  ;;  %8213 = vmatprep.mubr.msk.bf16.mxu0 %vm1974_vm9, %v6212_v3  ;;  %v7572_v26 = vld [vmem:[%s8957_s30 + $0x8] sm:$0xff]  }
 0x408   : > { %v6167_v20 = vadd.f32 %v8255_v0, %v10745_v33  ;;  %8214 = vmatmul.mubr.msk.bf16.gmra.mrb[92].mxu0 %vm1974_vm9, %v6213_v21  ;;  %v6198_v15 = vmax.f32 %v6166_v36, 0.0  ;;  %v7430_v40 = vunpack.c.l.bf16 %v7572_v26  ;;  %v7431_v52 = vunpack.c.h.bf16 %v7572_v26  ;;  %v7579_v26 = vld [vmem:[%s8957_s30 + $0x40] sm:$0xff]  }
 0x409   : > { %v6165_v24 = vadd.f32 %v8256_v58, %v10745_v33  ;;  %v6196_v8 = vmax.f32 %v6164_v2, 0.0  ;;  %v7434_v33 = vunpack.c.l.bf16 %v7573_v49  ;;  %v7446_v36 = vunpack.c.l.bf16 %v7576_v51 }
 0x40a   : > { %v6199_v5 = vmax.f32 %v6167_v20, 0.0  ;;  %v7451_v58 = vunpack.c.h.bf16 %v7577_v46 }
 0x40b   : > { %v6197_v50 = vmax.f32 %v6165_v24, 0.0 }
 0x40c   : > { %v6215_v38 = vpack.c.bf16 %v6199_v5, %v6198_v15  ;;  %v7447_v5 = vunpack.c.h.bf16 %v7576_v51 }
 0x40d   : > { %v6214_v22 = vpack.c.bf16 %v6197_v50, %v6196_v8 }
 0x40f   : > { %8217 = vmatprep.mubr.msk.bf16.mxu0 %vm1974_vm9, %v6214_v22 }
 0x410   : > { %8218 = vmatmul.mubr.msk.bf16.gmra.mrb[96].mxu0 %vm1974_vm9, %v6215_v38 }
 0x4ab   : > { %v8191_v30 = vpop.f32.mrb[68].mxu0 }
 0x4ac   : > { %v6330_v54 = vadd.f32 %v8191_v30, %v10824_v17  ;;  %v6321_v31 = vpop.f32.mrb[69].mxu0  ;;  %v7578_v30 = vld [vmem:[%s8957_s30 + $0x38] sm:$0xff]  }
 0x4ad   : > { %v6322_v9 = vadd.f32 %v10824_v17, %v6321_v31  ;;  %v8192_v48 = vpop.f32.mrb[70].mxu0 }
 0x4ae   : > { %v6520_v6 = vadd.f32 %v7434_v33, %v6330_v54  ;;  %v6333_v4 = vadd.f32 %v8192_v48, %v10824_v17  ;;  %v6324_v59 = vpop.f32.mrb[71].mxu0 }
 0x4af   : > { %v6518_v39 = vadd.f32 %v7430_v40, %v6322_v9  ;;  %v6325_v7 = vadd.f32 %v10824_v17, %v6324_v59 }
 0x4b0   : > { %v6521_v60 = vadd.f32 %v7435_v34, %v6333_v4  ;;  %v6552_v45 = vmax.f32 %v6520_v6, 0.0  ;;  %v7458_v34 = vunpack.c.l.bf16 %v7579_v26  ;;  %v7454_v6 = vunpack.c.l.bf16 %v7578_v30 }
 0x4b1   : > { %v6519_v16 = vadd.f32 %v7431_v52, %v6325_v7  ;;  %v6550_v35 = vmax.f32 %v6518_v39, 0.0  ;;  %v7459_v7 = vunpack.c.h.bf16 %v7579_v26 }
 0x4b2   : > { %v6553_v12 = vmax.f32 %v6521_v60, 0.0 }
 0x4b3   : > { %v6551_v1 = vmax.f32 %v6519_v16, 0.0  ;;  %v8195_v18 = vpop.f32.mrb[72].mxu0  ;;  %v7455_v16 = vunpack.c.h.bf16 %v7578_v30 }
 0x4b4   : > { %v7500_v55 = vpack.c.bf16 %v6553_v12, %v6552_v45  ;;  %v6346_v57 = vadd.f32 %v8195_v18, %v10824_v17  ;;  %v6337_v44 = vpop.f32.mrb[73].mxu0  ;;  %v7581_v18 = vld [vmem:[%s8957_s30 + $0x50] sm:$0xff]  }
 0x4b5   : > { %v7495_v42 = vpack.c.bf16 %v6551_v1, %v6550_v35  ;;  %v6338_v19 = vadd.f32 %v10824_v17, %v6337_v44  ;;  %v8196_v25 = vpop.f32.mrb[74].mxu0 }
 0x4b6   : > { %7588 = vst [vmem:[%s10835_s19 + $0x8] sm:$0xff] %v7500_v55   ;;  %v6524_v47 = vadd.f32 %v7442_v14, %v6346_v57  ;;  %v6349_v43 = vadd.f32 %v8196_v25, %v10824_v17  ;;  %v6340_v23 = vpop.f32.mrb[75].mxu0  ;;  %v7580_v55 = vld [vmem:[%s8957_s30 + $0x48] sm:$0xff]  }
 0x4b7   : > { %7496 = vst [vmem:[%s10835_s19] sm:$0xff] %v7495_v42   ;;  %v6522_v13 = vadd.f32 %v7438_v62, %v6338_v19  ;;  %v6341_v37 = vadd.f32 %v10824_v17, %v6340_v23  ;;  %v7466_v42 = vunpack.c.l.bf16 %v7581_v18 }
 0x4b8   : > { %v6525_v29 = vadd.f32 %v7443_v28, %v6349_v43  ;;  %v6556_v21 = vmax.f32 %v6524_v47, 0.0  ;;  %v7462_v47 = vunpack.c.l.bf16 %v7580_v55 }
 0x4b9   : > { %v6523_v61 = vadd.f32 %v7439_v11, %v6341_v37  ;;  %v6554_v3 = vmax.f32 %v6522_v13, 0.0  ;;  %v7467_v37 = vunpack.c.h.bf16 %v7581_v18 }
 0x4ba   : > { %v6557_v53 = vmax.f32 %v6525_v29, 0.0 }
 0x4bb   : > { %v6555_v27 = vmax.f32 %v6523_v61, 0.0  ;;  %v8199_v56 = vpop.f32.mrb[76].mxu0  ;;  %v7463_v61 = vunpack.c.h.bf16 %v7580_v55 }
 0x4bc   : > { %v7510_v0 = vpack.c.bf16 %v6557_v53, %v6556_v21  ;;  %v6362_v32 = vadd.f32 %v8199_v56, %v10824_v17  ;;  %v6353_v2 = vpop.f32.mrb[77].mxu0  ;;  %v7583_v56 = vld [vmem:[%s8957_s30 + $0x60] sm:$0xff]  }
 0x4bd   : > { %v7505_v20 = vpack.c.bf16 %v6555_v27, %v6554_v3  ;;  %v6354_v24 = vadd.f32 %v10824_v17, %v6353_v2  ;;  %v8200_v15 = vpop.f32.mrb[78].mxu0 }
 0x4be   : > { %7590 = vst [vmem:[%s10835_s19 + $0x18] sm:$0xff] %v7510_v0   ;;  %v6528_v8 = vadd.f32 %v7450_v41, %v6362_v32  ;;  %v6365_v50 = vadd.f32 %v8200_v15, %v10824_v17  ;;  %v6356_v38 = vpop.f32.mrb[79].mxu0  ;;  %v7582_v0 = vld [vmem:[%s8957_s30 + $0x58] sm:$0xff]  }
 0x4bf   : > { %7589 = vst [vmem:[%s10835_s19 + $0x10] sm:$0xff] %v7505_v20   ;;  %v6526_v22 = vadd.f32 %v7446_v36, %v6354_v24  ;;  %v6357_v49 = vadd.f32 %v10824_v17, %v6356_v38  ;;  %v7474_v20 = vunpack.c.l.bf16 %v7583_v56 }
 0x4c0   : > { %v6529_v33 = vadd.f32 %v7451_v58, %v6365_v50  ;;  %v6560_v54 = vmax.f32 %v6528_v8, 0.0  ;;  %v7470_v8 = vunpack.c.l.bf16 %v7582_v0 }
 0x4c1   : > { %v6527_v40 = vadd.f32 %v7447_v5, %v6357_v49  ;;  %v6558_v9 = vmax.f32 %v6526_v22, 0.0  ;;  %v7475_v49 = vunpack.c.h.bf16 %v7583_v56 }
 0x4c2   : > { %v6561_v31 = vmax.f32 %v6529_v33, 0.0 }
 0x4c3   : > { %v6559_v48 = vmax.f32 %v6527_v40, 0.0  ;;  %v8203_v52 = vpop.f32.mrb[80].mxu0  ;;  %v7471_v40 = vunpack.c.h.bf16 %v7582_v0 }
 0x4c4   : > { %v7520_v4 = vpack.c.bf16 %v6561_v31, %v6560_v54  ;;  %v6378_v59 = vadd.f32 %v8203_v52, %v10824_v17  ;;  %v6369_v39 = vpop.f32.mrb[81].mxu0  ;;  %v7585_v52 = vld [vmem:[%s8957_s30 + $0x70] sm:$0xff]  }
 0x4c5   : > { %v7515_v10 = vpack.c.bf16 %v6559_v48, %v6558_v9  ;;  %v6370_v60 = vadd.f32 %v10824_v17, %v6369_v39  ;;  %v8204_v63 = vpop.f32.mrb[82].mxu0 }
 0x4c6   : > { %7592 = vst [vmem:[%s10835_s19 + $0x28] sm:$0xff] %v7520_v4   ;;  %v6532_v45 = vadd.f32 %v7458_v34, %v6378_v59  ;;  %v6381_v12 = vadd.f32 %v8204_v63, %v10824_v17  ;;  %v6372_v14 = vpop.f32.mrb[83].mxu0  ;;  %v7584_v4 = vld [vmem:[%s8957_s30 + $0x68] sm:$0xff]  }
 0x4c7   : > { %7591 = vst [vmem:[%s10835_s19 + $0x20] sm:$0xff] %v7515_v10   ;;  %v6530_v35 = vadd.f32 %v7454_v6, %v6370_v60  ;;  %v6373_v1 = vadd.f32 %v10824_v17, %v6372_v14  ;;  %v7482_v10 = vunpack.c.l.bf16 %v7585_v52 }
 0x4c8   : > { %v6533_v62 = vadd.f32 %v7459_v7, %v6381_v12  ;;  %v6564_v44 = vmax.f32 %v6532_v45, 0.0  ;;  %v7478_v45 = vunpack.c.l.bf16 %v7584_v4 }
 0x4c9   : > { %v6531_v57 = vadd.f32 %v7455_v16, %v6373_v1  ;;  %v6562_v19 = vmax.f32 %v6530_v35, 0.0  ;;  %v7483_v1 = vunpack.c.h.bf16 %v7585_v52 }
 0x4ca   : > { %v6565_v28 = vmax.f32 %v6533_v62, 0.0 }
 0x4cb   : > { %v6563_v25 = vmax.f32 %v6531_v57, 0.0  ;;  %v8207_v11 = vpop.f32.mrb[84].mxu0  ;;  %v7479_v57 = vunpack.c.h.bf16 %v7584_v4 }
 0x4cc   : > { %v7530_v43 = vpack.c.bf16 %v6565_v28, %v6564_v44  ;;  %v6394_v23 = vadd.f32 %v8207_v11, %v10824_v17  ;;  %v6385_v13 = vpop.f32.mrb[85].mxu0  ;;  %v7587_v11 = vld [vmem:[%s8957_s30 + $0x80] sm:$0xff]  }
 0x4cd   : > { %v7525_v46 = vpack.c.bf16 %v6563_v25, %v6562_v19  ;;  %v6386_v29 = vadd.f32 %v10824_v17, %v6385_v13  ;;  %v8208_v51 = vpop.f32.mrb[86].mxu0 }
 0x4ce   : > { %7594 = vst [vmem:[%s10835_s19 + $0x38] sm:$0xff] %v7530_v43   ;;  %v6536_v21 = vadd.f32 %v7466_v42, %v6394_v23  ;;  %v6397_v53 = vadd.f32 %v8208_v51, %v10824_v17  ;;  %v6388_v41 = vpop.f32.mrb[87].mxu0  ;;  %v7586_v43 = vld [vmem:[%s8957_s30 + $0x78] sm:$0xff]   ;;  %s7427_s30 = sshll.u32 %s8784_s27, 11  ;;  %s6743_s27 = scalar_lea.sflag [#allocation5], %s8953_s22 }
 0x4cf   : > { %7593 = vst [vmem:[%s10835_s19 + $0x30] sm:$0xff] %v7525_v46   ;;  %v6534_v3 = vadd.f32 %v7462_v47, %v6386_v29  ;;  %v6389_v27 = vadd.f32 %v10824_v17, %v6388_v41  ;;  %v7490_v46 = vunpack.c.l.bf16 %v7587_v11  ;;  %s10894_s18 = scalar_lea.hbm %s10954_s7, %s7427_s30 }
 0x4d0   : > { %v6537_v36 = vadd.f32 %v7467_v37, %v6397_v53  ;;  %v6568_v2 = vmax.f32 %v6536_v21, 0.0  ;;  %v7486_v21 = vunpack.c.l.bf16 %v7586_v43 }
 0x4d1   : > { %v6535_v32 = vadd.f32 %v7463_v61, %v6389_v27  ;;  %v6566_v24 = vmax.f32 %v6534_v3, 0.0  ;;  %v7491_v27 = vunpack.c.h.bf16 %v7587_v11 }
 0x4d2   : > { %v6569_v58 = vmax.f32 %v6537_v36, 0.0 }
 0x4d3   : > { %v6567_v15 = vmax.f32 %v6535_v32, 0.0  ;;  %v8211_v5 = vpop.f32.mrb[88].mxu0  ;;  %v7487_v32 = vunpack.c.h.bf16 %v7586_v43 }
 0x4d4   : > { %v7540_v50 = vpack.c.bf16 %v6569_v58, %v6568_v2  ;;  %v6410_v38 = vadd.f32 %v8211_v5, %v10824_v17  ;;  %v6401_v22 = vpop.f32.mrb[89].mxu0 }
 0x4d5   : > { %v7535_v26 = vpack.c.bf16 %v6567_v15, %v6566_v24  ;;  %v6402_v33 = vadd.f32 %v10824_v17, %v6401_v22  ;;  %v8212_v30 = vpop.f32.mrb[90].mxu0 }
 0x4d6   : > { %7596 = vst [vmem:[%s10835_s19 + $0x48] sm:$0xff] %v7540_v50   ;;  %v6540_v54 = vadd.f32 %v7474_v20, %v6410_v38  ;;  %v6413_v31 = vadd.f32 %v8212_v30, %v10824_v17  ;;  %v6404_v34 = vpop.f32.mrb[91].mxu0 }
 0x4d7   : > { %7595 = vst [vmem:[%s10835_s19 + $0x40] sm:$0xff] %v7535_v26   ;;  %v6538_v9 = vadd.f32 %v7470_v8, %v6402_v33  ;;  %v6405_v48 = vadd.f32 %v10824_v17, %v6404_v34 }
 0x4d8   : > { %v6541_v6 = vadd.f32 %v7475_v49, %v6413_v31  ;;  %v6572_v39 = vmax.f32 %v6540_v54, 0.0 }
 0x4d9   : > { %v6539_v59 = vadd.f32 %v7471_v40, %v6405_v48  ;;  %v6570_v60 = vmax.f32 %v6538_v9, 0.0 }
 0x4da   : > { %v6573_v7 = vmax.f32 %v6541_v6, 0.0 }
 0x4db   : > { %v6571_v63 = vmax.f32 %v6539_v59, 0.0  ;;  %v8215_v16 = vpop.f32.mrb[92].mxu0 }
 0x4dc   : > { %v7550_v12 = vpack.c.bf16 %v6573_v7, %v6572_v39  ;;  %v6426_v14 = vadd.f32 %v8215_v16, %v10824_v17  ;;  %v6417_v35 = vpop.f32.mrb[93].mxu0 }
 0x4dd   : > { %v7545_v18 = vpack.c.bf16 %v6571_v63, %v6570_v60  ;;  %v6418_v62 = vadd.f32 %v10824_v17, %v6417_v35  ;;  %v8216_v55 = vpop.f32.mrb[94].mxu0 }
 0x4de   : > { %7598 = vst [vmem:[%s10835_s19 + $0x58] sm:$0xff] %v7550_v12   ;;  %v6544_v44 = vadd.f32 %v7482_v10, %v6426_v14  ;;  %v6429_v28 = vadd.f32 %v8216_v55, %v10824_v17  ;;  %v6420_v42 = vpop.f32.mrb[95].mxu0 }
 0x4df   : > { %7597 = vst [vmem:[%s10835_s19 + $0x50] sm:$0xff] %v7545_v18   ;;  %v6542_v19 = vadd.f32 %v7478_v45, %v6418_v62  ;;  %v6421_v25 = vadd.f32 %v10824_v17, %v6420_v42 }
 0x4e0   : > { %v6545_v47 = vadd.f32 %v7483_v1, %v6429_v28  ;;  %v6576_v13 = vmax.f32 %v6544_v44, 0.0 }
 0x4e1   : > { %v6543_v23 = vadd.f32 %v7479_v57, %v6421_v25  ;;  %v6574_v29 = vmax.f32 %v6542_v19, 0.0 }
 0x4e2   : > { %v6577_v37 = vmax.f32 %v6545_v47, 0.0 }
 0x4e3   : > { %v6575_v51 = vmax.f32 %v6543_v23, 0.0  ;;  %v8219_v61 = vpop.f32.mrb[96].mxu0 }
 0x4e4   : > { %v7560_v53 = vpack.c.bf16 %v6577_v37, %v6576_v13  ;;  %v6442_v41 = vadd.f32 %v8219_v61, %v10824_v17  ;;  %v6433_v3 = vpop.f32.mrb[97].mxu0 }
 0x4e5   : > { %v7555_v56 = vpack.c.bf16 %v6575_v51, %v6574_v29  ;;  %v6434_v36 = vadd.f32 %v10824_v17, %v6433_v3  ;;  %v8220_v0 = vpop.f32.mrb[98].mxu0 }
 0x4e6   : > { %7600 = vst [vmem:[%s10835_s19 + $0x68] sm:$0xff] %v7560_v53   ;;  %v6548_v2 = vadd.f32 %v7490_v46, %v6442_v41  ;;  %v6445_v58 = vadd.f32 %v8220_v0, %v10824_v17  ;;  %v6436_v20 = vpop.f32.mrb[99].mxu0 }
 0x4e7   : > { %7599 = vst [vmem:[%s10835_s19 + $0x60] sm:$0xff] %v7555_v56   ;;  %v6546_v24 = vadd.f32 %v7486_v21, %v6434_v36  ;;  %v6437_v15 = vadd.f32 %v10824_v17, %v6436_v20 }
 0x4e8   : > { %v6549_v5 = vadd.f32 %v7491_v27, %v6445_v58  ;;  %v6580_v50 = vmax.f32 %v6548_v2, 0.0 }
 0x4e9   : > { %v6547_v8 = vadd.f32 %v7487_v32, %v6437_v15  ;;  %v6578_v22 = vmax.f32 %v6546_v24, 0.0 }
 0x4ea   : > { %v6581_v38 = vmax.f32 %v6549_v5, 0.0 }
 0x4eb   : > { %v6579_v49 = vmax.f32 %v6547_v8, 0.0 }
 0x4ec   : > { %v7570_v26 = vpack.c.bf16 %v6581_v38, %v6580_v50 }
 0x4ed   : > { %v7565_v17 = vpack.c.bf16 %v6579_v49, %v6578_v22 }
 0x4ee   : > { %7602 = vst [vmem:[%s10835_s19 + $0x78] sm:$0xff] %v7570_v26  }
 0x4ef   : > { %7601 = vst [vmem:[%s10835_s19 + $0x70] sm:$0xff] %v7565_v17  }
 0x4f0   : > { %8723 = shalt.err (!%p8720_p4)
}
 0x4f1   : > { %s8724_s10 = scalar_lea.hbm %s10894_s18, 2048  ;;  %s8728_s30 = scalar_lea.hbm %s10954_s7, 4096 }
 0x4f2   : > { %p8725_p6 = scmp.ne.s32.totalorder %s10894_s18, %s8724_s10  ;;  %p8729_p12 = scmp.lt.u32.totalorder %s10894_s18, %s10954_s7 }
 0x4f3   : > { %p8730_p1 = scmp.lt.u32.totalorder %s8728_s30, %s8724_s10  ;;  %p8732_p8 = scmp.lt.u32.totalorder %s8724_s10, %s10894_s18 }
 0x4f4   : > { %p8726_p7 = pnand %p8725_p6, %p11054_p9 }
 0x4f5   : > { %p8731_p3 = por %p8730_p1, %p8729_p12 }
 0x4f6   : > { %p8727_p10 = pneg %p8726_p7 }
 0x4f7   : > { %p8733_p11 = por %p8732_p8, %p8731_p3 }
 0x4f9   : > { %p8734_p0 = pnand %p8733_p11, %p8727_p10 }
 0x4fb   : > { %8737 = shalt.err (!%p8734_p0)
}
 0x4fc   : > { %s8799_s17 = smov 64   ;;  %s8800_s20 = smov 4  }
 0x4fd   : > { %8486 = dma.vmem_to_hbm [thread:$0]  (%p11054_p9), %s10896_s11, 2048, %s10894_s18, %s6743_s27, %s8799_s17, %s8799_s17, %s8800_s20  }
 0x4fe PF: > { %s6773_s23 = sand.u32 1, %s8772_s24   ;;  %p11055_p5 = scmp.ne.s32.totalorder %s10979_s16, 0 }
 0x4ff   : > { %p11056_p13 = scmp.ge.s32.totalorder %s8792_s29, 2  ;;  %s6774_s8 = scalar_lea.sflag [#allocation5], %s6773_s23 }
 0x501   : > { %p8493_p2 = pnand %p11056_p13, %p11055_p5 }
 0x503   : > { %8767 = dma.done.wait (!%p8493_p2), %s6774_s8, 2048  }
 0x504   : > { %8769 = vsyncadd (!%p8493_p2), %s6774_s8, 4294965248  ;;  %s23_s29 = sadd.s32 1, %s8792_s29   ;;  %s11057_s24 = smov %s8776_s25 }
 0x505   : > { %p20_p4 = scmp.ge.s32.totalorder %s23_s29, 4   ;;  %s11058_s25 = smov %s8780_s26 }
 0x506   : > { %s11059_s26 = smov %s8897_s15  ;;  %s11060_s27 = smov %s8788_s28 }
 0x507   : > { %s11061_s28 = smov %s11063_s9  ;;  %22 = sbr.rel (!%p20_p4) target bundleno = 6 (0x6), region = 102 }
 0x50e   :  { %6779 = vsyncpa [#allocation4], 1 }
 0x50f   :  { %6781 = vsyncpa [#allocation4 + $0x1], 1 }
 0x510   :  { %6782 = vsyncpa [#allocation5], 1 }
 0x511   :  { %6784 = vsyncpa [#allocation5 + $0x1], 1 }

// kernel: tpu_custom_call.1
= control target key start
LH: loop header
LB: loop body
LE: loop exit
PB: predicated region body
PF: predicated region fallthrough
CT: control target
= control target key end

     0   :  { %12 = vsyncpa [#allocation4], 0  ;;  %s10947_s0 = inlined_call_operand.hbm [shape: bf16[2,288,128], index: 0, kind: input, shape index: {}]   ;;  %s10948_s1 = inlined_call_operand.vmem [shape: bf16[128,32], index: 1, kind: input, shape index: {}]   ;;  %s10949_s2 = inlined_call_operand.vmem [shape: f32[1,32], index: 2, kind: input, shape index: {}]   ;;  %s10950_s3 = inlined_call_operand.vmem [shape: bf16[288,32], index: 3, kind: input, shape index: {}]   ;;  %s10951_s4 = inlined_call_operand.vmem [shape: f32[1,32], index: 4, kind: input, shape index: {}]   ;;  %s10952_s5 = inlined_call_operand.vmem [shape: bf16[32,128], index: 5, kind: input, shape index: {}]   ;;  %s10953_s6 = inlined_call_operand.vmem [shape: f32[1,128], index: 6, kind: input, shape index: {}]   ;;  %s10954_s7 = inlined_call_operand.hbm [shape: bf16[2,256,128], index: 7, kind: output, shape index: {}]  }
   0x1   :  { %14 = vsyncpa [#allocation4 + $0x1], 0 }
   0x2   :  { %15 = vsyncpa [#allocation5], 0 }
   0x3   :  { %17 = vsyncpa [#allocation5 + $0x1], 0  ;;  %s8841_s24 = smov 0   ;;  %s8843_s25 = smov 0  }
   0x4   :  { %s8845_s26 = smov 0   ;;  %s8847_s27 = smov 0  }
   0x5   :  { %s8849_s28 = smov 0   ;;  %s8851_s29 = smov 0  }
   0x6 LB: > { %s6846_s30 = sadd.s32 4294967295, %s8792_s29   ;;  %s6847_s8 = sadd.s32 4294967294, %s8792_s29   ;;  %s8792_s29 = sphi %s8851_s29, %s23_s29   ;;  %s8788_s28 = sphi %s8849_s28, %s11061_s28   ;;  %s8784_s27 = sphi %s8847_s27, %s11060_s27   ;;  %s8780_s26 = sphi %s8845_s26, %s11059_s26   ;;  %s8776_s25 = sphi %s8843_s25, %s11058_s25   ;;  %s8772_s24 = sphi %s8841_s24, %s11057_s24  }
   0x7   : > { %s35_s9 = sadd.s32 1, %s8788_s28  ;;  %s42_s10 = sadd.s32 1, %s8780_s26 }
   0x8   : > { %p37_p0 = scmp.ge.s32.totalorder %s35_s9, 2  ;;  %p49_p1 = scmp.ne.s32.totalorder %s8780_s26, %s8776_s25 }
   0x9   : > { %p50_p2 = scmp.eq.s32.totalorder %s8792_s29, 0  ;;  %p55_p3 = scmp.ne.s32.totalorder %s8776_s25, %s8772_s24 }
   0xa   : > { %s11063_s9 = smov (%p37_p0, %s35_s9), 0  ;;  %p56_p5 = scmp.eq.s32.totalorder %s6846_s30, 0 }
   0xb   : > { %p8882_p4 = por %p50_p2, %p49_p1  ;;  %s39_s12 = ssub.s32 %s8788_s28, %s11063_s9 }
   0xc   : > { %p207_p6 = scmp.eq.s32.totalorder %s6846_s30, 1  ;;  %p40_p7 = scmp.eq.s32.totalorder %s39_s12, 0 }
   0xd   : > { %p8888_p8 = por %p56_p5, %p55_p3  ;;  %p213_p10 = scmp.eq.s32.totalorder %s6847_s8, 1 }
   0xe   : > { %p8892_p9 = por %p207_p6, %p49_p1  ;;  %p8496_p13 = scmp.lt.s32.totalorder %s8792_s29, 2 }
   0xf   : > { %s8897_s15 = scalar_select %p40_p7, %s8780_s26, %s42_s10  }
  0x10   : > { %s10978_s14 = scalar_select %p8892_p9, 1, 0 }
  0x11   : > { %p8899_p11 = por %p213_p10, %p55_p3  ;;  %s251_s17 = sand.u32 1, %s8780_s26  }
  0x12   : > { %s8481_s18 = smul.u32 144, %s251_s17  ;;  %p8909_p0 = pnand %p8496_p13, %p8882_p4 }
  0x13   : > { %s10979_s16 = scalar_select %p8899_p11, 1, 0 }
  0x14   : > { %s8482_s19 = smul.u32 2304, %s8788_s28  ;;  %s255_s30 = scalar_lea.vmem [#allocation3], %s8481_s18 }
  0x15   : > { %s262_s8 = sshll.u32 %s255_s30, 4  ;;  %s8921_s10 = scalar_lea.sflag [#allocation4], %s251_s17  ;;  %s8918_s8 = int_to_ptr.vmem [resolvable:$true] %s262_s8 }
  0x16   : > { %s8916_s23 = scalar_lea.hbm %s10947_s0, %s8482_s19  ;;  %p8682_p3 = pneg %p8909_p0 }
  0x17   : > { %s8680_s11 = scalar_lea.hbm %s8916_s23, 2304  ;;  %s8685_s21 = scalar_lea.hbm %s10947_s0, 4608 }
  0x18   : > { %p8681_p2 = scmp.ne.s32.totalorder %s8916_s23, %s8680_s11  ;;  %p8686_p6 = scmp.lt.u32.totalorder %s8916_s23, %s10947_s0 }
  0x19   : > { %p8687_p7 = scmp.lt.u32.totalorder %s8685_s21, %s8680_s11  ;;  %p8689_p13 = scmp.lt.u32.totalorder %s8680_s11, %s8916_s23 }
  0x1a   : > { %p8683_p4 = pnand %p8682_p3, %p8681_p2 }
  0x1b   : > { %p8688_p10 = por %p8687_p7, %p8686_p6 }
  0x1c   : > { %p8684_p5 = pneg %p8683_p4 }
  0x1d   : > { %p8690_p12 = por %p8689_p13, %p8688_p10 }
  0x1f   : > { %p8691_p1 = pnand %p8690_p12, %p8684_p5 }
  0x21   : > { %8694 = shalt.err (!%p8691_p1)
}
  0x22   : > { %s8695_s17 = scalar_lea.vmem %s8918_s8, 2304  ;;  %s8794_s30 = smov [#allocation3]  }
  0x23   : > { %p8696_p2 = scmp.ne.s32.totalorder %s8918_s8, %s8695_s17  ;;  %s8700_s12 = sshll.u32 %s8794_s30, 4  ;;  %s8701_s12 = int_to_ptr.vmem [resolvable:$false] %s8700_s12 }
  0x24   : > { %s8702_s19 = scalar_lea.vmem %s8701_s12, 4608  ;;  %p8703_p9 = scmp.lt.s32.totalorder %s8918_s8, %s8701_s12 }
  0x25   : > { %p8698_p4 = pnand %p8696_p2, %p8682_p3  ;;  %p8704_p6 = scmp.lt.s32.totalorder %s8702_s19, %s8695_s17 }
  0x27   : > { %p8699_p11 = pneg %p8698_p4  ;;  %p8705_p7 = por %p8704_p6, %p8703_p9 }
  0x29   : > { %p8706_p10 = pnand %p8705_p7, %p8699_p11 }
  0x2b   : > { %8709 = shalt.err (!%p8706_p10)
}
  0x2c   : > { %s8795_s11 = smov 64   ;;  %s8796_s21 = smov 4  }
  0x2d   : > { %8491 = dma.hbm_to_vmem [thread:$0]  (!%p8909_p0), %s8916_s23, 2304, %s8918_s8, %s8921_s10, %s8795_s11, %s8795_s11, %s8796_s21  }
  0x2e   : > { %p270_p12 = scmp.lt.s32.totalorder %s8792_s29, 3  ;;  %p10981_p1 = scmp.ge.s32.totalorder %s8792_s29, 1 }
  0x30   : > { %p271_p3 = pnand %p10981_p1, %p270_p12 }
  0x32   : > { %274 = sbr.rel (%p271_p3) target bundleno = 1278 (0x4fe), region = 48 }
  0x39   : > { %s8953_s22 = sand.u32 1, %s8776_s25  }
  0x3a   : > { %s8483_s18 = smul.u32 144, %s8953_s22  ;;  %s277_s17 = scalar_lea.sflag [#allocation4], %s8953_s22 }
  0x3c   : > { %s8957_s30 = scalar_lea.vmem [#allocation3], %s8483_s18 }
  0x3d   : > { %8763 = dma.done.wait (%p8888_p8), %s277_s17, 2304  }
  0x3e   : > { %8765 = vsyncadd (%p8888_p8), %s277_s17, 4294964992  ;;  %v8551_v0 = vld [vmem:[%s10948_s1] sm:$0xff]   ;;  %v8552_v1 = vld [vmem:[%s10948_s1 + $0x8] sm:$0xff]   ;;  %vm855_vm0 = vsmask.f32 256  ;;  %vm1218_vm1 = vcmask 257024  }
  0x3f   : > { %7809 = vmatprep.subr.bf16.mxu0 %v8551_v0  ;;  %v8553_v2 = vld [vmem:[%s10948_s1 + $0x10] sm:$0xff]   ;;  %v8554_v3 = vld [vmem:[%s10948_s1 + $0x18] sm:$0xff]   ;;  %v8555_v5 = vld [vmem:[%s10948_s1 + $0x20] sm:$0xff]   ;;  %vm1219_vm2 = vsmask.f32 7938  ;;  %vm1226_vm3 = vcmask 253952  }
  0x40   : > { %7810 = vmatpush3.bf16.msra.mxu0 %v8551_v0  ;;  %v8559_v4 = vld [vmem:[%s8957_s30] sm:$0xff]   ;;  %v8557_v7 = vld [vmem:[%s10948_s1 + $0x30] sm:$0xff]   ;;  %v8561_v10 = vld [vmem:[%s8957_s30 + $0x10] sm:$0xff]   ;;  %vm856_vm4 = vsmask.f32 4368  ;;  %vm1974_vm9 = vcmask 261120  }
  0x41   : > { %7811 = vmatprep.subr.bf16.mxu0 %v8552_v1  ;;  %7825 = vmatprep.mubr.bf16.mxu0 %v8559_v4  ;;  %v8556_v6 = vld [vmem:[%s10948_s1 + $0x28] sm:$0xff]   ;;  %v8558_v8 = vld [vmem:[%s10948_s1 + $0x38] sm:$0xff]   ;;  %v8560_v9 = vld [vmem:[%s8957_s30 + $0x8] sm:$0xff]   ;;  %vm1523_vm10 = vsmask.f32 3328  ;;  %vm2533_vm13 = vcmask 1042432  }
  0x42   : > { %v8562_v11 = vld [vmem:[%s8957_s30 + $0x18] sm:$0xff]   ;;  %v8563_v12 = vld [vmem:[%s8957_s30 + $0x20] sm:$0xff]   ;;  %v8564_v13 = vld [vmem:[%s8957_s30 + $0x28] sm:$0xff]   ;;  %vm1524_vm11 = vsmask.f32 7440  ;;  %vm2534_vm14 = vcmask 1046532  }
  0x43   : > { %v8565_v14 = vld [vmem:[%s8957_s30 + $0x30] sm:$0xff]   ;;  %v8566_v15 = vld [vmem:[%s8957_s30 + $0x38] sm:$0xff]   ;;  %v8567_v16 = vld [vmem:[%s8957_s30 + $0x40] sm:$0xff]   ;;  %s6852_s12 = sshll.u32 %s8953_s22, 7  ;;  %p11054_p9 = scmp.ne.s32.totalorder %s10978_s14, 0 }
  0x44   : > { %7812 = vmatpush3.bf16.msra.mxu0 %v8552_v1  ;;  %v8568_v17 = vld [vmem:[%s8957_s30 + $0x48] sm:$0xff]   ;;  %v8569_v18 = vld [vmem:[%s8957_s30 + $0x50] sm:$0xff]   ;;  %v8570_v19 = vld [vmem:[%s8957_s30 + $0x58] sm:$0xff]   ;;  %s10835_s19 = scalar_lea.vmem [#allocation6], %s6852_s12  ;;  %s8798_s20 = smov [#allocation6]  }
  0x45   : > { %7813 = vmatprep.subr.bf16.mxu0 %v8553_v2  ;;  %v8571_v20 = vld [vmem:[%s8957_s30 + $0x60] sm:$0xff]   ;;  %v8572_v21 = vld [vmem:[%s8957_s30 + $0x68] sm:$0xff]   ;;  %v8573_v22 = vld [vmem:[%s8957_s30 + $0x70] sm:$0xff]   ;;  %s6758_s11 = sshll.u32 %s10835_s19, 4  ;;  %s8714_s23 = sshll.u32 %s8798_s20, 4  ;;  %s10896_s11 = int_to_ptr.vmem [resolvable:$true] %s6758_s11  ;;  %s8715_s23 = int_to_ptr.vmem [resolvable:$false] %s8714_s23 }
  0x46   : > { %v8574_v23 = vld [vmem:[%s8957_s30 + $0x78] sm:$0xff]   ;;  %v8575_v24 = vld [vmem:[%s8957_s30 + $0x80] sm:$0xff]   ;;  %v8576_v25 = vld [vmem:[%s8957_s30 + $0x88] sm:$0xff]   ;;  %s8710_s17 = scalar_lea.vmem %s10896_s11, 2048  ;;  %s8716_s8 = scalar_lea.vmem %s8715_s23, 4096 }
  0x47   : > { %v8577_v26 = vld [vmem:[%s10950_s3 + $0x10] sm:$0xff]   ;;  %v8578_v27 = vld [vmem:[%s10950_s3 + $0x18] sm:$0xff]   ;;  %v9020_v30 = vld [vmem:[%s10950_s3 + $0x40] sm:$0xff]   ;;  %p8711_p8 = scmp.ne.s32.totalorder %s10896_s11, %s8710_s17  ;;  %p8717_p5 = scmp.lt.s32.totalorder %s10896_s11, %s8715_s23 }
  0x48   : > { %7814 = vmatpush3.bf16.msra.mxu0 %v8553_v2  ;;  %v8579_v28 = vld [vmem:[%s10950_s3 + $0x30] sm:$0xff]   ;;  %v8581_v29 = vld [vmem:[%s10950_s3 + $0x38] sm:$0xff]   ;;  %v9026_v31 = vld [vmem:[%s10949_s2] ss:$0 sm:$0xff]  ;;  %p8718_p13 = scmp.lt.s32.totalorder %s8716_s8, %s8710_s17 }
  0x49   : > { %7815 = vmatprep.subr.bf16.mxu0 %v8554_v3  ;;  %8221 = vmatprep.subr.bf16.mxu1 %v8579_v28  ;;  %vm9035_vm5 = vmand %vm1218_vm1, %vm1219_vm2  ;;  %v1231_v59 = vld [vmem:[#allocation2 + $0xc] sm:$0xf]  ;;  %v1221_v4 = vld [vmem:[#allocation2] sm:$0xf]  ;;  %p8712_p11 = pnand %p8711_p8, %p11054_p9 }
  0x4a   : > { %8223 = vmatpush3.bf16.msra.mxu1 %v8579_v28  ;;  %vm9042_vm6 = vmand %vm1226_vm3, %vm855_vm0  ;;  %p8719_p2 = por %p8718_p13, %p8717_p5 }
  0x4b   : > { %8222 = vmatprep.subr.bf16.mxu1 %v8581_v29  ;;  %vm9048_vm7 = vmor %vm855_vm0, %vm856_vm4  ;;  %p8713_p0 = pneg %p8712_p11 }
  0x4c   : > { %7816 = vmatpush3.bf16.msra.mxu0 %v8554_v3  ;;  %vm9082_vm8 = vmand %vm1226_vm3, %vm1219_vm2 }
  0x4d   : > { %7817 = vmatprep.subr.bf16.mxu0 %v8555_v5  ;;  %vm9319_vm12 = vmor %vm1523_vm10, %vm1524_vm11  ;;  %p8720_p4 = pnand %p8719_p2, %p8713_p0 }
  0x4e   : > { %8224 = vmatpush3.bf16.msra.mxu1 %v8581_v29  ;;  %vm9883_vm15 = vmor %vm2533_vm13, %vm2534_vm14 }
  0x4f   : > { %8005 = vmatprep.subr.bf16.mxu1 %v9020_v30 }
  0x50   : > { %7818 = vmatpush3.bf16.msra.mxu0 %v8555_v5 }
  0x51   : > { %7819 = vmatprep.subr.bf16.mxu0 %v8556_v6 }
  0x54   : > { %7820 = vmatpush3.bf16.msra.mxu0 %v8556_v6 }
  0x55   : > { %7821 = vmatprep.subr.bf16.mxu0 %v8557_v7 }
  0x58   : > { %7822 = vmatpush3.bf16.msra.mxu0 %v8557_v7 }
  0x59   : > { %7823 = vmatprep.subr.bf16.mxu0 %v8558_v8 }
  0x5c   : > { %7824 = vmatpush3.bf16.msra.mxu0 %v8558_v8 }
  0x5d   : > { %7861 = vmatprep.subr.bf16.mxu0 %v8577_v26 }
  0x5f   : > { %7826 = vmatmul.mubr.bf16.vlgmr.msra.gmra.mrb[0].mxu0 %v8560_v9 }
  0x60   : > { %7829 = vmatprep.mubr.bf16.mxu0 %v8561_v10  ;;  %7862 = vmatpush3.bf16.msra.mxu0 %v8577_v26 }
  0x61   : > { %7863 = vmatprep.subr.bf16.mxu0 %v8578_v27 }
  0x64   : > { %7864 = vmatpush3.bf16.msra.mxu0 %v8578_v27 }
  0x67   : > { %7830 = vmatmul.mubr.bf16.gmra.mrb[4].mxu0 %v8562_v11  ;;  %v1235_v11 = vld [vmem:[#allocation2 + $0x14] sm:$0x1] }
  0x68   : > { %7833 = vmatprep.mubr.bf16.mxu0 %v8563_v12 }
  0x6f   : > { %7834 = vmatmul.mubr.bf16.gmra.mrb[8].mxu0 %v8564_v13 }
  0x70   : > { %7837 = vmatprep.mubr.bf16.mxu0 %v8565_v14 }
  0x77   : > { %7838 = vmatmul.mubr.bf16.gmra.mrb[12].mxu0 %v8566_v15 }
  0x78   : > { %7841 = vmatprep.mubr.bf16.mxu0 %v8567_v16 }
  0x7f   : > { %7842 = vmatmul.mubr.bf16.gmra.mrb[16].mxu0 %v8568_v17  ;;  %v1228_v17 = vld [vmem:[#allocation2 + $0x8] sm:$0x1] }
  0x80   : > { %7845 = vmatprep.mubr.bf16.mxu0 %v8569_v18 }
  0x87   : > { %7846 = vmatmul.mubr.bf16.gmra.mrb[20].mxu0 %v8570_v19 }
  0x88   : > { %7849 = vmatprep.mubr.bf16.mxu0 %v8571_v20 }
  0x8f   : > { %7850 = vmatmul.mubr.bf16.gmra.mrb[24].mxu0 %v8572_v21 }
  0x90   : > { %7853 = vmatprep.mubr.bf16.mxu0 %v8573_v22 }
  0x97   : > { %7854 = vmatmul.mubr.bf16.gmra.mrb[28].mxu0 %v8574_v23 }
  0x98   : > { %7857 = vmatprep.mubr.bf16.mxu0 %v8575_v24 }
  0x9f   : > { %7858 = vmatmul.mubr.bf16.gmra.mrb[32].mxu0 %v8576_v25 }
 0x132   : > { %v7827_v32 = vpop.f32.mrb[0].mxu0 }
 0x133   : > { %v577_v33 = vadd.f32 %v7827_v32, %v9026_v31  ;;  %v568_v34 = vpop.f32.mrb[1].mxu0 }
 0x134   : > { %v569_v35 = vadd.f32 %v9026_v31, %v568_v34  ;;  %v7828_v36 = vpop.f32.mrb[2].mxu0 }
 0x135   : > { %v713_v37 = vmax.f32 %v577_v33, 0.0  ;;  %v580_v38 = vadd.f32 %v7828_v36, %v9026_v31  ;;  %v571_v39 = vpop.f32.mrb[3].mxu0 }
 0x136   : > { %v711_v40 = vmax.f32 %v569_v35, 0.0  ;;  %v572_v41 = vadd.f32 %v9026_v31, %v571_v39  ;;  %v1245_v39 = vld [vmem:[#allocation2 + $0x24] sm:$0xf] }
 0x137   : > { %v7361_v42 = vpack.c.bf16 %v713_v37, %v713_v37  ;;  %v714_v43 = vmax.f32 %v580_v38, 0.0  ;;  %v8797_v38 = vmov 0  }
 0x138   : > { %v7359_v44 = vpack.c.bf16 %v711_v40, %v711_v40  ;;  %v712_v45 = vmax.f32 %v572_v41, 0.0 }
 0x139   : > { %v876_v46 = vshrl.u32 %v7361_v42, 16  ;;  %v7362_v47 = vpack.c.bf16 %v714_v43, %v714_v43  ;;  %v879_v48 = vshll.u32 %v7361_v42, 16 }
 0x13a   : > { %v859_v49 = vshrl.u32 %v7359_v44, 16  ;;  %v862_v50 = vshll.u32 %v7359_v44, 16  ;;  %v7360_v51 = vpack.c.bf16 %v712_v45, %v712_v45  ;;  %v7831_v52 = vpop.f32.mrb[4].mxu0 }
 0x13b   : > { %v878_v53 = vrot.slane %v876_v46, 7  ;;  %v884_v54 = vshrl.u32 %v7362_v47, 16  ;;  %v887_v55 = vshll.u32 %v7362_v47, 16  ;;  %v593_v56 = vadd.f32 %v7831_v52, %v9026_v31  ;;  %v584_v57 = vpop.f32.mrb[5].mxu0  ;;  %v1238_v46 = vld [vmem:[#allocation2 + $0x18] sm:$0xf] }
 0x13c   : > { %v861_v60 = vrot.slane %v859_v49, 7  ;;  %v867_v61 = vshrl.u32 %v7360_v51, 16  ;;  %v870_v62 = vshll.u32 %v7360_v51, 16  ;;  %v585_v63 = vadd.f32 %v9026_v31, %v584_v57  ;;  %v7832_v0 = vpop.f32.mrb[6].mxu0 }
 0x13d   : > { %v881_v1 = vor.u32 %v879_v48, %v878_v53  ;;  %v882_v2 = vrot.slane %v878_v53, 4  ;;  %v886_v5 = vrot.slane %v884_v54, 7  ;;  %v717_v6 = vmax.f32 %v593_v56, 0.0  ;;  %v587_v7 = vpop.f32.mrb[7].mxu0 }
 0x13e   : > { %v864_v8 = vor.u32 %v862_v50, %v861_v60  ;;  %v865_v9 = vrot.slane %v861_v60, 4  ;;  %v869_v12 = vrot.slane %v867_v61, 7  ;;  %v715_v13 = vmax.f32 %v585_v63, 0.0 }
 0x13f   : > { %v1232_v14 = vsel %vm9035_vm5, %v881_v1, %v1231_v59  ;;  %v889_v15 = vor.u32 %v887_v55, %v886_v5  ;;  %v891_v16 = vrot.slane %v886_v5, 4  ;;  %v7365_v18 = vpack.c.bf16 %v717_v6, %v717_v6 }
 0x140   : > { %1233 = vst [vmem:[#allocation2 + $0xc] sm:$0xf] %v1232_v14  ;;  %v1222_v19 = vsel %vm9035_vm5, %v864_v8, %v1221_v4  ;;  %v872_v20 = vor.u32 %v870_v62, %v869_v12  ;;  %v874_v21 = vrot.slane %v869_v12, 4  ;;  %v7363_v22 = vpack.c.bf16 %v715_v13, %v715_v13 }
 0x141   : > { %1223 = vst [vmem:[#allocation2] sm:$0xf] %v1222_v19  ;;  %v890_v23 = vsel %vm9048_vm7, %v882_v2, %v889_v15  ;;  %v1236_v24 = vsel %vm9042_vm6, %v891_v16, %v1235_v11  ;;  %v910_v25 = vshrl.u32 %v7365_v18, 16  ;;  %v913_v28 = vshll.u32 %v7365_v18, 16  ;;  %v1249_v11 = vld [vmem:[#allocation2 + $0x2c] sm:$0x1] }
 0x142   : > { %1234 = vst.msk [vmem:[#allocation2 + $0x10] sm:$0xf] %vm1218_vm1, %v890_v23  ;;  %1237 = vst [vmem:[#allocation2 + $0x14] sm:$0x1] %v1236_v24  ;;  %v873_v26 = vsel %vm9048_vm7, %v865_v9, %v872_v20  ;;  %v1229_v27 = vsel %vm9042_vm6, %v874_v21, %v1228_v17  ;;  %v893_v29 = vshrl.u32 %v7363_v22, 16  ;;  %v7835_v32 = vpop.f32.mrb[8].mxu0  ;;  %v596_v34 = vadd.f32 %v7832_v0, %v9026_v31 }
 0x143   : > { %1225 = vst.msk [vmem:[#allocation2 + $0x4] sm:$0xf] %vm1218_vm1, %v873_v26  ;;  %1230 = vst [vmem:[#allocation2 + $0x8] sm:$0x1] %v1229_v27  ;;  %v9066_v33 = vrot.slane %v910_v25, 7  ;;  %v588_v35 = vadd.f32 %v9026_v31, %v587_v7  ;;  %v609_v36 = vadd.f32 %v7835_v32, %v9026_v31  ;;  %v600_v37 = vpop.f32.mrb[9].mxu0 }
 0x144   : > { %1464 = vst.msk [vmem:[#allocation2 + $0x4] sm:$0xf] %vm1218_vm1, %v8797_v38  ;;  %v9073_v40 = vrot.slane %v893_v29, 7  ;;  %v896_v41 = vshll.u32 %v7363_v22, 16  ;;  %v601_v42 = vadd.f32 %v9026_v31, %v600_v37  ;;  %v7836_v43 = vpop.f32.mrb[10].mxu0  ;;  %v718_v47 = vmax.f32 %v596_v34, 0.0 }
 0x145   : > { %v915_v44 = vor.u32 %v913_v28, %v9066_v33  ;;  %v916_v45 = vrot.slane %v9066_v33, 4  ;;  %v716_v48 = vmax.f32 %v588_v35, 0.0  ;;  %v603_v49 = vpop.f32.mrb[11].mxu0  ;;  %v721_v52 = vmax.f32 %v609_v36, 0.0  ;;  %v1242_v20 = vld [vmem:[#allocation2 + $0x20] sm:$0x1] }
 0x146   : > { %v898_v50 = vor.u32 %v896_v41, %v9073_v40  ;;  %v899_v51 = vrot.slane %v9073_v40, 4  ;;  %v719_v53 = vmax.f32 %v601_v42, 0.0  ;;  %v7366_v57 = vpack.c.bf16 %v718_v47, %v718_v47  ;;  %v1259_v32 = vld [vmem:[#allocation2 + $0x3c] sm:$0xf]  ;;  %v1252_v47 = vld [vmem:[#allocation2 + $0x30] sm:$0xf] }
 0x147   : > { %v1353_v54 = vld [vmem:[#allocation2 + $0xc] sm:$0x1]  ;;  %v1246_v56 = vsel %vm9035_vm5, %v915_v44, %v1245_v39  ;;  %v7364_v59 = vpack.c.bf16 %v716_v48, %v716_v48  ;;  %v612_v60 = vadd.f32 %v7836_v43, %v9026_v31  ;;  %v7369_v0 = vpack.c.bf16 %v721_v52, %v721_v52 }
 0x148   : > { %v1354_v61 = vsel %vm9042_vm6, 0, %v1353_v54  ;;  %v1350_v62 = vld [vmem:[#allocation2] sm:$0x1]  ;;  %1247 = vst [vmem:[#allocation2 + $0x24] sm:$0xf] %v1246_v56  ;;  %v1239_v63 = vsel %vm9035_vm5, %v898_v50, %v1238_v46  ;;  %v7367_v1 = vpack.c.bf16 %v719_v53, %v719_v53  ;;  %v918_v5 = vshrl.u32 %v7366_v57, 16 }
 0x149   : > { %1355 = vst [vmem:[#allocation2 + $0xc] sm:$0x1] %v1354_v61  ;;  %v1351_v2 = vsel %vm9042_vm6, 0, %v1350_v62  ;;  %v1408_v4 = vld [vmem:[#allocation2 + $0x14] sm:$0x1]  ;;  %v921_v6 = vshll.u32 %v7366_v57, 16  ;;  %v604_v24 = vadd.f32 %v9026_v31, %v603_v49 }
 0x14a   : > { %1240 = vst [vmem:[#allocation2 + $0x18] sm:$0xf] %v1239_v63  ;;  %v901_v7 = vshrl.u32 %v7364_v59, 16  ;;  %1352 = vst [vmem:[#allocation2] sm:$0x1] %v1351_v2  ;;  %v1409_v8 = vsel %vm9082_vm8, 0, %v1408_v4 }
 0x14b   : > { %v1405_v9 = vld [vmem:[#allocation2 + $0x8] sm:$0x1]  ;;  %v904_v12 = vshll.u32 %v7364_v59, 16  ;;  %v944_v13 = vshrl.u32 %v7369_v0, 16  ;;  %v947_v14 = vshll.u32 %v7369_v0, 16  ;;  %v920_v16 = vrot.slane %v918_v5, 7 }
 0x14c   : > { %1463 = vst.msk [vmem:[#allocation2] sm:$0xf] %vm1218_vm1, %v8797_v38  ;;  %1410 = vst [vmem:[#allocation2 + $0x14] sm:$0x1] %v1409_v8  ;;  %v1406_v15 = vsel %vm9082_vm8, 0, %v1405_v9  ;;  %v903_v17 = vrot.slane %v901_v7, 7 }
 0x14d   : > { %v927_v18 = vshrl.u32 %v7367_v1, 16  ;;  %v7839_v19 = vpop.f32.mrb[12].mxu0  ;;  %1407 = vst [vmem:[#allocation2 + $0x8] sm:$0x1] %v1406_v15  ;;  %v9101_v21 = vrot.slane %v944_v13, 7  ;;  %v930_v22 = vshll.u32 %v7367_v1, 16  ;;  %v923_v26 = vor.u32 %v921_v6, %v920_v16 }
 0x14e   : > { %v722_v23 = vmax.f32 %v612_v60, 0.0  ;;  %v616_v25 = vpop.f32.mrb[13].mxu0  ;;  %1466 = vst.msk [vmem:[#allocation2 + $0x8] sm:$0x1] %vm1226_vm3, %v8797_v38  ;;  %v925_v27 = vrot.slane %v920_v16, 4  ;;  %v906_v28 = vor.u32 %v904_v12, %v903_v17  ;;  %v908_v29 = vrot.slane %v903_v17, 4 }
 0x14f   : > { %v7840_v34 = vpop.f32.mrb[14].mxu0  ;;  %v949_v35 = vor.u32 %v947_v14, %v9101_v21  ;;  %v950_v36 = vrot.slane %v9101_v21, 4  ;;  %v9108_v37 = vrot.slane %v927_v18, 7  ;;  %v1359_v41 = vld [vmem:[#allocation2 + $0x24] sm:$0x1]  ;;  %v924_v42 = vsel %vm9048_vm7, %v916_v45, %v923_v26 }
 0x150   : > { %v7370_v39 = vpack.c.bf16 %v722_v23, %v722_v23  ;;  %v619_v40 = vpop.f32.mrb[15].mxu0  ;;  %v1250_v43 = vsel %vm9042_vm6, %v925_v27, %v1249_v11  ;;  %v907_v44 = vsel %vm9048_vm7, %v899_v51, %v906_v28  ;;  %v1243_v46 = vsel %vm9042_vm6, %v908_v29, %v1242_v20  ;;  %1248 = vst.msk [vmem:[#allocation2 + $0x28] sm:$0xf] %vm1218_vm1, %v924_v42  ;;  %v1263_v4 = vld [vmem:[#allocation2 + $0x44] sm:$0x1] }
 0x151   : > { %v1360_v48 = vsel %vm9042_vm6, 0, %v1359_v41  ;;  %v1356_v49 = vld [vmem:[#allocation2 + $0x18] sm:$0x1]  ;;  %1251 = vst [vmem:[#allocation2 + $0x2c] sm:$0x1] %v1250_v43  ;;  %v1260_v33 = vsel %vm9035_vm5, %v949_v35, %v1259_v32  ;;  %v932_v45 = vor.u32 %v930_v22, %v9108_v37  ;;  %v933_v50 = vrot.slane %v9108_v37, 4 }
 0x152   : > { %1241 = vst.msk [vmem:[#allocation2 + $0x1c] sm:$0xf] %vm1218_vm1, %v907_v44  ;;  %1244 = vst [vmem:[#allocation2 + $0x20] sm:$0x1] %v1243_v46  ;;  %v1357_v51 = vsel %vm9042_vm6, 0, %v1356_v49  ;;  %v952_v52 = vshrl.u32 %v7370_v39, 16  ;;  %v625_v57 = vadd.f32 %v7839_v19, %v9026_v31  ;;  %v617_v59 = vadd.f32 %v9026_v31, %v616_v25 }
 0x153   : > { %1361 = vst [vmem:[#allocation2 + $0x24] sm:$0x1] %v1360_v48  ;;  %1261 = vst [vmem:[#allocation2 + $0x3c] sm:$0xf] %v1260_v33  ;;  %v955_v53 = vshll.u32 %v7370_v39, 16  ;;  %v720_v54 = vmax.f32 %v604_v24, 0.0  ;;  %v1253_v56 = vsel %vm9035_vm5, %v932_v45, %v1252_v47  ;;  %v628_v60 = vadd.f32 %v7840_v34, %v9026_v31 }
 0x154   : > { %1358 = vst [vmem:[#allocation2 + $0x18] sm:$0x1] %v1357_v51  ;;  %v7843_v61 = vpop.f32.mrb[16].mxu0  ;;  %1254 = vst [vmem:[#allocation2 + $0x30] sm:$0xf] %v1253_v56  ;;  %v954_v62 = vrot.slane %v952_v52, 7  ;;  %v620_v0 = vadd.f32 %v9026_v31, %v619_v40 }
 0x155   : > { %v7368_v63 = vpack.c.bf16 %v720_v54, %v720_v54  ;;  %v9137_v1 = vadd.f32 %v7843_v61, %v9026_v31  ;;  %v632_v2 = vpop.f32.mrb[17].mxu0  ;;  %v725_v5 = vmax.f32 %v625_v57, 0.0  ;;  %v723_v6 = vmax.f32 %v617_v59, 0.0  ;;  %v1256_v16 = vld [vmem:[#allocation2 + $0x38] sm:$0x1] }
 0x156   : > { %v726_v7 = vmax.f32 %v628_v60, 0.0  ;;  %v9140_v8 = vadd.f32 %v9026_v31, %v632_v2  ;;  %v9142_v9 = vpop.f32.mrb[18].mxu0  ;;  %v957_v11 = vor.u32 %v955_v53, %v954_v62  ;;  %v959_v12 = vrot.slane %v954_v62, 4  ;;  %v1273_v33 = vld [vmem:[#allocation2 + $0x54] sm:$0xf] }
 0x157   : > { %v935_v13 = vshrl.u32 %v7368_v63, 16  ;;  %v938_v14 = vshll.u32 %v7368_v63, 16  ;;  %v9144_v15 = vpop.f32.mrb[19].mxu0  ;;  %v7373_v17 = vpack.c.bf16 %v725_v5, %v725_v5  ;;  %v7371_v18 = vpack.c.bf16 %v723_v6, %v723_v6  ;;  %v1266_v54 = vld [vmem:[#allocation2 + $0x48] sm:$0xf] }
 0x158   : > { %v7374_v19 = vpack.c.bf16 %v726_v7, %v726_v7  ;;  %v724_v20 = vmax.f32 %v620_v0, 0.0  ;;  %v1414_v21 = vld [vmem:[#allocation2 + $0x2c] sm:$0x1]  ;;  %v958_v23 = vsel %vm9048_vm7, %v950_v36, %v957_v11  ;;  %v1264_v24 = vsel %vm9042_vm6, %v959_v12, %v1263_v4  ;;  %v1277_v61 = vld [vmem:[#allocation2 + $0x5c] sm:$0x1] }
 0x159   : > { %v1411_v22 = vld [vmem:[#allocation2 + $0x20] sm:$0x1]  ;;  %v937_v25 = vrot.slane %v935_v13, 7  ;;  %v729_v26 = vmax.f32 %v9137_v1, 0.0  ;;  %v1415_v27 = vsel %vm9082_vm8, 0, %v1414_v21  ;;  %v978_v32 = vshrl.u32 %v7373_v17, 16 }
 0x15a   : > { %v1412_v28 = vsel %vm9082_vm8, 0, %v1411_v22  ;;  %v1365_v29 = vld [vmem:[#allocation2 + $0x3c] sm:$0x1]  ;;  %1262 = vst.msk [vmem:[#allocation2 + $0x40] sm:$0xf] %vm1218_vm1, %v958_v23  ;;  %v981_v34 = vshll.u32 %v7373_v17, 16  ;;  %v7372_v57 = vpack.c.bf16 %v724_v20, %v724_v20  ;;  %v644_v21 = vadd.f32 %v9142_v9, %v9026_v31 }
 0x15b   : > { %1265 = vst [vmem:[#allocation2 + $0x44] sm:$0x1] %v1264_v24  ;;  %1416 = vst [vmem:[#allocation2 + $0x2c] sm:$0x1] %v1415_v27  ;;  %v1366_v35 = vsel %vm9042_vm6, 0, %v1365_v29  ;;  %v940_v36 = vor.u32 %v938_v14, %v937_v25  ;;  %v942_v39 = vrot.slane %v937_v25, 4  ;;  %v636_v22 = vadd.f32 %v9026_v31, %v9144_v15 }
 0x15c   : > { %1413 = vst [vmem:[#allocation2 + $0x20] sm:$0x1] %v1412_v28  ;;  %v961_v40 = vshrl.u32 %v7371_v18, 16  ;;  %1367 = vst [vmem:[#allocation2 + $0x3c] sm:$0x1] %v1366_v35  ;;  %v980_v42 = vrot.slane %v978_v32, 7 }
 0x15d   : > { %v1362_v41 = vld [vmem:[#allocation2 + $0x30] sm:$0x1]  ;;  %v964_v43 = vshll.u32 %v7371_v18, 16  ;;  %v986_v44 = vshrl.u32 %v7374_v19, 16  ;;  %v989_v46 = vshll.u32 %v7374_v19, 16  ;;  %v941_v48 = vsel %vm9048_vm7, %v933_v50, %v940_v36  ;;  %v7847_v51 = vpop.f32.mrb[20].mxu0 }
 0x15e   : > { %v1363_v47 = vsel %vm9042_vm6, 0, %v1362_v41  ;;  %v1257_v49 = vsel %vm9042_vm6, %v942_v39, %v1256_v16  ;;  %v963_v45 = vrot.slane %v961_v40, 7  ;;  %1255 = vst.msk [vmem:[#allocation2 + $0x34] sm:$0xf] %vm1218_vm1, %v941_v48  ;;  %v983_v52 = vor.u32 %v981_v34, %v980_v42  ;;  %v648_v59 = vpop.f32.mrb[21].mxu0 }
 0x15f   : > { %1364 = vst [vmem:[#allocation2 + $0x30] sm:$0x1] %v1363_v47  ;;  %1258 = vst [vmem:[#allocation2 + $0x38] sm:$0x1] %v1257_v49  ;;  %v984_v53 = vrot.slane %v980_v42, 4  ;;  %v988_v56 = vrot.slane %v986_v44, 7  ;;  %v7377_v50 = vpack.c.bf16 %v729_v26, %v729_v26  ;;  %v657_v27 = vadd.f32 %v7847_v51, %v9026_v31 }
 0x160   : > { %v966_v37 = vor.u32 %v964_v43, %v963_v45  ;;  %v967_v60 = vrot.slane %v963_v45, 4  ;;  %v727_v62 = vmax.f32 %v9140_v8, 0.0  ;;  %v7848_v63 = vpop.f32.mrb[22].mxu0  ;;  %v1274_v0 = vsel %vm9035_vm5, %v983_v52, %v1273_v33  ;;  %v1270_v18 = vld [vmem:[#allocation2 + $0x50] sm:$0x1]  ;;  %v9205_v44 = vld [vmem:[%s10950_s3] sm:$0xff]  }
 0x161   : > { %v991_v1 = vor.u32 %v989_v46, %v988_v56  ;;  %v993_v2 = vrot.slane %v988_v56, 4  ;;  %v969_v4 = vshrl.u32 %v7372_v57, 16  ;;  %v651_v5 = vpop.f32.mrb[23].mxu0  ;;  %1275 = vst [vmem:[#allocation2 + $0x54] sm:$0xf] %v1274_v0  ;;  %v972_v11 = vshll.u32 %v7372_v57, 16  ;;  %7897 = vmatprep.subr.bf16.mxu0 %v9205_v44 }
 0x162   : > { %v1420_v6 = vld [vmem:[#allocation2 + $0x44] sm:$0x1]  ;;  %v1267_v7 = vsel %vm9035_vm5, %v966_v37, %v1266_v54  ;;  %v1012_v12 = vshrl.u32 %v7377_v50, 16  ;;  %v1015_v13 = vshll.u32 %v7377_v50, 16  ;;  %v7375_v20 = vpack.c.bf16 %v727_v62, %v727_v62  ;;  %v1287_v26 = vld [vmem:[#allocation2 + $0x6c] sm:$0xf] }
 0x163   : > { %v1421_v14 = vsel %vm9082_vm8, 0, %v1420_v6  ;;  %1268 = vst [vmem:[#allocation2 + $0x48] sm:$0xf] %v1267_v7  ;;  %v992_v8 = vsel %vm9048_vm7, %v984_v53, %v991_v1  ;;  %v1278_v16 = vsel %vm9042_vm6, %v993_v2, %v1277_v61  ;;  %v971_v17 = vrot.slane %v969_v4, 7  ;;  %v8580_v23 = vld [vmem:[#allocation2 + $0x3c] sm:$0xff]   ;;  %v9187_v29 = vpop.f32.mrb[24].mxu0 }
 0x164   : > { %1422 = vst [vmem:[#allocation2 + $0x44] sm:$0x1] %v1421_v14  ;;  %1276 = vst.msk [vmem:[#allocation2 + $0x58] sm:$0xf] %vm1218_vm1, %v992_v8  ;;  %v9179_v19 = vrot.slane %v1012_v12, 7  ;;  %v649_v28 = vadd.f32 %v9026_v31, %v648_v59  ;;  %v995_v36 = vshrl.u32 %v7375_v20, 16  ;;  %7981 = vmatprep.mubr.msk.bf16.mxu1 %vm1974_vm9, %v8580_v23  ;;  %v9215_v54 = vadd.f32 %v7848_v63, %v9026_v31 }
 0x165   : > { %1279 = vst [vmem:[#allocation2 + $0x5c] sm:$0x1] %v1278_v16  ;;  %v974_v24 = vor.u32 %v972_v11, %v971_v17  ;;  %v976_v25 = vrot.slane %v971_v17, 4  ;;  %v998_v9 = vshll.u32 %v7375_v20, 16  ;;  %v9191_v39 = vpop.f32.mrb[25].mxu0  ;;  %v730_v42 = vmax.f32 %v644_v21, 0.0 }
 0x166   : > { %v1417_v32 = vld [vmem:[#allocation2 + $0x38] sm:$0x1]  ;;  %v1017_v34 = vor.u32 %v1015_v13, %v9179_v19  ;;  %v1018_v35 = vrot.slane %v9179_v19, 4  ;;  %v9200_v43 = vpop.f32.mrb[26].mxu0  ;;  %v9210_v47 = vrot.slane %v995_v36, 7  ;;  %v728_v48 = vmax.f32 %v636_v22, 0.0 }
 0x167   : > { %v1418_v15 = vsel %vm9082_vm8, 0, %v1417_v32  ;;  %v975_v40 = vsel %vm9048_vm7, %v967_v60, %v974_v24  ;;  %v1271_v41 = vsel %vm9042_vm6, %v976_v25, %v1270_v18  ;;  %v733_v49 = vmax.f32 %v657_v27, 0.0  ;;  %v9212_v33 = vpop.f32.mrb[27].mxu0  ;;  %v1280_v51 = vld [vmem:[#allocation2 + $0x60] sm:$0xf] }
 0x168   : > { %1419 = vst [vmem:[#allocation2 + $0x38] sm:$0x1] %v1418_v15  ;;  %1269 = vst.msk [vmem:[#allocation2 + $0x4c] sm:$0xf] %vm1218_vm1, %v975_v40  ;;  %v1288_v46 = vsel %vm9035_vm5, %v1017_v34, %v1287_v26  ;;  %v1371_v45 = vld [vmem:[#allocation2 + $0x54] sm:$0x1]  ;;  %v7378_v52 = vpack.c.bf16 %v730_v42, %v730_v42  ;;  %v9218_v56 = vadd.f32 %v9026_v31, %v651_v5 }
 0x169   : > { %1272 = vst [vmem:[#allocation2 + $0x50] sm:$0x1] %v1271_v41  ;;  %1289 = vst [vmem:[#allocation2 + $0x6c] sm:$0xf] %v1288_v46  ;;  %v731_v53 = vmax.f32 %v649_v28, 0.0  ;;  %v1372_v57 = vsel %vm9042_vm6, 0, %v1371_v45  ;;  %v1000_v37 = vor.u32 %v998_v9, %v9210_v47  ;;  %v7376_v61 = vpack.c.bf16 %v728_v48, %v728_v48 }
 0x16a   : > { %v1368_v59 = vld [vmem:[#allocation2 + $0x48] sm:$0x1]  ;;  %v1001_v60 = vrot.slane %v9210_v47, 4  ;;  %v9225_v50 = vld [vmem:[#allocation2] sm:$0xf]  ;;  %v1020_v0 = vshrl.u32 %v7378_v52, 16  ;;  %v7381_v2 = vpack.c.bf16 %v733_v49, %v733_v49 }
 0x16b   : > { %1373 = vst [vmem:[#allocation2 + $0x54] sm:$0x1] %v1372_v57  ;;  %v1369_v62 = vsel %vm9042_vm6, 0, %v1368_v59  ;;  %v1023_v1 = vshll.u32 %v7378_v52, 16  ;;  %v1281_v5 = vsel %vm9035_vm5, %v1000_v37, %v1280_v51  ;;  %v1291_v6 = vld [vmem:[#allocation2 + $0x74] sm:$0x1]  ;;  %v7379_v16 = vpack.c.bf16 %v731_v53, %v731_v53 }
 0x16c   : > { %v1426_v63 = vld [vmem:[#allocation2 + $0x5c] sm:$0x1]  ;;  %1370 = vst [vmem:[#allocation2 + $0x48] sm:$0x1] %v1369_v62  ;;  %v1003_v7 = vshrl.u32 %v7376_v61, 16  ;;  %v1006_v11 = vshll.u32 %v7376_v61, 16 }
 0x16d   : > { %v1427_v4 = vsel %vm9082_vm8, 0, %v1426_v63  ;;  %1282 = vst [vmem:[#allocation2 + $0x60] sm:$0xf] %v1281_v5  ;;  %v1022_v12 = vrot.slane %v1020_v0, 7  ;;  %v1284_v13 = vld [vmem:[#allocation2 + $0x68] sm:$0x1] }
 0x16e   : > { %1428 = vst [vmem:[#allocation2 + $0x5c] sm:$0x1] %v1427_v4  ;;  %v1046_v14 = vshrl.u32 %v7381_v2, 16  ;;  %v1049_v8 = vshll.u32 %v7381_v2, 16  ;;  %v9233_v17 = vpop.f32.mrb[28].mxu0  ;;  %v1005_v18 = vrot.slane %v1003_v7, 7 }
 0x16f   : > { %v1301_v20 = vld [vmem:[#allocation2 + $0x84] sm:$0xf]  ;;  %v734_v21 = vmax.f32 %v9215_v54, 0.0  ;;  %v732_v22 = vmax.f32 %v9218_v56, 0.0  ;;  %v1527_v23 = vshrl.u32 %v9225_v50, 16  ;;  %v9238_v24 = vpop.f32.mrb[29].mxu0  ;;  %v1025_v26 = vor.u32 %v1023_v1, %v1022_v12 }
 0x170   : > { %v1423_v25 = vld [vmem:[#allocation2 + $0x50] sm:$0x1]  ;;  %v1027_v27 = vrot.slane %v1022_v12, 4  ;;  %v9240_v28 = vrot.slane %v1046_v14, 7  ;;  %v1029_v32 = vshrl.u32 %v7379_v16, 16  ;;  %v9242_v34 = vpop.f32.mrb[30].mxu0  ;;  %v1008_v15 = vor.u32 %v1006_v11, %v1005_v18 }
 0x171   : > { %v1424_v36 = vsel %vm9082_vm8, 0, %v1423_v25  ;;  %v1377_v9 = vld [vmem:[#allocation2 + $0x6c] sm:$0x1]  ;;  %v1010_v40 = vrot.slane %v1005_v18, 4  ;;  %v1032_v41 = vshll.u32 %v7379_v16, 16  ;;  %v9246_v42 = vpop.f32.mrb[31].mxu0  ;;  %v1026_v47 = vsel %vm9048_vm7, %v1018_v35, %v1025_v26 }
 0x172   : > { %1425 = vst [vmem:[#allocation2 + $0x50] sm:$0x1] %v1424_v36  ;;  %v1378_v46 = vsel %vm9042_vm6, 0, %v1377_v9  ;;  %v1292_v48 = vsel %vm9042_vm6, %v1027_v27, %v1291_v6  ;;  %v1051_v49 = vor.u32 %v1049_v8, %v9240_v28  ;;  %v1294_v45 = vld [vmem:[#allocation2 + $0x78] sm:$0xf]  ;;  %v1009_v52 = vsel %vm9048_vm7, %v1001_v60, %v1008_v15  ;;  %v8589_v54 = vld [vmem:[%s10950_s3 + $0x48] sm:$0xff]  }
 0x173   : > { %v9257_v51 = vld [vmem:[#allocation2 + $0x4] sm:$0xf]  ;;  %1379 = vst [vmem:[#allocation2 + $0x6c] sm:$0x1] %v1378_v46  ;;  %1290 = vst.msk [vmem:[#allocation2 + $0x70] sm:$0xf] %vm1218_vm1, %v1026_v47  ;;  %v1285_v19 = vsel %vm9042_vm6, %v1010_v40, %v1284_v13  ;;  %v7382_v57 = vpack.c.bf16 %v734_v21, %v734_v21  ;;  %v7380_v59 = vpack.c.bf16 %v732_v22, %v732_v22 }
 0x174   : > { %1293 = vst [vmem:[#allocation2 + $0x74] sm:$0x1] %v1292_v48  ;;  %v1052_v35 = vrot.slane %v9240_v28, 4  ;;  %v9265_v53 = vrot.slane %v1029_v32, 7  ;;  %1283 = vst.msk [vmem:[#allocation2 + $0x64] sm:$0xf] %vm1218_vm1, %v1009_v52  ;;  %v1302_v56 = vsel %vm9035_vm5, %v1051_v49, %v1301_v20 }
 0x175   : > { %1286 = vst [vmem:[#allocation2 + $0x68] sm:$0x1] %v1285_v19  ;;  %v1507_v37 = vld [vmem:[#allocation2 + $0x8] sm:$0x1]  ;;  %v1529_v60 = vrot.slane %v1527_v23, 4  ;;  %v1530_v4 = vshll.u32 %v9225_v50, 16 }
 0x176   : > { %v9273_v61 = vld [vmem:[#allocation2 + $0xc] sm:$0xf]  ;;  %v9275_v62 = vld [vmem:[#allocation2 + $0x10] sm:$0xf]  ;;  %v1374_v0 = vld [vmem:[#allocation2 + $0x60] sm:$0x1]  ;;  %v1034_v1 = vor.u32 %v1032_v41, %v9265_v53 }
 0x177   : > { %v8583_v63 = vld [vmem:[#allocation2 + $0x48] sm:$0xff]   ;;  %1303 = vst [vmem:[#allocation2 + $0x84] sm:$0xf] %v1302_v56  ;;  %v1035_v2 = vrot.slane %v9265_v53, 4  ;;  %v1536_v5 = vshll.u32 %v9257_v51, 16  ;;  %v8584_v6 = vld [vmem:[#allocation2 + $0x54] sm:$0xff]  }
 0x178   : > { %v1375_v7 = vsel %vm9042_vm6, 0, %v1374_v0  ;;  %v1054_v11 = vshrl.u32 %v7382_v57, 16  ;;  %v1057_v12 = vshll.u32 %v7382_v57, 16  ;;  %v1037_v13 = vshrl.u32 %v7380_v59, 16  ;;  %7982 = vmatmul.mubr.msk.bf16.vlgmr.msra.gmra.mrb[0].mxu1 %vm1974_vm9, %v8583_v63  ;;  %v9284_v14 = vpop.f32.mrb[32].mxu0  ;;  %v8597_v36 = vld [vmem:[%s10950_s3 + $0x50] sm:$0xff]  }
 0x179   : > { %1376 = vst [vmem:[#allocation2 + $0x60] sm:$0x1] %v1375_v7  ;;  %v1295_v8 = vsel %vm9035_vm5, %v1034_v1, %v1294_v45  ;;  %v1305_v16 = vld [vmem:[#allocation2 + $0x8c] sm:$0x1]  ;;  %v1040_v18 = vshll.u32 %v7380_v59, 16  ;;  %v1532_v20 = vrot.slane %v1530_v4, 5  ;;  %8006 = vmatpush3.bf16.msra.mxu1 %v9020_v30  ;;  %7985 = vmatprep.mubr.msk.bf16.mxu1 %vm1974_vm9, %v8584_v6 }
 0x17a   : > { %v9288_v21 = vrot.slane %v1536_v5, 5  ;;  %v9292_v22 = vpop.f32.mrb[33].mxu0  ;;  %1296 = vst [vmem:[#allocation2 + $0x78] sm:$0xf] %v1295_v8  ;;  %v1056_v23 = vrot.slane %v1054_v11, 7  ;;  %v1039_v25 = vrot.slane %v1037_v13, 7  ;;  %8007 = vmatprep.subr.bf16.mxu1 %v8589_v54 }
 0x17b   : > { %v1540_v26 = vshrl.u32 %v9257_v51, 16  ;;  %v1546_v27 = vshll.u32 %v1507_v37, 16  ;;  %v9295_v32 = vpop.f32.mrb[34].mxu0  ;;  %v1298_v9 = vld [vmem:[#allocation2 + $0x80] sm:$0x1]  ;;  %v1533_v15 = vor.u32 %v1532_v20, %v1529_v60  ;;  %v1551_v30 = vshrl.u32 %v9273_v61, 16 }
 0x17c   : > { %v1554_v40 = vshll.u32 %v9273_v61, 16  ;;  %v1560_v41 = vshll.u32 %v9275_v62, 16  ;;  %v9303_v46 = vpop.f32.mrb[35].mxu0  ;;  %v1432_v47 = vld [vmem:[#allocation2 + $0x74] sm:$0x1]  ;;  %v1059_v48 = vor.u32 %v1057_v12, %v1056_v23  ;;  %v1061_v49 = vrot.slane %v1056_v23, 4 }
 0x17d   : > { %v1042_v45 = vor.u32 %v1040_v18, %v1039_v25  ;;  %v1044_v52 = vrot.slane %v1039_v25, 4  ;;  %v1508_v19 = vld [vmem:[#allocation2 + $0x14] sm:$0x1]  ;;  %v1433_v53 = vsel %vm9082_vm8, 0, %v1432_v47  ;;  %v1429_v56 = vld [vmem:[#allocation2 + $0x68] sm:$0x1]  ;;  %8008 = vmatpush3.bf16.msra.mxu1 %v8589_v54  ;;  %v665_v18 = vadd.f32 %v9026_v31, %v9191_v39 }
 0x17e   : > { %v1534_v57 = vrot.slane %v1533_v15, 4  ;;  %v1542_v59 = vrot.slane %v1540_v26, 4  ;;  %v1548_v37 = vrot.slane %v1546_v27, 5  ;;  %1434 = vst [vmem:[#allocation2 + $0x74] sm:$0x1] %v1433_v53  ;;  %v1430_v60 = vsel %vm9082_vm8, 0, %v1429_v56  ;;  %8041 = vmatprep.subr.bf16.mxu1 %v8597_v36 }
 0x17f   : > { %v1383_v61 = vld [vmem:[#allocation2 + $0x84] sm:$0x1]  ;;  %v1060_v63 = vsel %vm9048_vm7, %v1052_v35, %v1059_v48  ;;  %v1306_v0 = vsel %vm9042_vm6, %v1061_v49, %v1305_v16  ;;  %v1043_v1 = vsel %vm9048_vm7, %v1035_v2, %v1042_v45  ;;  %1431 = vst [vmem:[#allocation2 + $0x68] sm:$0x1] %v1430_v60  ;;  %v1299_v35 = vsel %vm9042_vm6, %v1044_v52, %v1298_v9  ;;  %v1475_v27 = vld [vmem:[#allocation2 + $0x18] sm:$0xf] }
 0x180   : > { %v1384_v28 = vsel %vm9042_vm6, 0, %v1383_v61  ;;  %1304 = vst.msk [vmem:[#allocation2 + $0x88] sm:$0xf] %vm1218_vm1, %v1060_v63  ;;  %1307 = vst [vmem:[#allocation2 + $0x8c] sm:$0x1] %v1306_v0  ;;  %v1539_v2 = vsel %vm9319_vm12, %v1534_v57, %v9288_v21  ;;  %v1543_v4 = vor.u32 %v1542_v59, %v9288_v21  ;;  %v1553_v5 = vrot.slane %v1551_v30, 4 }
 0x181   : > { %1297 = vst.msk [vmem:[#allocation2 + $0x7c] sm:$0xf] %vm1218_vm1, %v1043_v1  ;;  %1385 = vst [vmem:[#allocation2 + $0x84] sm:$0x1] %v1384_v28  ;;  %v1556_v6 = vrot.slane %v1554_v40, 5  ;;  %v1562_v7 = vrot.slane %v1560_v41, 5  ;;  %v673_v16 = vadd.f32 %v9187_v29, %v9026_v31  ;;  %v676_v26 = vadd.f32 %v9200_v43, %v9026_v31 }
 0x182   : > { %1300 = vst [vmem:[#allocation2 + $0x80] sm:$0x1] %v1299_v35  ;;  %v1564_v11 = vshrl.u32 %v9275_v62, 16  ;;  %v1380_v12 = vld [vmem:[#allocation2 + $0x78] sm:$0x1]  ;;  %v1544_v13 = vrot.slane %v1543_v4, 4  ;;  %v668_v43 = vadd.f32 %v9026_v31, %v9212_v33 }
 0x183   : > { %v1570_v8 = vshll.u32 %v1508_v19, 16  ;;  %v8585_v20 = vld [vmem:[#allocation2 + $0x60] sm:$0xff]   ;;  %v1381_v21 = vsel %vm9042_vm6, 0, %v1380_v12  ;;  %v1557_v23 = vor.u32 %v1556_v6, %v1553_v5  ;;  %v8586_v62 = vld [vmem:[#allocation2 + $0x6c] sm:$0xff]   ;;  %v737_v29 = vmax.f32 %v673_v16, 0.0 }
 0x184   : > { %v1566_v25 = vrot.slane %v1564_v11, 4  ;;  %1382 = vst [vmem:[#allocation2 + $0x78] sm:$0x1] %v1381_v21  ;;  %v1549_v36 = vsel %vm9319_vm12, %v1544_v13, %v1548_v37  ;;  %v735_v15 = vmax.f32 %v665_v18, 0.0  ;;  %7986 = vmatmul.mubr.msk.bf16.gmra.mrb[4].mxu1 %vm1974_vm9, %v8585_v20  ;;  %v738_v41 = vmax.f32 %v676_v26, 0.0  ;;  %v8596_v11 = vld [vmem:[%s10950_s3 + $0x8] sm:$0xff]  }
 0x185   : > { %v1572_v9 = vrot.slane %v1570_v8, 5  ;;  %v6916_v39 = vcombine.low %v1539_v2, %v1549_v36  ;;  %v1558_v30 = vrot.slane %v1557_v23, 4  ;;  %7989 = vmatprep.mubr.msk.bf16.mxu1 %vm1974_vm9, %v8586_v62  ;;  %v7385_v47 = vpack.c.bf16 %v737_v29, %v737_v29  ;;  %v1315_v63 = vld [vmem:[#allocation2 + $0x9c] sm:$0xf]  ;;  %v1308_v1 = vld [vmem:[#allocation2 + $0x90] sm:$0xf] }
 0x186   : > { %v1567_v40 = vor.u32 %v1566_v25, %v1562_v7  ;;  %v7383_v48 = vpack.c.bf16 %v735_v15, %v735_v15  ;;  %v1575_v49 = vshrl.u32 %v1475_v27, 16  ;;  %v7386_v53 = vpack.c.bf16 %v738_v41, %v738_v41  ;;  %v1476_v35 = vld [vmem:[#allocation2 + $0x1c] sm:$0xf]  ;;  %v1509_v36 = vld [vmem:[#allocation2 + $0x20] sm:$0x1] }
 0x187   : > { %v1438_v45 = vld [vmem:[#allocation2 + $0x8c] sm:$0x1]  ;;  %7865 = vmatprep.mubr.msk.bf16.mxu0 %vm1974_vm9, %v6916_v39  ;;  %v1563_v52 = vsel %vm9319_vm12, %v1558_v30, %v1562_v7  ;;  %v1578_v56 = vshll.u32 %v1475_v27, 16  ;;  %v1080_v37 = vshrl.u32 %v7385_v47, 16  ;;  %v1083_v60 = vshll.u32 %v7385_v47, 16 }
 0x188   : > { %v1568_v19 = vrot.slane %v1567_v40, 4  ;;  %v1439_v57 = vsel %vm9082_vm8, 0, %v1438_v45  ;;  %v1063_v61 = vshrl.u32 %v7383_v48, 16  ;;  %v1066_v0 = vshll.u32 %v7383_v48, 16  ;;  %v1319_v7 = vld [vmem:[#allocation2 + $0xa4] sm:$0x1] }
 0x189   : > { %v1435_v59 = vld [vmem:[#allocation2 + $0x80] sm:$0x1]  ;;  %1440 = vst [vmem:[#allocation2 + $0x8c] sm:$0x1] %v1439_v57  ;;  %v1088_v28 = vshrl.u32 %v7386_v53, 16  ;;  %v1082_v4 = vrot.slane %v1080_v37, 7 }
 0x18a   : > { %v1436_v31 = vsel %vm9082_vm8, 0, %v1435_v59  ;;  %v1573_v33 = vsel %vm9319_vm12, %v1568_v19, %v1572_v9  ;;  %v9357_v5 = vrot.slane %v1063_v61, 7  ;;  %v1091_v6 = vshll.u32 %v7386_v53, 16  ;;  %v8588_v29 = vld [vmem:[#allocation2 + $0x84] sm:$0xff]   ;;  %v1510_v57 = vld [vmem:[#allocation2 + $0x2c] sm:$0x1] }
 0x18b   : > { %1437 = vst [vmem:[#allocation2 + $0x80] sm:$0x1] %v1436_v31  ;;  %v6917_v2 = vcombine.low %v1563_v52, %v1573_v33  ;;  %v1090_v12 = vrot.slane %v1088_v28, 7  ;;  %v736_v13 = vmax.f32 %v668_v43, 0.0  ;;  %v1577_v8 = vrot.slane %v1575_v49, 4  ;;  %v8587_v25 = vld [vmem:[#allocation2 + $0x78] sm:$0xff]  }
 0x18c   : > { %v1580_v16 = vrot.slane %v1578_v56, 5  ;;  %v1085_v18 = vor.u32 %v1083_v60, %v1082_v4  ;;  %v1086_v20 = vrot.slane %v1082_v4, 4  ;;  %v1068_v21 = vor.u32 %v1066_v0, %v9357_v5  ;;  %v1477_v41 = vld [vmem:[#allocation2 + $0x24] sm:$0xf]  ;;  %v1478_v47 = vld [vmem:[#allocation2 + $0x28] sm:$0xf]  ;;  %7990 = vmatmul.mubr.msk.bf16.gmra.mrb[8].mxu1 %vm1974_vm9, %v8587_v25 }
 0x18d   : > { %7866 = vmatmul.mubr.msk.bf16.vlgmr.msra.gmra.mrb[36].mxu0 %vm1974_vm9, %v6917_v2  ;;  %v1069_v23 = vrot.slane %v9357_v5, 4  ;;  %v1093_v26 = vor.u32 %v1091_v6, %v1090_v12  ;;  %v1095_v27 = vrot.slane %v1090_v12, 4  ;;  %v7384_v62 = vpack.c.bf16 %v736_v13, %v736_v13  ;;  %7993 = vmatprep.mubr.msk.bf16.mxu1 %vm1974_vm9, %v8588_v29  ;;  %v1312_v61 = vld [vmem:[#allocation2 + $0x98] sm:$0x1] }
 0x18e   : > { %v1581_v9 = vor.u32 %v1580_v16, %v1577_v8  ;;  %7898 = vmatpush3.bf16.msra.mxu0 %v9205_v44  ;;  %v1316_v15 = vsel %vm9035_vm5, %v1085_v18, %v1315_v63  ;;  %v1309_v39 = vsel %vm9035_vm5, %v1068_v21, %v1308_v1  ;;  %v1584_v30 = vshll.u32 %v1476_v35, 16  ;;  %v9386_v8 = vld [vmem:[%s10949_s2] ss:$0 sm:$0xff]  ;;  %v1479_v18 = vld [vmem:[#allocation2 + $0x30] sm:$0xf] }
 0x18f   : > { %v1588_v40 = vshrl.u32 %v1476_v35, 16  ;;  %7899 = vmatprep.subr.bf16.mxu0 %v8596_v11  ;;  %1317 = vst [vmem:[#allocation2 + $0x9c] sm:$0xf] %v1316_v15  ;;  %1310 = vst [vmem:[#allocation2 + $0x90] sm:$0xf] %v1309_v39  ;;  %v1094_v48 = vsel %vm9048_vm7, %v1086_v20, %v1093_v26  ;;  %v1320_v44 = vsel %vm9042_vm6, %v1095_v27, %v1319_v7  ;;  %v1071_v43 = vshrl.u32 %v7384_v62, 16 }
 0x190   : > { %v1074_v49 = vshll.u32 %v7384_v62, 16  ;;  %1318 = vst.msk [vmem:[#allocation2 + $0xa0] sm:$0xf] %vm1218_vm1, %v1094_v48  ;;  %1321 = vst [vmem:[#allocation2 + $0xa4] sm:$0x1] %v1320_v44  ;;  %v1582_v45 = vrot.slane %v1581_v9, 4  ;;  %v689_v16 = vadd.f32 %v9386_v8, %v9233_v17  ;;  %v681_v27 = vadd.f32 %v9386_v8, %v9238_v24 }
 0x191   : > { %v1586_v52 = vrot.slane %v1584_v30, 5  ;;  %v1590_v19 = vrot.slane %v1588_v40, 4  ;;  %v1594_v53 = vshll.u32 %v1509_v36, 16  ;;  %v1073_v56 = vrot.slane %v1071_v43, 7 }
 0x192   : > { %v1599_v59 = vshrl.u32 %v1477_v41, 16  ;;  %v1602_v37 = vshll.u32 %v1477_v41, 16  ;;  %v1608_v60 = vshll.u32 %v1478_v47, 16  ;;  %7900 = vmatpush3.bf16.msra.mxu0 %v8596_v11  ;;  %v1612_v0 = vshrl.u32 %v1478_v47, 16 }
 0x193   : > { %v1587_v31 = vsel %vm9319_vm12, %v1582_v45, %v1586_v52  ;;  %v1591_v33 = vor.u32 %v1590_v19, %v1586_v52  ;;  %v1596_v63 = vrot.slane %v1594_v53, 5  ;;  %v1076_v1 = vor.u32 %v1074_v49, %v1073_v56  ;;  %v1480_v45 = vld [vmem:[#allocation2 + $0x34] sm:$0xf] }
 0x194   : > { %v1078_v28 = vrot.slane %v1073_v56, 4  ;;  %v1601_v35 = vrot.slane %v1599_v59, 4  ;;  %v1604_v2 = vrot.slane %v1602_v37, 5  ;;  %v1610_v5 = vrot.slane %v1608_v60, 5 }
 0x195   : > { %v1592_v4 = vrot.slane %v1591_v33, 4  ;;  %v1614_v6 = vrot.slane %v1612_v0, 4  ;;  %v1618_v7 = vshll.u32 %v1510_v57, 16  ;;  %v1077_v12 = vsel %vm9048_vm7, %v1069_v23, %v1076_v1 }
 0x196   : > { %v1313_v11 = vsel %vm9042_vm6, %v1078_v28, %v1312_v61  ;;  %v1605_v13 = vor.u32 %v1604_v2, %v1601_v35  ;;  %v1389_v20 = vld [vmem:[#allocation2 + $0x9c] sm:$0x1]  ;;  %v1386_v21 = vld [vmem:[#allocation2 + $0x90] sm:$0x1]  ;;  %1311 = vst.msk [vmem:[#allocation2 + $0x94] sm:$0xf] %vm1218_vm1, %v1077_v12  ;;  %v692_v41 = vadd.f32 %v9386_v8, %v9242_v34  ;;  %v684_v47 = vadd.f32 %v9386_v8, %v9246_v42 }
 0x197   : > { %1314 = vst [vmem:[#allocation2 + $0x98] sm:$0x1] %v1313_v11  ;;  %v1597_v23 = vsel %vm9319_vm12, %v1592_v4, %v1596_v63  ;;  %v1615_v25 = vor.u32 %v1614_v6, %v1610_v5  ;;  %v1620_v26 = vrot.slane %v1618_v7, 5  ;;  %v1390_v62 = vsel %vm9042_vm6, 0, %v1389_v20  ;;  %v1444_v36 = vld [vmem:[#allocation2 + $0xa4] sm:$0x1] }
 0x198   : > { %v1387_v17 = vsel %vm9042_vm6, 0, %v1386_v21  ;;  %v6918_v9 = vcombine.low %v1587_v31, %v1597_v23  ;;  %v1606_v29 = vrot.slane %v1605_v13, 4  ;;  %1391 = vst [vmem:[#allocation2 + $0x9c] sm:$0x1] %v1390_v62  ;;  %v1445_v15 = vsel %vm9082_vm8, 0, %v1444_v36 }
 0x199   : > { %1388 = vst [vmem:[#allocation2 + $0x90] sm:$0x1] %v1387_v17  ;;  %v1616_v39 = vrot.slane %v1615_v25, 4  ;;  %v741_v30 = vmax.f32 %v689_v16, 0.0  ;;  %v739_v40 = vmax.f32 %v681_v27, 0.0  ;;  %v1623_v48 = vshrl.u32 %v1479_v18, 16 }
 0x19a   : > { %1446 = vst [vmem:[#allocation2 + $0xa4] sm:$0x1] %v1445_v15  ;;  %7869 = vmatprep.mubr.msk.bf16.mxu0 %vm1974_vm9, %v6918_v9  ;;  %v1611_v24 = vsel %vm9319_vm12, %v1606_v29, %v1610_v5  ;;  %v1626_v52 = vshll.u32 %v1479_v18, 16  ;;  %v742_v53 = vmax.f32 %v692_v41, 0.0  ;;  %v740_v56 = vmax.f32 %v684_v47, 0.0 }
 0x19b   : > { %v1621_v44 = vsel %vm9319_vm12, %v1616_v39, %v1620_v26  ;;  %v7389_v43 = vpack.c.bf16 %v741_v30, %v741_v30  ;;  %v7387_v49 = vpack.c.bf16 %v739_v40, %v739_v40  ;;  %v1625_v57 = vrot.slane %v1623_v48, 4  ;;  %v1329_v42 = vld [vmem:[#allocation2 + $0xb4] sm:$0xf]  ;;  %v1322_v31 = vld [vmem:[#allocation2 + $0xa8] sm:$0xf] }
 0x19c   : > { %v6919_v19 = vcombine.low %v1611_v24, %v1621_v44  ;;  %v7390_v33 = vpack.c.bf16 %v742_v53, %v742_v53  ;;  %v7388_v63 = vpack.c.bf16 %v740_v56, %v740_v56  ;;  %v1628_v0 = vrot.slane %v1626_v52, 5  ;;  %v1511_v4 = vld [vmem:[#allocation2 + $0x38] sm:$0x1]  ;;  %v1481_v62 = vld [vmem:[#allocation2 + $0x3c] sm:$0xf] }
 0x19d   : > { %v1114_v59 = vshrl.u32 %v7389_v43, 16  ;;  %v1117_v37 = vshll.u32 %v7389_v43, 16  ;;  %v1097_v60 = vshrl.u32 %v7387_v49, 16  ;;  %v1100_v61 = vshll.u32 %v7387_v49, 16  ;;  %v1333_v29 = vld [vmem:[#allocation2 + $0xbc] sm:$0x1] }
 0x19e   : > { %v1441_v34 = vld [vmem:[#allocation2 + $0x98] sm:$0x1]  ;;  %7870 = vmatmul.mubr.msk.bf16.gmra.mrb[40].mxu0 %vm1974_vm9, %v6919_v19  ;;  %v1632_v1 = vshll.u32 %v1480_v45, 16  ;;  %v1636_v5 = vshrl.u32 %v1480_v45, 16  ;;  %v1122_v6 = vshrl.u32 %v7390_v33, 16  ;;  %v1125_v7 = vshll.u32 %v7390_v33, 16 }
 0x19f   : > { %v1442_v28 = vsel %vm9082_vm8, 0, %v1441_v34  ;;  %v1116_v35 = vrot.slane %v1114_v59, 7  ;;  %v1099_v2 = vrot.slane %v1097_v60, 7  ;;  %v1105_v12 = vshrl.u32 %v7388_v63, 16  ;;  %v8591_v17 = vld [vmem:[#allocation2 + $0x9c] sm:$0xff]  }
 0x1a0   : > { %1443 = vst [vmem:[#allocation2 + $0x98] sm:$0x1] %v1442_v28  ;;  %v1108_v11 = vshll.u32 %v7388_v63, 16  ;;  %v8590_v21 = vld [vmem:[#allocation2 + $0x90] sm:$0xff]   ;;  %v1124_v23 = vrot.slane %v1122_v6, 7  ;;  %v1629_v26 = vor.u32 %v1628_v0, %v1625_v57  ;;  %v1634_v27 = vrot.slane %v1632_v1, 5 }
 0x1a1   : > { %v1119_v13 = vor.u32 %v1117_v37, %v1116_v35  ;;  %v1120_v16 = vrot.slane %v1116_v35, 4  ;;  %v1102_v18 = vor.u32 %v1100_v61, %v1099_v2  ;;  %v1103_v20 = vrot.slane %v1099_v2, 4  ;;  %v1326_v15 = vld [vmem:[#allocation2 + $0xb0] sm:$0x1]  ;;  %7994 = vmatmul.mubr.msk.bf16.gmra.mrb[12].mxu1 %vm1974_vm9, %v8590_v21  ;;  %v1482_v48 = vld [vmem:[#allocation2 + $0x40] sm:$0xf] }
 0x1a2   : > { %v1107_v25 = vrot.slane %v1105_v12, 7  ;;  %v1638_v39 = vrot.slane %v1636_v5, 4  ;;  %v1642_v30 = vshll.u32 %v1511_v4, 16  ;;  %v1127_v40 = vor.u32 %v1125_v7, %v1124_v23  ;;  %7997 = vmatprep.mubr.msk.bf16.mxu1 %vm1974_vm9, %v8591_v17  ;;  %v1512_v45 = vld [vmem:[#allocation2 + $0x44] sm:$0x1] }
 0x1a3   : > { %v1330_v36 = vsel %vm9035_vm5, %v1119_v13, %v1329_v42  ;;  %v1323_v9 = vsel %vm9035_vm5, %v1102_v18, %v1322_v31  ;;  %v1129_v24 = vrot.slane %v1124_v23, 4  ;;  %v1630_v44 = vrot.slane %v1629_v26, 4  ;;  %v9439_v6 = vld [vmem:[#allocation2 + $0x48] sm:$0xf] }
 0x1a4   : > { %1331 = vst [vmem:[#allocation2 + $0xb4] sm:$0xf] %v1330_v36  ;;  %1324 = vst [vmem:[#allocation2 + $0xa8] sm:$0xf] %v1323_v9  ;;  %v1110_v41 = vor.u32 %v1108_v11, %v1107_v25  ;;  %v1112_v47 = vrot.slane %v1107_v25, 4  ;;  %v1639_v43 = vor.u32 %v1638_v39, %v1634_v27  ;;  %v1644_v49 = vrot.slane %v1642_v30, 5 }
 0x1a5   : > { %v1647_v52 = vshrl.u32 %v1481_v62, 16  ;;  %v1128_v19 = vsel %vm9048_vm7, %v1120_v16, %v1127_v40  ;;  %v1334_v53 = vsel %vm9042_vm6, %v1129_v24, %v1333_v29  ;;  %v1635_v59 = vsel %vm9319_vm12, %v1630_v44, %v1634_v27  ;;  %v9464_v44 = vld [vmem:[%s10950_s3 + $0x20] sm:$0xff]  }
 0x1a6   : > { %v1111_v56 = vsel %vm9048_vm7, %v1103_v20, %v1110_v41  ;;  %v1327_v57 = vsel %vm9042_vm6, %v1112_v47, %v1326_v15  ;;  %1332 = vst.msk [vmem:[#allocation2 + $0xb8] sm:$0xf] %vm1218_vm1, %v1128_v19  ;;  %1335 = vst [vmem:[#allocation2 + $0xbc] sm:$0x1] %v1334_v53  ;;  %v1640_v37 = vrot.slane %v1639_v43, 4  ;;  %v1650_v61 = vshll.u32 %v1481_v62, 16  ;;  %7933 = vmatprep.subr.bf16.mxu0 %v9464_v44 }
 0x1a7   : > { %1325 = vst.msk [vmem:[#allocation2 + $0xac] sm:$0xf] %vm1218_vm1, %v1111_v56  ;;  %1328 = vst [vmem:[#allocation2 + $0xb0] sm:$0x1] %v1327_v57  ;;  %v1649_v60 = vrot.slane %v1647_v52, 4  ;;  %v1656_v34 = vshll.u32 %v1482_v48, 16  ;;  %v705_v33 = vadd.f32 %v9386_v8, %v9284_v14  ;;  %v697_v1 = vadd.f32 %v9386_v8, %v9292_v22 }
 0x1a8   : > { %v1660_v42 = vshrl.u32 %v1482_v48, 16  ;;  %v1666_v31 = vshll.u32 %v1512_v45, 16  ;;  %v1645_v63 = vsel %vm9319_vm12, %v1640_v37, %v1644_v49  ;;  %v1652_v0 = vrot.slane %v1650_v61, 5  ;;  %v1343_v41 = vld [vmem:[#allocation2 + $0xcc] sm:$0xf] }
 0x1a9   : > { %v708_v28 = vadd.f32 %v9386_v8, %v9295_v32  ;;  %v6920_v35 = vcombine.low %v1635_v59, %v1645_v63  ;;  %v1658_v2 = vrot.slane %v1656_v34, 5  ;;  %v745_v14 = vmax.f32 %v705_v33, 0.0  ;;  %v1336_v45 = vld [vmem:[#allocation2 + $0xc0] sm:$0xf]  ;;  %v1347_v56 = vld [vmem:[#allocation2 + $0xd4] sm:$0x1] }
 0x1aa   : > { %v1662_v4 = vrot.slane %v1660_v42, 4  ;;  %v1668_v5 = vrot.slane %v1666_v31, 5  ;;  %v1653_v11 = vor.u32 %v1652_v0, %v1649_v60  ;;  %v743_v13 = vmax.f32 %v697_v1, 0.0  ;;  %v1513_v59 = vld [vmem:[#allocation2 + $0x50] sm:$0x1] }
 0x1ab   : > { %v1395_v7 = vld [vmem:[#allocation2 + $0xb4] sm:$0x1]  ;;  %v1392_v12 = vld [vmem:[#allocation2 + $0xa8] sm:$0x1]  ;;  %v700_v16 = vadd.f32 %v9386_v8, %v9303_v46  ;;  %7873 = vmatprep.mubr.msk.bf16.mxu0 %vm1974_vm9, %v6920_v35  ;;  %v746_v20 = vmax.f32 %v708_v28, 0.0  ;;  %v7393_v23 = vpack.c.bf16 %v745_v14, %v745_v14  ;;  %v1671_v36 = vshrl.u32 %v9439_v6, 16 }
 0x1ac   : > { %v1396_v22 = vsel %vm9042_vm6, 0, %v1395_v7  ;;  %v1393_v32 = vsel %vm9042_vm6, 0, %v1392_v12  ;;  %v1663_v18 = vor.u32 %v1662_v4, %v1658_v2  ;;  %v1654_v21 = vrot.slane %v1653_v11, 4  ;;  %v9448_v8 = vld [vmem:[#allocation2 + $0x4c] sm:$0xf] }
 0x1ad   : > { %1397 = vst [vmem:[#allocation2 + $0xb4] sm:$0x1] %v1396_v22  ;;  %1394 = vst [vmem:[#allocation2 + $0xa8] sm:$0x1] %v1393_v32  ;;  %v7391_v25 = vpack.c.bf16 %v743_v13, %v743_v13  ;;  %v744_v26 = vmax.f32 %v700_v16, 0.0  ;;  %v7394_v46 = vpack.c.bf16 %v746_v20, %v746_v20  ;;  %v6950_v9 = vcombine.low %v9225_v50, %v9257_v51  ;;  %v8601_v50 = vld [vmem:[%s10950_s3 + $0x58] sm:$0xff]  }
 0x1ae   : > { %v1450_v27 = vld [vmem:[#allocation2 + $0xbc] sm:$0x1]  ;;  %v1447_v62 = vld [vmem:[#allocation2 + $0xb0] sm:$0x1]  ;;  %v1664_v17 = vrot.slane %v1663_v18, 4  ;;  %v1659_v39 = vsel %vm9319_vm12, %v1654_v21, %v1658_v2  ;;  %v1148_v30 = vshrl.u32 %v7393_v23, 16 }
 0x1af   : > { %v1451_v29 = vsel %vm9082_vm8, 0, %v1450_v27  ;;  %v1448_v15 = vsel %vm9082_vm8, 0, %v1447_v62  ;;  %v1151_v24 = vshll.u32 %v7393_v23, 16  ;;  %v1131_v47 = vshrl.u32 %v7391_v25, 16  ;;  %v9470_v33 = vld [vmem:[#allocation2 + $0x54] sm:$0xf] }
 0x1b0   : > { %1452 = vst [vmem:[#allocation2 + $0xbc] sm:$0x1] %v1451_v29  ;;  %1449 = vst [vmem:[#allocation2 + $0xb0] sm:$0x1] %v1448_v15  ;;  %v1669_v40 = vsel %vm9319_vm12, %v1664_v17, %v1668_v5  ;;  %v1134_v48 = vshll.u32 %v7391_v25, 16  ;;  %v1150_v49 = vrot.slane %v1148_v30, 7  ;;  %v7392_v57 = vpack.c.bf16 %v744_v26, %v744_v26 }
 0x1b1   : > { %v6921_v43 = vcombine.low %v1659_v39, %v1669_v40  ;;  %v1156_v52 = vshrl.u32 %v7394_v46, 16  ;;  %v1159_v19 = vshll.u32 %v7394_v46, 16  ;;  %v1133_v53 = vrot.slane %v1131_v47, 7  ;;  %v9477_v22 = vld [vmem:[#allocation2 + $0x58] sm:$0xf] }
 0x1b2   : > { %v1673_v37 = vrot.slane %v1671_v36, 4  ;;  %v1674_v60 = vshll.u32 %v9439_v6, 16  ;;  %v1153_v61 = vor.u32 %v1151_v24, %v1150_v49  ;;  %v1154_v34 = vrot.slane %v1150_v49, 4  ;;  %v1340_v20 = vld [vmem:[#allocation2 + $0xc8] sm:$0x1] }
 0x1b3   : > { %7874 = vmatmul.mubr.msk.bf16.gmra.mrb[44].mxu0 %vm1974_vm9, %v6921_v43  ;;  %v1158_v42 = vrot.slane %v1156_v52, 7  ;;  %v1680_v31 = vshll.u32 %v9448_v8, 16  ;;  %v1136_v63 = vor.u32 %v1134_v48, %v1133_v53  ;;  %v1137_v0 = vrot.slane %v1133_v53, 4  ;;  %v1514_v27 = vld [vmem:[#allocation2 + $0x5c] sm:$0x1] }
 0x1b4   : > { %v1139_v1 = vshrl.u32 %v7392_v57, 16  ;;  %v1142_v28 = vshll.u32 %v7392_v57, 16  ;;  %v8592_v35 = vld [vmem:[#allocation2 + $0xa8] sm:$0xff]   ;;  %v1344_v2 = vsel %vm9035_vm5, %v1153_v61, %v1343_v41  ;;  %v1676_v7 = vrot.slane %v1674_v60, 5  ;;  %v8593_v12 = vld [vmem:[#allocation2 + $0xb4] sm:$0xff]  }
 0x1b5   : > { %v1161_v4 = vor.u32 %v1159_v19, %v1158_v42  ;;  %v1163_v5 = vrot.slane %v1158_v42, 4  ;;  %1345 = vst [vmem:[#allocation2 + $0xcc] sm:$0xf] %v1344_v2  ;;  %v1337_v11 = vsel %vm9035_vm5, %v1136_v63, %v1336_v45  ;;  %v1682_v13 = vrot.slane %v1680_v31, 5  ;;  %7998 = vmatmul.mubr.msk.bf16.gmra.mrb[16].mxu1 %vm1974_vm9, %v8592_v35  ;;  %v9491_v15 = vld [vmem:[#allocation2 + $0x60] sm:$0xf] }
 0x1b6   : > { %v1141_v14 = vrot.slane %v1139_v1, 7  ;;  %v1684_v16 = vshrl.u32 %v9448_v8, 16  ;;  %1338 = vst [vmem:[#allocation2 + $0xc0] sm:$0xf] %v1337_v11  ;;  %v1677_v21 = vor.u32 %v1676_v7, %v1673_v37  ;;  %v1690_v23 = vshll.u32 %v1513_v59, 16  ;;  %8001 = vmatprep.mubr.msk.bf16.mxu1 %vm1974_vm9, %v8593_v12 }
 0x1b7   : > { %v1162_v32 = vsel %vm9048_vm7, %v1154_v34, %v1161_v4  ;;  %v1348_v18 = vsel %vm9042_vm6, %v1163_v5, %v1347_v56  ;;  %v1695_v62 = vshrl.u32 %v9470_v33, 16  ;;  %v1698_v36 = vshll.u32 %v9470_v33, 16  ;;  %v9497_v41 = vld [vmem:[#allocation2 + $0x64] sm:$0xf]  ;;  %v1515_v52 = vld [vmem:[#allocation2 + $0x68] sm:$0x1] }
 0x1b8   : > { %1346 = vst.msk [vmem:[#allocation2 + $0xd0] sm:$0xf] %vm1218_vm1, %v1162_v32  ;;  %1349 = vst [vmem:[#allocation2 + $0xd4] sm:$0x1] %v1348_v18  ;;  %v1144_v58 = vor.u32 %v1142_v28, %v1141_v14  ;;  %v1146_v25 = vrot.slane %v1141_v14, 4  ;;  %v1686_v26 = vrot.slane %v1684_v16, 4 }
 0x1b9   : > { %1469 = vst.msk [vmem:[#allocation2 + $0xd0] sm:$0xf] %vm1218_vm1, %v8797_v38  ;;  %v1678_v17 = vrot.slane %v1677_v21, 4  ;;  %v1692_v46 = vrot.slane %v1690_v23, 5  ;;  %v1704_v29 = vshll.u32 %v9477_v22, 16  ;;  %v1697_v24 = vrot.slane %v1695_v62, 4 }
 0x1ba   : > { %v1145_v39 = vsel %vm9048_vm7, %v1137_v0, %v1144_v58  ;;  %v1341_v30 = vsel %vm9042_vm6, %v1146_v25, %v1340_v20  ;;  %v1687_v40 = vor.u32 %v1686_v26, %v1682_v13  ;;  %v1700_v48 = vrot.slane %v1698_v36, 5  ;;  %v9505_v56 = vld [vmem:[#allocation2 + $0x6c] sm:$0xf]  ;;  %v9515_v5 = vld [vmem:[#allocation2 + $0x70] sm:$0xf] }
 0x1bb   : > { %1339 = vst.msk [vmem:[#allocation2 + $0xc4] sm:$0xf] %vm1218_vm1, %v1145_v39  ;;  %1342 = vst [vmem:[#allocation2 + $0xc8] sm:$0x1] %v1341_v30  ;;  %v1683_v47 = vsel %vm9319_vm12, %v1678_v17, %v1682_v13  ;;  %v1706_v43 = vrot.slane %v1704_v29, 5  ;;  %v1708_v49 = vshrl.u32 %v9477_v22, 16 }
 0x1bc   : > { %v1688_v45 = vrot.slane %v1687_v40, 4  ;;  %v1714_v10 = vshll.u32 %v1514_v27, 16  ;;  %v1719_v19 = vshrl.u32 %v9491_v15, 16  ;;  %v1722_v53 = vshll.u32 %v9491_v15, 16  ;;  %v1401_v57 = vld [vmem:[#allocation2 + $0xcc] sm:$0x1] }
 0x1bd   : > { %v1701_v59 = vor.u32 %v1700_v48, %v1697_v24  ;;  %v1710_v37 = vrot.slane %v1708_v49, 4  ;;  %v1728_v60 = vshll.u32 %v9497_v41, 16  ;;  %v1732_v61 = vshrl.u32 %v9497_v41, 16  ;;  %v1398_v42 = vld [vmem:[#allocation2 + $0xc0] sm:$0x1] }
 0x1be   : > { %v1402_v34 = vsel %vm9042_vm6, 0, %v1401_v57  ;;  %v1693_v31 = vsel %vm9319_vm12, %v1688_v45, %v1692_v46  ;;  %v1716_v63 = vrot.slane %v1714_v10, 5  ;;  %v1721_v0 = vrot.slane %v1719_v19, 4  ;;  %v1516_v13 = vld [vmem:[#allocation2 + $0x74] sm:$0x1] }
 0x1bf   : > { %1403 = vst [vmem:[#allocation2 + $0xcc] sm:$0x1] %v1402_v34  ;;  %v1399_v1 = vsel %vm9042_vm6, 0, %v1398_v42  ;;  %v1456_v28 = vld [vmem:[#allocation2 + $0xd4] sm:$0x1]  ;;  %v6922_v35 = vcombine.low %v1683_v47, %v1693_v31  ;;  %v1702_v2 = vrot.slane %v1701_v59, 4  ;;  %v1711_v4 = vor.u32 %v1710_v37, %v1706_v43 }
 0x1c0   : > { %1468 = vst.msk [vmem:[#allocation2 + $0xcc] sm:$0xf] %vm1218_vm1, %v8797_v38  ;;  %1400 = vst [vmem:[#allocation2 + $0xc0] sm:$0x1] %v1399_v1  ;;  %v1457_v7 = vsel %vm9082_vm8, 0, %v1456_v28  ;;  %v1724_v12 = vrot.slane %v1722_v53, 5 }
 0x1c1   : > { %v1730_v11 = vrot.slane %v1728_v60, 5  ;;  %v1734_v14 = vrot.slane %v1732_v61, 4  ;;  %1458 = vst [vmem:[#allocation2 + $0xd4] sm:$0x1] %v1457_v7  ;;  %7877 = vmatprep.mubr.msk.bf16.mxu0 %vm1974_vm9, %v6922_v35  ;;  %v1707_v3 = vsel %vm9319_vm12, %v1702_v2, %v1706_v43  ;;  %v1712_v16 = vrot.slane %v1711_v4, 4 }
 0x1c2   : > { %v1738_v32 = vshll.u32 %v1515_v52, 16  ;;  %v1743_v18 = vshrl.u32 %v9505_v56, 16  ;;  %v9525_v20 = vld [vmem:[#allocation2 + $0x78] sm:$0xf]  ;;  %1470 = vst.msk [vmem:[#allocation2 + $0xd4] sm:$0x1] %vm1226_vm3, %v8797_v38  ;;  %v1725_v23 = vor.u32 %v1724_v12, %v1721_v0 }
 0x1c3   : > { %v1453_v21 = vld [vmem:[#allocation2 + $0xc8] sm:$0x1]  ;;  %v1735_v58 = vor.u32 %v1734_v14, %v1730_v11  ;;  %v1746_v25 = vshll.u32 %v9505_v56, 16  ;;  %v1752_v26 = vshll.u32 %v9515_v5, 16  ;;  %v1717_v62 = vsel %vm9319_vm12, %v1712_v16, %v1716_v63  ;;  %v9536_v47 = vld [vmem:[#allocation2 + $0x7c] sm:$0xf] }
 0x1c4   : > { %v1454_v27 = vsel %vm9082_vm8, 0, %v1453_v21  ;;  %v1740_v17 = vrot.slane %v1738_v32, 5  ;;  %v1745_v46 = vrot.slane %v1743_v18, 4  ;;  %v6923_v36 = vcombine.low %v1707_v3, %v1717_v62  ;;  %v1517_v45 = vld [vmem:[#allocation2 + $0x80] sm:$0x1] }
 0x1c5   : > { %1455 = vst [vmem:[#allocation2 + $0xc8] sm:$0x1] %v1454_v27  ;;  %v1726_v29 = vrot.slane %v1725_v23, 4  ;;  %v1736_v39 = vrot.slane %v1735_v58, 4  ;;  %v1748_v38 = vrot.slane %v1746_v25, 5  ;;  %v1754_v30 = vrot.slane %v1752_v26, 5 }
 0x1c6   : > { %v1756_v40 = vshrl.u32 %v9515_v5, 16  ;;  %v1762_v24 = vshll.u32 %v1516_v13, 16  ;;  %v1767_v48 = vshrl.u32 %v9525_v20, 16  ;;  %7878 = vmatmul.mubr.msk.bf16.gmra.mrb[48].mxu0 %vm1974_vm9, %v6923_v36  ;;  %v1770_v10 = vshll.u32 %v9525_v20, 16  ;;  %v9545_v52 = vld [vmem:[#allocation2 + $0x84] sm:$0xf] }
 0x1c7   : > { %v1731_v55 = vsel %vm9319_vm12, %v1726_v29, %v1730_v11  ;;  %v1741_v43 = vsel %vm9319_vm12, %v1736_v39, %v1740_v17  ;;  %v1749_v49 = vor.u32 %v1748_v38, %v1745_v46  ;;  %v8594_v37 = vld [vmem:[#allocation2 + $0xc0] sm:$0xff]   ;;  %v1776_v34 = vshll.u32 %v9536_v47, 16  ;;  %v9550_v0 = vld [vmem:[#allocation2 + $0x88] sm:$0xf]  ;;  %v1518_v12 = vld [vmem:[#allocation2 + $0x8c] sm:$0x1] }
 0x1c8   : > { %v6924_v19 = vcombine.low %v1731_v55, %v1741_v43  ;;  %v1758_v53 = vrot.slane %v1756_v40, 4  ;;  %v1764_v57 = vrot.slane %v1762_v24, 5  ;;  %v1769_v59 = vrot.slane %v1767_v48, 4  ;;  %8002 = vmatmul.mubr.msk.bf16.gmra.mrb[20].mxu1 %vm1974_vm9, %v8594_v37  ;;  %v9557_v11 = vld [vmem:[#allocation2 + $0x90] sm:$0xf] }
 0x1c9   : > { %v1750_v60 = vrot.slane %v1749_v49, 4  ;;  %v1772_v61 = vrot.slane %v1770_v10, 5  ;;  %v1780_v42 = vshrl.u32 %v9536_v47, 16  ;;  %v1786_v63 = vshll.u32 %v1517_v45, 16  ;;  %v9563_v27 = vld [vmem:[#allocation2 + $0x94] sm:$0xf] }
 0x1ca   : > { %7881 = vmatprep.mubr.msk.bf16.mxu0 %vm1974_vm9, %v6924_v19  ;;  %v1759_v31 = vor.u32 %v1758_v53, %v1754_v30  ;;  %v1791_v1 = vshrl.u32 %v9545_v52, 16  ;;  %v1794_v28 = vshll.u32 %v9545_v52, 16  ;;  %v1778_v4 = vrot.slane %v1776_v34, 5  ;;  %v1519_v39 = vld [vmem:[#allocation2 + $0x98] sm:$0x1] }
 0x1cb   : > { %v1755_v35 = vsel %vm9319_vm12, %v1750_v60, %v1754_v30  ;;  %v1773_v2 = vor.u32 %v1772_v61, %v1769_v59  ;;  %v1782_v7 = vrot.slane %v1780_v42, 4  ;;  %v1788_v13 = vrot.slane %v1786_v63, 5  ;;  %v9568_v48 = vld [vmem:[#allocation2 + $0x9c] sm:$0xf]  ;;  %v9576_v10 = vld [vmem:[#allocation2 + $0xa0] sm:$0xf] }
 0x1cc   : > { %v1760_v14 = vrot.slane %v1759_v31, 4  ;;  %v1793_v3 = vrot.slane %v1791_v1, 4  ;;  %v1796_v16 = vrot.slane %v1794_v28, 5  ;;  %v1800_v21 = vshll.u32 %v9550_v0, 16  ;;  %v1520_v34 = vld [vmem:[#allocation2 + $0xa4] sm:$0x1] }
 0x1cd   : > { %v1774_v32 = vrot.slane %v1773_v2, 4  ;;  %v1783_v18 = vor.u32 %v1782_v7, %v1778_v4  ;;  %v1804_v23 = vshrl.u32 %v9550_v0, 16  ;;  %v1810_v26 = vshll.u32 %v1518_v12, 16  ;;  %v9585_v12 = vld [vmem:[#allocation2 + $0xa8] sm:$0xf] }
 0x1ce   : > { %v1765_v58 = vsel %vm9319_vm12, %v1760_v14, %v1764_v57  ;;  %v1797_v25 = vor.u32 %v1796_v16, %v1793_v3  ;;  %v1815_v62 = vshrl.u32 %v9557_v11, 16  ;;  %v1802_v29 = vrot.slane %v1800_v21, 5 }
 0x1cf   : > { %v6925_v17 = vcombine.low %v1755_v35, %v1765_v58  ;;  %v1779_v46 = vsel %vm9319_vm12, %v1774_v32, %v1778_v4  ;;  %v1784_v36 = vrot.slane %v1783_v18, 4  ;;  %v1806_v30 = vrot.slane %v1804_v23, 4  ;;  %v9589_v32 = vld [vmem:[#allocation2 + $0xac] sm:$0xf] }
 0x1d0   : > { %v1798_v38 = vrot.slane %v1797_v25, 4  ;;  %v1812_v40 = vrot.slane %v1810_v26, 5  ;;  %v1817_v24 = vrot.slane %v1815_v62, 4  ;;  %v1818_v43 = vshll.u32 %v9557_v11, 16  ;;  %v1521_v62 = vld [vmem:[#allocation2 + $0xb0] sm:$0x1] }
 0x1d1   : > { %7882 = vmatmul.mubr.msk.bf16.gmra.mrb[52].mxu0 %vm1974_vm9, %v6925_v17  ;;  %v1789_v55 = vsel %vm9319_vm12, %v1784_v36, %v1788_v13  ;;  %v1824_v49 = vshll.u32 %v9563_v27, 16  ;;  %v1828_v45 = vshrl.u32 %v9563_v27, 16  ;;  %v1807_v57 = vor.u32 %v1806_v30, %v1802_v29  ;;  %v3323_v30 = vld [vmem:[#allocation2 + $0xc] sm:$0xf] }
 0x1d2   : > { %v6926_v19 = vcombine.low %v1779_v46, %v1789_v55  ;;  %v1803_v53 = vsel %vm9319_vm12, %v1798_v38, %v1802_v29  ;;  %v1834_v59 = vshll.u32 %v1519_v39, 16  ;;  %v1820_v37 = vrot.slane %v1818_v43, 5 }
 0x1d3   : > { %v1826_v60 = vrot.slane %v1824_v49, 5  ;;  %v1830_v61 = vrot.slane %v1828_v45, 4  ;;  %v1839_v42 = vshrl.u32 %v9568_v48, 16  ;;  %v1808_v31 = vrot.slane %v1807_v57, 4  ;;  %v9599_v49 = vld [vmem:[#allocation2 + $0x10] sm:$0xf] }
 0x1d4   : > { %7885 = vmatprep.mubr.msk.bf16.mxu0 %vm1974_vm9, %v6926_v19  ;;  %v1836_v63 = vrot.slane %v1834_v59, 5  ;;  %v1842_v1 = vshll.u32 %v9568_v48, 16  ;;  %v1848_v28 = vshll.u32 %v9576_v10, 16  ;;  %v1821_v35 = vor.u32 %v1820_v37, %v1817_v24  ;;  %v9602_v59 = vld [vmem:[#allocation2 + $0x14] sm:$0x1] }
 0x1d5   : > { %v1831_v2 = vor.u32 %v1830_v61, %v1826_v60  ;;  %v1841_v4 = vrot.slane %v1839_v42, 4  ;;  %v1852_v7 = vshrl.u32 %v9576_v10, 16  ;;  %v1813_v14 = vsel %vm9319_vm12, %v1808_v31, %v1812_v40  ;;  %v9607_v42 = vld [vmem:[#allocation2 + $0xb4] sm:$0xf]  ;;  %v9609_v31 = vld [vmem:[#allocation2 + $0xb8] sm:$0xf] }
 0x1d6   : > { %v1844_v13 = vrot.slane %v1842_v1, 5  ;;  %v1850_v3 = vrot.slane %v1848_v28, 5  ;;  %v1858_v16 = vshll.u32 %v1520_v34, 16  ;;  %v6927_v18 = vcombine.low %v1803_v53, %v1813_v14 }
 0x1d7   : > { %v1822_v21 = vrot.slane %v1821_v35, 4  ;;  %v1832_v23 = vrot.slane %v1831_v2, 4  ;;  %v1854_v58 = vrot.slane %v1852_v7, 4  ;;  %v1863_v17 = vshrl.u32 %v9585_v12, 16 }
 0x1d8   : > { %v1845_v25 = vor.u32 %v1844_v13, %v1841_v4  ;;  %v1860_v26 = vrot.slane %v1858_v16, 5  ;;  %v1866_v46 = vshll.u32 %v9585_v12, 16  ;;  %v1872_v38 = vshll.u32 %v9589_v32, 16 }
 0x1d9   : > { %7886 = vmatmul.mubr.msk.bf16.gmra.mrb[56].mxu0 %vm1974_vm9, %v6927_v18  ;;  %v1827_v36 = vsel %vm9319_vm12, %v1822_v21, %v1826_v60  ;;  %v1837_v29 = vsel %vm9319_vm12, %v1832_v23, %v1836_v63  ;;  %v1855_v39 = vor.u32 %v1854_v58, %v1850_v3  ;;  %v1865_v55 = vrot.slane %v1863_v17, 4  ;;  %v1522_v58 = vld [vmem:[#allocation2 + $0xbc] sm:$0x1] }
 0x1da   : > { %v6928_v40 = vcombine.low %v1827_v36, %v1837_v29  ;;  %v1846_v24 = vrot.slane %v1845_v25, 4  ;;  %v1868_v43 = vrot.slane %v1866_v46, 5  ;;  %v1874_v19 = vrot.slane %v1872_v38, 5  ;;  %v3326_v29 = vld [vmem:[#allocation2 + $0x18] sm:$0xf] }
 0x1db   : > { %v1856_v45 = vrot.slane %v1855_v39, 4  ;;  %v1876_v53 = vshrl.u32 %v9589_v32, 16  ;;  %v1882_v57 = vshll.u32 %v1521_v62, 16  ;;  %v3372_v61 = vshrl.u32 %v3323_v30, 16  ;;  %v9622_v39 = vld [vmem:[#allocation2 + $0x1c] sm:$0xf] }
 0x1dc   : > { %7889 = vmatprep.mubr.msk.bf16.mxu0 %vm1974_vm9, %v6928_v40  ;;  %v1851_v37 = vsel %vm9319_vm12, %v1846_v24, %v1850_v3  ;;  %v1869_v60 = vor.u32 %v1868_v43, %v1865_v55  ;;  %v3375_v34 = vshll.u32 %v3323_v30, 16  ;;  %v3381_v35 = vshll.u32 %v9599_v49, 16  ;;  %v9625_v55 = vld [vmem:[#allocation2 + $0x20] sm:$0x1] }
 0x1dd   : > { %v1861_v63 = vsel %vm9319_vm12, %v1856_v45, %v1860_v26  ;;  %v1878_v1 = vrot.slane %v1876_v53, 4  ;;  %v1884_v28 = vrot.slane %v1882_v57, 5  ;;  %v3374_v7 = vrot.slane %v3372_v61, 4 }
 0x1de   : > { %v6929_v2 = vcombine.low %v1851_v37, %v1861_v63  ;;  %v1870_v4 = vrot.slane %v1869_v60, 4  ;;  %v3377_v14 = vrot.slane %v3375_v34, 5  ;;  %v3383_v3 = vrot.slane %v3381_v35, 5  ;;  %v3329_v34 = vld [vmem:[#allocation2 + $0x24] sm:$0xf] }
 0x1df   : > { %v1879_v13 = vor.u32 %v1878_v1, %v1874_v19  ;;  %v3385_v16 = vshrl.u32 %v9599_v49, 16  ;;  %v3391_v18 = vshll.u32 %v9602_v59, 16  ;;  %v1887_v25 = vshrl.u32 %v9607_v42, 16 }
 0x1e0   : > { %v1875_v21 = vsel %vm9319_vm12, %v1870_v4, %v1874_v19  ;;  %v3378_v23 = vor.u32 %v3377_v14, %v3374_v7  ;;  %v1890_v26 = vshll.u32 %v9607_v42, 16  ;;  %v1896_v36 = vshll.u32 %v9609_v31, 16  ;;  %v9631_v4 = vld [vmem:[#allocation2 + $0x28] sm:$0xf] }
 0x1e1   : > { %7890 = vmatmul.mubr.msk.bf16.gmra.mrb[60].mxu0 %vm1974_vm9, %v6929_v2  ;;  %v1880_v62 = vrot.slane %v1879_v13, 4  ;;  %v3387_v17 = vrot.slane %v3385_v16, 4  ;;  %v3393_v46 = vrot.slane %v3391_v18, 5  ;;  %v1889_v30 = vrot.slane %v1887_v25, 4 }
 0x1e2   : > { %v3379_v38 = vrot.slane %v3378_v23, 4  ;;  %v1892_v40 = vrot.slane %v1890_v26, 5  ;;  %v1900_v24 = vshrl.u32 %v9609_v31, 16  ;;  %v1898_v19 = vrot.slane %v1896_v36, 5 }
 0x1e3   : > { %v1885_v43 = vsel %vm9319_vm12, %v1880_v62, %v1884_v28  ;;  %v3388_v45 = vor.u32 %v3387_v17, %v3383_v3  ;;  %v1906_v53 = vshll.u32 %v1522_v58, 16  ;;  %v3396_v35 = vshrl.u32 %v3326_v29, 16  ;;  %v9641_v62 = vld [vmem:[#allocation2 + $0x2c] sm:$0x1] }
 0x1e4   : > { %v6930_v57 = vcombine.low %v1875_v21, %v1885_v43  ;;  %v3384_v37 = vsel %vm9319_vm12, %v3379_v38, %v3383_v3  ;;  %v1893_v60 = vor.u32 %v1892_v40, %v1889_v30  ;;  %v1902_v61 = vrot.slane %v1900_v24, 4  ;;  %v3332_v30 = vld [vmem:[#allocation2 + $0x30] sm:$0xf] }
 0x1e5   : > { %v3389_v63 = vrot.slane %v3388_v45, 4  ;;  %v1908_v1 = vrot.slane %v1906_v53, 5  ;;  %v3399_v2 = vshll.u32 %v3326_v29, 16  ;;  %v3405_v14 = vshll.u32 %v9622_v39, 16  ;;  %v9648_v45 = vld [vmem:[#allocation2 + $0x34] sm:$0xf] }
 0x1e6   : > { %7893 = vmatprep.mubr.msk.bf16.mxu0 %vm1974_vm9, %v6930_v57  ;;  %v1894_v7 = vrot.slane %v1893_v60, 4  ;;  %v1903_v28 = vor.u32 %v1902_v61, %v1898_v19  ;;  %v3409_v13 = vshrl.u32 %v9622_v39, 16  ;;  %v3398_v16 = vrot.slane %v3396_v35, 4 }
 0x1e7   : > { %v3394_v3 = vsel %vm9319_vm12, %v3389_v63, %v3393_v46  ;;  %v3401_v18 = vrot.slane %v3399_v2, 5  ;;  %v3415_v21 = vshll.u32 %v9625_v55, 16  ;;  %v3407_v26 = vrot.slane %v3405_v14, 5  ;;  %v9651_v2 = vld [vmem:[#allocation2 + $0x38] sm:$0x1] }
 0x1e8   : > { %v7068_v23 = vcombine.low %v3384_v37, %v3394_v3  ;;  %v1899_v58 = vsel %vm9319_vm12, %v1894_v7, %v1898_v19  ;;  %v1904_v25 = vrot.slane %v1903_v28, 4  ;;  %v3411_v36 = vrot.slane %v3409_v13, 4  ;;  %v8640_v7 = vld [vmem:[#allocation2 + $0xc] sm:$0xf]  ;;  %v9656_v28 = vld [vmem:[#allocation2 + $0x10] sm:$0xf] }
 0x1e9   : > { %v3402_v17 = vor.u32 %v3401_v18, %v3398_v16  ;;  %v3417_v29 = vrot.slane %v3415_v21, 5  ;;  %v3420_v38 = vshrl.u32 %v3329_v34, 16  ;;  %v3423_v40 = vshll.u32 %v3329_v34, 16  ;;  %v8642_v13 = vld [vmem:[#allocation2 + $0x18] sm:$0xf] }
 0x1ea   : > { %8009 = vmatprep.mubr.msk.bf16.mxu1 %vm1974_vm9, %v7068_v23  ;;  %v1909_v46 = vsel %vm9319_vm12, %v1904_v25, %v1908_v1  ;;  %v3429_v24 = vshll.u32 %v9631_v4, 16  ;;  %v3433_v43 = vshrl.u32 %v9631_v4, 16  ;;  %v3412_v57 = vor.u32 %v3411_v36, %v3407_v26  ;;  %v9659_v3 = vld [vmem:[#allocation2 + $0x1c] sm:$0xf] }
 0x1eb   : > { %v6931_v19 = vcombine.low %v1899_v58, %v1909_v46  ;;  %v3403_v53 = vrot.slane %v3402_v17, 4  ;;  %v3422_v37 = vrot.slane %v3420_v38, 4  ;;  %v3425_v60 = vrot.slane %v3423_v40, 5  ;;  %v3335_v18 = vld [vmem:[#allocation2 + $0x3c] sm:$0xf] }
 0x1ec   : > { %v3431_v61 = vrot.slane %v3429_v24, 5  ;;  %v3435_v63 = vrot.slane %v3433_v43, 4  ;;  %v3439_v35 = vshll.u32 %v9641_v62, 16  ;;  %v3413_v1 = vrot.slane %v3412_v57, 4  ;;  %v9670_v46 = vld [vmem:[#allocation2 + $0x40] sm:$0xf] }
 0x1ed   : > { %7894 = vmatmul.mubr.msk.bf16.gmra.mrb[64].mxu0 %vm1974_vm9, %v6931_v19  ;;  %v3408_v34 = vsel %vm9319_vm12, %v3403_v53, %v3407_v26  ;;  %v6951_v14 = vcombine.low %v8640_v7, %v9656_v28  ;;  %v6952_v16 = vcombine.low %v8642_v13, %v9659_v3  ;;  %v3426_v21 = vor.u32 %v3425_v60, %v3422_v37  ;;  %v9672_v53 = vld [vmem:[#allocation2 + $0x44] sm:$0x1]  ;;  %v8610_v57 = vld [vmem:[%s10950_s3 + $0x28] sm:$0xff]  }
 0x1ee   : > { %v3436_v23 = vor.u32 %v3435_v63, %v3431_v61  ;;  %v3441_v58 = vrot.slane %v3439_v35, 5  ;;  %7901 = vmatprep.mubr.msk.bf16.mxu0 %vm1974_vm9, %v6950_v9  ;;  %v3444_v25 = vshrl.u32 %v3332_v30, 16  ;;  %v3418_v26 = vsel %vm9319_vm12, %v3413_v1, %v3417_v29  ;;  %v8644_v1 = vld [vmem:[%s10950_s3 + $0x50] sm:$0xff]  }
 0x1ef   : > { %v3447_v17 = vshll.u32 %v3332_v30, 16  ;;  %v3453_v36 = vshll.u32 %v9648_v45, 16  ;;  %v3457_v38 = vshrl.u32 %v9648_v45, 16  ;;  %v7069_v40 = vcombine.low %v3408_v34, %v3418_v26  ;;  %v3338_v34 = vld [vmem:[#allocation2 + $0x48] sm:$0xf] }
 0x1f0   : > { %v3427_v24 = vrot.slane %v3426_v21, 4  ;;  %v3437_v43 = vrot.slane %v3436_v23, 4  ;;  %v3446_v19 = vrot.slane %v3444_v25, 4  ;;  %v3463_v30 = vshll.u32 %v9651_v2, 16  ;;  %v9692_v25 = vld [vmem:[%s10950_s3 + $0x60] sm:$0xff]  }
 0x1f1   : > { %v3449_v51 = vrot.slane %v3447_v17, 5  ;;  %v3455_v9 = vrot.slane %v3453_v36, 5  ;;  %v3459_v29 = vrot.slane %v3457_v38, 4  ;;  %8010 = vmatmul.mubr.msk.bf16.vlgmr.msra.gmra.mrb[24].mxu1 %vm1974_vm9, %v7069_v40  ;;  %v3468_v63 = vshrl.u32 %v3335_v18, 16  ;;  %v9696_v17 = vld [vmem:[#allocation2 + $0x4c] sm:$0xf] }
 0x1f2   : > { %v3432_v37 = vsel %vm9319_vm12, %v3427_v24, %v3431_v61  ;;  %v3442_v60 = vsel %vm9319_vm12, %v3437_v43, %v3441_v58  ;;  %v3471_v35 = vshll.u32 %v3335_v18, 16  ;;  %8042 = vmatpush3.bf16.msra.mxu1 %v8644_v1  ;;  %v3465_v23 = vrot.slane %v3463_v30, 5  ;;  %10992 = vst [vmem:[#allocation9_spill] sm:$0xff] %v9696_v17  ;;  %v9698_v36 = vld [vmem:[#allocation2 + $0x50] sm:$0x1] }
 0x1f3   : > { %v7070_v7 = vcombine.low %v3432_v37, %v3442_v60  ;;  %v3450_v13 = vor.u32 %v3449_v51, %v3446_v19  ;;  %v3460_v21 = vor.u32 %v3459_v29, %v3455_v9  ;;  %v3470_v61 = vrot.slane %v3468_v63, 4  ;;  %10993 = vst [vmem:[#allocation10_spill] sm:$0xff] %v9698_v36  ;;  %8043 = vmatprep.subr.bf16.mxu1 %v8601_v50  ;;  %v8645_v43 = vld [vmem:[#allocation2 + $0x24] sm:$0xf]  ;;  %v9703_v19 = vld [vmem:[#allocation2 + $0x28] sm:$0xf] }
 0x1f4   : > { %v3473_v26 = vrot.slane %v3471_v35, 5  ;;  %v3477_v58 = vshll.u32 %v9670_v46, 16  ;;  %v3481_v18 = vshrl.u32 %v9670_v46, 16  ;;  %v3487_v24 = vshll.u32 %v9672_v53, 16  ;;  %v3341_v29 = vld [vmem:[#allocation2 + $0x54] sm:$0xf] }
 0x1f5   : > { %8013 = vmatprep.mubr.msk.bf16.mxu1 %vm1974_vm9, %v7070_v7  ;;  %7902 = vmatmul.mubr.msk.bf16.vlgmr.msra.gmra.mrb[36].mxu0 %vm1974_vm9, %v6951_v14  ;;  %v3451_v38 = vrot.slane %v3450_v13, 4  ;;  %v3461_v40 = vrot.slane %v3460_v21, 4  ;;  %v6953_v51 = vcombine.low %v8645_v43, %v9703_v19  ;;  %v8647_v63 = vld [vmem:[#allocation2 + $0x30] sm:$0xf]  ;;  %v9707_v35 = vld [vmem:[#allocation2 + $0x34] sm:$0xf] }
 0x1f6   : > { %7905 = vmatprep.mubr.msk.bf16.mxu0 %vm1974_vm9, %v6952_v16  ;;  %v3474_v30 = vor.u32 %v3473_v26, %v3470_v61  ;;  %v3479_v37 = vrot.slane %v3477_v58, 5  ;;  %v3483_v60 = vrot.slane %v3481_v18, 4  ;;  %v6954_v14 = vcombine.low %v8647_v63, %v9707_v35  ;;  %7934 = vmatpush3.bf16.msra.mxu0 %v9464_v44  ;;  %v9715_v43 = vld [vmem:[#allocation2 + $0x58] sm:$0xf] }
 0x1f7   : > { %v3456_v1 = vsel %vm9319_vm12, %v3451_v38, %v3455_v9  ;;  %v3466_v7 = vsel %vm9319_vm12, %v3461_v40, %v3465_v23  ;;  %v3489_v13 = vrot.slane %v3487_v24, 5  ;;  %v3492_v21 = vshrl.u32 %v3338_v34, 16  ;;  %8044 = vmatpush3.bf16.msra.mxu1 %v8601_v50  ;;  %7935 = vmatprep.subr.bf16.mxu0 %v8610_v57  ;;  %v9721_v23 = vld [vmem:[#allocation2 + $0x5c] sm:$0x1] }
 0x1f8   : > { %v7071_v16 = vcombine.low %v3456_v1, %v3466_v7  ;;  %v3475_v61 = vrot.slane %v3474_v30, 4  ;;  %v3484_v26 = vor.u32 %v3483_v60, %v3479_v37  ;;  %v3495_v58 = vshll.u32 %v3338_v34, 16  ;;  %8077 = vmatprep.subr.bf16.mxu1 %v9692_v25  ;;  %v9729_v7 = vld [vmem:[%s10950_s3 + $0x30] sm:$0xff]  }
 0x1f9   : > { %v3494_v18 = vrot.slane %v3492_v21, 4  ;;  %v3501_v44 = vshll.u32 %v9696_v17, 16  ;;  %v3505_v9 = vshrl.u32 %v9696_v17, 16  ;;  %v3511_v38 = vshll.u32 %v9698_v36, 16  ;;  %v8650_v17 = vld [vmem:[#allocation2 + $0x3c] sm:$0xf] }
 0x1fa   : > { %8014 = vmatmul.mubr.msk.bf16.gmra.mrb[28].mxu1 %vm1974_vm9, %v7071_v16  ;;  %v3480_v50 = vsel %vm9319_vm12, %v3475_v61, %v3479_v37  ;;  %v3485_v40 = vrot.slane %v3484_v26, 4  ;;  %v3497_v24 = vrot.slane %v3495_v58, 5  ;;  %v3516_v30 = vshrl.u32 %v3341_v29, 16  ;;  %7936 = vmatpush3.bf16.msra.mxu0 %v8610_v57 }
 0x1fb   : > { %v3503_v34 = vrot.slane %v3501_v44, 5  ;;  %v3507_v60 = vrot.slane %v3505_v9, 4  ;;  %v3513_v63 = vrot.slane %v3511_v38, 5  ;;  %v3519_v1 = vshll.u32 %v3341_v29, 16  ;;  %7969 = vmatprep.subr.bf16.mxu0 %v9729_v7  ;;  %v3344_v44 = vld [vmem:[#allocation2 + $0x60] sm:$0xf] }
 0x1fc   : > { %v3490_v21 = vsel %vm9319_vm12, %v3485_v40, %v3489_v13  ;;  %v3498_v16 = vor.u32 %v3497_v24, %v3494_v18  ;;  %v3518_v37 = vrot.slane %v3516_v30, 4  ;;  %v3525_v61 = vshll.u32 %v9715_v43, 16  ;;  %v9739_v13 = vld [vmem:[#allocation2 + $0x40] sm:$0xf]  ;;  %v9742_v40 = vld [vmem:[#allocation2 + $0x64] sm:$0xf] }
 0x1fd   : > { %v7072_v26 = vcombine.low %v3480_v50, %v3490_v21  ;;  %7906 = vmatmul.mubr.msk.bf16.gmra.mrb[40].mxu0 %vm1974_vm9, %v6953_v51  ;;  %v3508_v57 = vor.u32 %v3507_v60, %v3503_v34  ;;  %v3521_v58 = vrot.slane %v3519_v1, 5  ;;  %v3529_v29 = vshrl.u32 %v9715_v43, 16  ;;  %10994 = vst [vmem:[#allocation11_spill] sm:$0xff] %v9739_v13  ;;  %v9749_v1 = vld [vmem:[#allocation2 + $0x68] sm:$0x1] }
 0x1fe   : > { %7909 = vmatprep.mubr.msk.bf16.mxu0 %vm1974_vm9, %v6954_v14  ;;  %v3499_v9 = vrot.slane %v3498_v16, 4  ;;  %v3527_v38 = vrot.slane %v3525_v61, 5  ;;  %v3535_v36 = vshll.u32 %v9721_v23, 16  ;;  %v6955_v18 = vcombine.low %v8650_v17, %v9739_v13  ;;  %10995 = vst [vmem:[#allocation12_spill] sm:$0xff] %v9749_v1 }
 0x1ff   : > { %8017 = vmatprep.mubr.msk.bf16.mxu1 %vm1974_vm9, %v7072_v26  ;;  %v3509_v51 = vrot.slane %v3508_v57, 4  ;;  %v3522_v50 = vor.u32 %v3521_v58, %v3518_v37  ;;  %v3531_v24 = vrot.slane %v3529_v29, 4  ;;  %v6956_v30 = vcombine.low %v9439_v6, %v9448_v8  ;;  %v3347_v37 = vld [vmem:[#allocation2 + $0x6c] sm:$0xf]  ;;  %v9755_v8 = vld [vmem:[#allocation2 + $0x70] sm:$0xf] }
 0x200   : > { %v3504_v14 = vsel %vm9319_vm12, %v3499_v9, %v3503_v34  ;;  %v3537_v60 = vrot.slane %v3535_v36, 5  ;;  %v3540_v21 = vshrl.u32 %v3344_v44, 16  ;;  %v3543_v16 = vshll.u32 %v3344_v44, 16 }
 0x201   : > { %v3514_v17 = vsel %vm9319_vm12, %v3509_v51, %v3513_v63  ;;  %v3523_v61 = vrot.slane %v3522_v50, 4  ;;  %v3532_v13 = vor.u32 %v3531_v24, %v3527_v38  ;;  %v3549_v26 = vshll.u32 %v9742_v40, 16  ;;  %v9761_v50 = vld [vmem:[#allocation2 + $0x74] sm:$0x1] }
 0x202   : > { %v7073_v57 = vcombine.low %v3504_v14, %v3514_v17  ;;  %v3542_v58 = vrot.slane %v3540_v21, 4  ;;  %v3545_v29 = vrot.slane %v3543_v16, 5  ;;  %v3553_v6 = vshrl.u32 %v9742_v40, 16 }
 0x203   : > { %v3528_v36 = vsel %vm9319_vm12, %v3523_v61, %v3527_v38  ;;  %v3533_v34 = vrot.slane %v3532_v13, 4  ;;  %v3551_v44 = vrot.slane %v3549_v26, 5  ;;  %v3559_v9 = vshll.u32 %v9749_v1, 16 }
 0x204   : > { %8018 = vmatmul.mubr.msk.bf16.gmra.mrb[0].mxu1 %vm1974_vm9, %v7073_v57  ;;  %v3546_v63 = vor.u32 %v3545_v29, %v3542_v58  ;;  %v3555_v51 = vrot.slane %v3553_v6, 4  ;;  %v3564_v24 = vshrl.u32 %v3347_v37, 16  ;;  %v3567_v14 = vshll.u32 %v3347_v37, 16  ;;  %v3350_v58 = vld [vmem:[#allocation2 + $0x78] sm:$0xf] }
 0x205   : > { %v3538_v21 = vsel %vm9319_vm12, %v3533_v34, %v3537_v60  ;;  %7910 = vmatmul.mubr.msk.bf16.gmra.mrb[44].mxu0 %vm1974_vm9, %v6955_v18  ;;  %v3561_v16 = vrot.slane %v3559_v9, 5  ;;  %v3573_v38 = vshll.u32 %v9755_v8, 16  ;;  %v3577_v13 = vshrl.u32 %v9755_v8, 16  ;;  %v9770_v60 = vld [vmem:[#allocation2 + $0x7c] sm:$0xf] }
 0x206   : > { %v7074_v17 = vcombine.low %v3528_v36, %v3538_v21  ;;  %7913 = vmatprep.mubr.msk.bf16.mxu0 %vm1974_vm9, %v6956_v30  ;;  %v3547_v61 = vrot.slane %v3546_v63, 4  ;;  %v3556_v26 = vor.u32 %v3555_v51, %v3551_v44  ;;  %v3566_v57 = vrot.slane %v3564_v24, 4  ;;  %v9779_v24 = vld [vmem:[#allocation2 + $0x80] sm:$0x1] }
 0x207   : > { %v3569_v29 = vrot.slane %v3567_v14, 5  ;;  %v3575_v6 = vrot.slane %v3573_v38, 5  ;;  %v3579_v37 = vrot.slane %v3577_v13, 4  ;;  %v3583_v1 = vshll.u32 %v9761_v50, 16 }
 0x208   : > { %8021 = vmatprep.mubr.msk.bf16.mxu1 %vm1974_vm9, %v7074_v17  ;;  %v3552_v18 = vsel %vm9319_vm12, %v3547_v61, %v3551_v44  ;;  %v3557_v34 = vrot.slane %v3556_v26, 4  ;;  %v6957_v30 = vcombine.low %v9470_v33, %v9477_v22  ;;  %v6958_v36 = vcombine.low %v9491_v15, %v9497_v41  ;;  %v3353_v17 = vld [vmem:[#allocation2 + $0x84] sm:$0xf] }
 0x209   : > { %v3570_v9 = vor.u32 %v3569_v29, %v3566_v57  ;;  %v3580_v63 = vor.u32 %v3579_v37, %v3575_v6  ;;  %v3585_v51 = vrot.slane %v3583_v1, 5  ;;  %v3588_v14 = vshrl.u32 %v3350_v58, 16  ;;  %v9786_v29 = vld [vmem:[#allocation2 + $0x88] sm:$0xf]  ;;  %v9794_v37 = vld [vmem:[#allocation2 + $0x8c] sm:$0x1] }
 0x20a   : > { %v3562_v21 = vsel %vm9319_vm12, %v3557_v34, %v3561_v16  ;;  %v3591_v38 = vshll.u32 %v3350_v58, 16  ;;  %v3597_v13 = vshll.u32 %v9770_v60, 16  ;;  %v3601_v44 = vshrl.u32 %v9770_v60, 16 }
 0x20b   : > { %v7075_v61 = vcombine.low %v3552_v18, %v3562_v21  ;;  %v3571_v33 = vrot.slane %v3570_v9, 4  ;;  %v3581_v22 = vrot.slane %v3580_v63, 4  ;;  %v3590_v26 = vrot.slane %v3588_v14, 4 }
 0x20c   : > { %v3593_v15 = vrot.slane %v3591_v38, 5  ;;  %v3599_v41 = vrot.slane %v3597_v13, 5  ;;  %v3603_v57 = vrot.slane %v3601_v44, 4  ;;  %v3607_v1 = vshll.u32 %v9779_v24, 16 }
 0x20d   : > { %8022 = vmatmul.mubr.msk.bf16.gmra.mrb[4].mxu1 %vm1974_vm9, %v7075_v61  ;;  %v3576_v16 = vsel %vm9319_vm12, %v3571_v33, %v3575_v6  ;;  %v3586_v58 = vsel %vm9319_vm12, %v3581_v22, %v3585_v51  ;;  %7914 = vmatmul.mubr.msk.bf16.gmra.mrb[48].mxu0 %vm1974_vm9, %v6957_v30  ;;  %v3612_v18 = vshrl.u32 %v3353_v17, 16  ;;  %v3615_v34 = vshll.u32 %v3353_v17, 16  ;;  %v3356_v61 = vld [vmem:[#allocation2 + $0x90] sm:$0xf] }
 0x20e   : > { %v7076_v9 = vcombine.low %v3576_v16, %v3586_v58  ;;  %7917 = vmatprep.mubr.msk.bf16.mxu0 %vm1974_vm9, %v6958_v36  ;;  %v3594_v63 = vor.u32 %v3593_v15, %v3590_v26  ;;  %v3604_v14 = vor.u32 %v3603_v57, %v3599_v41  ;;  %v3609_v21 = vrot.slane %v3607_v1, 5  ;;  %v9805_v57 = vld [vmem:[#allocation2 + $0x94] sm:$0xf]  ;;  %v9807_v1 = vld [vmem:[#allocation2 + $0x98] sm:$0x1] }
 0x20f   : > { %v3614_v38 = vrot.slane %v3612_v18, 4  ;;  %v3617_v13 = vrot.slane %v3615_v34, 5  ;;  %v3621_v44 = vshll.u32 %v9786_v29, 16  ;;  %v3625_v6 = vshrl.u32 %v9786_v29, 16 }
 0x210   : > { %8025 = vmatprep.mubr.msk.bf16.mxu1 %vm1974_vm9, %v7076_v9  ;;  %v3595_v30 = vrot.slane %v3594_v63, 4  ;;  %v3605_v51 = vrot.slane %v3604_v14, 4  ;;  %v3631_v33 = vshll.u32 %v9794_v37, 16  ;;  %v6959_v17 = vcombine.low %v9505_v56, %v9515_v5  ;;  %v3359_v9 = vld [vmem:[#allocation2 + $0x9c] sm:$0xf] }
 0x211   : > { %v3618_v36 = vor.u32 %v3617_v13, %v3614_v38  ;;  %v3623_v22 = vrot.slane %v3621_v44, 5  ;;  %v3627_v26 = vrot.slane %v3625_v6, 4  ;;  %v6960_v15 = vcombine.low %v9525_v20, %v9536_v47  ;;  %v9816_v44 = vld [vmem:[#allocation2 + $0xa0] sm:$0xf] }
 0x212   : > { %v3600_v16 = vsel %vm9319_vm12, %v3595_v30, %v3599_v41  ;;  %v3610_v58 = vsel %vm9319_vm12, %v3605_v51, %v3609_v21  ;;  %v3633_v18 = vrot.slane %v3631_v33, 5  ;;  %v3636_v34 = vshrl.u32 %v3356_v61, 16 }
 0x213   : > { %v7077_v56 = vcombine.low %v3600_v16, %v3610_v58  ;;  %v3619_v5 = vrot.slane %v3618_v36, 4  ;;  %v3628_v63 = vor.u32 %v3627_v26, %v3623_v22  ;;  %v3639_v14 = vshll.u32 %v3356_v61, 16  ;;  %v9823_v36 = vld [vmem:[#allocation2 + $0xa4] sm:$0x1] }
 0x214   : > { %v3638_v38 = vrot.slane %v3636_v34, 4  ;;  %v3645_v20 = vshll.u32 %v9805_v57, 16  ;;  %v3649_v47 = vshrl.u32 %v9805_v57, 16  ;;  %v3655_v13 = vshll.u32 %v9807_v1, 16 }
 0x215   : > { %8026 = vmatmul.mubr.msk.bf16.gmra.mrb[8].mxu1 %vm1974_vm9, %v7077_v56  ;;  %v3624_v41 = vsel %vm9319_vm12, %v3619_v5, %v3623_v22  ;;  %v3629_v21 = vrot.slane %v3628_v63, 4  ;;  %7918 = vmatmul.mubr.msk.bf16.gmra.mrb[52].mxu0 %vm1974_vm9, %v6959_v17  ;;  %v3641_v6 = vrot.slane %v3639_v14, 5  ;;  %v3660_v30 = vshrl.u32 %v3359_v9, 16  ;;  %v3362_v14 = vld [vmem:[#allocation2 + $0xa8] sm:$0xf] }
 0x216   : > { %7921 = vmatprep.mubr.msk.bf16.mxu0 %vm1974_vm9, %v6960_v15  ;;  %v3647_v61 = vrot.slane %v3645_v20, 5  ;;  %v3651_v51 = vrot.slane %v3649_v47, 4  ;;  %v3657_v33 = vrot.slane %v3655_v13, 5  ;;  %v3663_v26 = vshll.u32 %v3359_v9, 16  ;;  %v9832_v13 = vld [vmem:[#allocation2 + $0xac] sm:$0xf] }
 0x217   : > { %v3634_v16 = vsel %vm9319_vm12, %v3629_v21, %v3633_v18  ;;  %v3642_v58 = vor.u32 %v3641_v6, %v3638_v38  ;;  %v3662_v34 = vrot.slane %v3660_v30, 4  ;;  %v3669_v22 = vshll.u32 %v9816_v44, 16 }
 0x218   : > { %v7078_v56 = vcombine.low %v3624_v41, %v3634_v16  ;;  %v3652_v5 = vor.u32 %v3651_v51, %v3647_v61  ;;  %v3665_v17 = vrot.slane %v3663_v26, 5  ;;  %v3673_v63 = vshrl.u32 %v9816_v44, 16  ;;  %v9839_v51 = vld [vmem:[#allocation2 + $0xb0] sm:$0x1] }
 0x219   : > { %v3643_v15 = vrot.slane %v3642_v58, 4  ;;  %v3671_v20 = vrot.slane %v3669_v22, 5  ;;  %v3679_v47 = vshll.u32 %v9823_v36, 16  ;;  %v6961_v9 = vcombine.low %v9545_v52, %v9550_v0 }
 0x21a   : > { %8029 = vmatprep.mubr.msk.bf16.mxu1 %vm1974_vm9, %v7078_v56  ;;  %v3653_v18 = vrot.slane %v3652_v5, 4  ;;  %v3666_v38 = vor.u32 %v3665_v17, %v3662_v34  ;;  %v3675_v21 = vrot.slane %v3673_v63, 4  ;;  %v6962_v41 = vcombine.low %v9557_v11, %v9563_v27  ;;  %v3365_v34 = vld [vmem:[#allocation2 + $0xb4] sm:$0xf]  ;;  %v9846_v5 = vld [vmem:[#allocation2 + $0xb8] sm:$0xf] }
 0x21b   : > { %v3648_v6 = vsel %vm9319_vm12, %v3643_v15, %v3647_v61  ;;  %v3681_v30 = vrot.slane %v3679_v47, 5  ;;  %v3684_v26 = vshrl.u32 %v3362_v14, 16  ;;  %v3687_v16 = vshll.u32 %v3362_v14, 16 }
 0x21c   : > { %v3658_v52 = vsel %vm9319_vm12, %v3653_v18, %v3657_v33  ;;  %v3667_v0 = vrot.slane %v3666_v38, 4  ;;  %v3676_v58 = vor.u32 %v3675_v21, %v3671_v20  ;;  %v3693_v22 = vshll.u32 %v9832_v13, 16 }
 0x21d   : > { %v7079_v56 = vcombine.low %v3648_v6, %v3658_v52  ;;  %7922 = vmatmul.mubr.msk.bf16.gmra.mrb[56].mxu0 %vm1974_vm9, %v6961_v9  ;;  %v3686_v11 = vrot.slane %v3684_v26, 4  ;;  %v3689_v27 = vrot.slane %v3687_v16, 5  ;;  %v3697_v61 = vshrl.u32 %v9832_v13, 16  ;;  %v9853_v9 = vld [vmem:[#allocation2 + $0xbc] sm:$0x1] }
 0x21e   : > { %v3672_v17 = vsel %vm9319_vm12, %v3667_v0, %v3671_v20  ;;  %v3677_v63 = vrot.slane %v3676_v58, 4  ;;  %7925 = vmatprep.mubr.msk.bf16.mxu0 %vm1974_vm9, %v6962_v41  ;;  %v3695_v33 = vrot.slane %v3693_v22, 5  ;;  %v3703_v14 = vshll.u32 %v9839_v51, 16  ;;  %v3368_v58 = vld [vmem:[#allocation2 + $0xc0] sm:$0xf] }
 0x21f   : > { %8030 = vmatmul.mubr.msk.bf16.gmra.mrb[12].mxu1 %vm1974_vm9, %v7079_v56  ;;  %v3690_v15 = vor.u32 %v3689_v27, %v3686_v11  ;;  %v3699_v47 = vrot.slane %v3697_v61, 4  ;;  %v3708_v18 = vshrl.u32 %v3365_v34, 16  ;;  %v3711_v38 = vshll.u32 %v3365_v34, 16  ;;  %v9860_v61 = vld [vmem:[#allocation2 + $0xc4] sm:$0xf] }
 0x220   : > { %v3682_v21 = vsel %vm9319_vm12, %v3677_v63, %v3681_v30  ;;  %v3705_v6 = vrot.slane %v3703_v14, 5  ;;  %v3717_v20 = vshll.u32 %v9846_v5, 16  ;;  %v3721_v26 = vshrl.u32 %v9846_v5, 16 }
 0x221   : > { %v7080_v41 = vcombine.low %v3672_v17, %v3682_v21  ;;  %v3691_v16 = vrot.slane %v3690_v15, 4  ;;  %v3700_v52 = vor.u32 %v3699_v47, %v3695_v33  ;;  %v3710_v0 = vrot.slane %v3708_v18, 4  ;;  %v9869_v18 = vld [vmem:[#allocation2 + $0xc8] sm:$0x1] }
 0x222   : > { %v3713_v22 = vrot.slane %v3711_v38, 5  ;;  %v3719_v56 = vrot.slane %v3717_v20, 5  ;;  %v3723_v11 = vrot.slane %v3721_v26, 4  ;;  %v3727_v27 = vshll.u32 %v9853_v9, 16 }
 0x223   : > { %8033 = vmatprep.mubr.msk.bf16.mxu1 %vm1974_vm9, %v7080_v41  ;;  %v3696_v30 = vsel %vm9319_vm12, %v3691_v16, %v3695_v33  ;;  %v3701_v34 = vrot.slane %v3700_v52, 4  ;;  %v6963_v17 = vcombine.low %v9568_v48, %v9576_v10  ;;  %v6964_v63 = vcombine.low %v9585_v12, %v9589_v32 }
 0x224   : > { %v3714_v14 = vor.u32 %v3713_v22, %v3710_v0  ;;  %v3724_v15 = vor.u32 %v3723_v11, %v3719_v56  ;;  %v3729_v47 = vrot.slane %v3727_v27, 5  ;;  %v3732_v38 = vshrl.u32 %v3368_v58, 16  ;;  %v4060_v22 = vld [vmem:[#allocation2 + $0xc] sm:$0xe] }
 0x225   : > { %v3706_v21 = vsel %vm9319_vm12, %v3701_v34, %v3705_v6  ;;  %7926 = vmatmul.mubr.msk.bf16.gmra.mrb[60].mxu0 %vm1974_vm9, %v6963_v17  ;;  %v3735_v20 = vshll.u32 %v3368_v58, 16  ;;  %v3741_v33 = vshll.u32 %v9860_v61, 16  ;;  %v3745_v26 = vshrl.u32 %v9860_v61, 16  ;;  %v4061_v17 = vld [vmem:[#allocation2 + $0x18] sm:$0xe] }
 0x226   : > { %v7081_v48 = vcombine.low %v3696_v30, %v3706_v21  ;;  %v3715_v10 = vrot.slane %v3714_v14, 4  ;;  %v3725_v41 = vrot.slane %v3724_v15, 4  ;;  %7929 = vmatprep.mubr.msk.bf16.mxu0 %vm1974_vm9, %v6964_v63  ;;  %v3734_v12 = vrot.slane %v3732_v38, 4 }
 0x227   : > { %v3737_v32 = vrot.slane %v3735_v20, 5  ;;  %v3743_v16 = vrot.slane %v3741_v33, 5  ;;  %v3747_v52 = vrot.slane %v3745_v26, 4  ;;  %v3751_v0 = vshll.u32 %v9869_v18, 16 }
 0x228   : > { %8034 = vmatmul.mubr.msk.bf16.gmra.mrb[16].mxu1 %vm1974_vm9, %v7081_v48  ;;  %v3720_v6 = vsel %vm9319_vm12, %v3715_v10, %v3719_v56  ;;  %v3730_v58 = vsel %vm9319_vm12, %v3725_v41, %v3729_v47  ;;  %v7102_v14 = vrot.slane %v4060_v22, 9  ;;  %v4126_v15 = vrot.slane %v9599_v49, 5  ;;  %v2485_v10 = vld [vmem:[#allocation2] sm:$0xe]  ;;  %v8652_v22 = vld [vmem:[#allocation2 + $0x4] sm:$0xf] }
 0x229   : > { %v7082_v11 = vcombine.low %v3720_v6, %v3730_v58  ;;  %v3738_v27 = vor.u32 %v3737_v32, %v3734_v12  ;;  %v3748_v30 = vor.u32 %v3747_v52, %v3743_v16  ;;  %v3753_v34 = vrot.slane %v3751_v0, 5 }
 0x22a   : > { %v4129_v38 = vrot.slane %v9602_v59, 5  ;;  %v6965_v21 = vcombine.low %v9607_v42, %v9609_v31  ;;  %v4133_v20 = vrot.slane %v9622_v39, 5  ;;  %v4128_v33 = vrot.slane %v4126_v15, 4  ;;  %v4062_v42 = vld [vmem:[#allocation2 + $0x24] sm:$0xe] }
 0x22b   : > { %8037 = vmatprep.mubr.msk.bf16.mxu1 %vm1974_vm9, %v7082_v11  ;;  %v3739_v56 = vrot.slane %v3738_v27, 4  ;;  %v3749_v47 = vrot.slane %v3748_v30, 4  ;;  %v7103_v26 = vrot.slane %v4061_v17, 9  ;;  %v4136_v48 = vrot.slane %v9625_v55, 5  ;;  %v8653_v27 = vld [vmem:[#allocation2 + $0x8] sm:$0x1] }
 0x22c   : > { %v4127_v59 = vsel %vm9883_vm15, %v7102_v14, %v4126_v15  ;;  %v4135_v12 = vrot.slane %v4133_v20, 4  ;;  %v4130_v39 = vsel %vm9883_vm15, %v4128_v33, %v4129_v38  ;;  %v4140_v55 = vrot.slane %v9631_v4, 5  ;;  %v2487_v15 = vld [vmem:[#allocation2 + $0x18] sm:$0xe] }
 0x22d   : > { %v3744_v41 = vsel %vm9319_vm12, %v3739_v56, %v3743_v16  ;;  %v3754_v49 = vsel %vm9319_vm12, %v3749_v47, %v3753_v34  ;;  %7930 = vmatmul.mubr.msk.bf16.gmra.mrb[64].mxu0 %vm1974_vm9, %v6965_v21  ;;  %v4143_v32 = vrot.slane %v9641_v62, 5  ;;  %v7118_v52 = vcombine.low %v4127_v59, %v4130_v39  ;;  %v2486_v34 = vld [vmem:[#allocation2 + $0xc] sm:$0xe]  ;;  %v8654_v47 = vld [vmem:[#allocation2 + $0x14] sm:$0x1] }
 0x22e   : > { %v7083_v31 = vcombine.low %v3744_v41, %v3754_v49  ;;  %v4137_v16 = vsel %vm9883_vm15, %v4135_v12, %v4136_v48  ;;  %v6984_v0 = vrot.slane %v2485_v10, 9  ;;  %v2538_v6 = vrot.slane %v8652_v22, 5  ;;  %v8655_v59 = vld [vmem:[#allocation2 + $0x20] sm:$0x1] }
 0x22f   : > { %v4134_v58 = vsel %vm9883_vm15, %v7103_v26, %v4133_v20  ;;  %v7104_v11 = vrot.slane %v4062_v42, 9  ;;  %v2541_v30 = vrot.slane %v8653_v27, 5  ;;  %v4142_v4 = vrot.slane %v4140_v55, 4  ;;  %v4063_v42 = vld [vmem:[#allocation2 + $0x30] sm:$0xe] }
 0x230   : > { %8038 = vmatmul.mubr.msk.bf16.gmra.mrb[20].mxu1 %vm1974_vm9, %v7083_v31  ;;  %v2539_v62 = vsel %vm9883_vm15, %v6984_v0, %v2538_v6  ;;  %v2540_v17 = vrot.slane %v2538_v6, 4  ;;  %v2545_v14 = vrot.slane %v9656_v28, 5  ;;  %v7119_v38 = vcombine.low %v4134_v58, %v4137_v16  ;;  %v8612_v6 = vld [vmem:[%s10950_s3 + $0x68] sm:$0xff]   ;;  %v2488_v27 = vld [vmem:[#allocation2 + $0x24] sm:$0xe] }
 0x231   : > { %8045 = vmatprep.mubr.msk.bf16.mxu1 %vm1974_vm9, %v7118_v52  ;;  %v4141_v56 = vsel %vm9883_vm15, %v7104_v11, %v4140_v55  ;;  %v2548_v21 = vrot.slane %v8654_v47, 5  ;;  %v2552_v20 = vrot.slane %v9659_v3, 5  ;;  %v4144_v33 = vsel %vm9883_vm15, %v4142_v4, %v4143_v32  ;;  %v4064_v32 = vld [vmem:[#allocation2 + $0x3c] sm:$0xe]  ;;  %v9955_v47 = vld [vmem:[%s10950_s3 + $0x70] sm:$0xff]  }
 0x232   : > { %v2542_v26 = vsel %vm9883_vm15, %v2540_v17, %v2541_v30  ;;  %v6985_v48 = vrot.slane %v2486_v34, 9  ;;  %v2547_v10 = vrot.slane %v2545_v14, 4  ;;  %v6986_v49 = vrot.slane %v2487_v15, 9 }
 0x233   : > { %v7000_v41 = vcombine.low %v2539_v62, %v2542_v26  ;;  %v2554_v28 = vrot.slane %v2552_v20, 4  ;;  %v2555_v12 = vrot.slane %v8655_v59, 5  ;;  %v4147_v39 = vrot.slane %v9648_v45, 5  ;;  %v2489_v62 = vld [vmem:[#allocation2 + $0x30] sm:$0xe]  ;;  %v10999_v59 = vld [vmem:[#allocation10_spill] sm:$0xff] }
 0x234   : > { %v2546_v31 = vsel %vm9883_vm15, %v6985_v48, %v2545_v14  ;;  %v2549_v3 = vsel %vm9883_vm15, %v2547_v10, %v2548_v21  ;;  %v4150_v55 = vrot.slane %v9651_v2, 5  ;;  %v7120_v52 = vcombine.low %v4141_v56, %v4144_v33  ;;  %v8656_v14 = vld [vmem:[#allocation2 + $0x2c] sm:$0x1]  ;;  %v8657_v33 = vld [vmem:[#allocation2 + $0x38] sm:$0x1] }
 0x235   : > { %7937 = vmatprep.mubr.msk.bf16.mxu0 %vm1974_vm9, %v7000_v41  ;;  %v7001_v16 = vcombine.low %v2546_v31, %v2549_v3  ;;  %v2556_v0 = vsel %vm9883_vm15, %v2554_v28, %v2555_v12  ;;  %v4154_v22 = vrot.slane %v9670_v46, 5  ;;  %v2553_v58 = vsel %vm9883_vm15, %v6986_v49, %v2552_v20  ;;  %v4065_v41 = vld [vmem:[#allocation2 + $0x48] sm:$0xe]  ;;  %v10998_v49 = vld [vmem:[#allocation9_spill] sm:$0xff] }
 0x236   : > { %v7105_v45 = vrot.slane %v4063_v42, 9  ;;  %v4149_v11 = vrot.slane %v4147_v39, 4  ;;  %v4157_v2 = vrot.slane %v9672_v53, 5  ;;  %v7002_v30 = vcombine.low %v2553_v58, %v2556_v0  ;;  %v8658_v42 = vld [vmem:[%s10950_s3 + $0x38] sm:$0xff]  }
 0x237   : > { %7938 = vmatmul.mubr.msk.bf16.vlgmr.msra.gmra.mrb[36].mxu0 %vm1974_vm9, %v7001_v16  ;;  %v7106_v34 = vrot.slane %v4064_v32, 9  ;;  %v4156_v4 = vrot.slane %v4154_v22, 4  ;;  %v2559_v46 = vrot.slane %v9703_v19, 5  ;;  %v2562_v53 = vrot.slane %v8656_v14, 5 }
 0x238   : > { %8046 = vmatmul.mubr.msk.bf16.vlgmr.msra.gmra.mrb[24].mxu1 %vm1974_vm9, %v7119_v38  ;;  %v4151_v17 = vsel %vm9883_vm15, %v4149_v11, %v4150_v55  ;;  %v2566_v15 = vrot.slane %v9707_v35, 5  ;;  %7941 = vmatprep.mubr.msk.bf16.mxu0 %vm1974_vm9, %v7002_v30  ;;  %v4148_v38 = vsel %vm9883_vm15, %v7105_v45, %v4147_v39  ;;  %v6987_v21 = vrot.slane %v2488_v27, 9  ;;  %v4066_v39 = vld [vmem:[#allocation2 + $0x54] sm:$0xe]  ;;  %v2491_v30 = vld [vmem:[#allocation2 + $0x48] sm:$0xe] }
 0x239   : > { %8078 = vmatpush3.bf16.msra.mxu1 %v9692_v25  ;;  %8049 = vmatprep.mubr.msk.bf16.mxu1 %vm1974_vm9, %v7120_v52  ;;  %v4155_v19 = vsel %vm9883_vm15, %v7106_v34, %v4154_v22  ;;  %v4158_v25 = vsel %vm9883_vm15, %v4156_v4, %v4157_v2  ;;  %v2561_v56 = vrot.slane %v2559_v46, 4  ;;  %v6988_v35 = vrot.slane %v2489_v62, 9  ;;  %v2490_v22 = vld [vmem:[#allocation2 + $0x3c] sm:$0xe]  ;;  %v11000_v2 = vld [vmem:[#allocation11_spill] sm:$0xff] }
 0x23a   : > { %8079 = vmatprep.subr.bf16.mxu1 %v8612_v6  ;;  %v2568_v20 = vrot.slane %v2566_v15, 4  ;;  %v2569_v26 = vrot.slane %v8657_v33, 5  ;;  %7970 = vmatpush3.bf16.msra.mxu0 %v9729_v7  ;;  %v7121_v48 = vcombine.low %v4148_v38, %v4151_v17  ;;  %v4161_v28 = vrot.slane %v10998_v49, 5  ;;  %v8659_v34 = vld [vmem:[#allocation2 + $0x44] sm:$0x1]  ;;  %v11001_v49 = vld [vmem:[#allocation12_spill] sm:$0xff] }
 0x23b   : > { %v2563_v10 = vsel %vm9883_vm15, %v2561_v56, %v2562_v53  ;;  %v4164_v12 = vrot.slane %v10999_v59, 5  ;;  %7971 = vmatprep.subr.bf16.mxu0 %v8658_v42  ;;  %v7122_v31 = vcombine.low %v4155_v19, %v4158_v25  ;;  %v2560_v3 = vsel %vm9883_vm15, %v6987_v21, %v2559_v46  ;;  %v8660_v4 = vld [vmem:[#allocation2 + $0x4c] sm:$0xf]  ;;  %v8661_v25 = vld [vmem:[#allocation2 + $0x50] sm:$0x1] }
 0x23c   : > { %v2570_v7 = vsel %vm9883_vm15, %v2568_v20, %v2569_v26  ;;  %v4168_v55 = vrot.slane %v9715_v43, 5  ;;  %v7003_v32 = vcombine.low %v2560_v3, %v2563_v10  ;;  %v2567_v52 = vsel %vm9883_vm15, %v6988_v35, %v2566_v15  ;;  %v4067_v21 = vld [vmem:[#allocation2 + $0x60] sm:$0xe] }
 0x23d   : > { %8080 = vmatpush3.bf16.msra.mxu1 %v8612_v6  ;;  %v4163_v16 = vrot.slane %v4161_v28, 4  ;;  %v4171_v0 = vrot.slane %v9721_v23, 5  ;;  %v7004_v58 = vcombine.low %v2567_v52, %v2570_v7  ;;  %v7107_v45 = vrot.slane %v4065_v41, 9  ;;  %v2492_v7 = vld [vmem:[#allocation2 + $0x54] sm:$0xe] }
 0x23e   : > { %8113 = vmatprep.subr.bf16.mxu1 %v9955_v47  ;;  %v4170_v11 = vrot.slane %v4168_v55, 4  ;;  %v2573_v27 = vrot.slane %v11000_v2, 5  ;;  %7972 = vmatpush3.bf16.msra.mxu0 %v8658_v42  ;;  %v7108_v6 = vrot.slane %v4066_v39, 9  ;;  %v2576_v23 = vrot.slane %v8659_v34, 5 }
 0x23f   : > { %7942 = vmatmul.mubr.msk.bf16.gmra.mrb[40].mxu0 %vm1974_vm9, %v7003_v32  ;;  %v4165_v43 = vsel %vm9883_vm15, %v4163_v16, %v4164_v12  ;;  %v2580_v46 = vrot.slane %v8660_v4, 5  ;;  %v4162_v62 = vsel %vm9883_vm15, %v7107_v45, %v4161_v28  ;;  %v6989_v14 = vrot.slane %v2490_v22, 9  ;;  %v8662_v32 = vld [vmem:[#allocation2 + $0x58] sm:$0xf]  ;;  %v2493_v16 = vld [vmem:[#allocation2 + $0x60] sm:$0xe] }
 0x240   : > { %8050 = vmatmul.mubr.msk.bf16.gmra.mrb[28].mxu1 %vm1974_vm9, %v7121_v48  ;;  %7945 = vmatprep.mubr.msk.bf16.mxu0 %vm1974_vm9, %v7004_v58  ;;  %v4172_v17 = vsel %vm9883_vm15, %v4170_v11, %v4171_v0  ;;  %v2575_v53 = vrot.slane %v2573_v27, 4  ;;  %v4169_v15 = vsel %vm9883_vm15, %v7108_v6, %v4168_v55  ;;  %v6990_v38 = vrot.slane %v2491_v30, 9  ;;  %v4068_v48 = vld [vmem:[#allocation2 + $0x6c] sm:$0xe]  ;;  %v8663_v58 = vld [vmem:[#allocation2 + $0x5c] sm:$0x1] }
 0x241   : > { %8053 = vmatprep.mubr.msk.bf16.mxu1 %vm1974_vm9, %v7122_v31  ;;  %v2582_v19 = vrot.slane %v2580_v46, 4  ;;  %v2583_v56 = vrot.slane %v8661_v25, 5  ;;  %v7123_v35 = vcombine.low %v4162_v62, %v4165_v43  ;;  %v2574_v20 = vsel %vm9883_vm15, %v6989_v14, %v2573_v27  ;;  %v8664_v45 = vld [vmem:[#allocation2 + $0x64] sm:$0xf] }
 0x242   : > { %v2577_v33 = vsel %vm9883_vm15, %v2575_v53, %v2576_v23  ;;  %v4175_v26 = vrot.slane %v9742_v40, 5  ;;  %v7124_v10 = vcombine.low %v4169_v15, %v4172_v17  ;;  %v4178_v28 = vrot.slane %v11001_v49, 5  ;;  %v8665_v23 = vld [vmem:[#allocation2 + $0x68] sm:$0x1]  ;;  %v4070_v15 = vld [vmem:[#allocation2 + $0x84] sm:$0xe] }
 0x243   : > { %v2584_v41 = vsel %vm9883_vm15, %v2582_v19, %v2583_v56  ;;  %v4182_v59 = vrot.slane %v9755_v8, 5  ;;  %v7005_v12 = vcombine.low %v2574_v20, %v2577_v33  ;;  %v2581_v42 = vsel %vm9883_vm15, %v6990_v38, %v2580_v46  ;;  %v4069_v46 = vld [vmem:[#allocation2 + $0x78] sm:$0xe] }
 0x244   : > { %v7109_v31 = vrot.slane %v4067_v21, 9  ;;  %v4185_v3 = vrot.slane %v9761_v50, 5  ;;  %v4177_v39 = vrot.slane %v4175_v26, 4  ;;  %v7110_v55 = vrot.slane %v4068_v48, 9  ;;  %v8666_v48 = vld [vmem:[#allocation2 + $0x70] sm:$0xf] }
 0x245   : > { %v4184_v40 = vrot.slane %v4182_v59, 4  ;;  %v2587_v52 = vrot.slane %v8662_v32, 5  ;;  %v7006_v0 = vcombine.low %v2581_v42, %v2584_v41  ;;  %v2590_v8 = vrot.slane %v8663_v58, 5  ;;  %v8669_v32 = vld [vmem:[#allocation2 + $0x80] sm:$0x1] }
 0x246   : > { %v4176_v22 = vsel %vm9883_vm15, %v7109_v31, %v4175_v26  ;;  %v2594_v11 = vrot.slane %v8664_v45, 5  ;;  %v4179_v50 = vsel %vm9883_vm15, %v4177_v39, %v4178_v28  ;;  %v4183_v2 = vsel %vm9883_vm15, %v7110_v55, %v4182_v59  ;;  %v2494_v28 = vld [vmem:[#allocation2 + $0x6c] sm:$0xe]  ;;  %v2495_v39 = vld [vmem:[#allocation2 + $0x78] sm:$0xe] }
 0x247   : > { %7946 = vmatmul.mubr.msk.bf16.gmra.mrb[44].mxu0 %vm1974_vm9, %v7005_v12  ;;  %v4186_v27 = vsel %vm9883_vm15, %v4184_v40, %v4185_v3  ;;  %v2589_v30 = vrot.slane %v2587_v52, 4  ;;  %v6991_v6 = vrot.slane %v2492_v7, 9  ;;  %v6992_v34 = vrot.slane %v2493_v16, 9  ;;  %v8668_v12 = vld [vmem:[#allocation2 + $0x7c] sm:$0xf] }
 0x248   : > { %8054 = vmatmul.mubr.msk.bf16.gmra.mrb[0].mxu1 %vm1974_vm9, %v7123_v35  ;;  %7949 = vmatprep.mubr.msk.bf16.mxu0 %vm1974_vm9, %v7006_v0  ;;  %v7126_v43 = vcombine.low %v4183_v2, %v4186_v27  ;;  %v2597_v4 = vrot.slane %v8665_v23, 5  ;;  %v2596_v17 = vrot.slane %v2594_v11, 4  ;;  %v4189_v14 = vrot.slane %v9770_v60, 5  ;;  %v4071_v16 = vld [vmem:[#allocation2 + $0x90] sm:$0xe] }
 0x249   : > { %8057 = vmatprep.mubr.msk.bf16.mxu1 %vm1974_vm9, %v7124_v10  ;;  %v2591_v62 = vsel %vm9883_vm15, %v2589_v30, %v2590_v8  ;;  %v4192_v53 = vrot.slane %v9779_v24, 5  ;;  %v7125_v38 = vcombine.low %v4176_v22, %v4179_v50  ;;  %v2588_v19 = vsel %vm9883_vm15, %v6991_v6, %v2587_v52  ;;  %v4072_v8 = vld [vmem:[#allocation2 + $0x9c] sm:$0xe] }
 0x24a   : > { %v2595_v25 = vsel %vm9883_vm15, %v6992_v34, %v2594_v11  ;;  %v4196_v56 = vrot.slane %v9786_v29, 5  ;;  %v2598_v21 = vsel %vm9883_vm15, %v2596_v17, %v2597_v4  ;;  %v7111_v35 = vrot.slane %v4069_v46, 9  ;;  %v8667_v29 = vld [vmem:[#allocation2 + $0x74] sm:$0x1] }
 0x24b   : > { %v4191_v20 = vrot.slane %v4189_v14, 4  ;;  %v4199_v33 = vrot.slane %v9794_v37, 5  ;;  %v7007_v60 = vcombine.low %v2588_v19, %v2591_v62  ;;  %v7112_v26 = vrot.slane %v4070_v15, 9  ;;  %v8670_v62 = vld [vmem:[#allocation2 + $0x88] sm:$0xf] }
 0x24c   : > { %v4198_v24 = vrot.slane %v4196_v56, 4  ;;  %v2601_v10 = vrot.slane %v8666_v48, 5  ;;  %v4190_v41 = vsel %vm9883_vm15, %v7111_v35, %v4189_v14  ;;  %v2604_v59 = vrot.slane %v8667_v29, 5  ;;  %v2496_v15 = vld [vmem:[#allocation2 + $0x84] sm:$0xe] }
 0x24d   : > { %v4193_v49 = vsel %vm9883_vm15, %v4191_v20, %v4192_v53  ;;  %v2608_v42 = vrot.slane %v8668_v12, 5  ;;  %v7008_v31 = vcombine.low %v2595_v25, %v2598_v21  ;;  %v4197_v37 = vsel %vm9883_vm15, %v7112_v26, %v4196_v56  ;;  %v8672_v21 = vld [vmem:[#allocation2 + $0x8c] sm:$0x1]  ;;  %v2497_v20 = vld [vmem:[#allocation2 + $0x90] sm:$0xe] }
 0x24e   : > { %v7127_v3 = vcombine.low %v4190_v41, %v4193_v49  ;;  %v4200_v7 = vsel %vm9883_vm15, %v4198_v24, %v4199_v33  ;;  %v2603_v40 = vrot.slane %v2601_v10, 4  ;;  %v2611_v52 = vrot.slane %v8669_v32, 5  ;;  %v4073_v33 = vld [vmem:[#allocation2 + $0xa8] sm:$0xe]  ;;  %v8674_v32 = vld [vmem:[#allocation2 + $0xa0] sm:$0xf] }
 0x24f   : > { %7950 = vmatmul.mubr.msk.bf16.gmra.mrb[48].mxu0 %vm1974_vm9, %v7007_v60  ;;  %v7128_v55 = vcombine.low %v4197_v37, %v4200_v7  ;;  %v6993_v0 = vrot.slane %v2494_v28, 9  ;;  %v4203_v22 = vrot.slane %v9805_v57, 5  ;;  %v4206_v58 = vrot.slane %v9807_v1, 5  ;;  %v8673_v60 = vld [vmem:[#allocation2 + $0x98] sm:$0x1] }
 0x250   : > { %8058 = vmatmul.mubr.msk.bf16.gmra.mrb[4].mxu1 %vm1974_vm9, %v7125_v38  ;;  %7953 = vmatprep.mubr.msk.bf16.mxu0 %vm1974_vm9, %v7008_v31  ;;  %v2605_v45 = vsel %vm9883_vm15, %v2603_v40, %v2604_v59  ;;  %v6994_v11 = vrot.slane %v2495_v39, 9  ;;  %v2610_v50 = vrot.slane %v2608_v42, 4  ;;  %v4210_v2 = vrot.slane %v9816_v44, 5  ;;  %v8671_v38 = vld [vmem:[#allocation2 + $0x94] sm:$0xf] }
 0x251   : > { %8061 = vmatprep.mubr.msk.bf16.mxu1 %vm1974_vm9, %v7126_v43  ;;  %v2602_v27 = vsel %vm9883_vm15, %v6993_v0, %v2601_v10  ;;  %v7113_v30 = vrot.slane %v4071_v16, 9  ;;  %v4205_v43 = vrot.slane %v4203_v22, 4  ;;  %v4213_v6 = vrot.slane %v9823_v36, 5  ;;  %v4074_v10 = vld [vmem:[#allocation2 + $0xb4] sm:$0xe] }
 0x252   : > { %v2609_v57 = vsel %vm9883_vm15, %v6994_v11, %v2608_v42  ;;  %v2612_v1 = vsel %vm9883_vm15, %v2610_v50, %v2611_v52  ;;  %v7114_v34 = vrot.slane %v4072_v8, 9  ;;  %v4212_v23 = vrot.slane %v4210_v2, 4  ;;  %v8676_v50 = vld [vmem:[#allocation2 + $0xa4] sm:$0x1] }
 0x253   : > { %v7009_v4 = vcombine.low %v2602_v27, %v2605_v45  ;;  %v4204_v46 = vsel %vm9883_vm15, %v7113_v30, %v4203_v22  ;;  %v4207_v44 = vsel %vm9883_vm15, %v4205_v43, %v4206_v58  ;;  %v2615_v17 = vrot.slane %v8670_v62, 5  ;;  %v8675_v58 = vld [vmem:[#allocation2 + $0xac] sm:$0xf]  ;;  %v4075_v45 = vld [vmem:[#allocation2 + $0xc0] sm:$0xe] }
 0x254   : > { %v7129_v14 = vcombine.low %v4204_v46, %v4207_v44  ;;  %v4211_v36 = vsel %vm9883_vm15, %v7114_v34, %v4210_v2  ;;  %v4214_v53 = vsel %vm9883_vm15, %v4212_v23, %v4213_v6  ;;  %v2622_v19 = vrot.slane %v8671_v38, 5  ;;  %v2498_v43 = vld [vmem:[#allocation2 + $0x9c] sm:$0xe]  ;;  %v8677_v6 = vld [vmem:[#allocation2 + $0xb0] sm:$0x1] }
 0x255   : > { %v7010_v25 = vcombine.low %v2609_v57, %v2612_v1  ;;  %v7130_v56 = vcombine.low %v4211_v36, %v4214_v53  ;;  %v2618_v35 = vrot.slane %v8672_v21, 5  ;;  %v2625_v26 = vrot.slane %v8673_v60, 5  ;;  %v2499_v34 = vld [vmem:[#allocation2 + $0xa8] sm:$0xe]  ;;  %v8679_v21 = vld [vmem:[#allocation2 + $0xbc] sm:$0x1] }
 0x256   : > { %v4217_v24 = vrot.slane %v9832_v13, 5  ;;  %v4220_v48 = vrot.slane %v9839_v51, 5  ;;  %v6995_v41 = vrot.slane %v2496_v15, 9  ;;  %v2617_v49 = vrot.slane %v2615_v17, 4  ;;  %v8678_v15 = vld [vmem:[#allocation2 + $0xb8] sm:$0xf] }
 0x257   : > { %7954 = vmatmul.mubr.msk.bf16.gmra.mrb[52].mxu0 %vm1974_vm9, %v7009_v4  ;;  %v4224_v28 = vrot.slane %v9846_v5, 5  ;;  %v2624_v29 = vrot.slane %v2622_v19, 4  ;;  %v7115_v59 = vrot.slane %v4073_v33, 9  ;;  %v4227_v42 = vrot.slane %v9853_v9, 5 }
 0x258   : > { %8062 = vmatmul.mubr.msk.bf16.gmra.mrb[8].mxu1 %vm1974_vm9, %v7127_v3  ;;  %7957 = vmatprep.mubr.msk.bf16.mxu0 %vm1974_vm9, %v7010_v25  ;;  %v4219_v12 = vrot.slane %v4217_v24, 4  ;;  %v2619_v31 = vsel %vm9883_vm15, %v2617_v49, %v2618_v35  ;;  %v6996_v13 = vrot.slane %v2497_v20, 9  ;;  %v7116_v3 = vrot.slane %v4074_v10, 9  ;;  %v2500_v20 = vld [vmem:[#allocation2 + $0xb4] sm:$0xe]  ;;  %v8613_v10 = vld [vmem:[#allocation2 + $0x18] sm:$0xff]  }
 0x259   : > { %8065 = vmatprep.mubr.msk.bf16.mxu1 %vm1974_vm9, %v7128_v55  ;;  %v4226_v51 = vrot.slane %v4224_v28, 4  ;;  %v2616_v37 = vsel %vm9883_vm15, %v6995_v41, %v2615_v17  ;;  %v2626_v7 = vsel %vm9883_vm15, %v2624_v29, %v2625_v26  ;;  %v4218_v5 = vsel %vm9883_vm15, %v7115_v59, %v4217_v24  ;;  %v8614_v41 = vld [vmem:[#allocation2 + $0xc] sm:$0xff]   ;;  %v8616_v49 = vld [vmem:[#allocation2 + $0x24] sm:$0xff]   ;;  %v8627_v29 = vld [vmem:[%s10950_s3 + $0x78] sm:$0xff]  }
 0x25a   : > { %v4221_v39 = vsel %vm9883_vm15, %v4219_v12, %v4220_v48  ;;  %v4225_v9 = vsel %vm9883_vm15, %v7116_v3, %v4224_v28  ;;  %v2629_v52 = vrot.slane %v8674_v32, 5  ;;  %v7011_v16 = vcombine.low %v2616_v37, %v2619_v31  ;;  %v8618_v28 = vld [vmem:[#allocation2 + $0x18] sm:$0xff]   ;;  %v8617_v59 = vld [vmem:[#allocation2 + $0x30] sm:$0xff]   ;;  %v8619_v12 = vld [vmem:[#allocation2 + $0x24] sm:$0xff]  }
 0x25b   : > { %v7131_v55 = vcombine.low %v4218_v5, %v4221_v39  ;;  %v4228_v40 = vsel %vm9883_vm15, %v4226_v51, %v4227_v42  ;;  %v2623_v0 = vsel %vm9883_vm15, %v6996_v13, %v2622_v19  ;;  %v2636_v8 = vrot.slane %v8675_v58, 5  ;;  %v10120_v42 = vld [vmem:[%s10950_s3 + $0x80] sm:$0xff]   ;;  %v4911_v31 = vld [vmem:[#allocation2 + $0x18] sm:$0xf]  ;;  %v8622_v3 = vld [vmem:[#allocation2 + $0x30] sm:$0xff]  }
 0x25c   : > { %v7132_v22 = vcombine.low %v4225_v9, %v4228_v40  ;;  %v7012_v11 = vcombine.low %v2623_v0, %v2626_v7  ;;  %v2632_v2 = vrot.slane %v8676_v50, 5  ;;  %v4231_v27 = vrot.slane %v9860_v61, 5  ;;  %v8620_v13 = vld [vmem:[#allocation2 + $0x3c] sm:$0xff]   ;;  %v4914_v51 = vld [vmem:[#allocation2 + $0x24] sm:$0xf]  ;;  %v8621_v37 = vld [vmem:[#allocation2 + $0x48] sm:$0xff]  }
 0x25d   : > { %v4234_v30 = vrot.slane %v9869_v18, 5  ;;  %v2639_v57 = vrot.slane %v8677_v6, 5  ;;  %v2631_v1 = vrot.slane %v2629_v52, 4  ;;  %v7117_v23 = vrot.slane %v4075_v45, 9  ;;  %v10125_v5 = vld [vmem:[#allocation2 + $0x1c] sm:$0xf] }
 0x25e   : > { %v4233_v4 = vrot.slane %v4231_v27, 4  ;;  %v2638_v46 = vrot.slane %v2636_v8, 4  ;;  %v6997_v44 = vrot.slane %v2498_v43, 9  ;;  %v6998_v17 = vrot.slane %v2499_v34, 9  ;;  %v10128_v9 = vld [vmem:[#allocation2 + $0x28] sm:$0xf] }
 0x25f   : > { %7958 = vmatmul.mubr.msk.bf16.gmra.mrb[56].mxu0 %vm1974_vm9, %v7011_v16  ;;  %v2633_v61 = vsel %vm9883_vm15, %v2631_v1, %v2632_v2  ;;  %v4232_v18 = vsel %vm9883_vm15, %v7117_v23, %v4231_v27  ;;  %v2643_v38 = vrot.slane %v8678_v15, 5  ;;  %v2646_v35 = vrot.slane %v8679_v21, 5  ;;  %v4917_v45 = vld [vmem:[#allocation2 + $0x30] sm:$0xf]  ;;  %v10134_v50 = vld [vmem:[#allocation2 + $0x20] sm:$0x1] }
 0x260   : > { %8066 = vmatmul.mubr.msk.bf16.gmra.mrb[12].mxu1 %vm1974_vm9, %v7129_v14  ;;  %7961 = vmatprep.mubr.msk.bf16.mxu0 %vm1974_vm9, %v7012_v11  ;;  %v4235_v62 = vsel %vm9883_vm15, %v4233_v4, %v4234_v30  ;;  %v2640_v14 = vsel %vm9883_vm15, %v2638_v46, %v2639_v57  ;;  %v2630_v53 = vsel %vm9883_vm15, %v6997_v44, %v2629_v52  ;;  %v6999_v60 = vrot.slane %v2500_v20, 9  ;;  %v8623_v11 = vld [vmem:[#allocation2 + $0x54] sm:$0xff]   ;;  %v8624_v2 = vld [vmem:[#allocation2 + $0x60] sm:$0xff]   ;;  %v10137_v6 = vld [vmem:[#allocation2 + $0x2c] sm:$0x1] }
 0x261   : > { %8069 = vmatprep.mubr.msk.bf16.mxu1 %vm1974_vm9, %v7130_v56  ;;  %v7133_v36 = vcombine.low %v4232_v18, %v4235_v62  ;;  %v7013_v19 = vcombine.low %v2630_v53, %v2633_v61  ;;  %v2637_v25 = vsel %vm9883_vm15, %v6998_v17, %v2636_v8  ;;  %v2645_v33 = vrot.slane %v2643_v38, 4  ;;  %v10139_v57 = vld [vmem:[#allocation2 + $0x34] sm:$0xf]  ;;  %v10146_v21 = vld [vmem:[#allocation2 + $0x38] sm:$0x1] }
 0x262   : > { %v7014_v56 = vcombine.low %v2637_v25, %v2640_v14  ;;  %v2644_v24 = vsel %vm9883_vm15, %v6999_v60, %v2643_v38  ;;  %v4960_v7 = vshrl.u32 %v4911_v31, 16  ;;  %v4984_v39 = vshrl.u32 %v4914_v51, 16  ;;  %v4920_v25 = vld [vmem:[#allocation2 + $0x3c] sm:$0xf] }
 0x263   : > { %v2647_v26 = vsel %vm9883_vm15, %v2645_v33, %v2646_v35  ;;  %v4969_v52 = vshll.u32 %v10125_v5, 16  ;;  %v4973_v16 = vshrl.u32 %v10125_v5, 16  ;;  %v4993_v58 = vshll.u32 %v10128_v9, 16  ;;  %v10148_v35 = vld [vmem:[#allocation2 + $0x40] sm:$0xf]  ;;  %v8626_v20 = vld [vmem:[#allocation2 + $0x78] sm:$0xff]  }
 0x264   : > { %v7015_v48 = vcombine.low %v2644_v24, %v2647_v26  ;;  %v4962_v40 = vrot.slane %v4960_v7, 4  ;;  %v4986_v0 = vrot.slane %v4984_v39, 4  ;;  %v4997_v8 = vshrl.u32 %v10128_v9, 16 }
 0x265   : > { %v4971_v30 = vrot.slane %v4969_v52, 5  ;;  %v4975_v43 = vrot.slane %v4973_v16, 4  ;;  %v5008_v1 = vshrl.u32 %v4917_v45, 16  ;;  %v5011_v34 = vshll.u32 %v4917_v45, 16 }
 0x266   : > { %v4979_v23 = vshll.u32 %v10134_v50, 16  ;;  %v4995_v46 = vrot.slane %v4993_v58, 5  ;;  %v4999_v44 = vrot.slane %v4997_v8, 4  ;;  %v5003_v62 = vshll.u32 %v10137_v6, 16  ;;  %v8629_v58 = vld [vmem:[#allocation2 + $0x90] sm:$0xff]  }
 0x267   : > { %7962 = vmatmul.mubr.msk.bf16.gmra.mrb[60].mxu0 %vm1974_vm9, %v7013_v19  ;;  %v4976_v18 = vor.u32 %v4975_v43, %v4971_v30  ;;  %v5017_v17 = vshll.u32 %v10139_v57, 16  ;;  %v5010_v14 = vrot.slane %v5008_v1, 4  ;;  %v5021_v53 = vshrl.u32 %v10139_v57, 16 }
 0x268   : > { %8070 = vmatmul.mubr.msk.bf16.gmra.mrb[16].mxu1 %vm1974_vm9, %v7131_v55  ;;  %7965 = vmatprep.mubr.msk.bf16.mxu0 %vm1974_vm9, %v7014_v56  ;;  %v4987_v55 = vshll.u32 %v4914_v51, 16  ;;  %v4981_v15 = vrot.slane %v4979_v23, 5  ;;  %v5000_v19 = vor.u32 %v4999_v44, %v4995_v46  ;;  %v8625_v56 = vld [vmem:[#allocation2 + $0x6c] sm:$0xff]   ;;  %v5005_v26 = vrot.slane %v5003_v62, 5  ;;  %v10178_v23 = vld [vmem:[#allocation2 + $0x58] sm:$0xf] }
 0x269   : > { %8073 = vmatprep.mubr.msk.bf16.mxu1 %vm1974_vm9, %v7132_v22  ;;  %v4977_v60 = vrot.slane %v4976_v18, 4  ;;  %v10152_v24 = vrot.slane %v5017_v17, 5  ;;  %v10163_v51 = vld [vmem:[#allocation2 + $0x4c] sm:$0xf] }
 0x26a   : > { %v4989_v22 = vrot.slane %v4987_v55, 5  ;;  %v4926_v55 = vld [vmem:[#allocation2 + $0x54] sm:$0xf] }
 0x26b   : > { %v5083_v44 = vshll.u32 %v4926_v55, 16 }
 0x26c   : > { %v4990_v4 = vor.u32 %v4989_v22, %v4986_v0  ;;  %v4929_v22 = vld [vmem:[#allocation2 + $0x60] sm:$0xf] }
 0x26d   : > { %v5107_v18 = vshll.u32 %v4929_v22, 16 }
 0x26e   : > { %v4991_v38 = vrot.slane %v4990_v4, 4  ;;  %v10180_v4 = vld [vmem:[#allocation2 + $0x50] sm:$0x1] }
 0x26f   : > { %7966 = vmatmul.mubr.msk.bf16.gmra.mrb[64].mxu0 %vm1974_vm9, %v7015_v48  ;;  %v4923_v48 = vld [vmem:[#allocation2 + $0x48] sm:$0xf] }
 0x270   : > { %8074 = vmatmul.mubr.msk.bf16.gmra.mrb[20].mxu1 %vm1974_vm9, %v7133_v36  ;;  %7973 = vmatprep.mubr.msk.bf16.mxu0 %vm1974_vm9, %v8614_v41  ;;  %v5013_v36 = vrot.slane %v5011_v34, 5  ;;  %v5023_v41 = vrot.slane %v5021_v53, 4  ;;  %v5059_v7 = vshll.u32 %v4923_v48, 16  ;;  %v10187_v53 = vld [vmem:[#allocation2 + $0x64] sm:$0xf] }
 0x271   : > { %8081 = vmatprep.mubr.msk.bf16.mxu1 %vm1974_vm9, %v8613_v10 }
 0x272   : > { %v5014_v10 = vor.u32 %v5013_v36, %v5010_v14  ;;  %v5024_v52 = vor.u32 %v5023_v41, %v10152_v24  ;;  %v5061_v34 = vrot.slane %v5059_v7, 5  ;;  %v8630_v7 = vld [vmem:[#allocation2 + $0x9c] sm:$0xff]  }
 0x274   : > { %v5025_v17 = vrot.slane %v5024_v52, 4  ;;  %v10208_v52 = vld [vmem:[#allocation2 + $0x70] sm:$0xf] }
 0x277   : > { %7974 = vmatmul.mubr.msk.bf16.vlgmr.msra.gmra.mrb[36].mxu0 %vm1974_vm9, %v8618_v28  ;;  %v5035_v28 = vshll.u32 %v4920_v25, 16 }
 0x278   : > { %8082 = vmatmul.mubr.msk.bf16.vlgmr.msra.gmra.mrb[24].mxu1 %vm1974_vm9, %v8616_v49  ;;  %7977 = vmatprep.mubr.msk.bf16.mxu0 %vm1974_vm9, %v8619_v12  ;;  %v5032_v49 = vshrl.u32 %v4920_v25, 16  ;;  %v5001_v12 = vrot.slane %v5000_v19, 4  ;;  %v5089_v19 = vshll.u32 %v10178_v23, 16  ;;  %v5093_v25 = vshrl.u32 %v10178_v23, 16 }
 0x279   : > { %8114 = vmatpush3.bf16.msra.mxu1 %v9955_v47  ;;  %8085 = vmatprep.mubr.msk.bf16.mxu1 %vm1974_vm9, %v8617_v59  ;;  %v4963_v47 = vshll.u32 %v4911_v31, 16  ;;  %v4996_v59 = vsel %vm9319_vm12, %v4991_v38, %v4995_v46  ;;  %v5027_v31 = vshll.u32 %v10146_v21, 16  ;;  %v5037_v0 = vrot.slane %v5035_v28, 5 }
 0x27a   : > { %8115 = vmatprep.subr.bf16.mxu1 %v8627_v29  ;;  %v5006_v39 = vsel %vm9319_vm12, %v5001_v12, %v5005_v26  ;;  %v5034_v16 = vrot.slane %v5032_v49, 4  ;;  %v5080_v46 = vshrl.u32 %v4926_v55, 16  ;;  %v5075_v26 = vshll.u32 %v10180_v4, 16 }
 0x27b   : > { %v4965_v32 = vrot.slane %v4963_v47, 5  ;;  %v10170_v8 = vcombine.low %v4996_v59, %v5006_v39  ;;  %v5029_v45 = vrot.slane %v5027_v31, 5  ;;  %v5109_v49 = vrot.slane %v5107_v18, 5 }
 0x27c   : > { %v5038_v14 = vor.u32 %v5037_v0, %v5034_v16  ;;  %v5113_v28 = vshll.u32 %v10187_v53, 16  ;;  %v8631_v16 = vld [vmem:[#allocation2 + $0xa8] sm:$0xff]   ;;  %v5137_v18 = vshll.u32 %v10208_v52, 16 }
 0x27d   : > { %8116 = vmatpush3.bf16.msra.mxu1 %v8627_v29  ;;  %v4966_v27 = vor.u32 %v4965_v32, %v4962_v40  ;;  %v4982_v29 = vsel %vm9319_vm12, %v4977_v60, %v4981_v15  ;;  %v8628_v40 = vld [vmem:[#allocation2 + $0x84] sm:$0xff]   ;;  %v5015_v32 = vrot.slane %v5014_v10, 4  ;;  %v5085_v10 = vrot.slane %v5083_v44, 5 }
 0x27e   : > { %8149 = vmatprep.subr.bf16.mxu1 %v10120_v42  ;;  %v5039_v55 = vrot.slane %v5038_v14, 4 }
 0x27f   : > { %7978 = vmatmul.mubr.msk.bf16.gmra.mrb[40].mxu0 %vm1974_vm9, %v8622_v3  ;;  %v4967_v61 = vrot.slane %v4966_v27, 4  ;;  %v5045_v3 = vshrl.u32 %v10148_v35, 16  ;;  %v5069_v27 = vshrl.u32 %v10163_v51, 16  ;;  %v5020_v62 = vsel %vm9319_vm12, %v5015_v32, %v10152_v24  ;;  %v10198_v24 = vld [vmem:[#allocation2 + $0x5c] sm:$0x1] }
 0x280   : > { %8086 = vmatmul.mubr.msk.bf16.gmra.mrb[28].mxu1 %vm1974_vm9, %v8620_v13  ;;  %v5041_v13 = vshll.u32 %v10148_v35, 16  ;;  %v5099_v32 = vshll.u32 %v10198_v24, 16 }
 0x281   : > { %8089 = vmatprep.mubr.msk.bf16.mxu1 %vm1974_vm9, %v8621_v37  ;;  %v4972_v33 = vsel %vm9319_vm12, %v4967_v61, %v4971_v30  ;;  %v5056_v37 = vshrl.u32 %v4923_v48, 16  ;;  %v5047_v43 = vrot.slane %v5045_v3, 4  ;;  %v5104_v61 = vshrl.u32 %v4929_v22, 16 }
 0x282   : > { %v10165_v47 = vcombine.low %v4972_v33, %v4982_v29  ;;  %v10176_v30 = vrot.slane %v5041_v13, 5  ;;  %v5071_v38 = vrot.slane %v5069_v27, 4  ;;  %v5082_v48 = vrot.slane %v5080_v46, 4 }
 0x283   : > { %v5058_v1 = vrot.slane %v5056_v37, 4  ;;  %v5106_v41 = vrot.slane %v5104_v61, 4  ;;  %v5117_v29 = vshrl.u32 %v10187_v53, 16  ;;  %v10203_v3 = vrot.slane %v5089_v19, 5 }
 0x284   : > { %v5048_v33 = vor.u32 %v5047_v43, %v10176_v30  ;;  %v5095_v37 = vrot.slane %v5093_v25, 4  ;;  %v5077_v22 = vrot.slane %v5075_v26, 5  ;;  %v10213_v27 = vrot.slane %v5113_v28, 5 }
 0x285   : > { %v5062_v60 = vor.u32 %v5061_v34, %v5058_v1  ;;  %v5119_v43 = vrot.slane %v5117_v29, 4  ;;  %v10215_v1 = vld [vmem:[#allocation2 + $0x74] sm:$0x1]  ;;  %v5044_v14 = vsel %vm9319_vm12, %v5039_v55, %v10176_v30  ;;  %v10229_v19 = vrot.slane %v5099_v32, 5  ;;  %v8633_v55 = vld [vmem:[#allocation2 + $0xc0] sm:$0xff]  }
 0x286   : > { %v5049_v0 = vrot.slane %v5048_v33, 4  ;;  %v5096_v61 = vor.u32 %v5095_v37, %v10203_v3 }
 0x287   : > { %v5120_v30 = vor.u32 %v5119_v43, %v10213_v27 }
 0x288   : > { %8090 = vmatmul.mubr.msk.bf16.gmra.mrb[0].mxu1 %vm1974_vm9, %v8623_v11  ;;  %v10172_v11 = vld [vmem:[#allocation2 + $0x44] sm:$0x1] }
 0x289   : > { %8093 = vmatprep.mubr.msk.bf16.mxu1 %vm1974_vm9, %v8624_v2  ;;  %v5065_v2 = vshll.u32 %v10163_v51, 16  ;;  %v5051_v36 = vshll.u32 %v10172_v11, 16 }
 0x28b   : > { %v10190_v15 = vrot.slane %v5065_v2, 5  ;;  %v5053_v31 = vrot.slane %v5051_v36, 5  ;;  %v5110_v2 = vor.u32 %v5109_v49, %v5106_v41  ;;  %v10242_v41 = vrot.slane %v5096_v61, 4 }
 0x28c   : > { %v10244_v49 = vrot.slane %v5137_v18, 5 }
 0x28d   : > { %v5072_v13 = vor.u32 %v5071_v38, %v10190_v15  ;;  %v5054_v36 = vsel %vm9319_vm12, %v5049_v0, %v5053_v31  ;;  %v10252_v31 = vld [vmem:[#allocation2 + $0x80] sm:$0x1] }
 0x28f   : > { %v5073_v44 = vrot.slane %v5072_v13, 4 }
 0x290   : > { %8094 = vmatmul.mubr.msk.bf16.gmra.mrb[4].mxu1 %vm1974_vm9, %v8625_v56  ;;  %v4932_v56 = vld [vmem:[#allocation2 + $0x6c] sm:$0xf] }
 0x291   : > { %8097 = vmatprep.mubr.msk.bf16.mxu1 %vm1974_vm9, %v8626_v20  ;;  %v5030_v20 = vsel %vm9319_vm12, %v5025_v17, %v5029_v45  ;;  %v5128_v59 = vshrl.u32 %v4932_v56, 16  ;;  %v5131_v12 = vshll.u32 %v4932_v56, 16  ;;  %v10210_v45 = vld [vmem:[#allocation2 + $0x68] sm:$0x1]  ;;  %v4935_v17 = vld [vmem:[#allocation2 + $0x78] sm:$0xf]  ;;  %v5078_v25 = vsel %vm9319_vm12, %v5073_v44, %v5077_v22 }
 0x292   : > { %v10205_v39 = vcombine.low %v5020_v62, %v5030_v20  ;;  %v5141_v62 = vshrl.u32 %v10208_v52, 16  ;;  %v10235_v20 = vrot.slane %v5110_v2, 4  ;;  %v5123_v33 = vshll.u32 %v10210_v45, 16  ;;  %v10272_v22 = vld [vmem:[#allocation2 + $0x90] sm:$0xf] }
 0x293   : > { %v5130_v34 = vrot.slane %v5128_v59, 4  ;;  %v5133_v46 = vrot.slane %v5131_v12, 5  ;;  %v5155_v29 = vshll.u32 %v4935_v17, 16  ;;  %v10248_v59 = vcombine.low %v5044_v14, %v5054_v36  ;;  %v5651_v44 = vld [vmem:[#allocation2 + $0x3c] sm:$0xe] }
 0x294   : > { %v10246_v28 = vrot.slane %v5141_v62, 4  ;;  %v10270_v0 = vrot.slane %v5123_v33, 5  ;;  %v10275_v2 = vrot.slane %v5120_v30, 4  ;;  %v5653_v14 = vld [vmem:[#allocation2 + $0x54] sm:$0xe]  ;;  %v5731_v33 = vrot.slane %v10146_v21, 5 }
 0x295   : > { %v5134_v26 = vor.u32 %v5133_v46, %v5130_v34  ;;  %v10286_v18 = vrot.slane %v5155_v29, 5  ;;  %v5652_v30 = vld [vmem:[#allocation2 + $0x48] sm:$0xe]  ;;  %v8634_v29 = vld [vmem:[#allocation2 + $0xcc] sm:$0xff]   ;;  %v5742_v21 = vrot.slane %v10163_v51, 5  ;;  %v5745_v62 = vrot.slane %v10180_v4, 5 }
 0x297   : > { %v10277_v43 = vrot.slane %v5134_v26, 4  ;;  %v5744_v4 = vrot.slane %v5742_v21, 4 }
 0x298   : > { %8098 = vmatmul.mubr.msk.bf16.gmra.mrb[8].mxu1 %vm1974_vm9, %v8628_v40  ;;  %v5063_v40 = vrot.slane %v5062_v60, 4  ;;  %v10238_v60 = vld [vmem:[#allocation2 + $0x7c] sm:$0xf] }
 0x299   : > { %8101 = vmatprep.mubr.msk.bf16.mxu1 %vm1974_vm9, %v8629_v58  ;;  %v5086_v58 = vor.u32 %v5085_v10, %v5082_v48  ;;  %v5147_v48 = vshll.u32 %v10215_v1, 16  ;;  %v5152_v10 = vshrl.u32 %v4935_v17, 16  ;;  %v5161_v13 = vshll.u32 %v10238_v60, 16 }
 0x29a   : > { %v5068_v38 = vsel %vm9319_vm12, %v5063_v40, %v10190_v15  ;;  %v8632_v15 = vld [vmem:[#allocation2 + $0xb4] sm:$0xff]   ;;  %v5165_v37 = vshrl.u32 %v10238_v60, 16  ;;  %v5728_v17 = vrot.slane %v10139_v57, 5  ;;  %v5654_v40 = vld [vmem:[#allocation2 + $0x60] sm:$0xe] }
 0x29b   : > { %v10233_v56 = vrot.slane %v5086_v58, 4  ;;  %v10250_v12 = vcombine.low %v5068_v38, %v5078_v25  ;;  %v5650_v58 = vld [vmem:[#allocation2 + $0x30] sm:$0xe]  ;;  %v10279_v34 = vrot.slane %v5147_v48, 5  ;;  %v10281_v46 = vrot.slane %v5152_v10, 4  ;;  %v8636_v10 = vld [vmem:[%s10950_s3 + $0x88] sm:$0xff]  }
 0x29c   : > { %v10290_v36 = vrot.slane %v5161_v13, 5  ;;  %v10292_v38 = vrot.slane %v5165_v37, 4  ;;  %v7222_v25 = vrot.slane %v5650_v58, 9  ;;  %v5730_v13 = vrot.slane %v5728_v17, 4  ;;  %v10391_v48 = vld [vmem:[#allocation2 + $0xb8] sm:$0xf] }
 0x29d   : > { %v5735_v37 = vrot.slane %v10148_v35, 5  ;;  %v7224_v58 = vrot.slane %v5652_v30, 9  ;;  %v5749_v35 = vrot.slane %v10178_v23, 5  ;;  %v5655_v30 = vld [vmem:[#allocation2 + $0x6c] sm:$0xe] }
 0x29e   : > { %v10300_v57 = vsel %vm9883_vm15, %v7222_v25, %v5728_v17 }
 0x29f   : > { %v5737_v17 = vrot.slane %v5735_v37, 4  ;;  %v10319_v51 = vsel %vm9883_vm15, %v7224_v58, %v5742_v21  ;;  %v5656_v58 = vld [vmem:[#allocation2 + $0x78] sm:$0xe]  ;;  %v10341_v21 = vld [vmem:[#allocation2 + $0x88] sm:$0xf] }
 0x2a0   : > { %8102 = vmatmul.mubr.msk.bf16.gmra.mrb[12].mxu1 %vm1974_vm9, %v8630_v7  ;;  %v10256_v7 = vld [vmem:[#allocation2 + $0x84] sm:$0xf]  ;;  %11002 = vst [vmem:[#allocation9_spill] sm:$0xff] %v10319_v51  ;;  %v5662_v51 = vld [vmem:[#allocation2 + $0xc0] sm:$0xe] }
 0x2a1   : > { %8105 = vmatprep.mubr.msk.bf16.mxu1 %vm1974_vm9, %v8631_v16  ;;  %v7225_v16 = vrot.slane %v5653_v14, 9  ;;  %v5752_v14 = vrot.slane %v10198_v24, 5  ;;  %v10337_v24 = vsel %vm9883_vm15, %v5744_v4, %v5745_v62  ;;  %v10350_v62 = vld [vmem:[#allocation2 + $0x8c] sm:$0x1]  ;;  %v10352_v4 = vld [vmem:[#allocation2 + $0x94] sm:$0xf] }
 0x2a2   : > { %11005 = vst [vmem:[#allocation12_spill] sm:$0xff] %v10337_v24  ;;  %v5663_v24 = vld [vmem:[#allocation2 + $0xcc] sm:$0xe] }
 0x2a3   : > { %v10329_v23 = vsel %vm9883_vm15, %v7225_v16, %v5749_v35  ;;  %v7227_v16 = vrot.slane %v5655_v30, 9 }
 0x2a4   : > { %11004 = vst [vmem:[#allocation11_spill] sm:$0xff] %v10329_v23  ;;  %v5805_v23 = vrot.slane %v10391_v48, 5 }
 0x2a8   : > { %8106 = vmatmul.mubr.msk.bf16.gmra.mrb[16].mxu1 %vm1974_vm9, %v8632_v15  ;;  %v7223_v15 = vrot.slane %v5651_v44, 9  ;;  %v10308_v44 = vsel %vm9883_vm15, %v5730_v13, %v5731_v33  ;;  %v7226_v13 = vrot.slane %v5654_v40, 9 }
 0x2a9   : > { %8109 = vmatprep.mubr.msk.bf16.mxu1 %vm1974_vm9, %v8633_v55  ;;  %v5738_v55 = vrot.slane %v10172_v11, 5  ;;  %v5770_v11 = vrot.slane %v10238_v60, 5 }
 0x2aa   : > { %v10312_v25 = vsel %vm9883_vm15, %v7223_v15, %v5735_v37  ;;  %v5751_v15 = vrot.slane %v5749_v35, 4  ;;  %v5657_v35 = vld [vmem:[#allocation2 + $0x84] sm:$0xe]  ;;  %v5766_v37 = vrot.slane %v10215_v1, 5  ;;  %v5658_v1 = vld [vmem:[#allocation2 + $0x90] sm:$0xe] }
 0x2ab   : > { %v10325_v33 = vsel %vm9883_vm15, %v5737_v17, %v5738_v55  ;;  %v5759_v55 = vrot.slane %v10210_v45, 5  ;;  %v5763_v17 = vrot.slane %v10208_v52, 5  ;;  %v7229_v32 = vrot.slane %v5657_v35, 9  ;;  %v10389_v35 = vld [vmem:[#allocation2 + $0xa4] sm:$0x1]  ;;  %v11032_v63 = vld [vmem:[#allocation11_spill] sm:$0xff] }
 0x2ac   : > { %11003 = vst [vmem:[#allocation10_spill] sm:$0xff] %v10325_v33  ;;  %v10460_v33 = vld [vmem:[#allocation2 + $0xd0] sm:$0xf] }
 0x2ad   : > { %v10365_v52 = vsel %vm9883_vm15, %v7227_v16, %v5763_v17  ;;  %v5765_v30 = vrot.slane %v5763_v17, 4  ;;  %v10377_v16 = vld [vmem:[#allocation2 + $0xa0] sm:$0xf]  ;;  %v5659_v17 = vld [vmem:[#allocation2 + $0x9c] sm:$0xe] }
 0x2ae   : > { %11008 = vst [vmem:[#allocation15_spill] sm:$0xff] %v10365_v52  ;;  %v5794_v52 = vrot.slane %v10389_v35, 5 }
 0x2af   : > { %v10383_v60 = vsel %vm9883_vm15, %v5765_v30, %v5766_v37  ;;  %v5780_v37 = vrot.slane %v10350_v62, 5  ;;  %v10402_v30 = vld [vmem:[#allocation2 + $0xac] sm:$0xf] }
 0x2b0   : > { %8110 = vmatmul.mubr.msk.bf16.gmra.mrb[20].mxu1 %vm1974_vm9, %v8634_v29  ;;  %v5756_v29 = vrot.slane %v10187_v53, 5  ;;  %11010 = vst [vmem:[#allocation17_spill] sm:$0xff] %v10383_v60  ;;  %v5203_v60 = vshll.u32 %v10272_v22, 16 }
 0x2b1   : > { %8117 = vmatprep.mubr.msk.bf16.mxu1 %vm1974_vm9, %v10165_v47  ;;  %v10347_v47 = vsel %vm9883_vm15, %v5751_v15, %v5752_v14  ;;  %v10361_v14 = vld [vmem:[#allocation2 + $0x98] sm:$0x1]  ;;  %v7228_v15 = vrot.slane %v5656_v58, 9 }
 0x2b2   : > { %11006 = vst [vmem:[#allocation13_spill] sm:$0xff] %v10347_v47  ;;  %v10358_v45 = vsel %vm9883_vm15, %v7226_v13, %v5756_v29  ;;  %v5758_v40 = vrot.slane %v5756_v29, 4  ;;  %v5773_v13 = vrot.slane %v10252_v31, 5  ;;  %v5777_v29 = vrot.slane %v10341_v21, 5  ;;  %v10426_v47 = vld [vmem:[#allocation2 + $0xbc] sm:$0x1] }
 0x2b3   : > { %11007 = vst [vmem:[#allocation14_spill] sm:$0xff] %v10358_v45  ;;  %v5787_v26 = vrot.slane %v10361_v14, 5  ;;  %v5661_v45 = vld [vmem:[#allocation2 + $0xb4] sm:$0xe] }
 0x2b4   : > { %v10370_v53 = vsel %vm9883_vm15, %v5758_v40, %v5759_v55  ;;  %v10387_v55 = vsel %vm9883_vm15, %v7228_v15, %v5770_v11  ;;  %v5772_v40 = vrot.slane %v5770_v11, 4  ;;  %v10397_v58 = vsel %vm9883_vm15, %v7229_v32, %v5777_v29  ;;  %v10413_v32 = vld [vmem:[#allocation2 + $0xb0] sm:$0x1] }
 0x2b5   : > { %11009 = vst [vmem:[#allocation16_spill] sm:$0xff] %v10370_v53  ;;  %11011 = vst [vmem:[#allocation18_spill] sm:$0xff] %v10387_v55  ;;  %v5779_v61 = vrot.slane %v5777_v29, 4  ;;  %v7230_v15 = vrot.slane %v5658_v1, 9  ;;  %v5784_v53 = vrot.slane %v10352_v4, 5  ;;  %v5791_v1 = vrot.slane %v10377_v16, 5 }
 0x2b6   : > { %11012 = vst [vmem:[#allocation19_spill] sm:$0xff] %v10397_v58  ;;  %v10406_v11 = vsel %vm9883_vm15, %v5772_v40, %v5773_v13  ;;  %v7231_v13 = vrot.slane %v5659_v17, 9  ;;  %v5660_v40 = vld [vmem:[#allocation2 + $0xa8] sm:$0xe]  ;;  %v5801_v55 = vrot.slane %v10413_v32, 5 }
 0x2b7   : > { %11013 = vst [vmem:[#allocation20_spill] sm:$0xff] %v10406_v11  ;;  %v10419_v29 = vsel %vm9883_vm15, %v5779_v61, %v5780_v37  ;;  %v10432_v61 = vsel %vm9883_vm15, %v7230_v15, %v5784_v53  ;;  %v5793_v37 = vrot.slane %v5791_v1, 4  ;;  %v5798_v11 = vrot.slane %v10402_v30, 5 }
 0x2b8   : > { %8118 = vmatmul.mubr.msk.bf16.vlgmr.msra.gmra.mrb[24].mxu1 %vm1974_vm9, %v10170_v8  ;;  %11014 = vst [vmem:[#allocation21_spill] sm:$0xff] %v10419_v29  ;;  %v10428_v8 = vld [vmem:[#allocation2 + $0xc4] sm:$0xf]  ;;  %v10436_v17 = vsel %vm9883_vm15, %v7231_v13, %v5791_v1  ;;  %v7232_v58 = vrot.slane %v5660_v40, 9  ;;  %v7233_v1 = vrot.slane %v5661_v45, 9 }
 0x2b9   : > { %8150 = vmatpush3.bf16.msra.mxu1 %v10120_v42  ;;  %8121 = vmatprep.mubr.msk.bf16.mxu1 %vm1974_vm9, %v10205_v39  ;;  %v5786_v39 = vrot.slane %v5784_v53, 4  ;;  %v10439_v42 = vld [vmem:[#allocation2 + $0xc8] sm:$0x1]  ;;  %v10451_v15 = vsel %vm9883_vm15, %v5793_v37, %v5794_v52  ;;  %v5800_v13 = vrot.slane %v5798_v11, 4  ;;  %v5812_v37 = vrot.slane %v10428_v8, 5 }
 0x2ba   : > { %8151 = vmatprep.subr.bf16.mxu1 %v8636_v10  ;;  %11015 = vst [vmem:[#allocation22_spill] sm:$0xff] %v10451_v15  ;;  %v10457_v40 = vsel %vm9883_vm15, %v7232_v58, %v5798_v11  ;;  %v10468_v45 = vsel %vm9883_vm15, %v7233_v1, %v5805_v23  ;;  %v10474_v58 = vld [vmem:[#allocation2 + $0xd4] sm:$0x1]  ;;  %v7234_v53 = vrot.slane %v5662_v51, 9  ;;  %v11018_v11 = vor.u32 %v10246_v28, %v10244_v49 }
 0x2bb   : > { %v10443_v29 = vsel %vm9883_vm15, %v5786_v39, %v5787_v26  ;;  %v5807_v39 = vrot.slane %v5805_v23, 4  ;;  %v10464_v52 = vsel %vm9883_vm15, %v5800_v13, %v5801_v55  ;;  %v5815_v26 = vrot.slane %v10439_v42, 5 }
 0x2bc   : > { %11016 = vst [vmem:[#allocation23_spill] sm:$0xff] %v10464_v52  ;;  %v7235_v13 = vrot.slane %v5663_v24, 9  ;;  %v5819_v23 = vrot.slane %v10460_v33, 5  ;;  %v5822_v15 = vrot.slane %v10474_v58, 5  ;;  %v5145_v52 = vrot.slane %v11018_v11, 4 }
 0x2bd   : > { %8152 = vmatpush3.bf16.msra.mxu1 %v8636_v10  ;;  %v5808_v10 = vrot.slane %v10426_v47, 5  ;;  %v11019_v51 = vshrl.u32 %v10256_v7, 16  ;;  %v5185_v11 = vshll.u32 %v10341_v21, 16 }
 0x2be   : > { %v10495_v24 = vsel %vm9883_vm15, %v7235_v13, %v5819_v23 }
 0x2bf   : > { %v10480_v55 = vsel %vm9883_vm15, %v5807_v39, %v5808_v10  ;;  %v5158_v39 = vor.u32 %v10286_v18, %v10281_v46  ;;  %v5821_v10 = vrot.slane %v5819_v23, 4  ;;  %v5178_v1 = vrot.slane %v11019_v51, 4 }
 0x2c0   : > { %8122 = vmatmul.mubr.msk.bf16.gmra.mrb[28].mxu1 %vm1974_vm9, %v10248_v59  ;;  %11017 = vst [vmem:[#allocation24_spill] sm:$0xff] %v10480_v55  ;;  %v5814_v59 = vrot.slane %v5812_v37, 4  ;;  %v10503_v55 = vsel %vm9883_vm15, %v7234_v53, %v5812_v37  ;;  %v11020_v46 = vshll.u32 %v10256_v7, 16  ;;  %v5189_v23 = vshrl.u32 %v10341_v21, 16 }
 0x2c1   : > { %8125 = vmatprep.mubr.msk.bf16.mxu1 %vm1974_vm9, %v10250_v12  ;;  %v5168_v12 = vor.u32 %v10292_v38, %v10290_v36  ;;  %v10516_v38 = vsel %vm9883_vm15, %v5821_v10, %v5822_v15  ;;  %v11021_v53 = vshrl.u32 %v10272_v22, 16  ;;  %v5205_v51 = vrot.slane %v5203_v60, 5  ;;  %v4944_v10 = vld [vmem:[#allocation2 + $0x9c] sm:$0xf] }
 0x2c2   : > { %v10507_v28 = vsel %vm9883_vm15, %v5814_v59, %v5815_v26  ;;  %v5181_v18 = vrot.slane %v11020_v46, 5  ;;  %v7251_v26 = vcombine.low %v10495_v24, %v10516_v38  ;;  %v11022_v7 = vsel %vm9319_vm12, %v10242_v41, %v10229_v19 }
 0x2c3   : > { %v7250_v13 = vcombine.low %v10503_v55, %v10507_v28  ;;  %v5202_v37 = vrot.slane %v11021_v53, 4  ;;  %v11023_v15 = vsel %vm9319_vm12, %v10233_v56, %v10203_v3  ;;  %v5126_v22 = vsel %vm9319_vm12, %v10275_v2, %v10270_v0 }
 0x2c4   : > { %v7191_v59 = vcombine.low %v11023_v15, %v11022_v7  ;;  %v5209_v21 = vshll.u32 %v10352_v4, 16  ;;  %v5213_v60 = vshrl.u32 %v10352_v4, 16  ;;  %v11024_v19 = vsel %vm9319_vm12, %v10235_v20, %v10213_v27  ;;  %v4947_v27 = vld [vmem:[#allocation2 + $0xa8] sm:$0xf] }
 0x2c5   : > { %v7192_v41 = vcombine.low %v11024_v19, %v5126_v22  ;;  %v5140_v3 = vsel %vm9319_vm12, %v10277_v43, %v10244_v49  ;;  %v5150_v56 = vsel %vm9319_vm12, %v5145_v52, %v10279_v34  ;;  %v11025_v0 = vshll.u32 %v10252_v31, 16 }
 0x2c6   : > { %v5159_v4 = vrot.slane %v5158_v39, 4  ;;  %v5169_v46 = vrot.slane %v5168_v12, 4  ;;  %v5182_v53 = vor.u32 %v5181_v18, %v5178_v1  ;;  %v5187_v7 = vrot.slane %v5185_v11, 5 }
 0x2c7   : > { %v5173_v2 = vrot.slane %v11025_v0, 5  ;;  %v5191_v20 = vrot.slane %v5189_v23, 4  ;;  %v5206_v15 = vor.u32 %v5205_v51, %v5202_v37  ;;  %v5224_v22 = vshrl.u32 %v4944_v10, 16 }
 0x2c8   : > { %8126 = vmatmul.mubr.msk.bf16.gmra.mrb[0].mxu1 %vm1974_vm9, %v7191_v59  ;;  %v5227_v49 = vshll.u32 %v4944_v10, 16  ;;  %v5211_v43 = vrot.slane %v5209_v21, 5  ;;  %v5215_v19 = vrot.slane %v5213_v60, 4  ;;  %v5233_v34 = vshll.u32 %v10377_v16, 16 }
 0x2c9   : > { %8129 = vmatprep.mubr.msk.bf16.mxu1 %vm1974_vm9, %v7192_v41  ;;  %v5237_v31 = vshrl.u32 %v10377_v16, 16  ;;  %v7193_v52 = vcombine.low %v5140_v3, %v5150_v56  ;;  %v5195_v59 = vshll.u32 %v10350_v62, 16  ;;  %v5248_v39 = vshrl.u32 %v4947_v27, 16 }
 0x2ca   : > { %v5251_v12 = vshll.u32 %v4947_v27, 16  ;;  %v5164_v1 = vsel %vm9319_vm12, %v5159_v4, %v10290_v36  ;;  %v5174_v18 = vsel %vm9319_vm12, %v5169_v46, %v5173_v2  ;;  %v5183_v11 = vrot.slane %v5182_v53, 4 }
 0x2cb   : > { %v5219_v23 = vshll.u32 %v10361_v14, 16  ;;  %v5192_v37 = vor.u32 %v5191_v20, %v5187_v7  ;;  %v5207_v51 = vrot.slane %v5206_v15, 4  ;;  %v5226_v21 = vrot.slane %v5224_v22, 4  ;;  %v4950_v14 = vld [vmem:[#allocation2 + $0xb4] sm:$0xf] }
 0x2cc   : > { %v5229_v60 = vrot.slane %v5227_v49, 5  ;;  %v5216_v16 = vor.u32 %v5215_v19, %v5211_v43  ;;  %v10564_v10 = vrot.slane %v5233_v34, 5  ;;  %v5239_v62 = vrot.slane %v5237_v31, 4  ;;  %v4953_v15 = vld [vmem:[#allocation2 + $0xc0] sm:$0xf] }
 0x2cd   : > { %v5257_v41 = vshll.u32 %v10402_v30, 16  ;;  %v7194_v3 = vcombine.low %v5164_v1, %v5174_v18  ;;  %v5250_v56 = vrot.slane %v5248_v39, 4  ;;  %v5253_v0 = vrot.slane %v5251_v12, 5 }
 0x2ce   : > { %v5261_v36 = vshrl.u32 %v10402_v30, 16  ;;  %v5197_v2 = vrot.slane %v5195_v59, 5  ;;  %v5221_v4 = vrot.slane %v5219_v23, 5  ;;  %v5188_v46 = vsel %vm9319_vm12, %v5183_v11, %v5187_v7  ;;  %v4956_v23 = vld [vmem:[#allocation2 + $0xcc] sm:$0xf] }
 0x2cf   : > { %v5193_v53 = vrot.slane %v5192_v37, 4  ;;  %v5230_v27 = vor.u32 %v5229_v60, %v5226_v21  ;;  %v5243_v20 = vshll.u32 %v10389_v35, 16  ;;  %v5212_v22 = vsel %vm9319_vm12, %v5207_v51, %v5211_v43 }
 0x2d0   : > { %8130 = vmatmul.mubr.msk.bf16.gmra.mrb[4].mxu1 %vm1974_vm9, %v7193_v52  ;;  %v5217_v49 = vrot.slane %v5216_v16, 4  ;;  %v5240_v30 = vor.u32 %v5239_v62, %v10564_v10  ;;  %v5259_v19 = vrot.slane %v5257_v41, 5  ;;  %v5254_v34 = vor.u32 %v5253_v0, %v5250_v56  ;;  %v8637_v16 = vld [vmem:[%s10952_s5] sm:$0xff]  }
 0x2d1   : > { %8133 = vmatprep.mubr.msk.bf16.mxu1 %vm1974_vm9, %v7194_v3  ;;  %v5263_v31 = vrot.slane %v5261_v36, 4  ;;  %v5272_v52 = vshrl.u32 %v4950_v14, 16  ;;  %v5275_v59 = vshll.u32 %v4950_v14, 16  ;;  %v5198_v39 = vsel %vm9319_vm12, %v5193_v53, %v5197_v2  ;;  %8185 = vmatprep.subr.bf16.mxu0 %v8637_v16 }
 0x2d2   : > { %v5222_v7 = vsel %vm9319_vm12, %v5217_v49, %v5221_v4  ;;  %v5296_v12 = vshrl.u32 %v4953_v15, 16  ;;  %v5299_v35 = vshll.u32 %v4953_v15, 16  ;;  %v7195_v1 = vcombine.low %v5188_v46, %v5198_v39  ;;  %8186 = vmatpush3.bf16.msra.mxu0 %v8637_v16 }
 0x2d3   : > { %v7196_v18 = vcombine.low %v5212_v22, %v5222_v7  ;;  %v5231_v11 = vrot.slane %v5230_v27, 4  ;;  %v5245_v43 = vrot.slane %v5243_v20, 5  ;;  %v5241_v37 = vrot.slane %v5240_v30, 4 }
 0x2d4   : > { %v5267_v51 = vshll.u32 %v10413_v32, 16  ;;  %v5281_v21 = vshll.u32 %v10391_v48, 16  ;;  %v5285_v60 = vshrl.u32 %v10391_v48, 16  ;;  %v5255_v62 = vrot.slane %v5254_v34, 4 }
 0x2d5   : > { %v5264_v41 = vor.u32 %v5263_v31, %v5259_v19  ;;  %v5274_v3 = vrot.slane %v5272_v52, 4  ;;  %v5277_v56 = vrot.slane %v5275_v59, 5  ;;  %v5298_v0 = vrot.slane %v5296_v12, 4 }
 0x2d6   : > { %v5301_v36 = vrot.slane %v5299_v35, 5  ;;  %v5305_v2 = vshll.u32 %v10428_v8, 16  ;;  %v5309_v32 = vshrl.u32 %v10428_v8, 16  ;;  %v5320_v48 = vshrl.u32 %v4956_v23, 16 }
 0x2d7   : > { %v5323_v4 = vshll.u32 %v4956_v23, 16  ;;  %v5329_v14 = vshll.u32 %v10460_v33, 16  ;;  %v5333_v46 = vshrl.u32 %v10460_v33, 16  ;;  %v5236_v53 = vsel %vm9319_vm12, %v5231_v11, %v10564_v10 }
 0x2d8   : > { %8134 = vmatmul.mubr.msk.bf16.gmra.mrb[8].mxu1 %vm1974_vm9, %v7195_v1  ;;  %v5246_v27 = vsel %vm9319_vm12, %v5241_v37, %v5245_v43  ;;  %v5269_v20 = vrot.slane %v5267_v51, 5  ;;  %v5283_v15 = vrot.slane %v5281_v21, 5  ;;  %v5260_v8 = vsel %vm9319_vm12, %v5255_v62, %v5259_v19 }
 0x2d9   : > { %8137 = vmatprep.mubr.msk.bf16.mxu1 %vm1974_vm9, %v7196_v18  ;;  %v5278_v22 = vor.u32 %v5277_v56, %v5274_v3  ;;  %v5287_v49 = vrot.slane %v5285_v60, 4  ;;  %v5291_v30 = vshll.u32 %v10426_v47, 16  ;;  %v5265_v34 = vrot.slane %v5264_v41, 4 }
 0x2da   : > { %v5302_v31 = vor.u32 %v5301_v36, %v5298_v0  ;;  %v5307_v33 = vrot.slane %v5305_v2, 5  ;;  %v5311_v52 = vrot.slane %v5309_v32, 4  ;;  %v5322_v59 = vrot.slane %v5320_v48, 4 }
 0x2db   : > { %v5325_v39 = vrot.slane %v5323_v4, 5  ;;  %v5331_v7 = vrot.slane %v5329_v14, 5  ;;  %v5335_v10 = vrot.slane %v5333_v46, 4  ;;  %v7197_v12 = vcombine.low %v5236_v53, %v5246_v27  ;;  %v5648_v53 = vld [vmem:[#allocation2 + $0x18] sm:$0xe] }
 0x2dc   : > { %v5270_v35 = vsel %vm9319_vm12, %v5265_v34, %v5269_v20  ;;  %v5315_v1 = vshll.u32 %v10439_v42, 16  ;;  %v5279_v19 = vrot.slane %v5278_v22, 4  ;;  %v5288_v11 = vor.u32 %v5287_v49, %v5283_v15 }
 0x2dd   : > { %v7198_v18 = vcombine.low %v5260_v8, %v5270_v35  ;;  %v5303_v47 = vrot.slane %v5302_v31, 4  ;;  %v5312_v43 = vor.u32 %v5311_v52, %v5307_v33  ;;  %v5293_v23 = vrot.slane %v5291_v30, 5  ;;  %v5649_v30 = vld [vmem:[#allocation2 + $0x24] sm:$0xe] }
 0x2de   : > { %v5326_v37 = vor.u32 %v5325_v39, %v5322_v59  ;;  %v5336_v51 = vor.u32 %v5335_v10, %v5331_v7  ;;  %v5339_v21 = vshll.u32 %v10474_v58, 16  ;;  %v5317_v60 = vrot.slane %v5315_v1, 5  ;;  %v11029_v39 = vld [vmem:[#allocation9_spill] sm:$0xff]  ;;  %v11035_v1 = vld [vmem:[#allocation14_spill] sm:$0xff] }
 0x2df   : > { %v5284_v16 = vsel %vm9319_vm12, %v5279_v19, %v5283_v15  ;;  %v5289_v62 = vrot.slane %v5288_v11, 4  ;;  %v5308_v42 = vsel %vm9319_vm12, %v5303_v47, %v5307_v33  ;;  %v5313_v41 = vrot.slane %v5312_v43, 4  ;;  %v11039_v19 = vld [vmem:[#allocation17_spill] sm:$0xff]  ;;  %v11041_v11 = vld [vmem:[#allocation18_spill] sm:$0xff]  ;;  %v11042_v47 = vld [vmem:[#allocation20_spill] sm:$0xff] }
 0x2e0   : > { %8138 = vmatmul.mubr.msk.bf16.gmra.mrb[12].mxu1 %vm1974_vm9, %v7197_v12  ;;  %v5327_v56 = vrot.slane %v5326_v37, 4  ;;  %v5337_v0 = vrot.slane %v5336_v51, 4  ;;  %v5341_v36 = vrot.slane %v5339_v21, 5  ;;  %v5714_v58 = vrot.slane %v10125_v5, 5  ;;  %v11033_v12 = vld [vmem:[#allocation13_spill] sm:$0xff] }
 0x2e1   : > { %8141 = vmatprep.mubr.msk.bf16.mxu1 %vm1974_vm9, %v7198_v18  ;;  %v5294_v3 = vsel %vm9319_vm12, %v5289_v62, %v5293_v23  ;;  %v5318_v32 = vsel %vm9319_vm12, %v5313_v41, %v5317_v60  ;;  %v5717_v4 = vrot.slane %v10134_v50, 5  ;;  %v7220_v15 = vrot.slane %v5648_v53, 9  ;;  %v11036_v18 = vld [vmem:[#allocation16_spill] sm:$0xff]  ;;  %v11044_v23 = vld [vmem:[#allocation19_spill] sm:$0xff]  ;;  %v11045_v37 = vld [vmem:[#allocation21_spill] sm:$0xff] }
 0x2e2   : > { %v7199_v2 = vcombine.low %v5284_v16, %v5294_v3  ;;  %v7200_v48 = vcombine.low %v5308_v42, %v5318_v32  ;;  %v5332_v14 = vsel %vm9319_vm12, %v5327_v56, %v5331_v7  ;;  %v5342_v46 = vsel %vm9319_vm12, %v5337_v0, %v5341_v36  ;;  %v11030_v7 = vld [vmem:[#allocation12_spill] sm:$0xff]  ;;  %v11048_v41 = vld [vmem:[#allocation22_spill] sm:$0xff]  ;;  %v11050_v56 = vld [vmem:[#allocation23_spill] sm:$0xff] }
 0x2e3   : > { %v5716_v27 = vrot.slane %v5714_v58, 4  ;;  %v7201_v20 = vcombine.low %v5332_v14, %v5342_v46  ;;  %v5721_v8 = vrot.slane %v10128_v9, 5  ;;  %v5715_v50 = vsel %vm9883_vm15, %v7220_v15, %v5714_v58  ;;  %v11052_v32 = vld [vmem:[#allocation24_spill] sm:$0xff] }
 0x2e4   : > { %v5724_v49 = vrot.slane %v10137_v6, 5  ;;  %v7221_v34 = vrot.slane %v5649_v30, 9  ;;  %v11026_v52 = vcombine.low %v10300_v57, %v10308_v44  ;;  %v11027_v6 = vld [vmem:[#allocation10_spill] sm:$0xff]  ;;  %v11031_v10 = vcombine.low %v11029_v39, %v11030_v7  ;;  %v11038_v44 = vld [vmem:[#allocation15_spill] sm:$0xff] }
 0x2e5   : > { %v5718_v5 = vsel %vm9883_vm15, %v5716_v27, %v5717_v4  ;;  %v5723_v54 = vrot.slane %v5721_v8, 4  ;;  %v11028_v59 = vcombine.low %v10312_v25, %v11027_v6  ;;  %v11034_v35 = vcombine.low %v11032_v63, %v11033_v12 }
 0x2e6   : > { %v7236_v22 = vcombine.low %v5715_v50, %v5718_v5  ;;  %v5722_v33 = vsel %vm9883_vm15, %v7221_v34, %v5721_v8  ;;  %v11037_v57 = vcombine.low %v11035_v1, %v11036_v18  ;;  %v11040_v25 = vcombine.low %v11038_v44, %v11039_v19 }
 0x2e7   : > { %v5725_v31 = vsel %vm9883_vm15, %v5723_v54, %v5724_v49  ;;  %v11043_v43 = vcombine.low %v11041_v11, %v11042_v47  ;;  %v11046_v51 = vcombine.low %v11044_v23, %v11045_v37  ;;  %v11047_v21 = vcombine.low %v10432_v61, %v10443_v29  ;;  %v8638_v54 = vld [vmem:[%s10952_s5 + $0x8] sm:$0xff]  }
 0x2e8   : > { %8142 = vmatmul.mubr.msk.bf16.gmra.mrb[16].mxu1 %vm1974_vm9, %v7199_v2  ;;  %v7237_v9 = vcombine.low %v5722_v33, %v5725_v31  ;;  %v11049_v3 = vcombine.low %v10436_v17, %v11048_v41  ;;  %v11051_v0 = vcombine.low %v10457_v40, %v11050_v56  ;;  %v11053_v58 = vcombine.low %v10468_v45, %v11052_v32  ;;  %v10745_v33 = vld [vmem:[%s10951_s4] ss:$0 sm:$0xff] }
 0x2e9   : > { %8145 = vmatprep.mubr.msk.bf16.mxu1 %vm1974_vm9, %v7200_v48  ;;  %8187 = vmatprep.subr.bf16.mxu0 %v8638_v54 }
 0x2ea   : > { %8188 = vmatpush3.bf16.msra.mxu0 %v8638_v54 }
 0x2f0   : > { %8146 = vmatmul.mubr.msk.bf16.gmra.mrb[20].mxu1 %vm1974_vm9, %v7201_v20 }
 0x2f1   : > { %8153 = vmatprep.mubr.msk.bf16.mxu1 %vm1974_vm9, %v7236_v22 }
 0x2f8   : > { %8154 = vmatmul.mubr.msk.bf16.vlgmr.msra.gmra.mrb[24].mxu1 %vm1974_vm9, %v7237_v9 }
 0x2f9   : > { %8157 = vmatprep.mubr.msk.bf16.mxu1 %vm1974_vm9, %v11026_v52 }
 0x300   : > { %8158 = vmatmul.mubr.msk.bf16.gmra.mrb[28].mxu1 %vm1974_vm9, %v11028_v59 }
 0x301   : > { %8161 = vmatprep.mubr.msk.bf16.mxu1 %vm1974_vm9, %v11031_v10 }
 0x308   : > { %8162 = vmatmul.mubr.msk.bf16.gmra.mrb[0].mxu1 %vm1974_vm9, %v11034_v35 }
 0x309   : > { %8165 = vmatprep.mubr.msk.bf16.mxu1 %vm1974_vm9, %v11037_v57 }
 0x310   : > { %8166 = vmatmul.mubr.msk.bf16.gmra.mrb[4].mxu1 %vm1974_vm9, %v11040_v25 }
 0x311   : > { %8169 = vmatprep.mubr.msk.bf16.mxu1 %vm1974_vm9, %v11043_v43 }
 0x318   : > { %8170 = vmatmul.mubr.msk.bf16.gmra.mrb[8].mxu1 %vm1974_vm9, %v11046_v51 }
 0x319   : > { %8173 = vmatprep.mubr.msk.bf16.mxu1 %vm1974_vm9, %v11047_v21 }
 0x31a   : > { %v10671_v60 = vpop.f32.mrb[44].mxu0 }
 0x31b   : > { %v10673_v16 = vpop.f32.mrb[45].mxu0 }
 0x31c   : > { %v10675_v62 = vpop.f32.mrb[46].mxu0 }
 0x31d   : > { %v10677_v42 = vpop.f32.mrb[47].mxu0 }
 0x320   : > { %8174 = vmatmul.mubr.msk.bf16.gmra.mrb[12].mxu1 %vm1974_vm9, %v11049_v3 }
 0x321   : > { %8177 = vmatprep.mubr.msk.bf16.mxu1 %vm1974_vm9, %v11051_v0 }
 0x322   : > { %v10687_v29 = vpop.f32.mrb[48].mxu0 }
 0x323   : > { %v10689_v61 = vpop.f32.mrb[49].mxu0 }
 0x324   : > { %v10691_v36 = vpop.f32.mrb[50].mxu0 }
 0x325   : > { %v10693_v2 = vpop.f32.mrb[51].mxu0 }
 0x328   : > { %8178 = vmatmul.mubr.msk.bf16.gmra.mrb[16].mxu1 %vm1974_vm9, %v11053_v58 }
 0x329   : > { %8181 = vmatprep.mubr.msk.bf16.mxu1 %vm1974_vm9, %v7250_v13 }
 0x32a   : > { %v10703_v17 = vpop.f32.mrb[52].mxu0 }
 0x32b   : > { %v10705_v40 = vpop.f32.mrb[53].mxu0 }
 0x32c   : > { %v10707_v48 = vpop.f32.mrb[54].mxu0 }
 0x32d   : > { %v10709_v4 = vpop.f32.mrb[55].mxu0 }
 0x330   : > { %8182 = vmatmul.mubr.msk.bf16.gmra.mrb[20].mxu1 %vm1974_vm9, %v7251_v26 }
 0x332   : > { %v10715_v45 = vpop.f32.mrb[56].mxu0 }
 0x333   : > { %v10717_v14 = vpop.f32.mrb[57].mxu0 }
 0x334   : > { %v10719_v55 = vpop.f32.mrb[58].mxu0 }
 0x335   : > { %v10721_v28 = vpop.f32.mrb[59].mxu0 }
 0x33a   : > { %v10723_v13 = vpop.f32.mrb[60].mxu0 }
 0x33b   : > { %v10725_v46 = vpop.f32.mrb[61].mxu0 }
 0x33c   : > { %v10727_v53 = vpop.f32.mrb[62].mxu0 }
 0x33d   : > { %v10729_v27 = vpop.f32.mrb[63].mxu0 }
 0x342   : > { %v10731_v20 = vpop.f32.mrb[64].mxu0 }
 0x343   : > { %v10733_v24 = vpop.f32.mrb[65].mxu0 }
 0x344   : > { %v10735_v38 = vpop.f32.mrb[66].mxu0 }
 0x345   : > { %v10737_v26 = vpop.f32.mrb[67].mxu0 }
 0x34a   : > { %v7975_v15 = vpop.f32.mrb[36].mxu0 }
 0x34b   : > { %v3164_v5 = vpop.f32.mrb[37].mxu0 }
 0x34c   : > { %v7976_v8 = vpop.f32.mrb[38].mxu0 }
 0x34d   : > { %v3167_v50 = vpop.f32.mrb[39].mxu0 }
 0x352   : > { %v7979_v22 = vpop.f32.mrb[40].mxu0 }
 0x353   : > { %v3180_v49 = vpop.f32.mrb[41].mxu0 }
 0x354   : > { %v7980_v30 = vpop.f32.mrb[42].mxu0 }
 0x355   : > { %v3183_v34 = vpop.f32.mrb[43].mxu0 }
 0x3cb   : > { %v8155_v31 = vpop.f32.mrb[24].mxu1 }
 0x3cc   : > { %v8225_v9 = vadd.f32 %v8155_v31, %v7975_v15  ;;  %v5970_v52 = vpop.f32.mrb[25].mxu1 }
 0x3cd   : > { %v8226_v6 = vadd.f32 %v5970_v52, %v3164_v5  ;;  %v8156_v59 = vpop.f32.mrb[26].mxu1 }
 0x3ce   : > { %v6138_v39 = vadd.f32 %v8225_v9, %v10745_v33  ;;  %v8227_v7 = vadd.f32 %v8156_v59, %v7976_v8  ;;  %v5973_v10 = vpop.f32.mrb[27].mxu1 }
 0x3cf   : > { %v6136_v63 = vadd.f32 %v8226_v6, %v10745_v33  ;;  %v8228_v12 = vadd.f32 %v5973_v10, %v3167_v50 }
 0x3d0   : > { %v6139_v35 = vadd.f32 %v8227_v7, %v10745_v33  ;;  %v6170_v18 = vmax.f32 %v6138_v39, 0.0 }
 0x3d1   : > { %v6137_v1 = vadd.f32 %v8228_v12, %v10745_v33  ;;  %v6168_v44 = vmax.f32 %v6136_v63, 0.0 }
 0x3d2   : > { %v6171_v57 = vmax.f32 %v6139_v35, 0.0 }
 0x3d3   : > { %v6169_v19 = vmax.f32 %v6137_v1, 0.0  ;;  %v8159_v25 = vpop.f32.mrb[28].mxu1 }
 0x3d4   : > { %v6201_v11 = vpack.c.bf16 %v6171_v57, %v6170_v18  ;;  %v8229_v47 = vadd.f32 %v8159_v25, %v7979_v22  ;;  %v5986_v43 = vpop.f32.mrb[29].mxu1 }
 0x3d5   : > { %v6200_v23 = vpack.c.bf16 %v6169_v19, %v6168_v44  ;;  %v8230_v37 = vadd.f32 %v5986_v43, %v3180_v49  ;;  %v8160_v51 = vpop.f32.mrb[30].mxu1 }
 0x3d6   : > { %v6142_v21 = vadd.f32 %v8229_v47, %v10745_v33  ;;  %v8231_v41 = vadd.f32 %v8160_v51, %v7980_v30  ;;  %v5989_v3 = vpop.f32.mrb[31].mxu1 }
 0x3d7   : > { %v6140_v56 = vadd.f32 %v8230_v37, %v10745_v33  ;;  %v8232_v0 = vadd.f32 %v5989_v3, %v3183_v34  ;;  %8189 = vmatprep.mubr.msk.bf16.mxu0 %vm1974_vm9, %v6200_v23 }
 0x3d8   : > { %v6143_v32 = vadd.f32 %v8231_v41, %v10745_v33  ;;  %8190 = vmatmul.mubr.msk.bf16.vlgmr.msra.gmra.mrb[68].mxu0 %vm1974_vm9, %v6201_v11  ;;  %v6174_v15 = vmax.f32 %v6142_v21, 0.0 }
 0x3d9   : > { %v6141_v58 = vadd.f32 %v8232_v0, %v10745_v33  ;;  %v6172_v8 = vmax.f32 %v6140_v56, 0.0 }
 0x3da   : > { %v6175_v5 = vmax.f32 %v6143_v32, 0.0 }
 0x3db   : > { %v6173_v50 = vmax.f32 %v6141_v58, 0.0  ;;  %v8163_v22 = vpop.f32.mrb[0].mxu1 }
 0x3dc   : > { %v6203_v49 = vpack.c.bf16 %v6175_v5, %v6174_v15  ;;  %v8233_v30 = vadd.f32 %v8163_v22, %v10671_v60  ;;  %v6002_v54 = vpop.f32.mrb[1].mxu1 }
 0x3dd   : > { %v6202_v31 = vpack.c.bf16 %v6173_v50, %v6172_v8  ;;  %v8234_v34 = vadd.f32 %v6002_v54, %v10673_v16  ;;  %v8164_v9 = vpop.f32.mrb[2].mxu1 }
 0x3de   : > { %v6146_v52 = vadd.f32 %v8233_v30, %v10745_v33  ;;  %v8235_v6 = vadd.f32 %v8164_v9, %v10675_v62  ;;  %v6005_v59 = vpop.f32.mrb[3].mxu1 }
 0x3df   : > { %v6144_v39 = vadd.f32 %v8234_v34, %v10745_v33  ;;  %v8236_v7 = vadd.f32 %v6005_v59, %v10677_v42  ;;  %8193 = vmatprep.mubr.msk.bf16.mxu0 %vm1974_vm9, %v6202_v31 }
 0x3e0   : > { %v6147_v10 = vadd.f32 %v8235_v6, %v10745_v33  ;;  %8194 = vmatmul.mubr.msk.bf16.gmra.mrb[72].mxu0 %vm1974_vm9, %v6203_v49  ;;  %v6178_v63 = vmax.f32 %v6146_v52, 0.0 }
 0x3e1   : > { %v6145_v60 = vadd.f32 %v8236_v7, %v10745_v33  ;;  %v6176_v12 = vmax.f32 %v6144_v39, 0.0 }
 0x3e2   : > { %v6179_v16 = vmax.f32 %v6147_v10, 0.0 }
 0x3e3   : > { %v6177_v35 = vmax.f32 %v6145_v60, 0.0  ;;  %v8167_v1 = vpop.f32.mrb[4].mxu1 }
 0x3e4   : > { %v6205_v18 = vpack.c.bf16 %v6179_v16, %v6178_v63  ;;  %v8237_v62 = vadd.f32 %v8167_v1, %v10687_v29  ;;  %v6018_v57 = vpop.f32.mrb[5].mxu1 }
 0x3e5   : > { %v6204_v44 = vpack.c.bf16 %v6177_v35, %v6176_v12  ;;  %v8238_v42 = vadd.f32 %v6018_v57, %v10689_v61  ;;  %v8168_v19 = vpop.f32.mrb[6].mxu1 }
 0x3e6   : > { %v6150_v25 = vadd.f32 %v8237_v62, %v10745_v33  ;;  %v8239_v11 = vadd.f32 %v8168_v19, %v10691_v36  ;;  %v6021_v47 = vpop.f32.mrb[7].mxu1 }
 0x3e7   : > { %v6148_v43 = vadd.f32 %v8238_v42, %v10745_v33  ;;  %v8240_v23 = vadd.f32 %v6021_v47, %v10693_v2  ;;  %8197 = vmatprep.mubr.msk.bf16.mxu0 %vm1974_vm9, %v6204_v44 }
 0x3e8   : > { %v6151_v37 = vadd.f32 %v8239_v11, %v10745_v33  ;;  %8198 = vmatmul.mubr.msk.bf16.gmra.mrb[76].mxu0 %vm1974_vm9, %v6205_v18  ;;  %v6182_v51 = vmax.f32 %v6150_v25, 0.0 }
 0x3e9   : > { %v6149_v29 = vadd.f32 %v8240_v23, %v10745_v33  ;;  %v6180_v21 = vmax.f32 %v6148_v43, 0.0 }
 0x3ea   : > { %v6183_v61 = vmax.f32 %v6151_v37, 0.0 }
 0x3eb   : > { %v6181_v41 = vmax.f32 %v6149_v29, 0.0  ;;  %v8171_v3 = vpop.f32.mrb[8].mxu1 }
 0x3ec   : > { %v6207_v56 = vpack.c.bf16 %v6183_v61, %v6182_v51  ;;  %v8241_v36 = vadd.f32 %v8171_v3, %v10703_v17  ;;  %v6034_v0 = vpop.f32.mrb[9].mxu1 }
 0x3ed   : > { %v6206_v32 = vpack.c.bf16 %v6181_v41, %v6180_v21  ;;  %v8242_v2 = vadd.f32 %v6034_v0, %v10705_v40  ;;  %v8172_v58 = vpop.f32.mrb[10].mxu1 }
 0x3ee   : > { %v6154_v15 = vadd.f32 %v8241_v36, %v10745_v33  ;;  %v8243_v5 = vadd.f32 %v8172_v58, %v10707_v48  ;;  %v6037_v8 = vpop.f32.mrb[11].mxu1 }
 0x3ef   : > { %v6152_v50 = vadd.f32 %v8242_v2, %v10745_v33  ;;  %v8244_v22 = vadd.f32 %v6037_v8, %v10709_v4  ;;  %8201 = vmatprep.mubr.msk.bf16.mxu0 %vm1974_vm9, %v6206_v32 }
 0x3f0   : > { %v6155_v49 = vadd.f32 %v8243_v5, %v10745_v33  ;;  %8202 = vmatmul.mubr.msk.bf16.gmra.mrb[80].mxu0 %vm1974_vm9, %v6207_v56  ;;  %v6186_v30 = vmax.f32 %v6154_v15, 0.0 }
 0x3f1   : > { %v6153_v17 = vadd.f32 %v8244_v22, %v10745_v33  ;;  %v6184_v54 = vmax.f32 %v6152_v50, 0.0 }
 0x3f2   : > { %v6187_v40 = vmax.f32 %v6155_v49, 0.0  ;;  %v7573_v49 = vld [vmem:[%s8957_s30 + $0x10] sm:$0xff]  }
 0x3f3   : > { %v6185_v31 = vmax.f32 %v6153_v17, 0.0  ;;  %v8175_v34 = vpop.f32.mrb[12].mxu1  ;;  %v10824_v17 = vld [vmem:[%s10953_s6] ss:$0 sm:$0xff] }
 0x3f4   : > { %v6209_v9 = vpack.c.bf16 %v6187_v40, %v6186_v30  ;;  %v8245_v48 = vadd.f32 %v8175_v34, %v10715_v45  ;;  %v6050_v52 = vpop.f32.mrb[13].mxu1  ;;  %v7435_v34 = vunpack.c.h.bf16 %v7573_v49 }
 0x3f5   : > { %v6208_v6 = vpack.c.bf16 %v6185_v31, %v6184_v54  ;;  %v8246_v4 = vadd.f32 %v6050_v52, %v10717_v14  ;;  %v8176_v59 = vpop.f32.mrb[14].mxu1 }
 0x3f6   : > { %v6158_v39 = vadd.f32 %v8245_v48, %v10745_v33  ;;  %v8247_v7 = vadd.f32 %v8176_v59, %v10719_v55  ;;  %v6053_v10 = vpop.f32.mrb[15].mxu1 }
 0x3f7   : > { %v6156_v60 = vadd.f32 %v8246_v4, %v10745_v33  ;;  %v8248_v63 = vadd.f32 %v6053_v10, %v10721_v28  ;;  %8205 = vmatprep.mubr.msk.bf16.mxu0 %vm1974_vm9, %v6208_v6  ;;  %v7575_v10 = vld [vmem:[%s8957_s30 + $0x20] sm:$0xff]  }
 0x3f8   : > { %v6159_v16 = vadd.f32 %v8247_v7, %v10745_v33  ;;  %8206 = vmatmul.mubr.msk.bf16.gmra.mrb[84].mxu0 %vm1974_vm9, %v6209_v9  ;;  %v6190_v12 = vmax.f32 %v6158_v39, 0.0 }
 0x3f9   : > { %v6157_v45 = vadd.f32 %v8248_v63, %v10745_v33  ;;  %v6188_v35 = vmax.f32 %v6156_v60, 0.0  ;;  %v7574_v63 = vld [vmem:[%s8957_s30 + $0x18] sm:$0xff]  }
 0x3fa   : > { %v6191_v14 = vmax.f32 %v6159_v16, 0.0 }
 0x3fb   : > { %v6189_v1 = vmax.f32 %v6157_v45, 0.0  ;;  %v8179_v18 = vpop.f32.mrb[16].mxu1 }
 0x3fc   : > { %v6211_v62 = vpack.c.bf16 %v6191_v14, %v6190_v12  ;;  %v8249_v55 = vadd.f32 %v8179_v18, %v10723_v13  ;;  %v6066_v57 = vpop.f32.mrb[17].mxu1  ;;  %v7442_v14 = vunpack.c.l.bf16 %v7575_v10 }
 0x3fd   : > { %v6210_v44 = vpack.c.bf16 %v6189_v1, %v6188_v35  ;;  %v8250_v28 = vadd.f32 %v6066_v57, %v10725_v46  ;;  %v8180_v42 = vpop.f32.mrb[18].mxu1 }
 0x3fe   : > { %v6162_v19 = vadd.f32 %v8249_v55, %v10745_v33  ;;  %v8251_v25 = vadd.f32 %v8180_v42, %v10727_v53  ;;  %v6069_v11 = vpop.f32.mrb[19].mxu1 }
 0x3ff   : > { %v6160_v47 = vadd.f32 %v8250_v28, %v10745_v33  ;;  %v8252_v43 = vadd.f32 %v6069_v11, %v10729_v27  ;;  %8209 = vmatprep.mubr.msk.bf16.mxu0 %vm1974_vm9, %v6210_v44  ;;  %v7443_v28 = vunpack.c.h.bf16 %v7575_v10  ;;  %v7439_v11 = vunpack.c.h.bf16 %v7574_v63 }
 0x400   : > { %v6163_v23 = vadd.f32 %v8251_v25, %v10745_v33  ;;  %8210 = vmatmul.mubr.msk.bf16.gmra.mrb[88].mxu0 %vm1974_vm9, %v6211_v62  ;;  %v6194_v37 = vmax.f32 %v6162_v19, 0.0  ;;  %v7438_v62 = vunpack.c.l.bf16 %v7574_v63 }
 0x401   : > { %v6161_v13 = vadd.f32 %v8252_v43, %v10745_v33  ;;  %v6192_v29 = vmax.f32 %v6160_v47, 0.0 }
 0x402   : > { %v6195_v46 = vmax.f32 %v6163_v23, 0.0 }
 0x403   : > { %v6193_v51 = vmax.f32 %v6161_v13, 0.0  ;;  %v8183_v61 = vpop.f32.mrb[20].mxu1 }
 0x404   : > { %v6213_v21 = vpack.c.bf16 %v6195_v46, %v6194_v37  ;;  %v8253_v53 = vadd.f32 %v8183_v61, %v10731_v20  ;;  %v6082_v41 = vpop.f32.mrb[21].mxu1  ;;  %v7577_v46 = vld [vmem:[%s8957_s30 + $0x30] sm:$0xff]  }
 0x405   : > { %v6212_v3 = vpack.c.bf16 %v6193_v51, %v6192_v29  ;;  %v8254_v27 = vadd.f32 %v6082_v41, %v10733_v24  ;;  %v8184_v56 = vpop.f32.mrb[22].mxu1  ;;  %v7576_v51 = vld [vmem:[%s8957_s30 + $0x28] sm:$0xff]   ;;  %v7450_v41 = vunpack.c.l.bf16 %v7577_v46 }
 0x406   : > { %v6166_v36 = vadd.f32 %v8253_v53, %v10745_v33  ;;  %v8255_v0 = vadd.f32 %v8184_v56, %v10735_v38  ;;  %v6085_v32 = vpop.f32.mrb[23].mxu1 }
 0x407   : > { %v6164_v2 = vadd.f32 %v8254_v27, %v10745_v33  ;;  %v8256_v58 = vadd.f32 %v6085_v32, %v10737_v26  ;;  %8213 = vmatprep.mubr.msk.bf16.mxu0 %vm1974_vm9, %v6212_v3  ;;  %v7572_v26 = vld [vmem:[%s8957_s30 + $0x8] sm:$0xff]  }
 0x408   : > { %v6167_v20 = vadd.f32 %v8255_v0, %v10745_v33  ;;  %8214 = vmatmul.mubr.msk.bf16.gmra.mrb[92].mxu0 %vm1974_vm9, %v6213_v21  ;;  %v6198_v15 = vmax.f32 %v6166_v36, 0.0  ;;  %v7430_v40 = vunpack.c.l.bf16 %v7572_v26  ;;  %v7431_v52 = vunpack.c.h.bf16 %v7572_v26  ;;  %v7579_v26 = vld [vmem:[%s8957_s30 + $0x40] sm:$0xff]  }
 0x409   : > { %v6165_v24 = vadd.f32 %v8256_v58, %v10745_v33  ;;  %v6196_v8 = vmax.f32 %v6164_v2, 0.0  ;;  %v7434_v33 = vunpack.c.l.bf16 %v7573_v49  ;;  %v7446_v36 = vunpack.c.l.bf16 %v7576_v51 }
 0x40a   : > { %v6199_v5 = vmax.f32 %v6167_v20, 0.0  ;;  %v7451_v58 = vunpack.c.h.bf16 %v7577_v46 }
 0x40b   : > { %v6197_v50 = vmax.f32 %v6165_v24, 0.0 }
 0x40c   : > { %v6215_v38 = vpack.c.bf16 %v6199_v5, %v6198_v15  ;;  %v7447_v5 = vunpack.c.h.bf16 %v7576_v51 }
 0x40d   : > { %v6214_v22 = vpack.c.bf16 %v6197_v50, %v6196_v8 }
 0x40f   : > { %8217 = vmatprep.mubr.msk.bf16.mxu0 %vm1974_vm9, %v6214_v22 }
 0x410   : > { %8218 = vmatmul.mubr.msk.bf16.gmra.mrb[96].mxu0 %vm1974_vm9, %v6215_v38 }
 0x4ab   : > { %v8191_v30 = vpop.f32.mrb[68].mxu0 }
 0x4ac   : > { %v6330_v54 = vadd.f32 %v8191_v30, %v10824_v17  ;;  %v6321_v31 = vpop.f32.mrb[69].mxu0  ;;  %v7578_v30 = vld [vmem:[%s8957_s30 + $0x38] sm:$0xff]  }
 0x4ad   : > { %v6322_v9 = vadd.f32 %v10824_v17, %v6321_v31  ;;  %v8192_v48 = vpop.f32.mrb[70].mxu0 }
 0x4ae   : > { %v6520_v6 = vadd.f32 %v7434_v33, %v6330_v54  ;;  %v6333_v4 = vadd.f32 %v8192_v48, %v10824_v17  ;;  %v6324_v59 = vpop.f32.mrb[71].mxu0 }
 0x4af   : > { %v6518_v39 = vadd.f32 %v7430_v40, %v6322_v9  ;;  %v6325_v7 = vadd.f32 %v10824_v17, %v6324_v59 }
 0x4b0   : > { %v6521_v60 = vadd.f32 %v7435_v34, %v6333_v4  ;;  %v6552_v45 = vmax.f32 %v6520_v6, 0.0  ;;  %v7458_v34 = vunpack.c.l.bf16 %v7579_v26  ;;  %v7454_v6 = vunpack.c.l.bf16 %v7578_v30 }
 0x4b1   : > { %v6519_v16 = vadd.f32 %v7431_v52, %v6325_v7  ;;  %v6550_v35 = vmax.f32 %v6518_v39, 0.0  ;;  %v7459_v7 = vunpack.c.h.bf16 %v7579_v26 }
 0x4b2   : > { %v6553_v12 = vmax.f32 %v6521_v60, 0.0 }
 0x4b3   : > { %v6551_v1 = vmax.f32 %v6519_v16, 0.0  ;;  %v8195_v18 = vpop.f32.mrb[72].mxu0  ;;  %v7455_v16 = vunpack.c.h.bf16 %v7578_v30 }
 0x4b4   : > { %v7500_v55 = vpack.c.bf16 %v6553_v12, %v6552_v45  ;;  %v6346_v57 = vadd.f32 %v8195_v18, %v10824_v17  ;;  %v6337_v44 = vpop.f32.mrb[73].mxu0  ;;  %v7581_v18 = vld [vmem:[%s8957_s30 + $0x50] sm:$0xff]  }
 0x4b5   : > { %v7495_v42 = vpack.c.bf16 %v6551_v1, %v6550_v35  ;;  %v6338_v19 = vadd.f32 %v10824_v17, %v6337_v44  ;;  %v8196_v25 = vpop.f32.mrb[74].mxu0 }
 0x4b6   : > { %7588 = vst [vmem:[%s10835_s19 + $0x8] sm:$0xff] %v7500_v55   ;;  %v6524_v47 = vadd.f32 %v7442_v14, %v6346_v57  ;;  %v6349_v43 = vadd.f32 %v8196_v25, %v10824_v17  ;;  %v6340_v23 = vpop.f32.mrb[75].mxu0  ;;  %v7580_v55 = vld [vmem:[%s8957_s30 + $0x48] sm:$0xff]  }
 0x4b7   : > { %7496 = vst [vmem:[%s10835_s19] sm:$0xff] %v7495_v42   ;;  %v6522_v13 = vadd.f32 %v7438_v62, %v6338_v19  ;;  %v6341_v37 = vadd.f32 %v10824_v17, %v6340_v23  ;;  %v7466_v42 = vunpack.c.l.bf16 %v7581_v18 }
 0x4b8   : > { %v6525_v29 = vadd.f32 %v7443_v28, %v6349_v43  ;;  %v6556_v21 = vmax.f32 %v6524_v47, 0.0  ;;  %v7462_v47 = vunpack.c.l.bf16 %v7580_v55 }
 0x4b9   : > { %v6523_v61 = vadd.f32 %v7439_v11, %v6341_v37  ;;  %v6554_v3 = vmax.f32 %v6522_v13, 0.0  ;;  %v7467_v37 = vunpack.c.h.bf16 %v7581_v18 }
 0x4ba   : > { %v6557_v53 = vmax.f32 %v6525_v29, 0.0 }
 0x4bb   : > { %v6555_v27 = vmax.f32 %v6523_v61, 0.0  ;;  %v8199_v56 = vpop.f32.mrb[76].mxu0  ;;  %v7463_v61 = vunpack.c.h.bf16 %v7580_v55 }
 0x4bc   : > { %v7510_v0 = vpack.c.bf16 %v6557_v53, %v6556_v21  ;;  %v6362_v32 = vadd.f32 %v8199_v56, %v10824_v17  ;;  %v6353_v2 = vpop.f32.mrb[77].mxu0  ;;  %v7583_v56 = vld [vmem:[%s8957_s30 + $0x60] sm:$0xff]  }
 0x4bd   : > { %v7505_v20 = vpack.c.bf16 %v6555_v27, %v6554_v3  ;;  %v6354_v24 = vadd.f32 %v10824_v17, %v6353_v2  ;;  %v8200_v15 = vpop.f32.mrb[78].mxu0 }
 0x4be   : > { %7590 = vst [vmem:[%s10835_s19 + $0x18] sm:$0xff] %v7510_v0   ;;  %v6528_v8 = vadd.f32 %v7450_v41, %v6362_v32  ;;  %v6365_v50 = vadd.f32 %v8200_v15, %v10824_v17  ;;  %v6356_v38 = vpop.f32.mrb[79].mxu0  ;;  %v7582_v0 = vld [vmem:[%s8957_s30 + $0x58] sm:$0xff]  }
 0x4bf   : > { %7589 = vst [vmem:[%s10835_s19 + $0x10] sm:$0xff] %v7505_v20   ;;  %v6526_v22 = vadd.f32 %v7446_v36, %v6354_v24  ;;  %v6357_v49 = vadd.f32 %v10824_v17, %v6356_v38  ;;  %v7474_v20 = vunpack.c.l.bf16 %v7583_v56 }
 0x4c0   : > { %v6529_v33 = vadd.f32 %v7451_v58, %v6365_v50  ;;  %v6560_v54 = vmax.f32 %v6528_v8, 0.0  ;;  %v7470_v8 = vunpack.c.l.bf16 %v7582_v0 }
 0x4c1   : > { %v6527_v40 = vadd.f32 %v7447_v5, %v6357_v49  ;;  %v6558_v9 = vmax.f32 %v6526_v22, 0.0  ;;  %v7475_v49 = vunpack.c.h.bf16 %v7583_v56 }
 0x4c2   : > { %v6561_v31 = vmax.f32 %v6529_v33, 0.0 }
 0x4c3   : > { %v6559_v48 = vmax.f32 %v6527_v40, 0.0  ;;  %v8203_v52 = vpop.f32.mrb[80].mxu0  ;;  %v7471_v40 = vunpack.c.h.bf16 %v7582_v0 }
 0x4c4   : > { %v7520_v4 = vpack.c.bf16 %v6561_v31, %v6560_v54  ;;  %v6378_v59 = vadd.f32 %v8203_v52, %v10824_v17  ;;  %v6369_v39 = vpop.f32.mrb[81].mxu0  ;;  %v7585_v52 = vld [vmem:[%s8957_s30 + $0x70] sm:$0xff]  }
 0x4c5   : > { %v7515_v10 = vpack.c.bf16 %v6559_v48, %v6558_v9  ;;  %v6370_v60 = vadd.f32 %v10824_v17, %v6369_v39  ;;  %v8204_v63 = vpop.f32.mrb[82].mxu0 }
 0x4c6   : > { %7592 = vst [vmem:[%s10835_s19 + $0x28] sm:$0xff] %v7520_v4   ;;  %v6532_v45 = vadd.f32 %v7458_v34, %v6378_v59  ;;  %v6381_v12 = vadd.f32 %v8204_v63, %v10824_v17  ;;  %v6372_v14 = vpop.f32.mrb[83].mxu0  ;;  %v7584_v4 = vld [vmem:[%s8957_s30 + $0x68] sm:$0xff]  }
 0x4c7   : > { %7591 = vst [vmem:[%s10835_s19 + $0x20] sm:$0xff] %v7515_v10   ;;  %v6530_v35 = vadd.f32 %v7454_v6, %v6370_v60  ;;  %v6373_v1 = vadd.f32 %v10824_v17, %v6372_v14  ;;  %v7482_v10 = vunpack.c.l.bf16 %v7585_v52 }
 0x4c8   : > { %v6533_v62 = vadd.f32 %v7459_v7, %v6381_v12  ;;  %v6564_v44 = vmax.f32 %v6532_v45, 0.0  ;;  %v7478_v45 = vunpack.c.l.bf16 %v7584_v4 }
 0x4c9   : > { %v6531_v57 = vadd.f32 %v7455_v16, %v6373_v1  ;;  %v6562_v19 = vmax.f32 %v6530_v35, 0.0  ;;  %v7483_v1 = vunpack.c.h.bf16 %v7585_v52 }
 0x4ca   : > { %v6565_v28 = vmax.f32 %v6533_v62, 0.0 }
 0x4cb   : > { %v6563_v25 = vmax.f32 %v6531_v57, 0.0  ;;  %v8207_v11 = vpop.f32.mrb[84].mxu0  ;;  %v7479_v57 = vunpack.c.h.bf16 %v7584_v4 }
 0x4cc   : > { %v7530_v43 = vpack.c.bf16 %v6565_v28, %v6564_v44  ;;  %v6394_v23 = vadd.f32 %v8207_v11, %v10824_v17  ;;  %v6385_v13 = vpop.f32.mrb[85].mxu0  ;;  %v7587_v11 = vld [vmem:[%s8957_s30 + $0x80] sm:$0xff]  }
 0x4cd   : > { %v7525_v46 = vpack.c.bf16 %v6563_v25, %v6562_v19  ;;  %v6386_v29 = vadd.f32 %v10824_v17, %v6385_v13  ;;  %v8208_v51 = vpop.f32.mrb[86].mxu0 }
 0x4ce   : > { %7594 = vst [vmem:[%s10835_s19 + $0x38] sm:$0xff] %v7530_v43   ;;  %v6536_v21 = vadd.f32 %v7466_v42, %v6394_v23  ;;  %v6397_v53 = vadd.f32 %v8208_v51, %v10824_v17  ;;  %v6388_v41 = vpop.f32.mrb[87].mxu0  ;;  %v7586_v43 = vld [vmem:[%s8957_s30 + $0x78] sm:$0xff]   ;;  %s7427_s30 = sshll.u32 %s8784_s27, 11  ;;  %s6743_s27 = scalar_lea.sflag [#allocation5], %s8953_s22 }
 0x4cf   : > { %7593 = vst [vmem:[%s10835_s19 + $0x30] sm:$0xff] %v7525_v46   ;;  %v6534_v3 = vadd.f32 %v7462_v47, %v6386_v29  ;;  %v6389_v27 = vadd.f32 %v10824_v17, %v6388_v41  ;;  %v7490_v46 = vunpack.c.l.bf16 %v7587_v11  ;;  %s10894_s18 = scalar_lea.hbm %s10954_s7, %s7427_s30 }
 0x4d0   : > { %v6537_v36 = vadd.f32 %v7467_v37, %v6397_v53  ;;  %v6568_v2 = vmax.f32 %v6536_v21, 0.0  ;;  %v7486_v21 = vunpack.c.l.bf16 %v7586_v43 }
 0x4d1   : > { %v6535_v32 = vadd.f32 %v7463_v61, %v6389_v27  ;;  %v6566_v24 = vmax.f32 %v6534_v3, 0.0  ;;  %v7491_v27 = vunpack.c.h.bf16 %v7587_v11 }
 0x4d2   : > { %v6569_v58 = vmax.f32 %v6537_v36, 0.0 }
 0x4d3   : > { %v6567_v15 = vmax.f32 %v6535_v32, 0.0  ;;  %v8211_v5 = vpop.f32.mrb[88].mxu0  ;;  %v7487_v32 = vunpack.c.h.bf16 %v7586_v43 }
 0x4d4   : > { %v7540_v50 = vpack.c.bf16 %v6569_v58, %v6568_v2  ;;  %v6410_v38 = vadd.f32 %v8211_v5, %v10824_v17  ;;  %v6401_v22 = vpop.f32.mrb[89].mxu0 }
 0x4d5   : > { %v7535_v26 = vpack.c.bf16 %v6567_v15, %v6566_v24  ;;  %v6402_v33 = vadd.f32 %v10824_v17, %v6401_v22  ;;  %v8212_v30 = vpop.f32.mrb[90].mxu0 }
 0x4d6   : > { %7596 = vst [vmem:[%s10835_s19 + $0x48] sm:$0xff] %v7540_v50   ;;  %v6540_v54 = vadd.f32 %v7474_v20, %v6410_v38  ;;  %v6413_v31 = vadd.f32 %v8212_v30, %v10824_v17  ;;  %v6404_v34 = vpop.f32.mrb[91].mxu0 }
 0x4d7   : > { %7595 = vst [vmem:[%s10835_s19 + $0x40] sm:$0xff] %v7535_v26   ;;  %v6538_v9 = vadd.f32 %v7470_v8, %v6402_v33  ;;  %v6405_v48 = vadd.f32 %v10824_v17, %v6404_v34 }
 0x4d8   : > { %v6541_v6 = vadd.f32 %v7475_v49, %v6413_v31  ;;  %v6572_v39 = vmax.f32 %v6540_v54, 0.0 }
 0x4d9   : > { %v6539_v59 = vadd.f32 %v7471_v40, %v6405_v48  ;;  %v6570_v60 = vmax.f32 %v6538_v9, 0.0 }
 0x4da   : > { %v6573_v7 = vmax.f32 %v6541_v6, 0.0 }
 0x4db   : > { %v6571_v63 = vmax.f32 %v6539_v59, 0.0  ;;  %v8215_v16 = vpop.f32.mrb[92].mxu0 }
 0x4dc   : > { %v7550_v12 = vpack.c.bf16 %v6573_v7, %v6572_v39  ;;  %v6426_v14 = vadd.f32 %v8215_v16, %v10824_v17  ;;  %v6417_v35 = vpop.f32.mrb[93].mxu0 }
 0x4dd   : > { %v7545_v18 = vpack.c.bf16 %v6571_v63, %v6570_v60  ;;  %v6418_v62 = vadd.f32 %v10824_v17, %v6417_v35  ;;  %v8216_v55 = vpop.f32.mrb[94].mxu0 }
 0x4de   : > { %7598 = vst [vmem:[%s10835_s19 + $0x58] sm:$0xff] %v7550_v12   ;;  %v6544_v44 = vadd.f32 %v7482_v10, %v6426_v14  ;;  %v6429_v28 = vadd.f32 %v8216_v55, %v10824_v17  ;;  %v6420_v42 = vpop.f32.mrb[95].mxu0 }
 0x4df   : > { %7597 = vst [vmem:[%s10835_s19 + $0x50] sm:$0xff] %v7545_v18   ;;  %v6542_v19 = vadd.f32 %v7478_v45, %v6418_v62  ;;  %v6421_v25 = vadd.f32 %v10824_v17, %v6420_v42 }
 0x4e0   : > { %v6545_v47 = vadd.f32 %v7483_v1, %v6429_v28  ;;  %v6576_v13 = vmax.f32 %v6544_v44, 0.0 }
 0x4e1   : > { %v6543_v23 = vadd.f32 %v7479_v57, %v6421_v25  ;;  %v6574_v29 = vmax.f32 %v6542_v19, 0.0 }
 0x4e2   : > { %v6577_v37 = vmax.f32 %v6545_v47, 0.0 }
 0x4e3   : > { %v6575_v51 = vmax.f32 %v6543_v23, 0.0  ;;  %v8219_v61 = vpop.f32.mrb[96].mxu0 }
 0x4e4   : > { %v7560_v53 = vpack.c.bf16 %v6577_v37, %v6576_v13  ;;  %v6442_v41 = vadd.f32 %v8219_v61, %v10824_v17  ;;  %v6433_v3 = vpop.f32.mrb[97].mxu0 }
 0x4e5   : > { %v7555_v56 = vpack.c.bf16 %v6575_v51, %v6574_v29  ;;  %v6434_v36 = vadd.f32 %v10824_v17, %v6433_v3  ;;  %v8220_v0 = vpop.f32.mrb[98].mxu0 }
 0x4e6   : > { %7600 = vst [vmem:[%s10835_s19 + $0x68] sm:$0xff] %v7560_v53   ;;  %v6548_v2 = vadd.f32 %v7490_v46, %v6442_v41  ;;  %v6445_v58 = vadd.f32 %v8220_v0, %v10824_v17  ;;  %v6436_v20 = vpop.f32.mrb[99].mxu0 }
 0x4e7   : > { %7599 = vst [vmem:[%s10835_s19 + $0x60] sm:$0xff] %v7555_v56   ;;  %v6546_v24 = vadd.f32 %v7486_v21, %v6434_v36  ;;  %v6437_v15 = vadd.f32 %v10824_v17, %v6436_v20 }
 0x4e8   : > { %v6549_v5 = vadd.f32 %v7491_v27, %v6445_v58  ;;  %v6580_v50 = vmax.f32 %v6548_v2, 0.0 }
 0x4e9   : > { %v6547_v8 = vadd.f32 %v7487_v32, %v6437_v15  ;;  %v6578_v22 = vmax.f32 %v6546_v24, 0.0 }
 0x4ea   : > { %v6581_v38 = vmax.f32 %v6549_v5, 0.0 }
 0x4eb   : > { %v6579_v49 = vmax.f32 %v6547_v8, 0.0 }
 0x4ec   : > { %v7570_v26 = vpack.c.bf16 %v6581_v38, %v6580_v50 }
 0x4ed   : > { %v7565_v17 = vpack.c.bf16 %v6579_v49, %v6578_v22 }
 0x4ee   : > { %7602 = vst [vmem:[%s10835_s19 + $0x78] sm:$0xff] %v7570_v26  }
 0x4ef   : > { %7601 = vst [vmem:[%s10835_s19 + $0x70] sm:$0xff] %v7565_v17  }
 0x4f0   : > { %8723 = shalt.err (!%p8720_p4)
}
 0x4f1   : > { %s8724_s10 = scalar_lea.hbm %s10894_s18, 2048  ;;  %s8728_s30 = scalar_lea.hbm %s10954_s7, 4096 }
 0x4f2   : > { %p8725_p6 = scmp.ne.s32.totalorder %s10894_s18, %s8724_s10  ;;  %p8729_p12 = scmp.lt.u32.totalorder %s10894_s18, %s10954_s7 }
 0x4f3   : > { %p8730_p1 = scmp.lt.u32.totalorder %s8728_s30, %s8724_s10  ;;  %p8732_p8 = scmp.lt.u32.totalorder %s8724_s10, %s10894_s18 }
 0x4f4   : > { %p8726_p7 = pnand %p8725_p6, %p11054_p9 }
 0x4f5   : > { %p8731_p3 = por %p8730_p1, %p8729_p12 }
 0x4f6   : > { %p8727_p10 = pneg %p8726_p7 }
 0x4f7   : > { %p8733_p11 = por %p8732_p8, %p8731_p3 }
 0x4f9   : > { %p8734_p0 = pnand %p8733_p11, %p8727_p10 }
 0x4fb   : > { %8737 = shalt.err (!%p8734_p0)
}
 0x4fc   : > { %s8799_s17 = smov 64   ;;  %s8800_s20 = smov 4  }
 0x4fd   : > { %8486 = dma.vmem_to_hbm [thread:$0]  (%p11054_p9), %s10896_s11, 2048, %s10894_s18, %s6743_s27, %s8799_s17, %s8799_s17, %s8800_s20  }
 0x4fe PF: > { %s6773_s23 = sand.u32 1, %s8772_s24   ;;  %p11055_p5 = scmp.ne.s32.totalorder %s10979_s16, 0 }
 0x4ff   : > { %p11056_p13 = scmp.ge.s32.totalorder %s8792_s29, 2  ;;  %s6774_s8 = scalar_lea.sflag [#allocation5], %s6773_s23 }
 0x501   : > { %p8493_p2 = pnand %p11056_p13, %p11055_p5 }
 0x503   : > { %8767 = dma.done.wait (!%p8493_p2), %s6774_s8, 2048  }
 0x504   : > { %8769 = vsyncadd (!%p8493_p2), %s6774_s8, 4294965248  ;;  %s23_s29 = sadd.s32 1, %s8792_s29   ;;  %s11057_s24 = smov %s8776_s25 }
 0x505   : > { %p20_p4 = scmp.ge.s32.totalorder %s23_s29, 4   ;;  %s11058_s25 = smov %s8780_s26 }
 0x506   : > { %s11059_s26 = smov %s8897_s15  ;;  %s11060_s27 = smov %s8788_s28 }
 0x507   : > { %s11061_s28 = smov %s11063_s9  ;;  %22 = sbr.rel (!%p20_p4) target bundleno = 6 (0x6), region = 102 }
 0x50e   :  { %6779 = vsyncpa [#allocation4], 1 }
 0x50f   :  { %6781 = vsyncpa [#allocation4 + $0x1], 1 }
 0x510   :  { %6782 = vsyncpa [#allocation5], 1 }
 0x511   :  { %6784 = vsyncpa [#allocation5 + $0x1], 1 }

</bundles_post_ra>
